<compile_context>
chip_gen: v7x
topology: tpu7x:2x2x1
jax: 0.10.0
libtpu: 0.0.40
codegen_flags: <defaults>
</compile_context>

<pallas_src>
import math

import jax
import jax.numpy as jnp
from jax.experimental import pallas as pl
from jax.experimental.pallas import tpu as pltpu

# ----------------------------- scaled-down GPT-2 config -----------------------------
VOCAB      = 256                 # stand-in for GPT-2's 50257
N_POS      = 32                  # max positions
D_MODEL    = 256                 # stand-in for 768 (chosen so D_HEAD == 128 lanes)
N_HEAD     = 2
D_HEAD     = D_MODEL // N_HEAD   # 128 -> head slices are lane-aligned
N_LAYER    = 2
D_FF       = 4 * D_MODEL
LABEL_SIZE = 8
LABEL_PAD  = 128                 # lane-dense padded label head
LN_EPS     = 1e-5
_GELU_C    = 0.7978845608028654  # sqrt(2/pi), GPT-2 "gelu_new"


# ================================ fused Pallas kernel ================================

def _make_fused_kernel(batch: int, seq: int):
    """Entire GPT_label forward (post-embedding) in one kernel, VMEM-resident."""

    def kernel(x_ref, lab_ref,
               ln1g_ref, ln1b_ref, attnw_ref, attnb_ref, projw_ref, projb_ref,
               ln2g_ref, ln2b_ref, w1_ref, b1_ref, w2_ref, b2_ref,
               lnfg_ref, lnfb_ref, wte_ref, fclw_ref, fclb_ref,
               lab_out_ref, txt_out_ref):
        f32, bf16 = jnp.float32, jnp.bfloat16

        def layer_norm(x, g, b):
            mu = jnp.mean(x, axis=-1, keepdims=True)
            var = jnp.mean((x - mu) ** 2, axis=-1, keepdims=True)
            return (x - mu) * jax.lax.rsqrt(var + LN_EPS) * g + b

        # causal mask, shared by all layers / heads (hoisted out of the loops)
        qi = jax.lax.broadcasted_iota(jnp.int32, (seq, seq), 0)
        ki = jax.lax.broadcasted_iota(jnp.int32, (seq, seq), 1)
        causal = ki <= qi
        neg_inf = jnp.float32(-1e30)
        scale = jnp.float32(1.0 / math.sqrt(D_HEAD))

        x = x_ref[...]                                     # (M, D) f32 residual stream

        for l in range(N_LAYER):
            # ---- attention sub-block: LN1 -> QKV -> causal MHA -> proj -> residual ----
            h = layer_norm(x, ln1g_ref[l], ln1b_ref[l])
            qkv = jnp.dot(h.astype(bf16), attnw_ref[l],
                          preferred_element_type=f32) + attnb_ref[l]      # (M, 3D) f32
            qkv_bf = qkv.astype(bf16)                       # single cast, sliced below
            proj_w = projw_ref[l]                           # (D, D) bf16
            batch_rows = []
            for bi in range(batch):
                r0 = bi * seq
                acc = jnp.zeros((seq, D_MODEL), f32)
                for hh in range(N_HEAD):
                    c = hh * D_HEAD                          # lane-aligned (multiple of 128)
                    q = qkv_bf[r0:r0 + seq, c:c + D_HEAD]
                    k = qkv_bf[r0:r0 + seq, D_MODEL + c:D_MODEL + c + D_HEAD]
                    v = qkv_bf[r0:r0 + seq, 2 * D_MODEL + c:2 * D_MODEL + c + D_HEAD]
                    # scores = q @ k^T (contract feature dim of both; no transpose op)
                    s = jax.lax.dot_general(
                        q, k,
                        dimension_numbers=(((1,), (1,)), ((), ())),
                        preferred_element_type=f32) * scale               # (S, S) f32
                    s = jnp.where(causal, s, neg_inf)
                    s = s - jnp.max(s, axis=-1, keepdims=True)
                    p = jnp.exp(s)
                    p = p * pl.reciprocal(jnp.sum(p, axis=-1, keepdims=True),
                                          approx=True)
                    o = jnp.dot(p.astype(bf16), v,
                                preferred_element_type=f32)               # (S, Dh)
                    # fold the head-concat into the output projection:
                    acc = acc + jnp.dot(o.astype(bf16), proj_w[c:c + D_HEAD, :],
                                        preferred_element_type=f32)       # (S, D)
                batch_rows.append(acc)
            attn_out = jnp.concatenate(batch_rows, axis=0) + projb_ref[l]
            x = x + attn_out                                # fused residual add

            # ---- MLP sub-block: LN2 -> FF -> gelu_new -> FF -> residual ----
            h2 = layer_norm(x, ln2g_ref[l], ln2b_ref[l])
            a = jnp.dot(h2.astype(bf16), w1_ref[l],
                        preferred_element_type=f32) + b1_ref[l]           # (M, F) f32
            a = 0.5 * a * (1.0 + jnp.tanh(_GELU_C * (a + 0.044715 * a * a * a)))
            m = jnp.dot(a.astype(bf16), w2_ref[l],
                        preferred_element_type=f32) + b2_ref[l]
            x = x + m                                       # fused residual add

        # ---- final LN, label fusion, and both heads (lane-dense outputs) ----
        text_hidden = layer_norm(x, lnfg_ref[...], lnfb_ref[...])
        fusion = lab_ref[...] + text_hidden                 # label_hiden + text_hiden
        fusion_bf = fusion.astype(bf16)

        lab_out_ref[...] = (jnp.dot(fusion_bf, fclw_ref[...],
                                    preferred_element_type=f32) + fclb_ref[...])
        # tied lm_head: contract wte's feature dim in-kernel (no wte.T materialized)
        txt_out_ref[...] = jax.lax.dot_general(
            fusion_bf, wte_ref[...],
            dimension_numbers=(((1,), (1,)), ((), ())),
            preferred_element_type=f32)

    return kernel


# ================================ parameters =====================================

def init_params(key):
    ks = iter(jax.random.split(key, 64))
    bf = jnp.bfloat16

    def n(shape, s=0.02):
        return (s * jax.random.normal(next(ks), shape)).astype(jnp.float32)

    L = N_LAYER
    attn_w = jnp.stack([n((D_MODEL, 3 * D_MODEL)) for _ in range(L)])
    proj_w = jnp.stack([n((D_MODEL, D_MODEL)) for _ in range(L)])
    mlp_w1 = jnp.stack([n((D_MODEL, D_FF)) for _ in range(L)])
    mlp_w2 = jnp.stack([n((D_FF, D_MODEL)) for _ in range(L)])

    fc_label_w = n((D_MODEL, LABEL_SIZE))
    fc_label_w_pad = jnp.zeros((D_MODEL, LABEL_PAD), jnp.float32)
    fc_label_w_pad = fc_label_w_pad.at[:, :LABEL_SIZE].set(fc_label_w)

    wte = n((VOCAB, D_MODEL))

    params = {
        "wte": wte,                                 # f32 (embedding gather)
        "wte_bf": wte.astype(bf),                   # bf16 copy for the tied lm_head
        "wpe": n((N_POS, D_MODEL)),
        "embed_label": n((LABEL_SIZE, D_MODEL)),
        "lnf_g": jnp.ones((1, D_MODEL), jnp.float32),
        "lnf_b": jnp.zeros((1, D_MODEL), jnp.float32),
        "fc_label_w_pad": fc_label_w_pad.astype(bf),
        "fc_label_b_pad": jnp.zeros((1, LABEL_PAD), jnp.float32),
        "blocks": {
            "ln1_g": jnp.ones((L, 1, D_MODEL), jnp.float32),
            "ln1_b": jnp.zeros((L, 1, D_MODEL), jnp.float32),
            "attn_w": attn_w.astype(bf),
            "attn_b": jnp.zeros((L, 1, 3 * D_MODEL), jnp.float32),
            "proj_w": proj_w.astype(bf),
            "proj_b": jnp.zeros((L, 1, D_MODEL), jnp.float32),
            "ln2_g": jnp.ones((L, 1, D_MODEL), jnp.float32),
            "ln2_b": jnp.zeros((L, 1, D_MODEL), jnp.float32),
            "mlp_w1": mlp_w1.astype(bf),
            "mlp_b1": jnp.zeros((L, 1, D_FF), jnp.float32),
            "mlp_w2": mlp_w2.astype(bf),
            "mlp_b2": jnp.zeros((L, 1, D_MODEL), jnp.float32),
        },
    }
    return params


# ================================ forward (GPT_label) ============================

@jax.jit
def gpt_label_forward(params, text_ids, label_ids):
    """Mirrors GPT_label.forward(text, label) -> (label_logits, text_logits)."""
    B, S = text_ids.shape
    M = B * S
    blk = params["blocks"]

    # Embedding lookups as XLA gathers (one fused op), not one-hot matmuls.
    tok = jnp.take(params["wte"], text_ids.reshape(-1), axis=0)              # (M, D)
    pos = jnp.take(params["wpe"], jnp.arange(S, dtype=jnp.int32), axis=0)    # (S, D)
    x0 = (tok.reshape(B, S, D_MODEL) + pos[None]).reshape(M, D_MODEL)
    lab = jnp.take(params["embed_label"], label_ids.reshape(-1), axis=0)     # (M, D)

    vmem = pl.BlockSpec(memory_space=pltpu.MemorySpace.VMEM)
    lab_pad, txt = pl.pallas_call(
        _make_fused_kernel(B, S),
        out_shape=(jax.ShapeDtypeStruct((M, LABEL_PAD), jnp.float32),
                   jax.ShapeDtypeStruct((M, VOCAB), jnp.float32)),
        in_specs=[vmem] * 19,
        out_specs=(vmem, vmem),
        compiler_params=pltpu.CompilerParams(vmem_limit_bytes=64 * 1024 * 1024),
    )(x0, lab,
      blk["ln1_g"], blk["ln1_b"], blk["attn_w"], blk["attn_b"],
      blk["proj_w"], blk["proj_b"], blk["ln2_g"], blk["ln2_b"],
      blk["mlp_w1"], blk["mlp_b1"], blk["mlp_w2"], blk["mlp_b2"],
      params["lnf_g"], params["lnf_b"], params["wte_bf"],
      params["fc_label_w_pad"], params["fc_label_b_pad"])

    label_logits = lab_pad[:, :LABEL_SIZE].reshape(B, S, LABEL_SIZE)
    text_logits = txt.reshape(B, S, VOCAB)
    return label_logits, text_logits

# TODO(synk): GPT_label.generate() (autoregressive top-k / multinomial sampling loop)
# is host-side decode logic and is not implemented as a Pallas kernel.


# ================================ main ===========================================

if __name__ == "__main__":
    key = jax.random.PRNGKey(0)
    k_param, k_text, k_label = jax.random.split(key, 3)

    params = init_params(k_param)

    B, S = 2, 8
    text = jax.random.randint(k_text, (B, S), 0, VOCAB, dtype=jnp.int32)
    label = jax.random.randint(k_label, (B, S), 0, LABEL_SIZE, dtype=jnp.int32)

    label_logits, text_logits = gpt_label_forward(params, text, label)
    jax.block_until_ready((label_logits, text_logits))

    assert label_logits.shape == (B, S, LABEL_SIZE)
    assert text_logits.shape == (B, S, VOCAB)
    assert label_logits.dtype == jnp.float32 and text_logits.dtype == jnp.float32
    assert bool(jnp.all(jnp.isfinite(label_logits))) and bool(jnp.all(jnp.isfinite(text_logits)))

    print("KERNEL_OK")
</pallas_src>

<mosaic_0001>
module attributes {stable_mosaic.version = 11 : i64} {
  func.func @kernel(%arg0: memref<16x256xf32, #tpu.memory_space<vmem>>, %arg1: memref<16x256xf32, #tpu.memory_space<vmem>>, %arg2: memref<2x1x256xf32, #tpu.memory_space<vmem>>, %arg3: memref<2x1x256xf32, #tpu.memory_space<vmem>>, %arg4: memref<2x256x768xbf16, #tpu.memory_space<vmem>>, %arg5: memref<2x1x768xf32, #tpu.memory_space<vmem>>, %arg6: memref<2x256x256xbf16, #tpu.memory_space<vmem>>, %arg7: memref<2x1x256xf32, #tpu.memory_space<vmem>>, %arg8: memref<2x1x256xf32, #tpu.memory_space<vmem>>, %arg9: memref<2x1x256xf32, #tpu.memory_space<vmem>>, %arg10: memref<2x256x1024xbf16, #tpu.memory_space<vmem>>, %arg11: memref<2x1x1024xf32, #tpu.memory_space<vmem>>, %arg12: memref<2x1024x256xbf16, #tpu.memory_space<vmem>>, %arg13: memref<2x1x256xf32, #tpu.memory_space<vmem>>, %arg14: memref<1x256xf32, #tpu.memory_space<vmem>>, %arg15: memref<1x256xf32, #tpu.memory_space<vmem>>, %arg16: memref<256x256xbf16, #tpu.memory_space<vmem>>, %arg17: memref<256x128xbf16, #tpu.memory_space<vmem>>, %arg18: memref<1x128xf32, #tpu.memory_space<vmem>>, %arg19: memref<16x128xf32, #tpu.memory_space<vmem>>, %arg20: memref<16x256xf32, #tpu.memory_space<vmem>>) attributes {dimension_semantics = [], scalar_prefetch = 0 : i64, scratch_operands = 0 : i64, tpu.core_type = #tpu.core_type<tc>} {
    %0 = tpu.iota {dimensions = array<i32: 0>} : vector<8x8xi32>
    %1 = tpu.iota {dimensions = array<i32: 1>} : vector<8x8xi32>
    %2 = arith.cmpi sle, %1, %0 : vector<8x8xi32>
    %c0 = arith.constant 0 : index
    %c0_0 = arith.constant 0 : index
    %3 = vector.load %arg0[%c0, %c0_0] : memref<16x256xf32, #tpu.memory_space<vmem>>, vector<16x256xf32>
    %c0_1 = arith.constant 0 : index
    %c0_2 = arith.constant 0 : index
    %c0_3 = arith.constant 0 : index
    %4 = vector.load %arg2[%c0_1, %c0_2, %c0_3] : memref<2x1x256xf32, #tpu.memory_space<vmem>>, vector<1x1x256xf32>
    %5 = vector.shape_cast %4 : vector<1x1x256xf32> to vector<1x256xf32>
    %c0_4 = arith.constant 0 : index
    %c0_5 = arith.constant 0 : index
    %c0_6 = arith.constant 0 : index
    %6 = vector.load %arg3[%c0_4, %c0_5, %c0_6] : memref<2x1x256xf32, #tpu.memory_space<vmem>>, vector<1x1x256xf32>
    %7 = vector.shape_cast %6 : vector<1x1x256xf32> to vector<1x256xf32>
    %cst = arith.constant dense<0.000000e+00> : vector<16xf32>
    %8 = vector.multi_reduction <add>, %3, %cst [1] : vector<16x256xf32> to vector<16xf32>
    %9 = vector.shape_cast %8 : vector<16xf32> to vector<16x1xf32>
    %cst_7 = arith.constant 2.560000e+02 : f32
    %10 = vector.broadcast %cst_7 : f32 to vector<16x1xf32>
    %11 = arith.divf %9, %10 : vector<16x1xf32>
    %12 = vector.broadcast %11 : vector<16x1xf32> to vector<16x256xf32>
    %13 = arith.subf %3, %12 : vector<16x256xf32>
    %14 = arith.mulf %13, %13 : vector<16x256xf32>
    %cst_8 = arith.constant dense<0.000000e+00> : vector<16xf32>
    %15 = vector.multi_reduction <add>, %14, %cst_8 [1] : vector<16x256xf32> to vector<16xf32>
    %16 = vector.shape_cast %15 : vector<16xf32> to vector<16x1xf32>
    %cst_9 = arith.constant 2.560000e+02 : f32
    %17 = vector.broadcast %cst_9 : f32 to vector<16x1xf32>
    %18 = arith.divf %16, %17 : vector<16x1xf32>
    %19 = vector.broadcast %11 : vector<16x1xf32> to vector<16x256xf32>
    %20 = arith.subf %3, %19 : vector<16x256xf32>
    %cst_10 = arith.constant 9.99999974E-6 : f32
    %21 = vector.broadcast %cst_10 : f32 to vector<16x1xf32>
    %22 = arith.addf %18, %21 : vector<16x1xf32>
    %23 = math.rsqrt %22 : vector<16x1xf32>
    %24 = vector.broadcast %23 : vector<16x1xf32> to vector<16x256xf32>
    %25 = arith.mulf %20, %24 : vector<16x256xf32>
    %26 = vector.broadcast %5 : vector<1x256xf32> to vector<16x256xf32>
    %27 = arith.mulf %25, %26 : vector<16x256xf32>
    %28 = vector.broadcast %7 : vector<1x256xf32> to vector<16x256xf32>
    %29 = arith.addf %27, %28 : vector<16x256xf32>
    %30 = arith.truncf %29 : vector<16x256xf32> to vector<16x256xbf16>
    %c0_11 = arith.constant 0 : index
    %c0_12 = arith.constant 0 : index
    %c0_13 = arith.constant 0 : index
    %31 = vector.load %arg4[%c0_11, %c0_12, %c0_13] : memref<2x256x768xbf16, #tpu.memory_space<vmem>>, vector<1x256x768xbf16>
    %32 = vector.shape_cast %31 : vector<1x256x768xbf16> to vector<256x768xbf16>
    %cst_14 = arith.constant dense<0.000000e+00> : vector<16x768xf32>
    %33 = tpu.matmul %30, %32, %cst_14 {dimension_numbers = #tpu.dot_dimension_numbers<[1], [0], [0], [1], [0, 0, 1, 1], [], []>} : vector<16x256xbf16>, vector<256x768xbf16>, vector<16x768xf32> -> vector<16x768xf32>
    %c0_15 = arith.constant 0 : index
    %c0_16 = arith.constant 0 : index
    %c0_17 = arith.constant 0 : index
    %34 = vector.load %arg5[%c0_15, %c0_16, %c0_17] : memref<2x1x768xf32, #tpu.memory_space<vmem>>, vector<1x1x768xf32>
    %35 = vector.shape_cast %34 : vector<1x1x768xf32> to vector<1x768xf32>
    %36 = vector.broadcast %35 : vector<1x768xf32> to vector<16x768xf32>
    %37 = arith.addf %33, %36 : vector<16x768xf32>
    %38 = arith.truncf %37 : vector<16x768xf32> to vector<16x768xbf16>
    %c0_18 = arith.constant 0 : index
    %c0_19 = arith.constant 0 : index
    %c0_20 = arith.constant 0 : index
    %39 = vector.load %arg6[%c0_18, %c0_19, %c0_20] : memref<2x256x256xbf16, #tpu.memory_space<vmem>>, vector<1x256x256xbf16>
    %40 = vector.shape_cast %39 : vector<1x256x256xbf16> to vector<256x256xbf16>
    %cst_21 = arith.constant 0.000000e+00 : f32
    %41 = vector.broadcast %cst_21 : f32 to vector<8x256xf32>
    %42 = vector.extract_strided_slice %38 {offsets = [0, 0], sizes = [8, 128], strides = [1, 1]} : vector<16x768xbf16> to vector<8x128xbf16>
    %43 = vector.extract_strided_slice %38 {offsets = [0, 256], sizes = [8, 128], strides = [1, 1]} : vector<16x768xbf16> to vector<8x128xbf16>
    %44 = vector.extract_strided_slice %38 {offsets = [0, 512], sizes = [8, 128], strides = [1, 1]} : vector<16x768xbf16> to vector<8x128xbf16>
    %cst_22 = arith.constant dense<0.000000e+00> : vector<8x8xf32>
    %45 = tpu.matmul %42, %43, %cst_22 {dimension_numbers = #tpu.dot_dimension_numbers<[1], [1], [0], [0], [0, 0, 1, 0], [], []>} : vector<8x128xbf16>, vector<8x128xbf16>, vector<8x8xf32> -> vector<8x8xf32>
    %cst_23 = arith.constant 0.0883883461 : f32
    %46 = vector.broadcast %cst_23 : f32 to vector<8x8xf32>
    %47 = arith.mulf %45, %46 : vector<8x8xf32>
    %cst_24 = arith.constant -1.000000e+30 : f32
    %48 = vector.broadcast %cst_24 : f32 to vector<8x8xf32>
    %49 = arith.select %2, %47, %48 : vector<8x8xi1>, vector<8x8xf32>
    %cst_25 = arith.constant dense<0xFF800000> : vector<8xf32>
    %50 = vector.multi_reduction <maximumf>, %49, %cst_25 [1] : vector<8x8xf32> to vector<8xf32>
    %51 = vector.shape_cast %50 : vector<8xf32> to vector<8x1xf32>
    %52 = vector.broadcast %51 : vector<8x1xf32> to vector<8x8xf32>
    %53 = arith.subf %49, %52 : vector<8x8xf32>
    %54 = math.exp %53 : vector<8x8xf32>
    %cst_26 = arith.constant dense<0.000000e+00> : vector<8xf32>
    %55 = vector.multi_reduction <add>, %54, %cst_26 [1] : vector<8x8xf32> to vector<8xf32>
    %56 = vector.shape_cast %55 : vector<8xf32> to vector<8x1xf32>
    %57 = tpu.reciprocal %56 {approx = true} : vector<8x1xf32> -> vector<8x1xf32>
    %58 = vector.broadcast %57 : vector<8x1xf32> to vector<8x8xf32>
    %59 = arith.mulf %54, %58 : vector<8x8xf32>
    %60 = arith.truncf %59 : vector<8x8xf32> to vector<8x8xbf16>
    %cst_27 = arith.constant dense<0.000000e+00> : vector<8x128xf32>
    %61 = tpu.matmul %60, %44, %cst_27 {dimension_numbers = #tpu.dot_dimension_numbers<[1], [0], [0], [1], [0, 0, 1, 1], [], []>} : vector<8x8xbf16>, vector<8x128xbf16>, vector<8x128xf32> -> vector<8x128xf32>
    %62 = arith.truncf %61 : vector<8x128xf32> to vector<8x128xbf16>
    %63 = vector.extract_strided_slice %40 {offsets = [0, 0], sizes = [128, 256], strides = [1, 1]} : vector<256x256xbf16> to vector<128x256xbf16>
    %cst_28 = arith.constant dense<0.000000e+00> : vector<8x256xf32>
    %64 = tpu.matmul %62, %63, %cst_28 {dimension_numbers = #tpu.dot_dimension_numbers<[1], [0], [0], [1], [0, 0, 1, 1], [], []>} : vector<8x128xbf16>, vector<128x256xbf16>, vector<8x256xf32> -> vector<8x256xf32>
    %65 = arith.addf %41, %64 : vector<8x256xf32>
    %66 = vector.extract_strided_slice %38 {offsets = [0, 128], sizes = [8, 128], strides = [1, 1]} : vector<16x768xbf16> to vector<8x128xbf16>
    %67 = vector.extract_strided_slice %38 {offsets = [0, 384], sizes = [8, 128], strides = [1, 1]} : vector<16x768xbf16> to vector<8x128xbf16>
    %68 = vector.extract_strided_slice %38 {offsets = [0, 640], sizes = [8, 128], strides = [1, 1]} : vector<16x768xbf16> to vector<8x128xbf16>
    %cst_29 = arith.constant dense<0.000000e+00> : vector<8x8xf32>
    %69 = tpu.matmul %66, %67, %cst_29 {dimension_numbers = #tpu.dot_dimension_numbers<[1], [1], [0], [0], [0, 0, 1, 0], [], []>} : vector<8x128xbf16>, vector<8x128xbf16>, vector<8x8xf32> -> vector<8x8xf32>
    %cst_30 = arith.constant 0.0883883461 : f32
    %70 = vector.broadcast %cst_30 : f32 to vector<8x8xf32>
    %71 = arith.mulf %69, %70 : vector<8x8xf32>
    %cst_31 = arith.constant -1.000000e+30 : f32
    %72 = vector.broadcast %cst_31 : f32 to vector<8x8xf32>
    %73 = arith.select %2, %71, %72 : vector<8x8xi1>, vector<8x8xf32>
    %cst_32 = arith.constant dense<0xFF800000> : vector<8xf32>
    %74 = vector.multi_reduction <maximumf>, %73, %cst_32 [1] : vector<8x8xf32> to vector<8xf32>
    %75 = vector.shape_cast %74 : vector<8xf32> to vector<8x1xf32>
    %76 = vector.broadcast %75 : vector<8x1xf32> to vector<8x8xf32>
    %77 = arith.subf %73, %76 : vector<8x8xf32>
    %78 = math.exp %77 : vector<8x8xf32>
    %cst_33 = arith.constant dense<0.000000e+00> : vector<8xf32>
    %79 = vector.multi_reduction <add>, %78, %cst_33 [1] : vector<8x8xf32> to vector<8xf32>
    %80 = vector.shape_cast %79 : vector<8xf32> to vector<8x1xf32>
    %81 = tpu.reciprocal %80 {approx = true} : vector<8x1xf32> -> vector<8x1xf32>
    %82 = vector.broadcast %81 : vector<8x1xf32> to vector<8x8xf32>
    %83 = arith.mulf %78, %82 : vector<8x8xf32>
    %84 = arith.truncf %83 : vector<8x8xf32> to vector<8x8xbf16>
    %cst_34 = arith.constant dense<0.000000e+00> : vector<8x128xf32>
    %85 = tpu.matmul %84, %68, %cst_34 {dimension_numbers = #tpu.dot_dimension_numbers<[1], [0], [0], [1], [0, 0, 1, 1], [], []>} : vector<8x8xbf16>, vector<8x128xbf16>, vector<8x128xf32> -> vector<8x128xf32>
    %86 = arith.truncf %85 : vector<8x128xf32> to vector<8x128xbf16>
    %87 = vector.extract_strided_slice %40 {offsets = [128, 0], sizes = [128, 256], strides = [1, 1]} : vector<256x256xbf16> to vector<128x256xbf16>
    %cst_35 = arith.constant dense<0.000000e+00> : vector<8x256xf32>
    %88 = tpu.matmul %86, %87, %cst_35 {dimension_numbers = #tpu.dot_dimension_numbers<[1], [0], [0], [1], [0, 0, 1, 1], [], []>} : vector<8x128xbf16>, vector<128x256xbf16>, vector<8x256xf32> -> vector<8x256xf32>
    %89 = arith.addf %65, %88 : vector<8x256xf32>
    %cst_36 = arith.constant 0.000000e+00 : f32
    %90 = vector.broadcast %cst_36 : f32 to vector<8x256xf32>
    %91 = vector.extract_strided_slice %38 {offsets = [8, 0], sizes = [8, 128], strides = [1, 1]} : vector<16x768xbf16> to vector<8x128xbf16>
    %92 = vector.extract_strided_slice %38 {offsets = [8, 256], sizes = [8, 128], strides = [1, 1]} : vector<16x768xbf16> to vector<8x128xbf16>
    %93 = vector.extract_strided_slice %38 {offsets = [8, 512], sizes = [8, 128], strides = [1, 1]} : vector<16x768xbf16> to vector<8x128xbf16>
    %cst_37 = arith.constant dense<0.000000e+00> : vector<8x8xf32>
    %94 = tpu.matmul %91, %92, %cst_37 {dimension_numbers = #tpu.dot_dimension_numbers<[1], [1], [0], [0], [0, 0, 1, 0], [], []>} : vector<8x128xbf16>, vector<8x128xbf16>, vector<8x8xf32> -> vector<8x8xf32>
    %cst_38 = arith.constant 0.0883883461 : f32
    %95 = vector.broadcast %cst_38 : f32 to vector<8x8xf32>
    %96 = arith.mulf %94, %95 : vector<8x8xf32>
    %cst_39 = arith.constant -1.000000e+30 : f32
    %97 = vector.broadcast %cst_39 : f32 to vector<8x8xf32>
    %98 = arith.select %2, %96, %97 : vector<8x8xi1>, vector<8x8xf32>
    %cst_40 = arith.constant dense<0xFF800000> : vector<8xf32>
    %99 = vector.multi_reduction <maximumf>, %98, %cst_40 [1] : vector<8x8xf32> to vector<8xf32>
    %100 = vector.shape_cast %99 : vector<8xf32> to vector<8x1xf32>
    %101 = vector.broadcast %100 : vector<8x1xf32> to vector<8x8xf32>
    %102 = arith.subf %98, %101 : vector<8x8xf32>
    %103 = math.exp %102 : vector<8x8xf32>
    %cst_41 = arith.constant dense<0.000000e+00> : vector<8xf32>
    %104 = vector.multi_reduction <add>, %103, %cst_41 [1] : vector<8x8xf32> to vector<8xf32>
    %105 = vector.shape_cast %104 : vector<8xf32> to vector<8x1xf32>
    %106 = tpu.reciprocal %105 {approx = true} : vector<8x1xf32> -> vector<8x1xf32>
    %107 = vector.broadcast %106 : vector<8x1xf32> to vector<8x8xf32>
    %108 = arith.mulf %103, %107 : vector<8x8xf32>
    %109 = arith.truncf %108 : vector<8x8xf32> to vector<8x8xbf16>
    %cst_42 = arith.constant dense<0.000000e+00> : vector<8x128xf32>
    %110 = tpu.matmul %109, %93, %cst_42 {dimension_numbers = #tpu.dot_dimension_numbers<[1], [0], [0], [1], [0, 0, 1, 1], [], []>} : vector<8x8xbf16>, vector<8x128xbf16>, vector<8x128xf32> -> vector<8x128xf32>
    %111 = arith.truncf %110 : vector<8x128xf32> to vector<8x128xbf16>
    %112 = vector.extract_strided_slice %40 {offsets = [0, 0], sizes = [128, 256], strides = [1, 1]} : vector<256x256xbf16> to vector<128x256xbf16>
    %cst_43 = arith.constant dense<0.000000e+00> : vector<8x256xf32>
    %113 = tpu.matmul %111, %112, %cst_43 {dimension_numbers = #tpu.dot_dimension_numbers<[1], [0], [0], [1], [0, 0, 1, 1], [], []>} : vector<8x128xbf16>, vector<128x256xbf16>, vector<8x256xf32> -> vector<8x256xf32>
    %114 = arith.addf %90, %113 : vector<8x256xf32>
    %115 = vector.extract_strided_slice %38 {offsets = [8, 128], sizes = [8, 128], strides = [1, 1]} : vector<16x768xbf16> to vector<8x128xbf16>
    %116 = vector.extract_strided_slice %38 {offsets = [8, 384], sizes = [8, 128], strides = [1, 1]} : vector<16x768xbf16> to vector<8x128xbf16>
    %117 = vector.extract_strided_slice %38 {offsets = [8, 640], sizes = [8, 128], strides = [1, 1]} : vector<16x768xbf16> to vector<8x128xbf16>
    %cst_44 = arith.constant dense<0.000000e+00> : vector<8x8xf32>
    %118 = tpu.matmul %115, %116, %cst_44 {dimension_numbers = #tpu.dot_dimension_numbers<[1], [1], [0], [0], [0, 0, 1, 0], [], []>} : vector<8x128xbf16>, vector<8x128xbf16>, vector<8x8xf32> -> vector<8x8xf32>
    %cst_45 = arith.constant 0.0883883461 : f32
    %119 = vector.broadcast %cst_45 : f32 to vector<8x8xf32>
    %120 = arith.mulf %118, %119 : vector<8x8xf32>
    %cst_46 = arith.constant -1.000000e+30 : f32
    %121 = vector.broadcast %cst_46 : f32 to vector<8x8xf32>
    %122 = arith.select %2, %120, %121 : vector<8x8xi1>, vector<8x8xf32>
    %cst_47 = arith.constant dense<0xFF800000> : vector<8xf32>
    %123 = vector.multi_reduction <maximumf>, %122, %cst_47 [1] : vector<8x8xf32> to vector<8xf32>
    %124 = vector.shape_cast %123 : vector<8xf32> to vector<8x1xf32>
    %125 = vector.broadcast %124 : vector<8x1xf32> to vector<8x8xf32>
    %126 = arith.subf %122, %125 : vector<8x8xf32>
    %127 = math.exp %126 : vector<8x8xf32>
    %cst_48 = arith.constant dense<0.000000e+00> : vector<8xf32>
    %128 = vector.multi_reduction <add>, %127, %cst_48 [1] : vector<8x8xf32> to vector<8xf32>
    %129 = vector.shape_cast %128 : vector<8xf32> to vector<8x1xf32>
    %130 = tpu.reciprocal %129 {approx = true} : vector<8x1xf32> -> vector<8x1xf32>
    %131 = vector.broadcast %130 : vector<8x1xf32> to vector<8x8xf32>
    %132 = arith.mulf %127, %131 : vector<8x8xf32>
    %133 = arith.truncf %132 : vector<8x8xf32> to vector<8x8xbf16>
    %cst_49 = arith.constant dense<0.000000e+00> : vector<8x128xf32>
    %134 = tpu.matmul %133, %117, %cst_49 {dimension_numbers = #tpu.dot_dimension_numbers<[1], [0], [0], [1], [0, 0, 1, 1], [], []>} : vector<8x8xbf16>, vector<8x128xbf16>, vector<8x128xf32> -> vector<8x128xf32>
    %135 = arith.truncf %134 : vector<8x128xf32> to vector<8x128xbf16>
    %136 = vector.extract_strided_slice %40 {offsets = [128, 0], sizes = [128, 256], strides = [1, 1]} : vector<256x256xbf16> to vector<128x256xbf16>
    %cst_50 = arith.constant dense<0.000000e+00> : vector<8x256xf32>
    %137 = tpu.matmul %135, %136, %cst_50 {dimension_numbers = #tpu.dot_dimension_numbers<[1], [0], [0], [1], [0, 0, 1, 1], [], []>} : vector<8x128xbf16>, vector<128x256xbf16>, vector<8x256xf32> -> vector<8x256xf32>
    %138 = arith.addf %114, %137 : vector<8x256xf32>
    %139 = tpu.concatenate %89, %138 in 0 : vector<8x256xf32>, vector<8x256xf32> -> vector<16x256xf32>
    %c0_51 = arith.constant 0 : index
    %c0_52 = arith.constant 0 : index
    %c0_53 = arith.constant 0 : index
    %140 = vector.load %arg7[%c0_51, %c0_52, %c0_53] : memref<2x1x256xf32, #tpu.memory_space<vmem>>, vector<1x1x256xf32>
    %141 = vector.shape_cast %140 : vector<1x1x256xf32> to vector<1x256xf32>
    %142 = vector.broadcast %141 : vector<1x256xf32> to vector<16x256xf32>
    %143 = arith.addf %139, %142 : vector<16x256xf32>
    %144 = arith.addf %3, %143 : vector<16x256xf32>
    %c0_54 = arith.constant 0 : index
    %c0_55 = arith.constant 0 : index
    %c0_56 = arith.constant 0 : index
    %145 = vector.load %arg8[%c0_54, %c0_55, %c0_56] : memref<2x1x256xf32, #tpu.memory_space<vmem>>, vector<1x1x256xf32>
    %146 = vector.shape_cast %145 : vector<1x1x256xf32> to vector<1x256xf32>
    %c0_57 = arith.constant 0 : index
    %c0_58 = arith.constant 0 : index
    %c0_59 = arith.constant 0 : index
    %147 = vector.load %arg9[%c0_57, %c0_58, %c0_59] : memref<2x1x256xf32, #tpu.memory_space<vmem>>, vector<1x1x256xf32>
    %148 = vector.shape_cast %147 : vector<1x1x256xf32> to vector<1x256xf32>
    %cst_60 = arith.constant dense<0.000000e+00> : vector<16xf32>
    %149 = vector.multi_reduction <add>, %144, %cst_60 [1] : vector<16x256xf32> to vector<16xf32>
    %150 = vector.shape_cast %149 : vector<16xf32> to vector<16x1xf32>
    %cst_61 = arith.constant 2.560000e+02 : f32
    %151 = vector.broadcast %cst_61 : f32 to vector<16x1xf32>
    %152 = arith.divf %150, %151 : vector<16x1xf32>
    %153 = vector.broadcast %152 : vector<16x1xf32> to vector<16x256xf32>
    %154 = arith.subf %144, %153 : vector<16x256xf32>
    %155 = arith.mulf %154, %154 : vector<16x256xf32>
    %cst_62 = arith.constant dense<0.000000e+00> : vector<16xf32>
    %156 = vector.multi_reduction <add>, %155, %cst_62 [1] : vector<16x256xf32> to vector<16xf32>
    %157 = vector.shape_cast %156 : vector<16xf32> to vector<16x1xf32>
    %cst_63 = arith.constant 2.560000e+02 : f32
    %158 = vector.broadcast %cst_63 : f32 to vector<16x1xf32>
    %159 = arith.divf %157, %158 : vector<16x1xf32>
    %160 = vector.broadcast %152 : vector<16x1xf32> to vector<16x256xf32>
    %161 = arith.subf %144, %160 : vector<16x256xf32>
    %cst_64 = arith.constant 9.99999974E-6 : f32
    %162 = vector.broadcast %cst_64 : f32 to vector<16x1xf32>
    %163 = arith.addf %159, %162 : vector<16x1xf32>
    %164 = math.rsqrt %163 : vector<16x1xf32>
    %165 = vector.broadcast %164 : vector<16x1xf32> to vector<16x256xf32>
    %166 = arith.mulf %161, %165 : vector<16x256xf32>
    %167 = vector.broadcast %146 : vector<1x256xf32> to vector<16x256xf32>
    %168 = arith.mulf %166, %167 : vector<16x256xf32>
    %169 = vector.broadcast %148 : vector<1x256xf32> to vector<16x256xf32>
    %170 = arith.addf %168, %169 : vector<16x256xf32>
    %171 = arith.truncf %170 : vector<16x256xf32> to vector<16x256xbf16>
    %c0_65 = arith.constant 0 : index
    %c0_66 = arith.constant 0 : index
    %c0_67 = arith.constant 0 : index
    %172 = vector.load %arg10[%c0_65, %c0_66, %c0_67] : memref<2x256x1024xbf16, #tpu.memory_space<vmem>>, vector<1x256x1024xbf16>
    %173 = vector.shape_cast %172 : vector<1x256x1024xbf16> to vector<256x1024xbf16>
    %cst_68 = arith.constant dense<0.000000e+00> : vector<16x1024xf32>
    %174 = tpu.matmul %171, %173, %cst_68 {dimension_numbers = #tpu.dot_dimension_numbers<[1], [0], [0], [1], [0, 0, 1, 1], [], []>} : vector<16x256xbf16>, vector<256x1024xbf16>, vector<16x1024xf32> -> vector<16x1024xf32>
    %c0_69 = arith.constant 0 : index
    %c0_70 = arith.constant 0 : index
    %c0_71 = arith.constant 0 : index
    %175 = vector.load %arg11[%c0_69, %c0_70, %c0_71] : memref<2x1x1024xf32, #tpu.memory_space<vmem>>, vector<1x1x1024xf32>
    %176 = vector.shape_cast %175 : vector<1x1x1024xf32> to vector<1x1024xf32>
    %177 = vector.broadcast %176 : vector<1x1024xf32> to vector<16x1024xf32>
    %178 = arith.addf %174, %177 : vector<16x1024xf32>
    %cst_72 = arith.constant 5.000000e-01 : f32
    %179 = vector.broadcast %cst_72 : f32 to vector<16x1024xf32>
    %180 = arith.mulf %179, %178 : vector<16x1024xf32>
    %cst_73 = arith.constant 4.471500e-02 : f32
    %181 = vector.broadcast %cst_73 : f32 to vector<16x1024xf32>
    %182 = arith.mulf %181, %178 : vector<16x1024xf32>
    %183 = arith.mulf %182, %178 : vector<16x1024xf32>
    %184 = arith.mulf %183, %178 : vector<16x1024xf32>
    %185 = arith.addf %178, %184 : vector<16x1024xf32>
    %cst_74 = arith.constant 0.797884583 : f32
    %186 = vector.broadcast %cst_74 : f32 to vector<16x1024xf32>
    %187 = arith.mulf %186, %185 : vector<16x1024xf32>
    %188 = math.tanh %187 : vector<16x1024xf32>
    %cst_75 = arith.constant 1.000000e+00 : f32
    %189 = vector.broadcast %cst_75 : f32 to vector<16x1024xf32>
    %190 = arith.addf %189, %188 : vector<16x1024xf32>
    %191 = arith.mulf %180, %190 : vector<16x1024xf32>
    %192 = arith.truncf %191 : vector<16x1024xf32> to vector<16x1024xbf16>
    %c0_76 = arith.constant 0 : index
    %c0_77 = arith.constant 0 : index
    %c0_78 = arith.constant 0 : index
    %193 = vector.load %arg12[%c0_76, %c0_77, %c0_78] : memref<2x1024x256xbf16, #tpu.memory_space<vmem>>, vector<1x1024x256xbf16>
    %194 = vector.shape_cast %193 : vector<1x1024x256xbf16> to vector<1024x256xbf16>
    %cst_79 = arith.constant dense<0.000000e+00> : vector<16x256xf32>
    %195 = tpu.matmul %192, %194, %cst_79 {dimension_numbers = #tpu.dot_dimension_numbers<[1], [0], [0], [1], [0, 0, 1, 1], [], []>} : vector<16x1024xbf16>, vector<1024x256xbf16>, vector<16x256xf32> -> vector<16x256xf32>
    %c0_80 = arith.constant 0 : index
    %c0_81 = arith.constant 0 : index
    %c0_82 = arith.constant 0 : index
    %196 = vector.load %arg13[%c0_80, %c0_81, %c0_82] : memref<2x1x256xf32, #tpu.memory_space<vmem>>, vector<1x1x256xf32>
    %197 = vector.shape_cast %196 : vector<1x1x256xf32> to vector<1x256xf32>
    %198 = vector.broadcast %197 : vector<1x256xf32> to vector<16x256xf32>
    %199 = arith.addf %195, %198 : vector<16x256xf32>
    %200 = arith.addf %144, %199 : vector<16x256xf32>
    %c1 = arith.constant 1 : index
    %c0_83 = arith.constant 0 : index
    %c0_84 = arith.constant 0 : index
    %201 = vector.load %arg2[%c1, %c0_83, %c0_84] : memref<2x1x256xf32, #tpu.memory_space<vmem>>, vector<1x1x256xf32>
    %202 = vector.shape_cast %201 : vector<1x1x256xf32> to vector<1x256xf32>
    %c1_85 = arith.constant 1 : index
    %c0_86 = arith.constant 0 : index
    %c0_87 = arith.constant 0 : index
    %203 = vector.load %arg3[%c1_85, %c0_86, %c0_87] : memref<2x1x256xf32, #tpu.memory_space<vmem>>, vector<1x1x256xf32>
    %204 = vector.shape_cast %203 : vector<1x1x256xf32> to vector<1x256xf32>
    %cst_88 = arith.constant dense<0.000000e+00> : vector<16xf32>
    %205 = vector.multi_reduction <add>, %200, %cst_88 [1] : vector<16x256xf32> to vector<16xf32>
    %206 = vector.shape_cast %205 : vector<16xf32> to vector<16x1xf32>
    %cst_89 = arith.constant 2.560000e+02 : f32
    %207 = vector.broadcast %cst_89 : f32 to vector<16x1xf32>
    %208 = arith.divf %206, %207 : vector<16x1xf32>
    %209 = vector.broadcast %208 : vector<16x1xf32> to vector<16x256xf32>
    %210 = arith.subf %200, %209 : vector<16x256xf32>
    %211 = arith.mulf %210, %210 : vector<16x256xf32>
    %cst_90 = arith.constant dense<0.000000e+00> : vector<16xf32>
    %212 = vector.multi_reduction <add>, %211, %cst_90 [1] : vector<16x256xf32> to vector<16xf32>
    %213 = vector.shape_cast %212 : vector<16xf32> to vector<16x1xf32>
    %cst_91 = arith.constant 2.560000e+02 : f32
    %214 = vector.broadcast %cst_91 : f32 to vector<16x1xf32>
    %215 = arith.divf %213, %214 : vector<16x1xf32>
    %216 = vector.broadcast %208 : vector<16x1xf32> to vector<16x256xf32>
    %217 = arith.subf %200, %216 : vector<16x256xf32>
    %cst_92 = arith.constant 9.99999974E-6 : f32
    %218 = vector.broadcast %cst_92 : f32 to vector<16x1xf32>
    %219 = arith.addf %215, %218 : vector<16x1xf32>
    %220 = math.rsqrt %219 : vector<16x1xf32>
    %221 = vector.broadcast %220 : vector<16x1xf32> to vector<16x256xf32>
    %222 = arith.mulf %217, %221 : vector<16x256xf32>
    %223 = vector.broadcast %202 : vector<1x256xf32> to vector<16x256xf32>
    %224 = arith.mulf %222, %223 : vector<16x256xf32>
    %225 = vector.broadcast %204 : vector<1x256xf32> to vector<16x256xf32>
    %226 = arith.addf %224, %225 : vector<16x256xf32>
    %227 = arith.truncf %226 : vector<16x256xf32> to vector<16x256xbf16>
    %c1_93 = arith.constant 1 : index
    %c0_94 = arith.constant 0 : index
    %c0_95 = arith.constant 0 : index
    %228 = vector.load %arg4[%c1_93, %c0_94, %c0_95] : memref<2x256x768xbf16, #tpu.memory_space<vmem>>, vector<1x256x768xbf16>
    %229 = vector.shape_cast %228 : vector<1x256x768xbf16> to vector<256x768xbf16>
    %cst_96 = arith.constant dense<0.000000e+00> : vector<16x768xf32>
    %230 = tpu.matmul %227, %229, %cst_96 {dimension_numbers = #tpu.dot_dimension_numbers<[1], [0], [0], [1], [0, 0, 1, 1], [], []>} : vector<16x256xbf16>, vector<256x768xbf16>, vector<16x768xf32> -> vector<16x768xf32>
    %c1_97 = arith.constant 1 : index
    %c0_98 = arith.constant 0 : index
    %c0_99 = arith.constant 0 : index
    %231 = vector.load %arg5[%c1_97, %c0_98, %c0_99] : memref<2x1x768xf32, #tpu.memory_space<vmem>>, vector<1x1x768xf32>
    %232 = vector.shape_cast %231 : vector<1x1x768xf32> to vector<1x768xf32>
    %233 = vector.broadcast %232 : vector<1x768xf32> to vector<16x768xf32>
    %234 = arith.addf %230, %233 : vector<16x768xf32>
    %235 = arith.truncf %234 : vector<16x768xf32> to vector<16x768xbf16>
    %c1_100 = arith.constant 1 : index
    %c0_101 = arith.constant 0 : index
    %c0_102 = arith.constant 0 : index
    %236 = vector.load %arg6[%c1_100, %c0_101, %c0_102] : memref<2x256x256xbf16, #tpu.memory_space<vmem>>, vector<1x256x256xbf16>
    %237 = vector.shape_cast %236 : vector<1x256x256xbf16> to vector<256x256xbf16>
    %cst_103 = arith.constant 0.000000e+00 : f32
    %238 = vector.broadcast %cst_103 : f32 to vector<8x256xf32>
    %239 = vector.extract_strided_slice %235 {offsets = [0, 0], sizes = [8, 128], strides = [1, 1]} : vector<16x768xbf16> to vector<8x128xbf16>
    %240 = vector.extract_strided_slice %235 {offsets = [0, 256], sizes = [8, 128], strides = [1, 1]} : vector<16x768xbf16> to vector<8x128xbf16>
    %241 = vector.extract_strided_slice %235 {offsets = [0, 512], sizes = [8, 128], strides = [1, 1]} : vector<16x768xbf16> to vector<8x128xbf16>
    %cst_104 = arith.constant dense<0.000000e+00> : vector<8x8xf32>
    %242 = tpu.matmul %239, %240, %cst_104 {dimension_numbers = #tpu.dot_dimension_numbers<[1], [1], [0], [0], [0, 0, 1, 0], [], []>} : vector<8x128xbf16>, vector<8x128xbf16>, vector<8x8xf32> -> vector<8x8xf32>
    %cst_105 = arith.constant 0.0883883461 : f32
    %243 = vector.broadcast %cst_105 : f32 to vector<8x8xf32>
    %244 = arith.mulf %242, %243 : vector<8x8xf32>
    %cst_106 = arith.constant -1.000000e+30 : f32
    %245 = vector.broadcast %cst_106 : f32 to vector<8x8xf32>
    %246 = arith.select %2, %244, %245 : vector<8x8xi1>, vector<8x8xf32>
    %cst_107 = arith.constant dense<0xFF800000> : vector<8xf32>
    %247 = vector.multi_reduction <maximumf>, %246, %cst_107 [1] : vector<8x8xf32> to vector<8xf32>
    %248 = vector.shape_cast %247 : vector<8xf32> to vector<8x1xf32>
    %249 = vector.broadcast %248 : vector<8x1xf32> to vector<8x8xf32>
    %250 = arith.subf %246, %249 : vector<8x8xf32>
    %251 = math.exp %250 : vector<8x8xf32>
    %cst_108 = arith.constant dense<0.000000e+00> : vector<8xf32>
    %252 = vector.multi_reduction <add>, %251, %cst_108 [1] : vector<8x8xf32> to vector<8xf32>
    %253 = vector.shape_cast %252 : vector<8xf32> to vector<8x1xf32>
    %254 = tpu.reciprocal %253 {approx = true} : vector<8x1xf32> -> vector<8x1xf32>
    %255 = vector.broadcast %254 : vector<8x1xf32> to vector<8x8xf32>
    %256 = arith.mulf %251, %255 : vector<8x8xf32>
    %257 = arith.truncf %256 : vector<8x8xf32> to vector<8x8xbf16>
    %cst_109 = arith.constant dense<0.000000e+00> : vector<8x128xf32>
    %258 = tpu.matmul %257, %241, %cst_109 {dimension_numbers = #tpu.dot_dimension_numbers<[1], [0], [0], [1], [0, 0, 1, 1], [], []>} : vector<8x8xbf16>, vector<8x128xbf16>, vector<8x128xf32> -> vector<8x128xf32>
    %259 = arith.truncf %258 : vector<8x128xf32> to vector<8x128xbf16>
    %260 = vector.extract_strided_slice %237 {offsets = [0, 0], sizes = [128, 256], strides = [1, 1]} : vector<256x256xbf16> to vector<128x256xbf16>
    %cst_110 = arith.constant dense<0.000000e+00> : vector<8x256xf32>
    %261 = tpu.matmul %259, %260, %cst_110 {dimension_numbers = #tpu.dot_dimension_numbers<[1], [0], [0], [1], [0, 0, 1, 1], [], []>} : vector<8x128xbf16>, vector<128x256xbf16>, vector<8x256xf32> -> vector<8x256xf32>
    %262 = arith.addf %238, %261 : vector<8x256xf32>
    %263 = vector.extract_strided_slice %235 {offsets = [0, 128], sizes = [8, 128], strides = [1, 1]} : vector<16x768xbf16> to vector<8x128xbf16>
    %264 = vector.extract_strided_slice %235 {offsets = [0, 384], sizes = [8, 128], strides = [1, 1]} : vector<16x768xbf16> to vector<8x128xbf16>
    %265 = vector.extract_strided_slice %235 {offsets = [0, 640], sizes = [8, 128], strides = [1, 1]} : vector<16x768xbf16> to vector<8x128xbf16>
    %cst_111 = arith.constant dense<0.000000e+00> : vector<8x8xf32>
    %266 = tpu.matmul %263, %264, %cst_111 {dimension_numbers = #tpu.dot_dimension_numbers<[1], [1], [0], [0], [0, 0, 1, 0], [], []>} : vector<8x128xbf16>, vector<8x128xbf16>, vector<8x8xf32> -> vector<8x8xf32>
    %cst_112 = arith.constant 0.0883883461 : f32
    %267 = vector.broadcast %cst_112 : f32 to vector<8x8xf32>
    %268 = arith.mulf %266, %267 : vector<8x8xf32>
    %cst_113 = arith.constant -1.000000e+30 : f32
    %269 = vector.broadcast %cst_113 : f32 to vector<8x8xf32>
    %270 = arith.select %2, %268, %269 : vector<8x8xi1>, vector<8x8xf32>
    %cst_114 = arith.constant dense<0xFF800000> : vector<8xf32>
    %271 = vector.multi_reduction <maximumf>, %270, %cst_114 [1] : vector<8x8xf32> to vector<8xf32>
    %272 = vector.shape_cast %271 : vector<8xf32> to vector<8x1xf32>
    %273 = vector.broadcast %272 : vector<8x1xf32> to vector<8x8xf32>
    %274 = arith.subf %270, %273 : vector<8x8xf32>
    %275 = math.exp %274 : vector<8x8xf32>
    %cst_115 = arith.constant dense<0.000000e+00> : vector<8xf32>
    %276 = vector.multi_reduction <add>, %275, %cst_115 [1] : vector<8x8xf32> to vector<8xf32>
    %277 = vector.shape_cast %276 : vector<8xf32> to vector<8x1xf32>
    %278 = tpu.reciprocal %277 {approx = true} : vector<8x1xf32> -> vector<8x1xf32>
    %279 = vector.broadcast %278 : vector<8x1xf32> to vector<8x8xf32>
    %280 = arith.mulf %275, %279 : vector<8x8xf32>
    %281 = arith.truncf %280 : vector<8x8xf32> to vector<8x8xbf16>
    %cst_116 = arith.constant dense<0.000000e+00> : vector<8x128xf32>
    %282 = tpu.matmul %281, %265, %cst_116 {dimension_numbers = #tpu.dot_dimension_numbers<[1], [0], [0], [1], [0, 0, 1, 1], [], []>} : vector<8x8xbf16>, vector<8x128xbf16>, vector<8x128xf32> -> vector<8x128xf32>
    %283 = arith.truncf %282 : vector<8x128xf32> to vector<8x128xbf16>
    %284 = vector.extract_strided_slice %237 {offsets = [128, 0], sizes = [128, 256], strides = [1, 1]} : vector<256x256xbf16> to vector<128x256xbf16>
    %cst_117 = arith.constant dense<0.000000e+00> : vector<8x256xf32>
    %285 = tpu.matmul %283, %284, %cst_117 {dimension_numbers = #tpu.dot_dimension_numbers<[1], [0], [0], [1], [0, 0, 1, 1], [], []>} : vector<8x128xbf16>, vector<128x256xbf16>, vector<8x256xf32> -> vector<8x256xf32>
    %286 = arith.addf %262, %285 : vector<8x256xf32>
    %cst_118 = arith.constant 0.000000e+00 : f32
    %287 = vector.broadcast %cst_118 : f32 to vector<8x256xf32>
    %288 = vector.extract_strided_slice %235 {offsets = [8, 0], sizes = [8, 128], strides = [1, 1]} : vector<16x768xbf16> to vector<8x128xbf16>
    %289 = vector.extract_strided_slice %235 {offsets = [8, 256], sizes = [8, 128], strides = [1, 1]} : vector<16x768xbf16> to vector<8x128xbf16>
    %290 = vector.extract_strided_slice %235 {offsets = [8, 512], sizes = [8, 128], strides = [1, 1]} : vector<16x768xbf16> to vector<8x128xbf16>
    %cst_119 = arith.constant dense<0.000000e+00> : vector<8x8xf32>
    %291 = tpu.matmul %288, %289, %cst_119 {dimension_numbers = #tpu.dot_dimension_numbers<[1], [1], [0], [0], [0, 0, 1, 0], [], []>} : vector<8x128xbf16>, vector<8x128xbf16>, vector<8x8xf32> -> vector<8x8xf32>
    %cst_120 = arith.constant 0.0883883461 : f32
    %292 = vector.broadcast %cst_120 : f32 to vector<8x8xf32>
    %293 = arith.mulf %291, %292 : vector<8x8xf32>
    %cst_121 = arith.constant -1.000000e+30 : f32
    %294 = vector.broadcast %cst_121 : f32 to vector<8x8xf32>
    %295 = arith.select %2, %293, %294 : vector<8x8xi1>, vector<8x8xf32>
    %cst_122 = arith.constant dense<0xFF800000> : vector<8xf32>
    %296 = vector.multi_reduction <maximumf>, %295, %cst_122 [1] : vector<8x8xf32> to vector<8xf32>
    %297 = vector.shape_cast %296 : vector<8xf32> to vector<8x1xf32>
    %298 = vector.broadcast %297 : vector<8x1xf32> to vector<8x8xf32>
    %299 = arith.subf %295, %298 : vector<8x8xf32>
    %300 = math.exp %299 : vector<8x8xf32>
    %cst_123 = arith.constant dense<0.000000e+00> : vector<8xf32>
    %301 = vector.multi_reduction <add>, %300, %cst_123 [1] : vector<8x8xf32> to vector<8xf32>
    %302 = vector.shape_cast %301 : vector<8xf32> to vector<8x1xf32>
    %303 = tpu.reciprocal %302 {approx = true} : vector<8x1xf32> -> vector<8x1xf32>
    %304 = vector.broadcast %303 : vector<8x1xf32> to vector<8x8xf32>
    %305 = arith.mulf %300, %304 : vector<8x8xf32>
    %306 = arith.truncf %305 : vector<8x8xf32> to vector<8x8xbf16>
    %cst_124 = arith.constant dense<0.000000e+00> : vector<8x128xf32>
    %307 = tpu.matmul %306, %290, %cst_124 {dimension_numbers = #tpu.dot_dimension_numbers<[1], [0], [0], [1], [0, 0, 1, 1], [], []>} : vector<8x8xbf16>, vector<8x128xbf16>, vector<8x128xf32> -> vector<8x128xf32>
    %308 = arith.truncf %307 : vector<8x128xf32> to vector<8x128xbf16>
    %309 = vector.extract_strided_slice %237 {offsets = [0, 0], sizes = [128, 256], strides = [1, 1]} : vector<256x256xbf16> to vector<128x256xbf16>
    %cst_125 = arith.constant dense<0.000000e+00> : vector<8x256xf32>
    %310 = tpu.matmul %308, %309, %cst_125 {dimension_numbers = #tpu.dot_dimension_numbers<[1], [0], [0], [1], [0, 0, 1, 1], [], []>} : vector<8x128xbf16>, vector<128x256xbf16>, vector<8x256xf32> -> vector<8x256xf32>
    %311 = arith.addf %287, %310 : vector<8x256xf32>
    %312 = vector.extract_strided_slice %235 {offsets = [8, 128], sizes = [8, 128], strides = [1, 1]} : vector<16x768xbf16> to vector<8x128xbf16>
    %313 = vector.extract_strided_slice %235 {offsets = [8, 384], sizes = [8, 128], strides = [1, 1]} : vector<16x768xbf16> to vector<8x128xbf16>
    %314 = vector.extract_strided_slice %235 {offsets = [8, 640], sizes = [8, 128], strides = [1, 1]} : vector<16x768xbf16> to vector<8x128xbf16>
    %cst_126 = arith.constant dense<0.000000e+00> : vector<8x8xf32>
    %315 = tpu.matmul %312, %313, %cst_126 {dimension_numbers = #tpu.dot_dimension_numbers<[1], [1], [0], [0], [0, 0, 1, 0], [], []>} : vector<8x128xbf16>, vector<8x128xbf16>, vector<8x8xf32> -> vector<8x8xf32>
    %cst_127 = arith.constant 0.0883883461 : f32
    %316 = vector.broadcast %cst_127 : f32 to vector<8x8xf32>
    %317 = arith.mulf %315, %316 : vector<8x8xf32>
    %cst_128 = arith.constant -1.000000e+30 : f32
    %318 = vector.broadcast %cst_128 : f32 to vector<8x8xf32>
    %319 = arith.select %2, %317, %318 : vector<8x8xi1>, vector<8x8xf32>
    %cst_129 = arith.constant dense<0xFF800000> : vector<8xf32>
    %320 = vector.multi_reduction <maximumf>, %319, %cst_129 [1] : vector<8x8xf32> to vector<8xf32>
    %321 = vector.shape_cast %320 : vector<8xf32> to vector<8x1xf32>
    %322 = vector.broadcast %321 : vector<8x1xf32> to vector<8x8xf32>
    %323 = arith.subf %319, %322 : vector<8x8xf32>
    %324 = math.exp %323 : vector<8x8xf32>
    %cst_130 = arith.constant dense<0.000000e+00> : vector<8xf32>
    %325 = vector.multi_reduction <add>, %324, %cst_130 [1] : vector<8x8xf32> to vector<8xf32>
    %326 = vector.shape_cast %325 : vector<8xf32> to vector<8x1xf32>
    %327 = tpu.reciprocal %326 {approx = true} : vector<8x1xf32> -> vector<8x1xf32>
    %328 = vector.broadcast %327 : vector<8x1xf32> to vector<8x8xf32>
    %329 = arith.mulf %324, %328 : vector<8x8xf32>
    %330 = arith.truncf %329 : vector<8x8xf32> to vector<8x8xbf16>
    %cst_131 = arith.constant dense<0.000000e+00> : vector<8x128xf32>
    %331 = tpu.matmul %330, %314, %cst_131 {dimension_numbers = #tpu.dot_dimension_numbers<[1], [0], [0], [1], [0, 0, 1, 1], [], []>} : vector<8x8xbf16>, vector<8x128xbf16>, vector<8x128xf32> -> vector<8x128xf32>
    %332 = arith.truncf %331 : vector<8x128xf32> to vector<8x128xbf16>
    %333 = vector.extract_strided_slice %237 {offsets = [128, 0], sizes = [128, 256], strides = [1, 1]} : vector<256x256xbf16> to vector<128x256xbf16>
    %cst_132 = arith.constant dense<0.000000e+00> : vector<8x256xf32>
    %334 = tpu.matmul %332, %333, %cst_132 {dimension_numbers = #tpu.dot_dimension_numbers<[1], [0], [0], [1], [0, 0, 1, 1], [], []>} : vector<8x128xbf16>, vector<128x256xbf16>, vector<8x256xf32> -> vector<8x256xf32>
    %335 = arith.addf %311, %334 : vector<8x256xf32>
    %336 = tpu.concatenate %286, %335 in 0 : vector<8x256xf32>, vector<8x256xf32> -> vector<16x256xf32>
    %c1_133 = arith.constant 1 : index
    %c0_134 = arith.constant 0 : index
    %c0_135 = arith.constant 0 : index
    %337 = vector.load %arg7[%c1_133, %c0_134, %c0_135] : memref<2x1x256xf32, #tpu.memory_space<vmem>>, vector<1x1x256xf32>
    %338 = vector.shape_cast %337 : vector<1x1x256xf32> to vector<1x256xf32>
    %339 = vector.broadcast %338 : vector<1x256xf32> to vector<16x256xf32>
    %340 = arith.addf %336, %339 : vector<16x256xf32>
    %341 = arith.addf %200, %340 : vector<16x256xf32>
    %c1_136 = arith.constant 1 : index
    %c0_137 = arith.constant 0 : index
    %c0_138 = arith.constant 0 : index
    %342 = vector.load %arg8[%c1_136, %c0_137, %c0_138] : memref<2x1x256xf32, #tpu.memory_space<vmem>>, vector<1x1x256xf32>
    %343 = vector.shape_cast %342 : vector<1x1x256xf32> to vector<1x256xf32>
    %c1_139 = arith.constant 1 : index
    %c0_140 = arith.constant 0 : index
    %c0_141 = arith.constant 0 : index
    %344 = vector.load %arg9[%c1_139, %c0_140, %c0_141] : memref<2x1x256xf32, #tpu.memory_space<vmem>>, vector<1x1x256xf32>
    %345 = vector.shape_cast %344 : vector<1x1x256xf32> to vector<1x256xf32>
    %cst_142 = arith.constant dense<0.000000e+00> : vector<16xf32>
    %346 = vector.multi_reduction <add>, %341, %cst_142 [1] : vector<16x256xf32> to vector<16xf32>
    %347 = vector.shape_cast %346 : vector<16xf32> to vector<16x1xf32>
    %cst_143 = arith.constant 2.560000e+02 : f32
    %348 = vector.broadcast %cst_143 : f32 to vector<16x1xf32>
    %349 = arith.divf %347, %348 : vector<16x1xf32>
    %350 = vector.broadcast %349 : vector<16x1xf32> to vector<16x256xf32>
    %351 = arith.subf %341, %350 : vector<16x256xf32>
    %352 = arith.mulf %351, %351 : vector<16x256xf32>
    %cst_144 = arith.constant dense<0.000000e+00> : vector<16xf32>
    %353 = vector.multi_reduction <add>, %352, %cst_144 [1] : vector<16x256xf32> to vector<16xf32>
    %354 = vector.shape_cast %353 : vector<16xf32> to vector<16x1xf32>
    %cst_145 = arith.constant 2.560000e+02 : f32
    %355 = vector.broadcast %cst_145 : f32 to vector<16x1xf32>
    %356 = arith.divf %354, %355 : vector<16x1xf32>
    %357 = vector.broadcast %349 : vector<16x1xf32> to vector<16x256xf32>
    %358 = arith.subf %341, %357 : vector<16x256xf32>
    %cst_146 = arith.constant 9.99999974E-6 : f32
    %359 = vector.broadcast %cst_146 : f32 to vector<16x1xf32>
    %360 = arith.addf %356, %359 : vector<16x1xf32>
    %361 = math.rsqrt %360 : vector<16x1xf32>
    %362 = vector.broadcast %361 : vector<16x1xf32> to vector<16x256xf32>
    %363 = arith.mulf %358, %362 : vector<16x256xf32>
    %364 = vector.broadcast %343 : vector<1x256xf32> to vector<16x256xf32>
    %365 = arith.mulf %363, %364 : vector<16x256xf32>
    %366 = vector.broadcast %345 : vector<1x256xf32> to vector<16x256xf32>
    %367 = arith.addf %365, %366 : vector<16x256xf32>
    %368 = arith.truncf %367 : vector<16x256xf32> to vector<16x256xbf16>
    %c1_147 = arith.constant 1 : index
    %c0_148 = arith.constant 0 : index
    %c0_149 = arith.constant 0 : index
    %369 = vector.load %arg10[%c1_147, %c0_148, %c0_149] : memref<2x256x1024xbf16, #tpu.memory_space<vmem>>, vector<1x256x1024xbf16>
    %370 = vector.shape_cast %369 : vector<1x256x1024xbf16> to vector<256x1024xbf16>
    %cst_150 = arith.constant dense<0.000000e+00> : vector<16x1024xf32>
    %371 = tpu.matmul %368, %370, %cst_150 {dimension_numbers = #tpu.dot_dimension_numbers<[1], [0], [0], [1], [0, 0, 1, 1], [], []>} : vector<16x256xbf16>, vector<256x1024xbf16>, vector<16x1024xf32> -> vector<16x1024xf32>
    %c1_151 = arith.constant 1 : index
    %c0_152 = arith.constant 0 : index
    %c0_153 = arith.constant 0 : index
    %372 = vector.load %arg11[%c1_151, %c0_152, %c0_153] : memref<2x1x1024xf32, #tpu.memory_space<vmem>>, vector<1x1x1024xf32>
    %373 = vector.shape_cast %372 : vector<1x1x1024xf32> to vector<1x1024xf32>
    %374 = vector.broadcast %373 : vector<1x1024xf32> to vector<16x1024xf32>
    %375 = arith.addf %371, %374 : vector<16x1024xf32>
    %cst_154 = arith.constant 5.000000e-01 : f32
    %376 = vector.broadcast %cst_154 : f32 to vector<16x1024xf32>
    %377 = arith.mulf %376, %375 : vector<16x1024xf32>
    %cst_155 = arith.constant 4.471500e-02 : f32
    %378 = vector.broadcast %cst_155 : f32 to vector<16x1024xf32>
    %379 = arith.mulf %378, %375 : vector<16x1024xf32>
    %380 = arith.mulf %379, %375 : vector<16x1024xf32>
    %381 = arith.mulf %380, %375 : vector<16x1024xf32>
    %382 = arith.addf %375, %381 : vector<16x1024xf32>
    %cst_156 = arith.constant 0.797884583 : f32
    %383 = vector.broadcast %cst_156 : f32 to vector<16x1024xf32>
    %384 = arith.mulf %383, %382 : vector<16x1024xf32>
    %385 = math.tanh %384 : vector<16x1024xf32>
    %cst_157 = arith.constant 1.000000e+00 : f32
    %386 = vector.broadcast %cst_157 : f32 to vector<16x1024xf32>
    %387 = arith.addf %386, %385 : vector<16x1024xf32>
    %388 = arith.mulf %377, %387 : vector<16x1024xf32>
    %389 = arith.truncf %388 : vector<16x1024xf32> to vector<16x1024xbf16>
    %c1_158 = arith.constant 1 : index
    %c0_159 = arith.constant 0 : index
    %c0_160 = arith.constant 0 : index
    %390 = vector.load %arg12[%c1_158, %c0_159, %c0_160] : memref<2x1024x256xbf16, #tpu.memory_space<vmem>>, vector<1x1024x256xbf16>
    %391 = vector.shape_cast %390 : vector<1x1024x256xbf16> to vector<1024x256xbf16>
    %cst_161 = arith.constant dense<0.000000e+00> : vector<16x256xf32>
    %392 = tpu.matmul %389, %391, %cst_161 {dimension_numbers = #tpu.dot_dimension_numbers<[1], [0], [0], [1], [0, 0, 1, 1], [], []>} : vector<16x1024xbf16>, vector<1024x256xbf16>, vector<16x256xf32> -> vector<16x256xf32>
    %c1_162 = arith.constant 1 : index
    %c0_163 = arith.constant 0 : index
    %c0_164 = arith.constant 0 : index
    %393 = vector.load %arg13[%c1_162, %c0_163, %c0_164] : memref<2x1x256xf32, #tpu.memory_space<vmem>>, vector<1x1x256xf32>
    %394 = vector.shape_cast %393 : vector<1x1x256xf32> to vector<1x256xf32>
    %395 = vector.broadcast %394 : vector<1x256xf32> to vector<16x256xf32>
    %396 = arith.addf %392, %395 : vector<16x256xf32>
    %397 = arith.addf %341, %396 : vector<16x256xf32>
    %c0_165 = arith.constant 0 : index
    %c0_166 = arith.constant 0 : index
    %398 = vector.load %arg14[%c0_165, %c0_166] : memref<1x256xf32, #tpu.memory_space<vmem>>, vector<1x256xf32>
    %c0_167 = arith.constant 0 : index
    %c0_168 = arith.constant 0 : index
    %399 = vector.load %arg15[%c0_167, %c0_168] : memref<1x256xf32, #tpu.memory_space<vmem>>, vector<1x256xf32>
    %cst_169 = arith.constant dense<0.000000e+00> : vector<16xf32>
    %400 = vector.multi_reduction <add>, %397, %cst_169 [1] : vector<16x256xf32> to vector<16xf32>
    %401 = vector.shape_cast %400 : vector<16xf32> to vector<16x1xf32>
    %cst_170 = arith.constant 2.560000e+02 : f32
    %402 = vector.broadcast %cst_170 : f32 to vector<16x1xf32>
    %403 = arith.divf %401, %402 : vector<16x1xf32>
    %404 = vector.broadcast %403 : vector<16x1xf32> to vector<16x256xf32>
    %405 = arith.subf %397, %404 : vector<16x256xf32>
    %406 = arith.mulf %405, %405 : vector<16x256xf32>
    %cst_171 = arith.constant dense<0.000000e+00> : vector<16xf32>
    %407 = vector.multi_reduction <add>, %406, %cst_171 [1] : vector<16x256xf32> to vector<16xf32>
    %408 = vector.shape_cast %407 : vector<16xf32> to vector<16x1xf32>
    %cst_172 = arith.constant 2.560000e+02 : f32
    %409 = vector.broadcast %cst_172 : f32 to vector<16x1xf32>
    %410 = arith.divf %408, %409 : vector<16x1xf32>
    %411 = vector.broadcast %403 : vector<16x1xf32> to vector<16x256xf32>
    %412 = arith.subf %397, %411 : vector<16x256xf32>
    %cst_173 = arith.constant 9.99999974E-6 : f32
    %413 = vector.broadcast %cst_173 : f32 to vector<16x1xf32>
    %414 = arith.addf %410, %413 : vector<16x1xf32>
    %415 = math.rsqrt %414 : vector<16x1xf32>
    %416 = vector.broadcast %415 : vector<16x1xf32> to vector<16x256xf32>
    %417 = arith.mulf %412, %416 : vector<16x256xf32>
    %418 = vector.broadcast %398 : vector<1x256xf32> to vector<16x256xf32>
    %419 = arith.mulf %417, %418 : vector<16x256xf32>
    %420 = vector.broadcast %399 : vector<1x256xf32> to vector<16x256xf32>
    %421 = arith.addf %419, %420 : vector<16x256xf32>
    %c0_174 = arith.constant 0 : index
    %c0_175 = arith.constant 0 : index
    %422 = vector.load %arg1[%c0_174, %c0_175] : memref<16x256xf32, #tpu.memory_space<vmem>>, vector<16x256xf32>
    %423 = arith.addf %422, %421 : vector<16x256xf32>
    %424 = arith.truncf %423 : vector<16x256xf32> to vector<16x256xbf16>
    %c0_176 = arith.constant 0 : index
    %c0_177 = arith.constant 0 : index
    %425 = vector.load %arg17[%c0_176, %c0_177] : memref<256x128xbf16, #tpu.memory_space<vmem>>, vector<256x128xbf16>
    %cst_178 = arith.constant dense<0.000000e+00> : vector<16x128xf32>
    %426 = tpu.matmul %424, %425, %cst_178 {dimension_numbers = #tpu.dot_dimension_numbers<[1], [0], [0], [1], [0, 0, 1, 1], [], []>} : vector<16x256xbf16>, vector<256x128xbf16>, vector<16x128xf32> -> vector<16x128xf32>
    %c0_179 = arith.constant 0 : index
    %c0_180 = arith.constant 0 : index
    %427 = vector.load %arg18[%c0_179, %c0_180] : memref<1x128xf32, #tpu.memory_space<vmem>>, vector<1x128xf32>
    %428 = vector.broadcast %427 : vector<1x128xf32> to vector<16x128xf32>
    %429 = arith.addf %426, %428 : vector<16x128xf32>
    %c0_181 = arith.constant 0 : index
    %c0_182 = arith.constant 0 : index
    %430 = vector.load %arg19[%c0_181, %c0_182] : memref<16x128xf32, #tpu.memory_space<vmem>>, vector<16x128xf32>
    tpu.vector_store %arg19[%c0_181, %c0_182], %429 {strides = array<i32>} : memref<16x128xf32, #tpu.memory_space<vmem>>, vector<16x128xf32>,
    %c0_183 = arith.constant 0 : index
    %c0_184 = arith.constant 0 : index
    %431 = vector.load %arg16[%c0_183, %c0_184] : memref<256x256xbf16, #tpu.memory_space<vmem>>, vector<256x256xbf16>
    %cst_185 = arith.constant dense<0.000000e+00> : vector<16x256xf32>
    %432 = tpu.matmul %424, %431, %cst_185 {dimension_numbers = #tpu.dot_dimension_numbers<[1], [1], [0], [0], [0, 0, 1, 0], [], []>} : vector<16x256xbf16>, vector<256x256xbf16>, vector<16x256xf32> -> vector<16x256xf32>
    %c0_186 = arith.constant 0 : index
    %c0_187 = arith.constant 0 : index
    %433 = vector.load %arg20[%c0_186, %c0_187] : memref<16x256xf32, #tpu.memory_space<vmem>>, vector<16x256xf32>
    tpu.vector_store %arg20[%c0_186, %c0_187], %432 {strides = array<i32>} : memref<16x256xf32, #tpu.memory_space<vmem>>, vector<16x256xf32>,
    return
  }
}

</mosaic_0001>

<bundles_post_ra>
// kernel: gpt_label_forward.1
= control target key start
LH: loop header
LB: loop body
LE: loop exit
PB: predicated region body
PF: predicated region fallthrough
CT: control target
= control target key end

     0   :  { %s12236_s0 = inlined_call_operand.hbm [shape: f32[16,256], index: 0, kind: input, shape index: {}]   ;;  %s12237_s1 = inlined_call_operand.hbm [shape: f32[16,256], index: 1, kind: input, shape index: {}]   ;;  %s12238_s2 = inlined_call_operand.hbm [shape: f32[2,1,256], index: 2, kind: input, shape index: {}]   ;;  %s12239_s3 = inlined_call_operand.hbm [shape: f32[2,1,256], index: 3, kind: input, shape index: {}]   ;;  %s12240_s4 = inlined_call_operand.hbm [shape: bf16[2,256,768], index: 4, kind: input, shape index: {}]   ;;  %s12241_s5 = inlined_call_operand.hbm [shape: f32[2,1,768], index: 5, kind: input, shape index: {}]   ;;  %s12242_s6 = inlined_call_operand.hbm [shape: bf16[2,256,256], index: 6, kind: input, shape index: {}]   ;;  %s12243_s7 = inlined_call_operand.hbm [shape: f32[2,1,256], index: 7, kind: input, shape index: {}]   ;;  %s12244_s8 = inlined_call_operand.hbm [shape: f32[2,1,256], index: 8, kind: input, shape index: {}]   ;;  %s12245_s9 = inlined_call_operand.hbm [shape: f32[2,1,256], index: 9, kind: input, shape index: {}]   ;;  %s12246_s10 = inlined_call_operand.hbm [shape: bf16[2,256,1024], index: 10, kind: input, shape index: {}]   ;;  %s12247_s11 = inlined_call_operand.hbm [shape: f32[2,1,1024], index: 11, kind: input, shape index: {}]   ;;  %s12248_s12 = inlined_call_operand.hbm [shape: bf16[2,1024,256], index: 12, kind: input, shape index: {}]   ;;  %s12249_s13 = inlined_call_operand.hbm [shape: f32[2,1,256], index: 13, kind: input, shape index: {}]   ;;  %s12250_s14 = inlined_call_operand.hbm [shape: f32[1,256], index: 14, kind: input, shape index: {}]   ;;  %s12251_s15 = inlined_call_operand.hbm [shape: f32[1,256], index: 15, kind: input, shape index: {}]   ;;  %s12252_s16 = inlined_call_operand.hbm [shape: bf16[256,256], index: 16, kind: input, shape index: {}]   ;;  %s12253_s17 = inlined_call_operand.hbm [shape: bf16[256,128], index: 17, kind: input, shape index: {}]   ;;  %s12254_s18 = inlined_call_operand.hbm [shape: f32[1,128], index: 18, kind: input, shape index: {}]   ;;  %s12255_s19 = inlined_call_operand.hbm [shape: f32[16,128], index: 19, kind: output, shape index: {0}]   ;;  %s12256_s20 = inlined_call_operand.hbm [shape: f32[16,256], index: 20, kind: output, shape index: {1}]  }
   0x1   :  { %12269 = sst [smem:[#allocation47_spill]] %s12236_s0 }
   0x2   :  { %12270 = sst [smem:[#allocation48_spill]] %s12237_s1 }
   0x3   :  { %12271 = sst [smem:[#allocation49_spill]] %s12238_s2 }
   0x4   :  { %12272 = sst [smem:[#allocation50_spill]] %s12239_s3 }
   0x5   :  { %12273 = sst [smem:[#allocation51_spill]] %s12240_s4 }
   0x6   :  { %12274 = sst [smem:[#allocation52_spill]] %s12254_s18 }
   0x7   :  { %12275 = sst [smem:[#allocation53_spill]] %s12255_s19 }
   0x8   :  { %12276 = sst [smem:[#allocation54_spill]] %s12256_s20 }
   0x9   :  { %26 = vsyncpa [#allocation3], 0 }
   0xa   :  { %27 = vsyncpa [#allocation6], 0 }
   0xb   :  { %28 = vsyncpa [#allocation9], 0 }
   0xc   :  { %29 = vsyncpa [#allocation12], 0 }
   0xd   :  { %30 = vsyncpa [#allocation15], 0 }
   0xe   :  { %31 = vsyncpa [#allocation18], 0 }
   0xf   :  { %32 = vsyncpa [#allocation21], 0 }
  0x10   :  { %33 = vsyncpa [#allocation24], 0 }
  0x11   :  { %34 = vsyncpa [#allocation27], 0 }
  0x12   :  { %35 = vsyncpa [#allocation30], 0 }
  0x13   :  { %36 = vsyncpa [#allocation4], 0 }
  0x14   :  { %37 = vsyncpa [#allocation34], 0  ;;  %s10879_s1 = smov [#allocation5]   ;;  %s12277_s2 = sld [smem:[#allocation48_spill]] }
  0x15   :  { %s55_s22 = sshll.u32 %s10879_s1, 4  ;;  %s56_s22 = int_to_ptr.vmem [resolvable:$true] %s55_s22 }
  0x1a   :  { %s10393_s25 = scalar_lea.hbm %s12277_s2, 512 }
  0x1b   :  { %p10394_p0 = scmp.ne.s32.totalorder %s12277_s2, %s10393_s25  ;;  %p10397_p1 = scmp.lt.u32.totalorder %s10393_s25, %s12277_s2 }
  0x1d   :  { %p10399_p2 = pnand %p10397_p1, %p10394_p0 }
  0x1f   :  { %10402 = shalt.err (!%p10399_p2)
}
  0x20   :  { %s10403_s4 = scalar_lea.vmem %s56_s22, 512  ;;  %p10408_p4 = scmp.lt.s32.totalorder %s56_s22, %s56_s22 }
  0x21   :  { %p10404_p3 = scmp.ne.s32.totalorder %s56_s22, %s10403_s4  ;;  %p10409_p5 = scmp.lt.s32.totalorder %s10403_s4, %s10403_s4 }
  0x23   :  { %p10410_p6 = por %p10409_p5, %p10408_p4 }
  0x25   :  { %p10411_p7 = pnand %p10410_p6, %p10404_p3 }
  0x27   :  { %10414 = shalt.err (!%p10411_p7)
}
  0x28   :  { %s12265_s29 = smov 256   ;;  %s12267_s30 = smov 16  }
  0x29   :  { %61 = dma.hbm_to_vmem [thread:$0]  %s12277_s2, 512, %s56_s22, [#allocation6], %s12265_s29, %s12265_s29, %s12267_s30  }
  0x2a   :  { %s10882_s1 = smov [#allocation8]   ;;  %s10883_s24 = smov [#allocation11]  }
  0x2b   :  { %s79_s23 = sshll.u32 %s10882_s1, 4  ;;  %s103_s25 = sshll.u32 %s10883_s24, 4  ;;  %s80_s23 = int_to_ptr.vmem [resolvable:$true] %s79_s23  ;;  %s104_s25 = int_to_ptr.vmem [resolvable:$true] %s103_s25 }
  0x2c   :  { %s12278_s27 = sld [smem:[#allocation50_spill]] }
  0x32   :  { %s10415_s28 = scalar_lea.hbm %s12278_s27, 64 }
  0x33   :  { %p10416_p8 = scmp.ne.s32.totalorder %s12278_s27, %s10415_s28  ;;  %p10419_p9 = scmp.lt.u32.totalorder %s10415_s28, %s12278_s27 }
  0x35   :  { %p10421_p10 = pnand %p10419_p9, %p10416_p8 }
  0x37   :  { %10424 = shalt.err (!%p10421_p10)
}
  0x38   :  { %s10425_s22 = scalar_lea.vmem %s80_s23, 64  ;;  %p10430_p12 = scmp.lt.s32.totalorder %s80_s23, %s80_s23 }
  0x39   :  { %p10426_p11 = scmp.ne.s32.totalorder %s80_s23, %s10425_s22  ;;  %p10431_p13 = scmp.lt.s32.totalorder %s10425_s22, %s10425_s22 }
  0x3b   :  { %p10432_p0 = por %p10431_p13, %p10430_p12 }
  0x3d   :  { %p10433_p1 = pnand %p10432_p0, %p10426_p11 }
  0x3f   :  { %10436 = shalt.err (!%p10433_p1)
}
  0x40   :  { %s10884_s2 = smov 32   ;;  %s10885_s0 = smov 2  }
  0x41   :  { %85 = dma.hbm_to_vmem [thread:$0]  %s12278_s27, 64, %s80_s23, [#allocation9], %s10884_s2, %s10884_s2, %s10885_s0  }
  0x42   :  { %s10437_s1 = scalar_lea.hbm %s12241_s5, 192 }
  0x43   :  { %p10438_p2 = scmp.ne.s32.totalorder %s12241_s5, %s10437_s1  ;;  %p10441_p3 = scmp.lt.u32.totalorder %s10437_s1, %s12241_s5 }
  0x45   :  { %p10443_p4 = pnand %p10441_p3, %p10438_p2 }
  0x47   :  { %10446 = shalt.err (!%p10443_p4)
}
  0x48   :  { %s10447_s4 = scalar_lea.vmem %s104_s25, 192  ;;  %p10452_p6 = scmp.lt.s32.totalorder %s104_s25, %s104_s25 }
  0x49   :  { %p10448_p5 = scmp.ne.s32.totalorder %s104_s25, %s10447_s4  ;;  %p10453_p7 = scmp.lt.s32.totalorder %s10447_s4, %s10447_s4 }
  0x4b   :  { %p10454_p8 = por %p10453_p7, %p10452_p6 }
  0x4d   :  { %p10455_p9 = pnand %p10454_p8, %p10448_p5 }
  0x4f   :  { %10458 = shalt.err (!%p10455_p9)
}
  0x50   :  { %s10886_s23 = smov 96   ;;  %s10887_s27 = smov 6  }
  0x51   :  { %109 = dma.hbm_to_vmem [thread:$0]  %s12241_s5, 192, %s104_s25, [#allocation12], %s10886_s23, %s10886_s23, %s10887_s27  }
  0x52   :  { %s10888_s21 = smov [#allocation14]   ;;  %s10889_s19 = smov [#allocation17]  }
  0x53   :  { %s127_s18 = sshll.u32 %s10888_s21, 4  ;;  %s151_s1 = sshll.u32 %s10889_s19, 4  ;;  %s128_s18 = int_to_ptr.vmem [resolvable:$true] %s127_s18  ;;  %s152_s1 = int_to_ptr.vmem [resolvable:$true] %s151_s1 }
  0x54   :  { %s10459_s26 = scalar_lea.hbm %s12243_s7, 64 }
  0x55   :  { %p10460_p10 = scmp.ne.s32.totalorder %s12243_s7, %s10459_s26  ;;  %p10463_p11 = scmp.lt.u32.totalorder %s10459_s26, %s12243_s7 }
  0x57   :  { %p10465_p12 = pnand %p10463_p11, %p10460_p10 }
  0x59   :  { %10468 = shalt.err (!%p10465_p12)
}
  0x5a   :  { %s10469_s5 = scalar_lea.vmem %s128_s18, 64  ;;  %p10474_p0 = scmp.lt.s32.totalorder %s128_s18, %s128_s18 }
  0x5b   :  { %p10470_p13 = scmp.ne.s32.totalorder %s128_s18, %s10469_s5  ;;  %p10475_p1 = scmp.lt.s32.totalorder %s10469_s5, %s10469_s5 }
  0x5d   :  { %p10476_p2 = por %p10475_p1, %p10474_p0 }
  0x5f   :  { %p10477_p3 = pnand %p10476_p2, %p10470_p13 }
  0x61   :  { %10480 = shalt.err (!%p10477_p3)
}
  0x62   :  { %133 = dma.hbm_to_vmem [thread:$0]  %s12243_s7, 64, %s128_s18, [#allocation15], %s10884_s2, %s10884_s2, %s10885_s0  }
  0x63   :  { %s10481_s30 = scalar_lea.hbm %s12245_s9, 64 }
  0x64   :  { %p10482_p4 = scmp.ne.s32.totalorder %s12245_s9, %s10481_s30  ;;  %p10485_p5 = scmp.lt.u32.totalorder %s10481_s30, %s12245_s9 }
  0x66   :  { %p10487_p6 = pnand %p10485_p5, %p10482_p4 }
  0x68   :  { %10490 = shalt.err (!%p10487_p6)
}
  0x69   :  { %s10491_s24 = scalar_lea.vmem %s152_s1, 64  ;;  %p10496_p8 = scmp.lt.s32.totalorder %s152_s1, %s152_s1 }
  0x6a   :  { %p10492_p7 = scmp.ne.s32.totalorder %s152_s1, %s10491_s24  ;;  %p10497_p9 = scmp.lt.s32.totalorder %s10491_s24, %s10491_s24 }
  0x6c   :  { %p10498_p10 = por %p10497_p9, %p10496_p8 }
  0x6e   :  { %p10499_p11 = pnand %p10498_p10, %p10492_p7 }
  0x70   :  { %10502 = shalt.err (!%p10499_p11)
}
  0x71   :  { %157 = dma.hbm_to_vmem [thread:$0]  %s12245_s9, 64, %s152_s1, [#allocation18], %s10884_s2, %s10884_s2, %s10885_s0  }
  0x72   :  { %s10890_s3 = smov [#allocation20]   ;;  %s10891_s28 = smov [#allocation23]  }
  0x73   :  { %s175_s26 = sshll.u32 %s10890_s3, 4  ;;  %s199_s4 = sshll.u32 %s10891_s28, 4  ;;  %s176_s26 = int_to_ptr.vmem [resolvable:$true] %s175_s26  ;;  %s200_s4 = int_to_ptr.vmem [resolvable:$true] %s199_s4 }
  0x74   :  { %s10503_s23 = scalar_lea.hbm %s12247_s11, 256 }
  0x75   :  { %p10504_p12 = scmp.ne.s32.totalorder %s12247_s11, %s10503_s23  ;;  %p10507_p13 = scmp.lt.u32.totalorder %s10503_s23, %s12247_s11 }
  0x77   :  { %p10509_p0 = pnand %p10507_p13, %p10504_p12 }
  0x79   :  { %10512 = shalt.err (!%p10509_p0)
}
  0x7a   :  { %s10513_s9 = scalar_lea.vmem %s176_s26, 256  ;;  %p10518_p2 = scmp.lt.s32.totalorder %s176_s26, %s176_s26 }
  0x7b   :  { %p10514_p1 = scmp.ne.s32.totalorder %s176_s26, %s10513_s9  ;;  %p10519_p3 = scmp.lt.s32.totalorder %s10513_s9, %s10513_s9 }
  0x7d   :  { %p10520_p4 = por %p10519_p3, %p10518_p2 }
  0x7f   :  { %p10521_p5 = pnand %p10520_p4, %p10514_p1 }
  0x81   :  { %10524 = shalt.err (!%p10521_p5)
}
  0x82   :  { %s10892_s1 = smov 128   ;;  %s10893_s20 = smov 8  }
  0x83   :  { %181 = dma.hbm_to_vmem [thread:$0]  %s12247_s11, 256, %s176_s26, [#allocation21], %s10892_s1, %s10892_s1, %s10893_s20  }
  0x84   :  { %s10525_s18 = scalar_lea.hbm %s12249_s13, 64 }
  0x85   :  { %p10526_p6 = scmp.ne.s32.totalorder %s12249_s13, %s10525_s18  ;;  %p10529_p7 = scmp.lt.u32.totalorder %s10525_s18, %s12249_s13 }
  0x87   :  { %p10531_p8 = pnand %p10529_p7, %p10526_p6 }
  0x89   :  { %10534 = shalt.err (!%p10531_p8)
}
  0x8a   :  { %s10535_s23 = scalar_lea.vmem %s200_s4, 64  ;;  %p10540_p10 = scmp.lt.s32.totalorder %s200_s4, %s200_s4 }
  0x8b   :  { %p10536_p9 = scmp.ne.s32.totalorder %s200_s4, %s10535_s23  ;;  %p10541_p11 = scmp.lt.s32.totalorder %s10535_s23, %s10535_s23 }
  0x8d   :  { %p10542_p12 = por %p10541_p11, %p10540_p10 }
  0x8f   :  { %p10543_p13 = pnand %p10542_p12, %p10536_p9 }
  0x91   :  { %10546 = shalt.err (!%p10543_p13)
}
  0x92   :  { %205 = dma.hbm_to_vmem [thread:$0]  %s12249_s13, 64, %s200_s4, [#allocation24], %s10884_s2, %s10884_s2, %s10885_s0  }
  0x93   :  { %s10894_s27 = smov [#allocation26]   ;;  %s10895_s30 = smov [#allocation29]  }
  0x94   :  { %s222_s29 = sshll.u32 %s10894_s27, 4  ;;  %s243_s22 = sshll.u32 %s10895_s30, 4  ;;  %s223_s29 = int_to_ptr.vmem [resolvable:$true] %s222_s29  ;;  %s244_s22 = int_to_ptr.vmem [resolvable:$true] %s243_s22 }
  0x95   :  { %s10547_s19 = scalar_lea.hbm %s12251_s15, 32 }
  0x96   :  { %p10548_p0 = scmp.ne.s32.totalorder %s12251_s15, %s10547_s19  ;;  %p10551_p1 = scmp.lt.u32.totalorder %s10547_s19, %s12251_s15 }
  0x98   :  { %p10553_p2 = pnand %p10551_p1, %p10548_p0 }
  0x9a   :  { %10556 = shalt.err (!%p10553_p2)
}
  0x9b   :  { %s10557_s13 = scalar_lea.vmem %s223_s29, 32  ;;  %p10562_p4 = scmp.lt.s32.totalorder %s223_s29, %s223_s29 }
  0x9c   :  { %p10558_p3 = scmp.ne.s32.totalorder %s223_s29, %s10557_s13  ;;  %p10563_p5 = scmp.lt.s32.totalorder %s10557_s13, %s10557_s13 }
  0x9e   :  { %p10564_p6 = por %p10563_p5, %p10562_p4 }
  0xa0   :  { %p10565_p7 = pnand %p10564_p6, %p10558_p3 }
  0xa2   :  { %10568 = shalt.err (!%p10565_p7)
}
  0xa3   :  { %225 = dma.hbm_to_vmem [thread:$0]  %s12251_s15, 32, %s223_s29, [#allocation27]  }
  0xa4   :  { %s10569_s23 = scalar_lea.hbm %s12253_s17, 2048 }
  0xa5   :  { %p10570_p8 = scmp.ne.s32.totalorder %s12253_s17, %s10569_s23  ;;  %p10573_p9 = scmp.lt.u32.totalorder %s10569_s23, %s12253_s17 }
  0xa7   :  { %p10575_p10 = pnand %p10573_p9, %p10570_p8 }
  0xa9   :  { %10578 = shalt.err (!%p10575_p10)
}
  0xaa   :  { %s10579_s9 = scalar_lea.vmem %s244_s22, 2048  ;;  %p10584_p12 = scmp.lt.s32.totalorder %s244_s22, %s244_s22 }
  0xab   :  { %p10580_p11 = scmp.ne.s32.totalorder %s244_s22, %s10579_s9  ;;  %p10585_p13 = scmp.lt.s32.totalorder %s10579_s9, %s10579_s9 }
  0xad   :  { %p10586_p0 = por %p10585_p13, %p10584_p12 }
  0xaf   :  { %p10587_p1 = pnand %p10586_p0, %p10580_p11 }
  0xb1   :  { %10590 = shalt.err (!%p10587_p1)
}
  0xb2   :  { %s10896_s15 = smov 64   ;;  %s10897_s29 = smov 4  }
  0xb3   :  { %249 = dma.hbm_to_vmem [thread:$0]  %s12253_s17, 2048, %s244_s22, [#allocation30], %s10896_s15, %s10896_s15, %s10897_s29  }
  0xb4   :  { %s10898_s24 = smov [#allocation2]   ;;  %s10899_s18 = smov [#allocation7]  }
  0xb5   :  { %s43_s7 = sshll.u32 %s10898_s24, 4  ;;  %s67_s3 = sshll.u32 %s10899_s18, 4  ;;  %s44_s7 = int_to_ptr.vmem [resolvable:$true] %s43_s7  ;;  %s68_s3 = int_to_ptr.vmem [resolvable:$true] %s67_s3 }
  0xb6   :  { %s12279_s28 = sld [smem:[#allocation47_spill]] }
  0xbc   :  { %s10591_s5 = scalar_lea.hbm %s12279_s28, 512 }
  0xbd   :  { %p10592_p2 = scmp.ne.s32.totalorder %s12279_s28, %s10591_s5  ;;  %p10595_p3 = scmp.lt.u32.totalorder %s10591_s5, %s12279_s28 }
  0xbf   :  { %p10597_p4 = pnand %p10595_p3, %p10592_p2 }
  0xc1   :  { %10600 = shalt.err (!%p10597_p4)
}
  0xc2   :  { %s10601_s17 = scalar_lea.vmem %s44_s7, 512  ;;  %p10606_p6 = scmp.lt.s32.totalorder %s44_s7, %s44_s7 }
  0xc3   :  { %p10602_p5 = scmp.ne.s32.totalorder %s44_s7, %s10601_s17  ;;  %p10607_p7 = scmp.lt.s32.totalorder %s10601_s17, %s10601_s17 }
  0xc5   :  { %p10608_p8 = por %p10607_p7, %p10606_p6 }
  0xc7   :  { %p10609_p9 = pnand %p10608_p8, %p10602_p5 }
  0xc9   :  { %10612 = shalt.err (!%p10609_p9)
}
  0xca   :  { %s12280_s22 = smov 16   ;;  %s12281_s27 = smov 256  }
  0xcb   :  { %49 = dma.hbm_to_vmem [thread:$0]  %s12279_s28, 512, %s44_s7, [#allocation3], %s12281_s27, %s12281_s27, %s12280_s22  }
  0xcc   :  { %s12282_s21 = sld [smem:[#allocation49_spill]] }
  0xd2   :  { %s10613_s19 = scalar_lea.hbm %s12282_s21, 64 }
  0xd3   :  { %p10614_p10 = scmp.ne.s32.totalorder %s12282_s21, %s10613_s19  ;;  %p10617_p11 = scmp.lt.u32.totalorder %s10613_s19, %s12282_s21 }
  0xd5   :  { %p10619_p12 = pnand %p10617_p11, %p10614_p10 }
  0xd7   :  { %10622 = shalt.err (!%p10619_p12)
}
  0xd8   :  { %s10623_s5 = scalar_lea.vmem %s68_s3, 64  ;;  %p10628_p0 = scmp.lt.s32.totalorder %s68_s3, %s68_s3 }
  0xd9   :  { %p10624_p13 = scmp.ne.s32.totalorder %s68_s3, %s10623_s5  ;;  %p10629_p1 = scmp.lt.s32.totalorder %s10623_s5, %s10623_s5 }
  0xdb   :  { %p10630_p2 = por %p10629_p1, %p10628_p0 }
  0xdd   :  { %p10631_p3 = pnand %p10630_p2, %p10624_p13 }
  0xdf   :  { %10634 = shalt.err (!%p10631_p3)
}
  0xe0   :  { %73 = dma.hbm_to_vmem [thread:$0]  %s12282_s21, 64, %s68_s3, [#allocation6], %s10884_s2, %s10884_s2, %s10885_s0  }
  0xe1   :  { %s10900_s25 = smov [#allocation10]   ;;  %s12283_s17 = sld [smem:[#allocation51_spill]] }
  0xe2   :  { %s91_s23 = sshll.u32 %s10900_s25, 4  ;;  %s92_s23 = int_to_ptr.vmem [resolvable:$true] %s91_s23 }
  0xe7   :  { %s10635_s30 = scalar_lea.hbm %s12283_s17, 24576 }
  0xe8   :  { %p10636_p4 = scmp.ne.s32.totalorder %s12283_s17, %s10635_s30  ;;  %p10639_p5 = scmp.lt.u32.totalorder %s10635_s30, %s12283_s17 }
  0xea   :  { %p10641_p6 = pnand %p10639_p5, %p10636_p4 }
  0xec   :  { %10644 = shalt.err (!%p10641_p6)
}
  0xed   :  { %s10645_s24 = scalar_lea.vmem %s92_s23, 24576  ;;  %p10650_p8 = scmp.lt.s32.totalorder %s92_s23, %s92_s23 }
  0xee   :  { %p10646_p7 = scmp.ne.s32.totalorder %s92_s23, %s10645_s24  ;;  %p10651_p9 = scmp.lt.s32.totalorder %s10645_s24, %s10645_s24 }
  0xf0   :  { %p10652_p10 = por %p10651_p9, %p10650_p8 }
  0xf2   :  { %p10653_p11 = pnand %p10652_p10, %p10646_p7 }
  0xf4   :  { %10656 = shalt.err (!%p10653_p11)
}
  0xf5   :  { %s10901_s3 = smov 384   ;;  %s10902_s21 = smov 24  }
  0xf6   :  { %97 = dma.hbm_to_vmem [thread:$0]  %s12283_s17, 24576, %s92_s23, [#allocation9], %s10901_s3, %s10901_s3, %s10902_s21  }
  0xf7   :  { %s10903_s4 = smov [#allocation13]   ;;  %s10904_s7 = smov [#allocation16]  }
  0xf8   :  { %s115_s5 = sshll.u32 %s10903_s4, 4  ;;  %s139_s28 = sshll.u32 %s10904_s7, 4  ;;  %s116_s5 = int_to_ptr.vmem [resolvable:$true] %s115_s5  ;;  %s11189_s28 = int_to_ptr.vmem [resolvable:$true] %s139_s28 }
  0xf9   :  { %s10657_s26 = scalar_lea.hbm %s12242_s6, 8192 }
  0xfa   :  { %p10658_p12 = scmp.ne.s32.totalorder %s12242_s6, %s10657_s26  ;;  %p10661_p13 = scmp.lt.u32.totalorder %s10657_s26, %s12242_s6 }
  0xfc   :  { %p10663_p0 = pnand %p10661_p13, %p10658_p12 }
  0xfe   :  { %10666 = shalt.err (!%p10663_p0)
}
  0xff   :  { %s10667_s23 = scalar_lea.vmem %s116_s5, 8192  ;;  %p10672_p2 = scmp.lt.s32.totalorder %s116_s5, %s116_s5 }
 0x100   :  { %p10668_p1 = scmp.ne.s32.totalorder %s116_s5, %s10667_s23  ;;  %p10673_p3 = scmp.lt.s32.totalorder %s10667_s23, %s10667_s23 }
 0x102   :  { %p10674_p4 = por %p10673_p3, %p10672_p2 }
 0x104   :  { %p10675_p5 = pnand %p10674_p4, %p10668_p1 }
 0x106   :  { %10678 = shalt.err (!%p10675_p5)
}
 0x107   :  { %121 = dma.hbm_to_vmem [thread:$0]  %s12242_s6, 8192, %s116_s5, [#allocation12], %s10892_s1, %s10892_s1, %s10893_s20  }
 0x108   :  { %s10679_s21 = scalar_lea.hbm %s12244_s8, 64 }
 0x109   :  { %p10680_p6 = scmp.ne.s32.totalorder %s12244_s8, %s10679_s21  ;;  %p10683_p7 = scmp.lt.u32.totalorder %s10679_s21, %s12244_s8 }
 0x10b   :  { %p10685_p8 = pnand %p10683_p7, %p10680_p6 }
 0x10d   :  { %10688 = shalt.err (!%p10685_p8)
}
 0x10e   :  { %s10689_s25 = scalar_lea.vmem %s11189_s28, 64  ;;  %p10694_p10 = scmp.lt.s32.totalorder %s11189_s28, %s11189_s28 }
 0x10f   :  { %p10690_p9 = scmp.ne.s32.totalorder %s11189_s28, %s10689_s25  ;;  %p10695_p11 = scmp.lt.s32.totalorder %s10689_s25, %s10689_s25 }
 0x111   :  { %p10696_p12 = por %p10695_p11, %p10694_p10 }
 0x113   :  { %p10697_p13 = pnand %p10696_p12, %p10690_p9 }
 0x115   :  { %10700 = shalt.err (!%p10697_p13)
}
 0x116   :  { %145 = dma.hbm_to_vmem [thread:$0]  %s12244_s8, 64, %s11189_s28, [#allocation15], %s10884_s2, %s10884_s2, %s10885_s0  }
 0x117   :  { %s10905_s11 = smov [#allocation19]   ;;  %s10906_s30 = smov [#allocation22]  }
 0x118   :  { %s163_s26 = sshll.u32 %s10905_s11, 4  ;;  %s187_s9 = sshll.u32 %s10906_s30, 4  ;;  %s164_s26 = int_to_ptr.vmem [resolvable:$true] %s163_s26  ;;  %s188_s9 = int_to_ptr.vmem [resolvable:$true] %s187_s9 }
 0x119   :  { %s10701_s23 = scalar_lea.hbm %s12246_s10, 32768 }
 0x11a   :  { %p10702_p0 = scmp.ne.s32.totalorder %s12246_s10, %s10701_s23  ;;  %p10705_p1 = scmp.lt.u32.totalorder %s10701_s23, %s12246_s10 }
 0x11c   :  { %p10707_p2 = pnand %p10705_p1, %p10702_p0 }
 0x11e   :  { %10710 = shalt.err (!%p10707_p2)
}
 0x11f   :  { %s10711_s8 = scalar_lea.vmem %s164_s26, 32768  ;;  %p10716_p4 = scmp.lt.s32.totalorder %s164_s26, %s164_s26 }
 0x120   :  { %p10712_p3 = scmp.ne.s32.totalorder %s164_s26, %s10711_s8  ;;  %p10717_p5 = scmp.lt.s32.totalorder %s10711_s8, %s10711_s8 }
 0x122   :  { %p10718_p6 = por %p10717_p5, %p10716_p4 }
 0x124   :  { %p10719_p7 = pnand %p10718_p6, %p10712_p3 }
 0x126   :  { %10722 = shalt.err (!%p10719_p7)
}
 0x127   :  { %s10907_s0 = smov 512   ;;  %s10723_s4 = scalar_lea.hbm %s12248_s12, 32768 }
 0x128   :  { %169 = dma.hbm_to_vmem [thread:$0]  %s12246_s10, 32768, %s164_s26, [#allocation18], %s10907_s0, %s10907_s0, %s10884_s2  }
 0x129   :  { %p10724_p8 = scmp.ne.s32.totalorder %s12248_s12, %s10723_s4  ;;  %p10727_p9 = scmp.lt.u32.totalorder %s10723_s4, %s12248_s12 }
 0x12b   :  { %p10729_p10 = pnand %p10727_p9, %p10724_p8 }
 0x12d   :  { %10732 = shalt.err (!%p10729_p10)
}
 0x12e   :  { %s10733_s11 = scalar_lea.vmem %s188_s9, 32768  ;;  %p10738_p12 = scmp.lt.s32.totalorder %s188_s9, %s188_s9 }
 0x12f   :  { %p10734_p11 = scmp.ne.s32.totalorder %s188_s9, %s10733_s11  ;;  %p10739_p13 = scmp.lt.s32.totalorder %s10733_s11, %s10733_s11 }
 0x131   :  { %p10740_p0 = por %p10739_p13, %p10738_p12 }
 0x133   :  { %p10741_p1 = pnand %p10740_p0, %p10734_p11 }
 0x135   :  { %10744 = shalt.err (!%p10741_p1)
}
 0x136   :  { %193 = dma.hbm_to_vmem [thread:$0]  %s12248_s12, 32768, %s188_s9, [#allocation21], %s10892_s1, %s10892_s1, %s10893_s20  }
 0x137   :  { %s10908_s26 = smov [#allocation25]   ;;  %s10909_s15 = smov [#allocation28]  }
 0x138   :  { %s212_s30 = sshll.u32 %s10908_s26, 4  ;;  %s231_s29 = sshll.u32 %s10909_s15, 4  ;;  %s213_s30 = int_to_ptr.vmem [resolvable:$true] %s212_s30  ;;  %s232_s29 = int_to_ptr.vmem [resolvable:$true] %s231_s29 }
 0x139   :  { %s10745_s19 = scalar_lea.hbm %s12250_s14, 32 }
 0x13a   :  { %p10746_p2 = scmp.ne.s32.totalorder %s12250_s14, %s10745_s19  ;;  %p10749_p3 = scmp.lt.u32.totalorder %s10745_s19, %s12250_s14 }
 0x13c   :  { %p10751_p4 = pnand %p10749_p3, %p10746_p2 }
 0x13e   :  { %10754 = shalt.err (!%p10751_p4)
}
 0x13f   :  { %s10755_s12 = scalar_lea.vmem %s213_s30, 32  ;;  %p10760_p6 = scmp.lt.s32.totalorder %s213_s30, %s213_s30 }
 0x140   :  { %p10756_p5 = scmp.ne.s32.totalorder %s213_s30, %s10755_s12  ;;  %p10761_p7 = scmp.lt.s32.totalorder %s10755_s12, %s10755_s12 }
 0x142   :  { %p10762_p8 = por %p10761_p7, %p10760_p6 }
 0x144   :  { %p10763_p9 = pnand %p10762_p8, %p10756_p5 }
 0x146   :  { %10766 = shalt.err (!%p10763_p9)
}
 0x147   :  { %215 = dma.hbm_to_vmem [thread:$0]  %s12250_s14, 32, %s213_s30, [#allocation24]  }
 0x148   :  { %s10767_s13 = scalar_lea.hbm %s12252_s16, 4096 }
 0x149   :  { %p10768_p10 = scmp.ne.s32.totalorder %s12252_s16, %s10767_s13  ;;  %p10771_p11 = scmp.lt.u32.totalorder %s10767_s13, %s12252_s16 }
 0x14b   :  { %p10773_p12 = pnand %p10771_p11, %p10768_p10 }
 0x14d   :  { %10776 = shalt.err (!%p10773_p12)
}
 0x14e   :  { %s10777_s5 = scalar_lea.vmem %s232_s29, 4096  ;;  %p10782_p0 = scmp.lt.s32.totalorder %s232_s29, %s232_s29 }
 0x14f   :  { %p10778_p13 = scmp.ne.s32.totalorder %s232_s29, %s10777_s5  ;;  %p10783_p1 = scmp.lt.s32.totalorder %s10777_s5, %s10777_s5 }
 0x151   :  { %p10784_p2 = por %p10783_p1, %p10782_p0 }
 0x153   :  { %p10785_p3 = pnand %p10784_p2, %p10778_p13 }
 0x155   :  { %10788 = shalt.err (!%p10785_p3)
}
 0x156   :  { %237 = dma.hbm_to_vmem [thread:$0]  %s12252_s16, 4096, %s232_s29, [#allocation27], %s10892_s1, %s10892_s1, %s10893_s20  }
 0x157   :  { %s10910_s10 = smov [#allocation31]   ;;  %s12284_s15 = sld [smem:[#allocation52_spill]] }
 0x158   :  { %s256_s2 = sshll.u32 %s10910_s10, 4  ;;  %s257_s2 = int_to_ptr.vmem [resolvable:$true] %s256_s2 }
 0x15d   :  { %s10789_s23 = scalar_lea.hbm %s12284_s15, 16 }
 0x15e   :  { %p10790_p4 = scmp.ne.s32.totalorder %s12284_s15, %s10789_s23  ;;  %p10793_p5 = scmp.lt.u32.totalorder %s10789_s23, %s12284_s15 }
 0x160   :  { %p10795_p6 = pnand %p10793_p5, %p10790_p4 }
 0x162   :  { %10798 = shalt.err (!%p10795_p6)
}
 0x163   :  { %s10799_s8 = scalar_lea.vmem %s257_s2, 16  ;;  %s10803_s16 = scalar_lea.vmem %s257_s2, 32 }
 0x164   :  { %p10800_p7 = scmp.ne.s32.totalorder %s257_s2, %s10799_s8  ;;  %p10804_p8 = scmp.lt.s32.totalorder %s257_s2, %s257_s2 }
 0x165   :  { %p10805_p9 = scmp.lt.s32.totalorder %s10803_s16, %s10799_s8 }
 0x167   :  { %p10806_p10 = por %p10805_p9, %p10804_p8 }
 0x169   :  { %p10807_p11 = pnand %p10806_p10, %p10800_p7 }
 0x16b   :  { %10810 = shalt.err (!%p10807_p11)
}
 0x16c   :  { %259 = dma.hbm_to_vmem [thread:$0]  %s12284_s15, 16, %s257_s2, [#allocation30]  }
 0x16d   :  { %10855 = dma.done.wait [#allocation3], 512  }
 0x16e   :  { %10856 = vsyncadd [#allocation3], 4294966784 }
 0x16f   :  { %10857 = dma.done.wait [#allocation6], 576  }
 0x170   :  { %10858 = vsyncadd [#allocation6], 4294966720 }
 0x171   :  { %10859 = dma.done.wait [#allocation9], 24640  }
 0x172   :  { %10860 = vsyncadd [#allocation9], 4294942656 }
 0x173   :  { %10861 = dma.done.wait [#allocation12], 8384  }
 0x174   :  { %10862 = vsyncadd [#allocation12], 4294958912 }
 0x175   :  { %10863 = dma.done.wait [#allocation15], 128  }
 0x176   :  { %10864 = vsyncadd [#allocation15], 4294967168 }
 0x177   :  { %10865 = dma.done.wait [#allocation18], 32832  }
 0x178   :  { %10866 = vsyncadd [#allocation18], 4294934464 }
 0x179   :  { %10867 = dma.done.wait [#allocation21], 33024  }
 0x17a   :  { %10868 = vsyncadd [#allocation21], 4294934272 }
 0x17b   :  { %10869 = dma.done.wait [#allocation24], 96  }
 0x17c   :  { %10870 = vsyncadd [#allocation24], 4294967200 }
 0x17d   :  { %10871 = dma.done.wait [#allocation27], 4128  }
 0x17e   :  { %10872 = vsyncadd [#allocation27], 4294963168 }
 0x17f   :  { %10873 = dma.done.wait [#allocation30], 2064  }
 0x180   :  { %10874 = vsyncadd [#allocation30], 4294965232  ;;  %v11293_v0 = vld [vmem:[#allocation2] sm:$0xff]  ;;  %v11295_v1 = vld [vmem:[#allocation2 + $0x8] sm:$0xff]  ;;  %vm10912_vm0 = vmmov 0   ;;  %vm1227_vm1 = vcmask 1043456  }
 0x181   :  { %v11297_v2 = vld [vmem:[#allocation2 + $0x10] sm:$0xff]  ;;  %v329_v3 = vadd.f32 %v11295_v1, %v11293_v0  ;;  %v11301_v4 = vld [vmem:[#allocation2 + $0x18] sm:$0xff]  ;;  %v9441_v6 = vld [vmem:[#allocation10 + $0x4] ss:$24 sps:$4 sm:$0xff]   ;;  %vm1211_vm3 = vcmask 64512   ;;  %s10914_s12 = smov [#allocation32]  }
 0x182   :  { %v332_v5 = vadd.f32 %v11301_v4, %v11297_v2  ;;  %v9443_v7 = vld [vmem:[#allocation10] ss:$24 sps:$4 sm:$0xff]   ;;  %v9444_v8 = vld [vmem:[#allocation10 + $0x14] ss:$24 sps:$4 sm:$0xff]   ;;  %v9446_v9 = vld [vmem:[#allocation10 + $0x10] ss:$24 sps:$4 sm:$0xff]   ;;  %1002 = vmatprep.subr.bf16.mxu1 %v9441_v6 }
 0x183   :  { %330 = vadd.xlane.f32.xlu0 %v329_v3  ;;  %v9447_v10 = vld [vmem:[#allocation10 + $0x34] ss:$24 sps:$4 sm:$0xff]   ;;  %1088 = vmatprep.subr.bf16.mxu0 %v9444_v8  ;;  %v9450_v11 = vld [vmem:[#allocation10 + $0x44] ss:$24 sps:$4 sm:$0xff]   ;;  %v9449_v12 = vld [vmem:[#allocation10 + $0x30] ss:$24 sps:$4 sm:$0xff]  }
 0x184   :  { %1003 = vmatpush1.bf16.msra.mxu1 %v9443_v7  ;;  %1089 = vmatpush1.bf16.msra.mxu0 %v9446_v9  ;;  %v9452_v13 = vld [vmem:[#allocation10 + $0x40] ss:$24 sps:$4 sm:$0xff]   ;;  %v9453_v14 = vld [vmem:[#allocation10 + $0x64] ss:$24 sps:$4 sm:$0xff]   ;;  %v9456_v15 = vld [vmem:[#allocation10 + $0x74] ss:$24 sps:$4 sm:$0xff]  }
 0x185   :  { %1004 = vmatprep.subr.bf16.mxu1 %v9447_v10  ;;  %1090 = vmatprep.subr.bf16.mxu0 %v9450_v11  ;;  %v9455_v16 = vld [vmem:[#allocation10 + $0x60] ss:$24 sps:$4 sm:$0xff]   ;;  %v9458_v17 = vld [vmem:[#allocation10 + $0x70] ss:$24 sps:$4 sm:$0xff]   ;;  %v9459_v18 = vld [vmem:[#allocation10 + $0x94] ss:$24 sps:$4 sm:$0xff]  }
 0x186   :  { %v9462_v19 = vld [vmem:[#allocation10 + $0xa4] ss:$24 sps:$4 sm:$0xff]   ;;  %v9461_v20 = vld [vmem:[#allocation10 + $0x90] ss:$24 sps:$4 sm:$0xff]   ;;  %v9464_v21 = vld [vmem:[#allocation10 + $0xa0] ss:$24 sps:$4 sm:$0xff]  }
 0x187   :  { %333 = vadd.xlane.f32.xlu0 %v332_v5  ;;  %v9465_v22 = vld [vmem:[#allocation10 + $0xc4] ss:$24 sps:$4 sm:$0xff]   ;;  %v9468_v23 = vld [vmem:[#allocation10 + $0xd4] ss:$24 sps:$4 sm:$0xff]   ;;  %v9467_v24 = vld [vmem:[#allocation10 + $0xc0] ss:$24 sps:$4 sm:$0xff]  }
 0x188   :  { %1005 = vmatpush1.bf16.msra.mxu1 %v9449_v12  ;;  %1091 = vmatpush1.bf16.msra.mxu0 %v9452_v13  ;;  %v9470_v25 = vld [vmem:[#allocation10 + $0xd0] ss:$24 sps:$4 sm:$0xff]   ;;  %v9471_v26 = vld [vmem:[#allocation10 + $0xf4] ss:$24 sps:$4 sm:$0xff]   ;;  %v9474_v27 = vld [vmem:[#allocation10 + $0x104] ss:$24 sps:$4 sm:$0xff]  }
 0x189   :  { %1006 = vmatprep.subr.bf16.mxu1 %v9453_v14  ;;  %1092 = vmatprep.subr.bf16.mxu0 %v9456_v15  ;;  %v9473_v28 = vld [vmem:[#allocation10 + $0xf0] ss:$24 sps:$4 sm:$0xff]   ;;  %v9476_v29 = vld [vmem:[#allocation10 + $0x100] ss:$24 sps:$4 sm:$0xff]   ;;  %v9477_v30 = vld [vmem:[#allocation10 + $0x124] ss:$24 sps:$4 sm:$0xff]  }
 0x18a   :  { %v9480_v31 = vld [vmem:[#allocation10 + $0x134] ss:$24 sps:$4 sm:$0xff]   ;;  %v9479_v32 = vld [vmem:[#allocation10 + $0x120] ss:$24 sps:$4 sm:$0xff]   ;;  %v9482_v33 = vld [vmem:[#allocation10 + $0x130] ss:$24 sps:$4 sm:$0xff]  }
 0x18b   :  { %v9483_v34 = vld [vmem:[#allocation10 + $0x154] ss:$24 sps:$4 sm:$0xff]   ;;  %v9486_v35 = vld [vmem:[#allocation10 + $0x164] ss:$24 sps:$4 sm:$0xff]   ;;  %v9485_v36 = vld [vmem:[#allocation10 + $0x150] ss:$24 sps:$4 sm:$0xff]  }
 0x18c   :  { %1007 = vmatpush1.bf16.msra.mxu1 %v9455_v16  ;;  %1093 = vmatpush1.bf16.msra.mxu0 %v9458_v17  ;;  %v9488_v37 = vld [vmem:[#allocation10 + $0x160] ss:$24 sps:$4 sm:$0xff]   ;;  %v9489_v38 = vld [vmem:[#allocation10 + $0x184] ss:$24 sps:$4 sm:$0xff]   ;;  %v9492_v39 = vld [vmem:[#allocation10 + $0x194] ss:$24 sps:$4 sm:$0xff]  }
 0x18d   :  { %1008 = vmatprep.subr.bf16.mxu1 %v9459_v18  ;;  %1094 = vmatprep.subr.bf16.mxu0 %v9462_v19  ;;  %v9491_v40 = vld [vmem:[#allocation10 + $0x180] ss:$24 sps:$4 sm:$0xff]   ;;  %v9494_v41 = vld [vmem:[#allocation10 + $0x190] ss:$24 sps:$4 sm:$0xff]   ;;  %v9495_v42 = vld [vmem:[#allocation10 + $0x1b4] ss:$24 sps:$4 sm:$0xff]  }
 0x18e   :  { %v9497_v57 = vld [vmem:[#allocation10 + $0x1b0] ss:$24 sps:$4 sm:$0xff]   ;;  %v9498_v58 = vld [vmem:[#allocation10 + $0x1c4] ss:$24 sps:$4 sm:$0xff]   ;;  %v9500_v59 = vld [vmem:[#allocation10 + $0x1c0] ss:$24 sps:$4 sm:$0xff]  }
 0x18f   :  { %v9501_v60 = vld [vmem:[#allocation10 + $0x1e4] ss:$24 sps:$4 sm:$0xff]   ;;  %v9503_v61 = vld [vmem:[#allocation10 + $0x1e0] ss:$24 sps:$4 sm:$0xff]   ;;  %v9504_v62 = vld [vmem:[#allocation10 + $0x1f4] ss:$24 sps:$4 sm:$0xff]  }
 0x190   :  { %1009 = vmatpush1.bf16.msra.mxu1 %v9461_v20  ;;  %1095 = vmatpush1.bf16.msra.mxu0 %v9464_v21  ;;  %v9506_v63 = vld [vmem:[#allocation10 + $0x1f0] ss:$24 sps:$4 sm:$0xff]   ;;  %v9512_v3 = vld [vmem:[#allocation10 + $0x220] ss:$24 sps:$4 sm:$0xff]   ;;  %v9516_v6 = vld [vmem:[#allocation10 + $0x254] ss:$24 sps:$4 sm:$0xff]  }
 0x191   :  { %1010 = vmatprep.subr.bf16.mxu1 %v9465_v22  ;;  %1096 = vmatprep.subr.bf16.mxu0 %v9468_v23  ;;  %v9515_v5 = vld [vmem:[#allocation10 + $0x240] ss:$24 sps:$4 sm:$0xff]   ;;  %v9518_v7 = vld [vmem:[#allocation10 + $0x250] ss:$24 sps:$4 sm:$0xff]   ;;  %v9519_v8 = vld [vmem:[#allocation10 + $0x274] ss:$24 sps:$4 sm:$0xff]  }
 0x192   :  { %v9522_v9 = vld [vmem:[#allocation10 + $0x284] ss:$24 sps:$4 sm:$0xff]   ;;  %v9521_v10 = vld [vmem:[#allocation10 + $0x270] ss:$24 sps:$4 sm:$0xff]   ;;  %v9524_v11 = vld [vmem:[#allocation10 + $0x280] ss:$24 sps:$4 sm:$0xff]  }
 0x193   :  { %v9525_v12 = vld [vmem:[#allocation10 + $0x2a4] ss:$24 sps:$4 sm:$0xff]   ;;  %v9527_v13 = vld [vmem:[#allocation10 + $0x2a0] ss:$24 sps:$4 sm:$0xff]   ;;  %v9528_v14 = vld [vmem:[#allocation10 + $0x2b4] ss:$24 sps:$4 sm:$0xff]  }
 0x194   :  { %1011 = vmatpush1.bf16.msra.mxu1 %v9467_v24  ;;  %1097 = vmatpush1.bf16.msra.mxu0 %v9470_v25  ;;  %v9530_v15 = vld [vmem:[#allocation10 + $0x2b0] ss:$24 sps:$4 sm:$0xff]   ;;  %v9531_v16 = vld [vmem:[#allocation10 + $0x2d4] ss:$24 sps:$4 sm:$0xff]   ;;  %v9534_v17 = vld [vmem:[#allocation10 + $0x2e4] ss:$24 sps:$4 sm:$0xff]   ;;  %v318_v25 = vlaneseq }
 0x195   :  { %1012 = vmatprep.subr.bf16.mxu1 %v9471_v26  ;;  %1098 = vmatprep.subr.bf16.mxu0 %v9474_v27  ;;  %v9533_v18 = vld [vmem:[#allocation10 + $0x2d0] ss:$24 sps:$4 sm:$0xff]   ;;  %v9536_v19 = vld [vmem:[#allocation10 + $0x2e0] ss:$24 sps:$4 sm:$0xff]   ;;  %v9539_v20 = vld [vmem:[#allocation10 + $0xc] ss:$24 sps:$4 sm:$0xff]  }
 0x196   :  { %s8360_s9 = sshll.u32 %s10914_s12, 4  ;;  %s8361_s9 = int_to_ptr.vmem [resolvable:$true] %s8360_s9 }
 0x197   :  { %s10811_s28 = scalar_lea.vmem %s8361_s9, 256  ;;  %p10816_p13 = scmp.lt.s32.totalorder %s8361_s9, %s8361_s9 }
 0x198   :  { %1013 = vmatpush1.bf16.msra.mxu1 %v9473_v28  ;;  %1099 = vmatpush1.bf16.msra.mxu0 %v9476_v29  ;;  %v11326_v28 = vshrl.u32 %v318_v25, 7  ;;  %p10812_p12 = scmp.ne.s32.totalorder %s8361_s9, %s10811_s28  ;;  %p10817_p0 = scmp.lt.s32.totalorder %s10811_s28, %s10811_s28 }
 0x199   :  { %1014 = vmatprep.subr.bf16.mxu1 %v9477_v30  ;;  %1100 = vmatprep.subr.bf16.mxu0 %v9480_v31  ;;  %v327_v31 = vld [vmem:[#allocation7] sm:$0x3] }
 0x19a   :  { %v11329_v29 = vsub.s32 1, %v11326_v28  ;;  %v11332_v30 = vsub.s32 0, %v11326_v28  ;;  %p10818_p1 = por %p10817_p0, %p10816_p13 }
 0x19c   :  { %1015 = vmatpush1.bf16.msra.mxu1 %v9479_v32  ;;  %1101 = vmatpush1.bf16.msra.mxu0 %v9482_v33  ;;  %v328_v33 = vld [vmem:[#allocation8] sm:$0x3]  ;;  %p10819_p2 = pnand %p10818_p1, %p10812_p12 }
 0x19d   :  { %1016 = vmatprep.subr.bf16.mxu1 %v9483_v34  ;;  %1102 = vmatprep.subr.bf16.mxu0 %v9486_v35  ;;  %v370_v35 = vrot.slane %v327_v31, %v11329_v29 }
 0x1a0   :  { %1017 = vmatpush1.bf16.msra.mxu1 %v9485_v36  ;;  %1103 = vmatpush1.bf16.msra.mxu0 %v9488_v37  ;;  %v366_v37 = vrot.slane %v327_v31, %v11332_v30 }
 0x1a1   :  { %1018 = vmatprep.subr.bf16.mxu1 %v9489_v38  ;;  %1104 = vmatprep.subr.bf16.mxu0 %v9492_v39  ;;  %v385_v39 = vrot.slane %v328_v33, %v11329_v29 }
 0x1a4   :  { %1019 = vmatpush1.bf16.msra.mxu1 %v9491_v40  ;;  %1105 = vmatpush1.bf16.msra.mxu0 %v9494_v41  ;;  %v381_v40 = vrot.slane %v328_v33, %v11332_v30 }
 0x1a5   :  { %1020 = vmatprep.subr.bf16.mxu1 %v9495_v42  ;;  %1106 = vmatprep.subr.bf16.mxu0 %v9498_v58  ;;  %v9548_v58 = vld [vmem:[#allocation10 + $0x9c] ss:$24 sps:$4 sm:$0xff]  }
 0x1a8   :  { %1021 = vmatpush1.bf16.msra.mxu1 %v9497_v57  ;;  %1107 = vmatpush1.bf16.msra.mxu0 %v9500_v59  ;;  %v9543_v57 = vld [vmem:[#allocation10 + $0x68] ss:$24 sps:$4 sm:$0xff]   ;;  %v9546_v59 = vld [vmem:[#allocation10 + $0x98] ss:$24 sps:$4 sm:$0xff]  }
 0x1a9   :  { %1022 = vmatprep.subr.bf16.mxu1 %v9501_v60  ;;  %1108 = vmatprep.subr.bf16.mxu0 %v9504_v62  ;;  %v9551_v60 = vld [vmem:[#allocation10 + $0xcc] ss:$24 sps:$4 sm:$0xff]   ;;  %v9554_v62 = vld [vmem:[#allocation10 + $0xfc] ss:$24 sps:$4 sm:$0xff]  }
 0x1ac   :  { %1023 = vmatpush1.bf16.msra.mxu1 %v9503_v61  ;;  %1109 = vmatpush1.bf16.msra.mxu0 %v9506_v63  ;;  %v9549_v61 = vld [vmem:[#allocation10 + $0xc8] ss:$24 sps:$4 sm:$0xff]   ;;  %v9552_v63 = vld [vmem:[#allocation10 + $0xf8] ss:$24 sps:$4 sm:$0xff]  }
 0x210   :  { %v331_v43 = vpop.xlane.xlu0 %330 }
 0x211   :  { %v336_v44 = vmul.f32 0.00390625, %v331_v43 }
 0x213   :  { %v11306_v45 = vsub.f32 %v11293_v0, %v336_v44  ;;  %v11309_v46 = vsub.f32 %v11295_v1, %v336_v44  ;;  %v9507_v0 = vld [vmem:[#allocation10 + $0x214] ss:$24 sps:$4 sm:$0xff]   ;;  %v9509_v1 = vld [vmem:[#allocation10 + $0x210] ss:$24 sps:$4 sm:$0xff]  }
 0x214   :  { %v334_v47 = vpop.xlane.xlu0 %333  ;;  %1024 = vmatprep.subr.bf16.mxu1 %v9507_v0  ;;  %v9557_v0 = vld [vmem:[#allocation10 + $0x12c] ss:$24 sps:$4 sm:$0xff]  }
 0x215   :  { %v337_v48 = vmul.f32 0.00390625, %v334_v47  ;;  %v342_v49 = vmul.f32 %v11306_v45, %v11306_v45  ;;  %v343_v50 = vmul.f32 %v11309_v46, %v11309_v46  ;;  %1025 = vmatpush1.bf16.msra.mxu1 %v9509_v1  ;;  %v9555_v1 = vld [vmem:[#allocation10 + $0x128] ss:$24 sps:$4 sm:$0xff]  }
 0x217   :  { %v11316_v51 = vsub.f32 %v11297_v2, %v337_v48  ;;  %v11319_v52 = vsub.f32 %v11301_v4, %v337_v48  ;;  %v346_v53 = vadd.f32 %v343_v50, %v342_v49  ;;  %v9510_v2 = vld [vmem:[#allocation10 + $0x224] ss:$24 sps:$4 sm:$0xff]  }
 0x218   :  { %1110 = vmatprep.subr.bf16.mxu0 %v9510_v2  ;;  %v9513_v4 = vld [vmem:[#allocation10 + $0x244] ss:$24 sps:$4 sm:$0xff]  }
 0x219   :  { %347 = vadd.xlane.f32.xlu1 %v346_v53  ;;  %v344_v54 = vmul.f32 %v11316_v51, %v11316_v51  ;;  %v345_v55 = vmul.f32 %v11319_v52, %v11319_v52  ;;  %1111 = vmatpush1.bf16.msra.mxu0 %v9512_v3  ;;  %v9560_v2 = vld [vmem:[#allocation10 + $0x15c] ss:$24 sps:$4 sm:$0xff]   ;;  %v9558_v3 = vld [vmem:[#allocation10 + $0x158] ss:$24 sps:$4 sm:$0xff]  }
 0x21a   :  { %1026 = vmatprep.subr.bf16.mxu1 %v9513_v4  ;;  %1112 = vmatprep.subr.bf16.mxu0 %v9516_v6  ;;  %v9563_v4 = vld [vmem:[#allocation10 + $0x18c] ss:$24 sps:$4 sm:$0xff]   ;;  %v9566_v6 = vld [vmem:[#allocation10 + $0x1bc] ss:$24 sps:$4 sm:$0xff]  }
 0x21b   :  { %v349_v56 = vadd.f32 %v345_v55, %v344_v54  ;;  %1027 = vmatpush1.bf16.msra.mxu1 %v9515_v5  ;;  %v9537_v54 = vld [vmem:[#allocation10 + $0x8] ss:$24 sps:$4 sm:$0xff]  }
 0x21c   :  { %1028 = vmatprep.subr.bf16.mxu1 %v9519_v8  ;;  %v9561_v5 = vld [vmem:[#allocation10 + $0x188] ss:$24 sps:$4 sm:$0xff]   ;;  %v9569_v8 = vld [vmem:[#allocation10 + $0x1ec] ss:$24 sps:$4 sm:$0xff]  }
 0x21d   :  { %350 = vadd.xlane.f32.xlu1 %v349_v56  ;;  %1113 = vmatpush1.bf16.msra.mxu0 %v9518_v7  ;;  %v9542_v56 = vld [vmem:[#allocation10 + $0x3c] ss:$24 sps:$4 sm:$0xff]   ;;  %v9564_v7 = vld [vmem:[#allocation10 + $0x1b8] ss:$24 sps:$4 sm:$0xff]  }
 0x21e   :  { %1114 = vmatprep.subr.bf16.mxu0 %v9522_v9  ;;  %v9567_v9 = vld [vmem:[#allocation10 + $0x1e8] ss:$24 sps:$4 sm:$0xff]  }
 0x21f   :  { %1029 = vmatpush1.bf16.msra.mxu1 %v9521_v10  ;;  %v9572_v10 = vld [vmem:[#allocation10 + $0x21c] ss:$24 sps:$4 sm:$0xff]  }
 0x220   :  { %1030 = vmatprep.subr.bf16.mxu1 %v9525_v12  ;;  %v9575_v12 = vld [vmem:[#allocation10 + $0x24c] ss:$24 sps:$4 sm:$0xff]  }
 0x221   :  { %1115 = vmatpush1.bf16.msra.mxu0 %v9524_v11  ;;  %v9570_v11 = vld [vmem:[#allocation10 + $0x218] ss:$24 sps:$4 sm:$0xff]  }
 0x222   :  { %1116 = vmatprep.subr.bf16.mxu0 %v9528_v14  ;;  %v9578_v14 = vld [vmem:[#allocation10 + $0x27c] ss:$24 sps:$4 sm:$0xff]  }
 0x223   :  { %1031 = vmatpush1.bf16.msra.mxu1 %v9527_v13  ;;  %v9573_v13 = vld [vmem:[#allocation10 + $0x248] ss:$24 sps:$4 sm:$0xff]  }
 0x224   :  { %1032 = vmatprep.subr.bf16.mxu1 %v9531_v16  ;;  %v9581_v16 = vld [vmem:[#allocation10 + $0x2ac] ss:$24 sps:$4 sm:$0xff]  }
 0x225   :  { %1117 = vmatpush1.bf16.msra.mxu0 %v9530_v15  ;;  %v9576_v15 = vld [vmem:[#allocation10 + $0x278] ss:$24 sps:$4 sm:$0xff]  }
 0x226   :  { %1118 = vmatprep.subr.bf16.mxu0 %v9534_v17  ;;  %v9579_v17 = vld [vmem:[#allocation10 + $0x2a8] ss:$24 sps:$4 sm:$0xff]  }
 0x227   :  { %1033 = vmatpush1.bf16.msra.mxu1 %v9533_v18  ;;  %v9584_v18 = vld [vmem:[#allocation10 + $0x2dc] ss:$24 sps:$4 sm:$0xff]  }
 0x228   :  { %1045 = vmatprep.subr.bf16.mxu1 %v9539_v20  ;;  %v10911_v20 = vmov 0.0  }
 0x229   :  { %1119 = vmatpush1.bf16.msra.mxu0 %v9536_v19  ;;  %v9582_v19 = vld [vmem:[#allocation10 + $0x2d8] ss:$24 sps:$4 sm:$0xff]  }
 0x22a   :  { %9276 = vmatprep.subr.bf16.mxu0 %v10911_v20 }
 0x2a6   :  { %v348_v21 = vpop.xlane.xlu1 %347 }
 0x2a7   :  { %v352_v22 = vmul.f32 0.00390625, %v348_v21  ;;  %v11354_v21 = vsub.s32 4, %v11326_v28 }
 0x2a9   :  { %v354_v23 = vadd.f32 1e-05, %v352_v22  ;;  %v490_v22 = vld [vmem:[#allocation11] sm:$0x3f] }
 0x2aa   :  { %v351_v24 = vpop.xlane.xlu1 %350 }
 0x2ab   :  { %10273 = vrsqrt.f32 %v354_v23  ;;  %v353_v26 = vmul.f32 0.00390625, %v351_v24  ;;  %v11357_v23 = vsub.s32 5, %v11326_v28  ;;  %v495_v24 = vrot.slane %v490_v22, %v11332_v30 }
 0x2ad   :  { %v355_v27 = vadd.f32 1e-05, %v353_v26  ;;  %v511_v26 = vrot.slane %v490_v22, %v11354_v21  ;;  %v515_v33 = vrot.slane %v490_v22, %v11357_v23 }
 0x2af   :  { %10275 = vrsqrt.f32 %v355_v27 }
 0x2b5   :  { %v10274_v32 = vpop.eup %10273 }
 0x2b6   :  { %v359_v34 = vmul.f32 %v10274_v32, %v11309_v46  ;;  %v358_v36 = vmul.f32 %v10274_v32, %v11306_v45  ;;  %v499_v32 = vrot.slane %v490_v22, %v11329_v29 }
 0x2b8   :  { %v374_v42 = vmul.f32 %v370_v35, %v359_v34  ;;  %v373_v44 = vmul.f32 %v366_v37, %v358_v36 }
 0x2b9   :  { %v10276_v38 = vpop.eup %10275 }
 0x2ba   :  { %v361_v41 = vmul.f32 %v10276_v38, %v11319_v52  ;;  %v360_v43 = vmul.f32 %v10276_v38, %v11316_v51  ;;  %v389_v46 = vadd.f32 %v385_v39, %v374_v42  ;;  %v388_v50 = vadd.f32 %v381_v40, %v373_v44  ;;  %v9540_v51 = vld [vmem:[#allocation10 + $0x38] ss:$24 sps:$4 sm:$0xff]   ;;  %v9545_v52 = vld [vmem:[#allocation10 + $0x6c] ss:$24 sps:$4 sm:$0xff]  }
 0x2bc   :  { %v376_v47 = vmul.f32 %v370_v35, %v361_v41  ;;  %v375_v48 = vmul.f32 %v366_v37, %v360_v43 }
 0x2be   :  { %v391_v49 = vadd.f32 %v385_v39, %v376_v47  ;;  %v390_v53 = vadd.f32 %v381_v40, %v375_v48 }
 0x2c0   :  { %v393_v45 = vpack.c.bf16 %v391_v49, %v389_v46  ;;  %v11342_v55 = vpack.c.bf16 %v390_v53, %v388_v50 }
 0x2c2   :  { %1034 = vmatprep.mubr.bf16.mxu1 %v393_v45  ;;  %1120 = vmatprep.mubr.bf16.mxu0 %v393_v45 }
 0x2c3   :  { %1035 = vmatmul.mubr.bf16.vlgmr.msra.gmra.mrb[0].mxu1 %v11342_v55  ;;  %1121 = vmatmul.mubr.bf16.vlgmr.msra.gmra.mrb[0].mxu0 %v11342_v55 }
 0x2c4   :  { %1046 = vmatpush1.bf16.msra.mxu1 %v9537_v54  ;;  %1077 = vmatprep.mubr.bf16.mxu1 %v393_v45  ;;  %v11372_v54 = vsub.s32 2, %v11326_v28 }
 0x2c5   :  { %1047 = vmatprep.subr.bf16.mxu1 %v9542_v56  ;;  %9278 = vmatprep.mubr.msk.bf16.mxu0 %vm10912_vm0, %v10911_v20 }
 0x2c6   :  { %v503_v56 = vrot.slane %v490_v22, %v11372_v54 }
 0x2c8   :  { %1048 = vmatpush1.bf16.msra.mxu1 %v9540_v51 }
 0x2c9   :  { %1049 = vmatprep.subr.bf16.mxu1 %v9545_v52 }
 0x2cc   :  { %1050 = vmatpush1.bf16.msra.mxu1 %v9543_v57 }
 0x2cd   :  { %1051 = vmatprep.subr.bf16.mxu1 %v9548_v58 }
 0x2d0   :  { %1052 = vmatpush1.bf16.msra.mxu1 %v9546_v59 }
 0x2d1   :  { %1053 = vmatprep.subr.bf16.mxu1 %v9551_v60 }
 0x2d4   :  { %1054 = vmatpush1.bf16.msra.mxu1 %v9549_v61 }
 0x2d5   :  { %1055 = vmatprep.subr.bf16.mxu1 %v9554_v62 }
 0x2d8   :  { %1056 = vmatpush1.bf16.msra.mxu1 %v9552_v63 }
 0x2d9   :  { %1057 = vmatprep.subr.bf16.mxu1 %v9557_v0 }
 0x2dc   :  { %1058 = vmatpush1.bf16.msra.mxu1 %v9555_v1 }
 0x2dd   :  { %1059 = vmatprep.subr.bf16.mxu1 %v9560_v2 }
 0x2e0   :  { %1060 = vmatpush1.bf16.msra.mxu1 %v9558_v3 }
 0x2e1   :  { %1061 = vmatprep.subr.bf16.mxu1 %v9563_v4  ;;  %v321_v4 = vand.u32 127, %v318_v25 }
 0x2e3   :  { %vm11401_vm2 = vcmp.le.s32.totalorder %v321_v4, %v11326_v28 }
 0x2e4   :  { %1062 = vmatpush1.bf16.msra.mxu1 %v9561_v5 }
 0x2e5   :  { %1063 = vmatprep.subr.bf16.mxu1 %v9566_v6 }
 0x2e8   :  { %1064 = vmatpush1.bf16.msra.mxu1 %v9564_v7 }
 0x2e9   :  { %1065 = vmatprep.subr.bf16.mxu1 %v9569_v8 }
 0x2ec   :  { %1066 = vmatpush1.bf16.msra.mxu1 %v9567_v9 }
 0x2ed   :  { %1067 = vmatprep.subr.bf16.mxu1 %v9572_v10 }
 0x2f0   :  { %1068 = vmatpush1.bf16.msra.mxu1 %v9570_v11 }
 0x2f1   :  { %1069 = vmatprep.subr.bf16.mxu1 %v9575_v12 }
 0x2f4   :  { %1070 = vmatpush1.bf16.msra.mxu1 %v9573_v13 }
 0x2f5   :  { %1071 = vmatprep.subr.bf16.mxu1 %v9578_v14 }
 0x2f8   :  { %1072 = vmatpush1.bf16.msra.mxu1 %v9576_v15 }
 0x2f9   :  { %1073 = vmatprep.subr.bf16.mxu1 %v9581_v16 }
 0x2fc   :  { %1074 = vmatpush1.bf16.msra.mxu1 %v9579_v17 }
 0x2fd   :  { %1075 = vmatprep.subr.bf16.mxu1 %v9584_v18 }
 0x300   :  { %1076 = vmatpush1.bf16.msra.mxu1 %v9582_v19 }
 0x301   :  { %9288 = vmatprep.subr.bf16.mxu1 %v10911_v20 }
 0x303   :  { %1078 = vmatmul.mubr.bf16.vlgmr.msra.gmra.mrb[4].mxu1 %v11342_v55  ;;  %v11375_v55 = vsub.s32 3, %v11326_v28 }
 0x304   :  { %9290 = vmatprep.mubr.msk.bf16.mxu1 %vm10912_vm0, %v10911_v20 }
 0x305   :  { %v507_v52 = vrot.slane %v490_v22, %v11375_v55 }
 0x396   :  { %v1036_v27 = vpop.f32.mrb[0].mxu1  ;;  %v1122_v31 = vpop.f32.mrb[0].mxu0 }
 0x397   :  { %v1038_v34 = vpop.f32.mrb[1].mxu1  ;;  %v1124_v35 = vpop.f32.mrb[1].mxu0  ;;  %v1037_v38 = vadd.f32 %v1036_v27, %v495_v24  ;;  %v1123_v39 = vadd.f32 %v1122_v31, %v511_v26 }
 0x398   :  { %v1040_v36 = vpop.f32.mrb[2].mxu1  ;;  %v1126_v37 = vpop.f32.mrb[2].mxu0  ;;  %v1039_v44 = vadd.f32 %v1038_v34, %v499_v32  ;;  %v1125_v47 = vadd.f32 %v1124_v35, %v515_v33  ;;  %v11414_v34 = vld [vmem:[#allocation13 + $0x94] ss:$8 sps:$4 sm:$0xff]   ;;  %v11418_v35 = vld [vmem:[#allocation13 + $0x90] ss:$8 sps:$4 sm:$0xff]  }
 0x399   :  { %v1041_v40 = vadd.f32 %v1040_v36, %v495_v24  ;;  %v1127_v41 = vadd.f32 %v1126_v37, %v511_v26  ;;  %v1042_v42 = vpop.f32.mrb[3].mxu1  ;;  %v1128_v43 = vpop.f32.mrb[3].mxu0  ;;  %v11409_v24 = vld [vmem:[#allocation13 + $0x84] ss:$8 sps:$4 sm:$0xff]   ;;  %v11424_v37 = vld [vmem:[#allocation13 + $0xa0] ss:$8 sps:$4 sm:$0xff]  }
 0x39a   :  { %v1043_v48 = vadd.f32 %v1042_v42, %v499_v32  ;;  %v1129_v46 = vadd.f32 %v1128_v43, %v515_v33  ;;  %v11412_v32 = vld [vmem:[#allocation13 + $0x80] ss:$8 sps:$4 sm:$0xff]   ;;  %v11421_v36 = vld [vmem:[#allocation13 + $0xa4] ss:$8 sps:$4 sm:$0xff]   ;;  %v11439_v42 = vld [vmem:[#allocation13 + $0xd4] ss:$8 sps:$4 sm:$0xff]  }
 0x39b   :  { %v11363_v49 = vpack.c.bf16 %v1041_v40, %v1037_v38  ;;  %v11365_v50 = vpack.c.bf16 %v1127_v41, %v1123_v39  ;;  %v11427_v38 = vld [vmem:[#allocation13 + $0xb4] ss:$8 sps:$4 sm:$0xff]   ;;  %v11430_v39 = vld [vmem:[#allocation13 + $0xb0] ss:$8 sps:$4 sm:$0xff]   ;;  %v11433_v40 = vld [vmem:[#allocation13 + $0xc4] ss:$8 sps:$4 sm:$0xff]  }
 0x39c   :  { %v11367_v53 = vpack.c.bf16 %v1043_v48, %v1039_v44  ;;  %v11369_v45 = vpack.c.bf16 %v1129_v46, %v1125_v47  ;;  %v11436_v41 = vld [vmem:[#allocation13 + $0xc0] ss:$8 sps:$4 sm:$0xff]   ;;  %v11442_v43 = vld [vmem:[#allocation13 + $0xd0] ss:$8 sps:$4 sm:$0xff]   ;;  %v11445_v44 = vld [vmem:[#allocation13 + $0xe4] ss:$8 sps:$4 sm:$0xff]  }
 0x39d   :  { %v1229_v2 = vsel %vm1227_vm1, %v11365_v50, 0  ;;  %v11448_v47 = vld [vmem:[#allocation13 + $0xe0] ss:$8 sps:$4 sm:$0xff]   ;;  %v11451_v48 = vld [vmem:[#allocation13 + $0xf4] ss:$8 sps:$4 sm:$0xff]  }
 0x39e   :  { %v1330_v3 = vsel %vm1227_vm1, %v11369_v45, 0  ;;  %v11454_v46 = vld [vmem:[#allocation13 + $0xf0] ss:$8 sps:$4 sm:$0xff]  }
 0x3d6   :  { %v1079_v51 = vpop.f32.mrb[4].mxu1 }
 0x3d7   :  { %v1081_v57 = vpop.f32.mrb[5].mxu1  ;;  %v1080_v59 = vadd.f32 %v1079_v51, %v503_v56 }
 0x3d8   :  { %v1083_v58 = vpop.f32.mrb[6].mxu1  ;;  %v1082_v62 = vadd.f32 %v1081_v57, %v507_v52 }
 0x3d9   :  { %v1084_v60 = vadd.f32 %v1083_v58, %v503_v56  ;;  %v1085_v61 = vpop.f32.mrb[7].mxu1  ;;  %v10913_v56 = vmov 0  }
 0x3da   :  { %v1086_v63 = vadd.f32 %v1085_v61, %v507_v52  ;;  %v1676_v61 = vrot.slane %v11365_v50, 4 }
 0x3db   :  { %v11379_v0 = vpack.c.bf16 %v1084_v60, %v1080_v59 }
 0x3dc   :  { %v11381_v1 = vpack.c.bf16 %v1086_v63, %v1082_v62  ;;  %v1616_v62 = vrot.slane %v11363_v49, 4  ;;  %v1681_v63 = vsel %vm1227_vm1, %v1676_v61, 0 }
 0x3dd   :  { %9277 = vmatpush3.bf16.xpose.msra.mxu0 %v11379_v0  ;;  %v1619_v58 = vrot.slane %v11379_v0, 4 }
 0x3de   :  { %9289 = vmatpush3.bf16.xpose.msra.mxu1 %v11381_v1  ;;  %9282 = vmatprep.subr.bf16.mxu0 %v10911_v20 }
 0x3df   :  { %9294 = vmatprep.subr.bf16.mxu1 %v10911_v20 }
 0x3e4   :  { %9279 = vmatmul.mubr.bf16.vlgmr.msra.gmra.mrb[4].mxu0 %v11363_v49 }
 0x3e5   :  { %9283 = vmatpush3.bf16.msra.mxu0 %v1229_v2  ;;  %9291 = vmatmul.mubr.bf16.vlgmr.msra.gmra.mrb[8].mxu1 %v11367_v53 }
 0x3e6   :  { %9295 = vmatpush3.bf16.msra.mxu1 %v1330_v3  ;;  %9296 = vmatprep.mubr.msk.bf16.mxu1 %vm10912_vm0, %v10911_v20 }
 0x3e7   :  { %9284 = vmatprep.mubr.msk.bf16.mxu0 %vm10912_vm0, %v10911_v20  ;;  %1453 = vmatprep.subr.bf16.mxu1 %v11409_v24 }
 0x4b7   :  { %v11398_v5 = vpop.f32.mrb[4].mxu0 }
 0x4b8   :  { %v9280_v6 = vpop.f32.mrb[5].mxu0  ;;  %v1306_v7 = vpop.f32.mrb[8].mxu1  ;;  %v1209_v50 = vmul.f32 0.088388346, %v11398_v5 }
 0x4b9   :  { %v1312_v9 = vmul.f32 0.088388346, %v1306_v7  ;;  %v1206_v10 = vpop.f32.mrb[6].mxu0  ;;  %v9292_v11 = vpop.f32.mrb[9].mxu1 }
 0x4ba   :  { %v9281_v12 = vpop.f32.mrb[7].mxu0  ;;  %v1309_v13 = vpop.f32.mrb[10].mxu1 }
 0x4bb   :  { %v9293_v14 = vpop.f32.mrb[11].mxu1  ;;  %v1313_v15 = vsel %vm11401_vm2, %v1312_v9, -1e+30  ;;  %v1210_v13 = vsel %vm11401_vm2, %v1209_v50, -1e+30 }
 0x4bc   :  { %v1314_v25 = vsel %vm1211_vm3, %v1313_v15, -inf  ;;  %v1212_v14 = vsel %vm1211_vm3, %v1210_v13, -inf  ;;  %v11500_v50 = vld [vmem:[#allocation13 + $0x24] ss:$8 sps:$4 sm:$0xff]  }
 0x4bd   :  { %1315 = vmax.xlane.f32.xlu0 %v1314_v25 }
 0x54a   :  { %v1316_v16 = vpop.xlane.xlu0 %1315 }
 0x54b   :  { %v1317_v17 = vsub.f32 %v1313_v15, %v1316_v16 }
 0x54d   :  { %v1318_v18 = vmul.f32 1.442695, %v1317_v17 }
 0x54f   :  { %10277 = vpow2.f32 %v1318_v18 }
 0x559   :  { %v10278_v19 = vpop.eup %10277 }
 0x55a   :  { %v1320_v22 = vsel %vm1211_vm3, %v10278_v19, 0.0 }
 0x55b   :  { %1321 = vadd.xlane.f32.xlu1 %v1320_v22 }
 0x5e8   :  { %v1322_v26 = vpop.xlane.xlu1 %1321 }
 0x5e9   :  { %10279 = vrcp.f32 %v1322_v26 }
 0x5f3   :  { %v10280_v27 = vpop.eup %10279 }
 0x5f4   :  { %v1324_v31 = vmul.f32 %v10280_v27, %v10278_v19 }
 0x5f6   :  { %v1325_v33 = vpack.c.bf16 %v1324_v31, %v1324_v31  ;;  %v9611_v31 = vld [vmem:[#allocation13 + $0x4] ss:$8 sps:$4 sm:$0xff]  }
 0x5f7   :  { %1574 = vmatprep.subr.bf16.mxu0 %v9611_v31 }
 0x5f8   :  { %9297 = vmatmul.mubr.msk.bf16.vlgmr.msra.gmra.mrb[12].mxu1 %vm1211_vm3, %v1325_v33 }
 0x5f9   :  { %1454 = vmatpush1.bf16.msra.mxu1 %v11412_v32  ;;  %1485 = vmatprep.mubr.bf16.mxu1 %v10913_v56 }
 0x5fa   :  { %1455 = vmatprep.subr.bf16.mxu1 %v11414_v34 }
 0x5fd   :  { %1456 = vmatpush1.bf16.msra.mxu1 %v11418_v35 }
 0x5fe   :  { %1457 = vmatprep.subr.bf16.mxu1 %v11421_v36 }
 0x601   :  { %1458 = vmatpush1.bf16.msra.mxu1 %v11424_v37 }
 0x602   :  { %1459 = vmatprep.subr.bf16.mxu1 %v11427_v38 }
 0x605   :  { %1460 = vmatpush1.bf16.msra.mxu1 %v11430_v39 }
 0x606   :  { %1461 = vmatprep.subr.bf16.mxu1 %v11433_v40 }
 0x609   :  { %1462 = vmatpush1.bf16.msra.mxu1 %v11436_v41 }
 0x60a   :  { %1463 = vmatprep.subr.bf16.mxu1 %v11439_v42 }
 0x60d   :  { %1464 = vmatpush1.bf16.msra.mxu1 %v11442_v43 }
 0x60e   :  { %1465 = vmatprep.subr.bf16.mxu1 %v11445_v44 }
 0x611   :  { %1466 = vmatpush1.bf16.msra.mxu1 %v11448_v47 }
 0x612   :  { %1467 = vmatprep.subr.bf16.mxu1 %v11451_v48 }
 0x615   :  { %1468 = vmatpush1.bf16.msra.mxu1 %v11454_v46 }
 0x616   :  { %9300 = vmatprep.subr.bf16.mxu1 %v10911_v20 }
 0x6cb   :  { %v1366_v51 = vpop.f32.mrb[12].mxu1 }
 0x6cc   :  { %v1372_v52 = vpack.c.bf16 %v1366_v51, %v1366_v51  ;;  %v9298_v57 = vpop.f32.mrb[13].mxu1 }
 0x6cd   :  { %v1369_v59 = vpop.f32.mrb[14].mxu1 }
 0x6ce   :  { %v9299_v60 = vpop.f32.mrb[15].mxu1  ;;  %1486 = vmatmul.mubr.bf16.vlgmr.msra.gmra.mrb[16].mxu1 %v1372_v52 }
 0x6cf   :  { %9301 = vmatpush3.bf16.xpose.msra.mxu1 %v1619_v58  ;;  %9302 = vmatprep.mubr.msk.bf16.mxu1 %vm10912_vm0, %v10911_v20  ;;  %v1728_v60 = vrot.slane %v11381_v1, 4  ;;  %v11495_v1 = vld [vmem:[#allocation13 + $0x10] ss:$8 sps:$4 sm:$0xff]  }
 0x6d0   :  { %9306 = vmatprep.subr.bf16.mxu1 %v10911_v20 }
 0x6d6   :  { %9303 = vmatmul.mubr.bf16.vlgmr.msra.gmra.mrb[20].mxu1 %v1616_v62  ;;  %v11487_v62 = vld [vmem:[#allocation13] ss:$8 sps:$4 sm:$0xff]  }
 0x6d7   :  { %9307 = vmatpush3.bf16.msra.mxu1 %v1681_v63  ;;  %9308 = vmatprep.mubr.msk.bf16.mxu1 %vm10912_vm0, %v10911_v20 }
 0x6d8   :  { %9312 = vmatprep.subr.bf16.mxu1 %v10911_v20 }
 0x7a1   :  { %v11470_v0 = vpop.f32.mrb[16].mxu1 }
 0x7a2   :  { %v11472_v2 = vpop.f32.mrb[17].mxu1 }
 0x7a3   :  { %v1491_v3 = vpop.f32.mrb[18].mxu1 }
 0x7a4   :  { %v1492_v4 = vpop.f32.mrb[19].mxu1  ;;  %v11490_v3 = vld [vmem:[#allocation13 + $0x14] ss:$8 sps:$4 sm:$0xff]  }
 0x7a5   :  { %v1785_v4 = vrot.slane %v11369_v45, 4  ;;  %v11504_v45 = vld [vmem:[#allocation13 + $0x20] ss:$8 sps:$4 sm:$0xff]  }
 0x7a9   :  { %v1655_v6 = vpop.f32.mrb[20].mxu1 }
 0x7aa   :  { %v1661_v7 = vmul.f32 0.088388346, %v1655_v6  ;;  %v9304_v49 = vpop.f32.mrb[21].mxu1  ;;  %v1725_v6 = vrot.slane %v11367_v53, 4  ;;  %v11512_v53 = vld [vmem:[#allocation13 + $0x30] ss:$8 sps:$4 sm:$0xff]  }
 0x7ab   :  { %v1658_v9 = vpop.f32.mrb[22].mxu1  ;;  %v11507_v49 = vld [vmem:[#allocation13 + $0x34] ss:$8 sps:$4 sm:$0xff]  }
 0x7ac   :  { %v9305_v10 = vpop.f32.mrb[23].mxu1  ;;  %v1662_v11 = vsel %vm11401_vm2, %v1661_v7, -1e+30  ;;  %v1790_v7 = vsel %vm1227_vm1, %v1785_v4, 0  ;;  %v11515_v9 = vld [vmem:[#allocation13 + $0x44] ss:$8 sps:$4 sm:$0xff]  }
 0x7ad   :  { %v1663_v12 = vsel %vm1211_vm3, %v1662_v11, -inf  ;;  %v11518_v10 = vld [vmem:[#allocation13 + $0x40] ss:$8 sps:$4 sm:$0xff]   ;;  %v10390_v4 = vld [vmem:[#allocation2 + $0x8] sm:$0xff] }
 0x7ae   :  { %1664 = vmax.xlane.f32.xlu0 %v1663_v12  ;;  %v11524_v12 = vld [vmem:[#allocation13 + $0x50] ss:$8 sps:$4 sm:$0xff]  }
 0x7b2   :  { %1213 = vmax.xlane.f32.xlu0 %v1212_v14  ;;  %v11530_v14 = vld [vmem:[#allocation13 + $0x60] ss:$8 sps:$4 sm:$0xff]  }
 0x83b   :  { %v1665_v15 = vpop.xlane.xlu0 %1664 }
 0x83c   :  { %v1666_v25 = vsub.f32 %v1662_v11, %v1665_v15  ;;  %v11521_v11 = vld [vmem:[#allocation13 + $0x54] ss:$8 sps:$4 sm:$0xff]   ;;  %v11534_v15 = vld [vmem:[#allocation13 + $0x70] ss:$8 sps:$4 sm:$0xff]  }
 0x83e   :  { %v1667_v16 = vmul.f32 1.442695, %v1666_v25  ;;  %v11536_v25 = vld [vmem:[#allocation13 + $0x74] ss:$8 sps:$4 sm:$0xff]  }
 0x83f   :  { %v1214_v5 = vpop.xlane.xlu0 %1213 }
 0x840   :  { %10281 = vpow2.f32 %v1667_v16  ;;  %v1215_v17 = vsub.f32 %v1210_v13, %v1214_v5  ;;  %v11527_v13 = vld [vmem:[#allocation13 + $0x64] ss:$8 sps:$4 sm:$0xff]  }
 0x842   :  { %v1216_v18 = vmul.f32 1.442695, %v1215_v17 }
 0x844   :  { %10283 = vpow2.f32 %v1216_v18 }
 0x84a   :  { %v10282_v19 = vpop.eup %10281 }
 0x84b   :  { %v1669_v22 = vsel %vm1211_vm3, %v10282_v19, 0.0 }
 0x84c   :  { %1670 = vadd.xlane.f32.xlu1 %v1669_v22 }
 0x84e   :  { %v10284_v26 = vpop.eup %10283 }
 0x84f   :  { %v1218_v27 = vsel %vm1211_vm3, %v10284_v26, 0.0 }
 0x850   :  { %1219 = vadd.xlane.f32.xlu0 %v1218_v27 }
 0x8d9   :  { %v1671_v33 = vpop.xlane.xlu1 %1670 }
 0x8da   :  { %10285 = vrcp.f32 %v1671_v33 }
 0x8dd   :  { %v1220_v51 = vpop.xlane.xlu0 %1219 }
 0x8de   :  { %10287 = vrcp.f32 %v1220_v51 }
 0x8e4   :  { %v10286_v52 = vpop.eup %10285 }
 0x8e5   :  { %v1673_v57 = vmul.f32 %v10286_v52, %v10282_v19 }
 0x8e7   :  { %v1674_v58 = vpack.c.bf16 %v1673_v57, %v1673_v57 }
 0x8e8   :  { %v10288_v59 = vpop.eup %10287 }
 0x8e9   :  { %v1222_v61 = vmul.f32 %v10288_v59, %v10284_v26  ;;  %9309 = vmatmul.mubr.msk.bf16.vlgmr.msra.gmra.mrb[24].mxu1 %vm1211_vm3, %v1674_v58 }
 0x8ea   :  { %9313 = vmatpush3.bf16.xpose.msra.mxu1 %v1728_v60  ;;  %9314 = vmatprep.mubr.msk.bf16.mxu1 %vm10912_vm0, %v10911_v20 }
 0x8eb   :  { %v1223_v63 = vpack.c.bf16 %v1222_v61, %v1222_v61  ;;  %9318 = vmatprep.subr.bf16.mxu1 %v10911_v20  ;;  %v10389_v61 = vld [vmem:[#allocation2] sm:$0xff] }
 0x8ed   :  { %9285 = vmatmul.mubr.msk.bf16.vlgmr.msra.gmra.mrb[8].mxu0 %vm1211_vm3, %v1223_v63 }
 0x8ee   :  { %1575 = vmatpush1.bf16.msra.mxu0 %v11487_v62  ;;  %1606 = vmatprep.mubr.bf16.mxu0 %v10913_v56 }
 0x8ef   :  { %1576 = vmatprep.subr.bf16.mxu0 %v11490_v3 }
 0x8f1   :  { %9315 = vmatmul.mubr.bf16.vlgmr.msra.gmra.mrb[28].mxu1 %v1725_v6 }
 0x8f2   :  { %9319 = vmatpush3.bf16.msra.mxu1 %v1790_v7  ;;  %1577 = vmatpush1.bf16.msra.mxu0 %v11495_v1 }
 0x8f3   :  { %1578 = vmatprep.subr.bf16.mxu0 %v11500_v50  ;;  %9320 = vmatprep.mubr.msk.bf16.mxu1 %vm10912_vm0, %v10911_v20 }
 0x8f4   :  { %1874 = vmatprep.subr.bf16.mxu1 %v9611_v31 }
 0x8f6   :  { %1579 = vmatpush1.bf16.msra.mxu0 %v11504_v45 }
 0x8f7   :  { %1580 = vmatprep.subr.bf16.mxu0 %v11507_v49 }
 0x8fa   :  { %1581 = vmatpush1.bf16.msra.mxu0 %v11512_v53 }
 0x8fb   :  { %1582 = vmatprep.subr.bf16.mxu0 %v11515_v9 }
 0x8fe   :  { %1583 = vmatpush1.bf16.msra.mxu0 %v11518_v10 }
 0x8ff   :  { %1584 = vmatprep.subr.bf16.mxu0 %v11521_v11 }
 0x902   :  { %1585 = vmatpush1.bf16.msra.mxu0 %v11524_v12 }
 0x903   :  { %1586 = vmatprep.subr.bf16.mxu0 %v11527_v13 }
 0x906   :  { %1587 = vmatpush1.bf16.msra.mxu0 %v11530_v14 }
 0x907   :  { %1588 = vmatprep.subr.bf16.mxu0 %v11536_v25 }
 0x90a   :  { %1589 = vmatpush1.bf16.msra.mxu0 %v11534_v15 }
 0x90b   :  { %1833 = vmatprep.subr.bf16.mxu0 %v11409_v24 }
 0x9bc   :  { %v11541_v16 = vpop.f32.mrb[24].mxu1 }
 0x9bd   :  { %v9310_v5 = vpop.f32.mrb[25].mxu1 }
 0x9be   :  { %v1720_v17 = vpop.f32.mrb[26].mxu1 }
 0x9bf   :  { %v9311_v18 = vpop.f32.mrb[27].mxu1 }
 0x9c0   :  { %v1265_v19 = vpop.f32.mrb[8].mxu0 }
 0x9c1   :  { %v1271_v22 = vpack.c.bf16 %v1265_v19, %v1265_v19  ;;  %v9286_v26 = vpop.f32.mrb[9].mxu0 }
 0x9c2   :  { %v1268_v27 = vpop.f32.mrb[10].mxu0 }
 0x9c3   :  { %v9287_v31 = vpop.f32.mrb[11].mxu0  ;;  %1607 = vmatmul.mubr.bf16.vlgmr.msra.gmra.mrb[12].mxu0 %v1271_v22 }
 0x9c4   :  { %v1764_v33 = vpop.f32.mrb[28].mxu1  ;;  %1834 = vmatpush1.bf16.msra.mxu0 %v11412_v32  ;;  %1865 = vmatprep.mubr.bf16.mxu0 %v10913_v56 }
 0x9c5   :  { %v1770_v51 = vmul.f32 0.088388346, %v1764_v33  ;;  %v9316_v52 = vpop.f32.mrb[29].mxu1  ;;  %1835 = vmatprep.subr.bf16.mxu0 %v11414_v34 }
 0x9c6   :  { %v1767_v24 = vpop.f32.mrb[30].mxu1 }
 0x9c7   :  { %v9317_v57 = vpop.f32.mrb[31].mxu1  ;;  %v1771_v58 = vsel %vm11401_vm2, %v1770_v51, -1e+30  ;;  %v10391_v24 = vld [vmem:[#allocation2 + $0x10] sm:$0xff] }
 0x9c8   :  { %v1772_v59 = vsel %vm1211_vm3, %v1771_v58, -inf  ;;  %1836 = vmatpush1.bf16.msra.mxu0 %v11418_v35 }
 0x9c9   :  { %1773 = vmax.xlane.f32.xlu1 %v1772_v59  ;;  %1837 = vmatprep.subr.bf16.mxu0 %v11421_v36 }
 0x9cc   :  { %1838 = vmatpush1.bf16.msra.mxu0 %v11424_v37 }
 0x9cd   :  { %1839 = vmatprep.subr.bf16.mxu0 %v11427_v38  ;;  %v1915_v38 = vld [vmem:[#allocation14] sm:$0x3] }
 0x9d0   :  { %1840 = vmatpush1.bf16.msra.mxu0 %v11430_v39  ;;  %v11564_v39 = vrot.slane %v1915_v38, %v11332_v30 }
 0x9d1   :  { %1841 = vmatprep.subr.bf16.mxu0 %v11433_v40 }
 0x9d4   :  { %1842 = vmatpush1.bf16.msra.mxu0 %v11436_v41  ;;  %v11567_v41 = vrot.slane %v1915_v38, %v11329_v29 }
 0x9d5   :  { %1843 = vmatprep.subr.bf16.mxu0 %v11439_v42 }
 0x9d8   :  { %1844 = vmatpush1.bf16.msra.mxu0 %v11442_v43 }
 0x9d9   :  { %1845 = vmatprep.subr.bf16.mxu0 %v11445_v44 }
 0x9dc   :  { %1846 = vmatpush1.bf16.msra.mxu0 %v11448_v47 }
 0x9dd   :  { %1847 = vmatprep.subr.bf16.mxu0 %v11451_v48 }
 0x9e0   :  { %1848 = vmatpush1.bf16.msra.mxu0 %v11454_v46 }
 0xa56   :  { %v1774_v32 = vpop.xlane.xlu1 %1773 }
 0xa57   :  { %v1775_v34 = vsub.f32 %v1771_v58, %v1774_v32  ;;  %v10392_v58 = vld [vmem:[#allocation2 + $0x18] sm:$0xff] }
 0xa59   :  { %v1776_v35 = vmul.f32 1.442695, %v1775_v34  ;;  %v2001_v34 = vld [vmem:[#allocation19] sm:$0xff] }
 0xa5b   :  { %10289 = vpow2.f32 %v1776_v35  ;;  %v2005_v35 = vld [vmem:[#allocation19 + $0x20] sm:$0xff] }
 0xa5c   :  { %v8530_v38 = vcombine.high %v2001_v34, %v2005_v35 }
 0xa5e   :  { %2811 = vmatprep.subr.bf16.mxu0 %v8530_v38 }
 0xa65   :  { %v10290_v36 = vpop.eup %10289 }
 0xa66   :  { %v1778_v37 = vsel %vm1211_vm3, %v10290_v36, 0.0 }
 0xa67   :  { %1779 = vadd.xlane.f32.xlu1 %v1778_v37  ;;  %v8529_v37 = vcombine.low %v2001_v34, %v2005_v35  ;;  %v2050_v34 = vld [vmem:[#allocation19 + $0x188] sm:$0xff] }
 0xa68   :  { %v2054_v35 = vld [vmem:[#allocation19 + $0x1a8] sm:$0xff] }
 0xa96   :  { %v1608_v40 = vpop.f32.mrb[12].mxu0 }
 0xa97   :  { %v1609_v42 = vadd.f32 %v1608_v40, %v11470_v0  ;;  %v1610_v43 = vpop.f32.mrb[13].mxu0  ;;  %v2006_v40 = vld [vmem:[#allocation19 + $0x28] sm:$0xff] }
 0xa98   :  { %v1611_v44 = vadd.f32 %v1610_v43, %v11472_v2  ;;  %v1612_v47 = vpop.f32.mrb[14].mxu0 }
 0xa99   :  { %v1927_v48 = vadd.f32 %v11564_v39, %v1609_v42  ;;  %v1613_v46 = vpop.f32.mrb[15].mxu0  ;;  %v2013_v42 = vld [vmem:[#allocation19 + $0x60] sm:$0xff]  ;;  %v2010_v47 = vld [vmem:[#allocation19 + $0x48] sm:$0xff] }
 0xa9a   :  { %v1928_v60 = vadd.f32 %v11567_v41, %v1611_v44  ;;  %v2017_v46 = vld [vmem:[#allocation19 + $0x80] sm:$0xff] }
 0xa9b   :  { %v11573_v63 = vadd.f32 %v10389_v61, %v1927_v48  ;;  %v2014_v48 = vld [vmem:[#allocation19 + $0x68] sm:$0xff]  ;;  %v2021_v61 = vld [vmem:[#allocation19 + $0xa0] sm:$0xff] }
 0xa9c   :  { %v11575_v6 = vadd.f32 %v10390_v4, %v1928_v60  ;;  %v8540_v60 = vcombine.high %v2010_v47, %v2014_v48  ;;  %v2018_v4 = vld [vmem:[#allocation19 + $0x88] sm:$0xff] }
 0xa9e   :  { %v1937_v7 = vadd.f32 %v11575_v6, %v11573_v63 }
 0xaa0   :  { %1938 = vadd.xlane.f32.xlu0 %v1937_v7  ;;  %v2022_v7 = vld [vmem:[#allocation19 + $0xa8] sm:$0xff] }
 0xaf4   :  { %v1780_v0 = vpop.xlane.xlu1 %1779 }
 0xaf5   :  { %10291 = vrcp.f32 %v1780_v0 }
 0xaff   :  { %v10292_v5 = vpop.eup %10291 }
 0xb00   :  { %v1782_v2 = vmul.f32 %v10292_v5, %v10290_v36  ;;  %v2002_v36 = vld [vmem:[#allocation19 + $0x8] sm:$0xff]  ;;  %v8539_v5 = vcombine.low %v2010_v47, %v2014_v48  ;;  %v8579_v47 = vcombine.low %v2050_v34, %v2054_v35 }
 0xb01   :  { %v8531_v43 = vcombine.low %v2002_v36, %v2006_v40 }
 0xb02   :  { %v1783_v17 = vpack.c.bf16 %v1782_v2, %v1782_v2  ;;  %v8546_v2 = vcombine.high %v2017_v46, %v2021_v61 }
 0xb04   :  { %9321 = vmatmul.mubr.msk.bf16.vlgmr.msra.gmra.mrb[32].mxu1 %vm1211_vm3, %v1783_v17  ;;  %v8548_v17 = vcombine.high %v2018_v4, %v2022_v7 }
 0xb05   :  { %1875 = vmatpush1.bf16.msra.mxu1 %v11487_v62  ;;  %1906 = vmatprep.mubr.bf16.mxu1 %v10913_v56  ;;  %v1723_v62 = vpack.c.bf16 %v11541_v16, %v11541_v16 }
 0xb06   :  { %1876 = vmatprep.subr.bf16.mxu1 %v11490_v3 }
 0xb09   :  { %1877 = vmatpush1.bf16.msra.mxu1 %v11495_v1 }
 0xb0a   :  { %1878 = vmatprep.subr.bf16.mxu1 %v11500_v50 }
 0xb0d   :  { %1879 = vmatpush1.bf16.msra.mxu1 %v11504_v45 }
 0xb0e   :  { %1880 = vmatprep.subr.bf16.mxu1 %v11507_v49 }
 0xb11   :  { %1881 = vmatpush1.bf16.msra.mxu1 %v11512_v53 }
 0xb12   :  { %1882 = vmatprep.subr.bf16.mxu1 %v11515_v9 }
 0xb15   :  { %1883 = vmatpush1.bf16.msra.mxu1 %v11518_v10 }
 0xb16   :  { %1884 = vmatprep.subr.bf16.mxu1 %v11521_v11 }
 0xb19   :  { %1885 = vmatpush1.bf16.msra.mxu1 %v11524_v12 }
 0xb1a   :  { %1886 = vmatprep.subr.bf16.mxu1 %v11527_v13 }
 0xb1d   :  { %1887 = vmatpush1.bf16.msra.mxu1 %v11530_v14 }
 0xb1e   :  { %1888 = vmatprep.subr.bf16.mxu1 %v11536_v25 }
 0xb21   :  { %1889 = vmatpush1.bf16.msra.mxu1 %v11534_v15 }
 0xb24   :  { %1907 = vmatmul.mubr.bf16.vlgmr.msra.gmra.mrb[36].mxu1 %v1723_v62  ;;  %v2025_v62 = vld [vmem:[#allocation19 + $0xc0] sm:$0xff] }
 0xb2d   :  { %v1939_v3 = vpop.xlane.xlu0 %1938 }
 0xb2e   :  { %v1943_v1 = vmul.f32 0.00390625, %v1939_v3  ;;  %v2029_v3 = vld [vmem:[#allocation19 + $0xe0] sm:$0xff] }
 0xb30   :  { %v11599_v50 = vsub.f32 %v11573_v63, %v1943_v1  ;;  %v11602_v45 = vsub.f32 %v11575_v6, %v1943_v1  ;;  %v2026_v1 = vld [vmem:[#allocation19 + $0xc8] sm:$0xff] }
 0xb32   :  { %v1949_v49 = vmul.f32 %v11599_v50, %v11599_v50  ;;  %v1950_v53 = vmul.f32 %v11602_v45, %v11602_v45 }
 0xb34   :  { %v1953_v9 = vadd.f32 %v1950_v53, %v1949_v49  ;;  %v2030_v49 = vld [vmem:[#allocation19 + $0xe8] sm:$0xff]  ;;  %v8545_v53 = vcombine.low %v2017_v46, %v2021_v61  ;;  %v2069_v61 = vld [vmem:[#allocation19 + $0x220] sm:$0xff] }
 0xb36   :  { %1954 = vadd.xlane.f32.xlu0 %v1953_v9  ;;  %v8547_v9 = vcombine.low %v2018_v4, %v2022_v7  ;;  %v2066_v4 = vld [vmem:[#allocation19 + $0x208] sm:$0xff] }
 0xb37   :  { %v2070_v7 = vld [vmem:[#allocation19 + $0x228] sm:$0xff] }
 0xbd7   :  { %v1826_v10 = vpop.f32.mrb[32].mxu1 }
 0xbd8   :  { %v1832_v11 = vpack.c.bf16 %v1826_v10, %v1826_v10  ;;  %v9322_v12 = vpop.f32.mrb[33].mxu1  ;;  %v8554_v10 = vcombine.high %v2025_v62, %v2029_v3 }
 0xbd9   :  { %v1829_v13 = vpop.f32.mrb[34].mxu1  ;;  %v2033_v12 = vld [vmem:[#allocation19 + $0x100] sm:$0xff] }
 0xbda   :  { %v9323_v14 = vpop.f32.mrb[35].mxu1  ;;  %1866 = vmatmul.mubr.bf16.vlgmr.msra.gmra.mrb[16].mxu0 %v1832_v11  ;;  %v8556_v11 = vcombine.high %v2026_v1, %v2030_v49  ;;  %v2037_v13 = vld [vmem:[#allocation19 + $0x120] sm:$0xff] }
 0xbdb   :  { %2812 = vmatpush1.bf16.msra.mxu0 %v8529_v37  ;;  %v2034_v14 = vld [vmem:[#allocation19 + $0x108] sm:$0xff] }
 0xbf7   :  { %v1908_v15 = vpop.f32.mrb[36].mxu1 }
 0xbf8   :  { %v1910_v25 = vpop.f32.mrb[37].mxu1 }
 0xbf9   :  { %v1912_v16 = vpop.f32.mrb[38].mxu1 }
 0xbfa   :  { %v1913_v18 = vpop.f32.mrb[39].mxu1  ;;  %v8555_v16 = vcombine.low %v2026_v1, %v2030_v49  ;;  %v2074_v1 = vld [vmem:[#allocation19 + $0x248] sm:$0xff] }
 0xbfb   :  { %v8562_v18 = vcombine.high %v2033_v12, %v2037_v13  ;;  %v2078_v49 = vld [vmem:[#allocation19 + $0x268] sm:$0xff] }
 0xcad   :  { %v1867_v19 = vpop.f32.mrb[16].mxu0 }
 0xcae   :  { %v1909_v22 = vadd.f32 %v1908_v15, %v1867_v19  ;;  %v1869_v26 = vpop.f32.mrb[17].mxu0  ;;  %v2038_v15 = vld [vmem:[#allocation19 + $0x128] sm:$0xff] }
 0xcaf   :  { %v1911_v27 = vadd.f32 %v1910_v25, %v1869_v26  ;;  %v1871_v31 = vpop.f32.mrb[18].mxu0  ;;  %v8553_v25 = vcombine.low %v2025_v62, %v2029_v3  ;;  %v8564_v19 = vcombine.high %v2034_v14, %v2038_v15  ;;  %v2045_v26 = vld [vmem:[#allocation19 + $0x160] sm:$0xff] }
 0xcb0   :  { %v1929_v33 = vadd.f32 %v11564_v39, %v1909_v22  ;;  %v1872_v51 = vpop.f32.mrb[19].mxu0  ;;  %v2009_v39 = vld [vmem:[#allocation19 + $0x40] sm:$0xff]  ;;  %v2046_v31 = vld [vmem:[#allocation19 + $0x168] sm:$0xff] }
 0xcb1   :  { %v1930_v52 = vadd.f32 %v11567_v41, %v1911_v27  ;;  %v8532_v41 = vcombine.high %v2002_v36, %v2006_v40  ;;  %v8538_v44 = vcombine.high %v2009_v39, %v2013_v42  ;;  %v8537_v0 = vcombine.low %v2009_v39, %v2013_v42  ;;  %v2041_v22 = vld [vmem:[#allocation19 + $0x140] sm:$0xff]  ;;  %v2042_v27 = vld [vmem:[#allocation19 + $0x148] sm:$0xff] }
 0xcb2   :  { %v11610_v57 = vadd.f32 %v10391_v24, %v1929_v33  ;;  %v8561_v33 = vcombine.low %v2033_v12, %v2037_v13  ;;  %v8563_v51 = vcombine.low %v2034_v14, %v2038_v15  ;;  %v8572_v24 = vcombine.high %v2042_v27, %v2046_v31  ;;  %v2057_v39 = vld [vmem:[#allocation19 + $0x1c0] sm:$0xff]  ;;  %v2082_v14 = vld [vmem:[#allocation19 + $0x288] sm:$0xff] }
 0xcb3   :  { %v11612_v59 = vadd.f32 %v10392_v58, %v1930_v52  ;;  %2854 = vmatprep.subr.bf16.mxu1 %v8532_v41  ;;  %2813 = vmatprep.subr.bf16.mxu0 %v8538_v44  ;;  %v8570_v52 = vcombine.high %v2041_v22, %v2045_v26  ;;  %v2049_v58 = vld [vmem:[#allocation19 + $0x180] sm:$0xff]  ;;  %v8569_v36 = vcombine.low %v2041_v22, %v2045_v26  ;;  %v2062_v41 = vld [vmem:[#allocation19 + $0x1e8] sm:$0xff] }
 0xcb4   :  { %2855 = vmatpush1.bf16.msra.mxu1 %v8531_v43  ;;  %2814 = vmatpush1.bf16.msra.mxu0 %v8537_v0  ;;  %v8571_v37 = vcombine.low %v2042_v27, %v2046_v31  ;;  %v8580_v40 = vcombine.high %v2050_v34, %v2054_v35  ;;  %v2061_v42 = vld [vmem:[#allocation19 + $0x1e0] sm:$0xff]  ;;  %v2058_v43 = vld [vmem:[#allocation19 + $0x1c8] sm:$0xff] }
 0xcb5   :  { %v1940_v32 = vadd.f32 %v11612_v59, %v11610_v57  ;;  %2856 = vmatprep.subr.bf16.mxu1 %v8540_v60  ;;  %2815 = vmatprep.subr.bf16.mxu0 %v8546_v2  ;;  %v8586_v48 = vcombine.high %v2057_v39, %v2061_v42  ;;  %v8588_v46 = vcombine.high %v2058_v43, %v2062_v41  ;;  %v2065_v60 = vld [vmem:[#allocation19 + $0x200] sm:$0xff]  ;;  %v2086_v15 = vld [vmem:[#allocation19 + $0x2a8] sm:$0xff] }
 0xcb6   :  { %v8585_v0 = vcombine.low %v2057_v39, %v2061_v42  ;;  %v8594_v2 = vcombine.high %v2065_v60, %v2069_v61  ;;  %v2073_v62 = vld [vmem:[#allocation19 + $0x240] sm:$0xff]  ;;  %v8611_v26 = vcombine.low %v2082_v14, %v2086_v15  ;;  %v2090_v35 = vld [vmem:[#allocation19 + $0x2c8] sm:$0xff] }
 0xcb7   :  { %1941 = vadd.xlane.f32.xlu1 %v1940_v32  ;;  %v2053_v32 = vld [vmem:[#allocation19 + $0x1a0] sm:$0xff] }
 0xcb8   :  { %2857 = vmatpush1.bf16.msra.mxu1 %v8539_v5  ;;  %2816 = vmatpush1.bf16.msra.mxu0 %v8545_v53  ;;  %v8578_v38 = vcombine.high %v2049_v58, %v2053_v32  ;;  %v8577_v44 = vcombine.low %v2049_v58, %v2053_v32  ;;  %v8587_v5 = vcombine.low %v2058_v43, %v2062_v41  ;;  %v2077_v3 = vld [vmem:[#allocation19 + $0x260] sm:$0xff]  ;;  %v2098_v41 = vld [vmem:[#allocation19 + $0x308] sm:$0xff] }
 0xcb9   :  { %2858 = vmatprep.subr.bf16.mxu1 %v8548_v17  ;;  %2817 = vmatprep.subr.bf16.mxu0 %v8554_v10  ;;  %v8596_v17 = vcombine.high %v2066_v4, %v2070_v7  ;;  %v8593_v53 = vcombine.low %v2065_v60, %v2069_v61  ;;  %v8602_v10 = vcombine.high %v2073_v62, %v2077_v3  ;;  %v2081_v12 = vld [vmem:[#allocation19 + $0x280] sm:$0xff] }
 0xcba   :  { %v2085_v13 = vld [vmem:[#allocation19 + $0x2a0] sm:$0xff] }
 0xcbb   :  { %v8609_v22 = vcombine.low %v2081_v12, %v2085_v13  ;;  %v2089_v32 = vld [vmem:[#allocation19 + $0x2c0] sm:$0xff] }
 0xcbc   :  { %2859 = vmatpush1.bf16.msra.mxu1 %v8547_v9  ;;  %2818 = vmatpush1.bf16.msra.mxu0 %v8553_v25  ;;  %v8595_v9 = vcombine.low %v2066_v4, %v2070_v7  ;;  %v8601_v25 = vcombine.low %v2073_v62, %v2077_v3  ;;  %v2093_v34 = vld [vmem:[#allocation19 + $0x2e0] sm:$0xff]  ;;  %v2106_v7 = vld [vmem:[#allocation19 + $0x348] sm:$0xff] }
 0xcbd   :  { %2860 = vmatprep.subr.bf16.mxu1 %v8556_v11  ;;  %2819 = vmatprep.subr.bf16.mxu0 %v8562_v18  ;;  %v8604_v11 = vcombine.high %v2074_v1, %v2078_v49  ;;  %v8610_v18 = vcombine.high %v2081_v12, %v2085_v13  ;;  %v2097_v42 = vld [vmem:[#allocation19 + $0x300] sm:$0xff] }
 0xcbe   :  { %v2101_v43 = vld [vmem:[#allocation19 + $0x320] sm:$0xff] }
 0xcbf   :  { %v2105_v61 = vld [vmem:[#allocation19 + $0x340] sm:$0xff] }
 0xcc0   :  { %2861 = vmatpush1.bf16.msra.mxu1 %v8555_v16  ;;  %2820 = vmatpush1.bf16.msra.mxu0 %v8561_v33  ;;  %v8603_v16 = vcombine.low %v2074_v1, %v2078_v49  ;;  %v2109_v4 = vld [vmem:[#allocation19 + $0x360] sm:$0xff]  ;;  %v2114_v49 = vld [vmem:[#allocation19 + $0x388] sm:$0xff] }
 0xcc1   :  { %2862 = vmatprep.subr.bf16.mxu1 %v8564_v19  ;;  %2821 = vmatprep.subr.bf16.mxu0 %v8570_v52  ;;  %v8612_v19 = vcombine.high %v2082_v14, %v2086_v15  ;;  %v2113_v3 = vld [vmem:[#allocation19 + $0x380] sm:$0xff]  ;;  %v2122_v15 = vld [vmem:[#allocation19 + $0x3c8] sm:$0xff] }
 0xcc2   :  { %v2117_v1 = vld [vmem:[#allocation19 + $0x3a0] sm:$0xff] }
 0xcc3   :  { %v2121_v13 = vld [vmem:[#allocation19 + $0x3c0] sm:$0xff] }
 0xcc4   :  { %2863 = vmatpush1.bf16.msra.mxu1 %v8563_v51  ;;  %2822 = vmatpush1.bf16.msra.mxu0 %v8569_v36  ;;  %v8618_v36 = vcombine.high %v2089_v32, %v2093_v34  ;;  %v2125_v14 = vld [vmem:[#allocation19 + $0x3e0] sm:$0xff] }
 0xcc5   :  { %2864 = vmatprep.subr.bf16.mxu1 %v8572_v24  ;;  %2823 = vmatprep.subr.bf16.mxu0 %v8578_v38  ;;  %v8617_v38 = vcombine.low %v2089_v32, %v2093_v34 }
 0xcc8   :  { %2865 = vmatpush1.bf16.msra.mxu1 %v8571_v37  ;;  %2824 = vmatpush1.bf16.msra.mxu0 %v8577_v44  ;;  %v2094_v37 = vld [vmem:[#allocation19 + $0x2e8] sm:$0xff]  ;;  %v8626_v44 = vcombine.high %v2097_v42, %v2101_v43 }
 0xcc9   :  { %2866 = vmatprep.subr.bf16.mxu1 %v8580_v40  ;;  %2825 = vmatprep.subr.bf16.mxu0 %v8586_v48  ;;  %v8619_v40 = vcombine.low %v2090_v35, %v2094_v37  ;;  %v8620_v39 = vcombine.high %v2090_v35, %v2094_v37  ;;  %v8625_v48 = vcombine.low %v2097_v42, %v2101_v43  ;;  %v1955_v35 = vpop.xlane.xlu0 %1954  ;;  %v1935_v43 = vld [vmem:[#allocation16] sm:$0x3] }
 0xccc   :  { %2867 = vmatpush1.bf16.msra.mxu1 %v8579_v47  ;;  %2826 = vmatpush1.bf16.msra.mxu0 %v8585_v0  ;;  %v2102_v47 = vld [vmem:[#allocation19 + $0x328] sm:$0xff]  ;;  %v8634_v0 = vcombine.high %v2105_v61, %v2109_v4 }
 0xccd   :  { %2868 = vmatprep.subr.bf16.mxu1 %v8588_v46  ;;  %2827 = vmatprep.subr.bf16.mxu0 %v8594_v2  ;;  %v8627_v46 = vcombine.low %v2098_v41, %v2102_v47  ;;  %v8628_v60 = vcombine.high %v2098_v41, %v2102_v47  ;;  %v8633_v2 = vcombine.low %v2105_v61, %v2109_v4  ;;  %v1936_v47 = vld [vmem:[#allocation17] sm:$0x3] }
 0xcce   :  { %v1992_v61 = vrot.slane %v1936_v47, %v11329_v29  ;;  %v1988_v4 = vrot.slane %v1936_v47, %v11332_v30  ;;  %v2044_v47 = vld [vmem:[#allocation19 + $0x158] sm:$0xff] }
 0xcd0   :  { %2869 = vmatpush1.bf16.msra.mxu1 %v8587_v5  ;;  %2828 = vmatpush1.bf16.msra.mxu0 %v8593_v53  ;;  %v2110_v5 = vld [vmem:[#allocation19 + $0x368] sm:$0xff]  ;;  %v8642_v53 = vcombine.high %v2113_v3, %v2117_v1 }
 0xcd1   :  { %2870 = vmatprep.subr.bf16.mxu1 %v8596_v17  ;;  %2829 = vmatprep.subr.bf16.mxu0 %v8602_v10  ;;  %v8635_v17 = vcombine.low %v2106_v7, %v2110_v5  ;;  %v8636_v62 = vcombine.high %v2106_v7, %v2110_v5  ;;  %v8641_v10 = vcombine.low %v2113_v3, %v2117_v1 }
 0xcd4   :  { %2871 = vmatpush1.bf16.msra.mxu1 %v8595_v9  ;;  %2830 = vmatpush1.bf16.msra.mxu0 %v8601_v25  ;;  %v2118_v9 = vld [vmem:[#allocation19 + $0x3a8] sm:$0xff]  ;;  %v8650_v25 = vcombine.high %v2121_v13, %v2125_v14 }
 0xcd5   :  { %2872 = vmatprep.subr.bf16.mxu1 %v8604_v11  ;;  %2831 = vmatprep.subr.bf16.mxu0 %v8610_v18  ;;  %v8643_v11 = vcombine.low %v2114_v49, %v2118_v9  ;;  %v8644_v12 = vcombine.high %v2114_v49, %v2118_v9  ;;  %v8649_v18 = vcombine.low %v2121_v13, %v2125_v14  ;;  %v2011_v49 = vld [vmem:[#allocation19 + $0x50] sm:$0xff]  ;;  %v2012_v9 = vld [vmem:[#allocation19 + $0x58] sm:$0xff] }
 0xcd6   :  { %v2019_v13 = vld [vmem:[#allocation19 + $0x90] sm:$0xff] }
 0xcd7   :  { %v2023_v14 = vld [vmem:[#allocation19 + $0xb0] sm:$0xff] }
 0xcd8   :  { %2873 = vmatpush1.bf16.msra.mxu1 %v8603_v16  ;;  %2832 = vmatpush1.bf16.msra.mxu0 %v8609_v22  ;;  %v2126_v16 = vld [vmem:[#allocation19 + $0x3e8] sm:$0xff] }
 0xcd9   :  { %2874 = vmatprep.subr.bf16.mxu1 %v8612_v19  ;;  %2833 = vmatprep.subr.bf16.mxu0 %v8618_v36  ;;  %v8652_v19 = vcombine.high %v2122_v15, %v2126_v16  ;;  %v8651_v22 = vcombine.low %v2122_v15, %v2126_v16  ;;  %v1959_v36 = vmul.f32 0.00390625, %v1955_v35  ;;  %v2020_v15 = vld [vmem:[#allocation19 + $0x98] sm:$0xff]  ;;  %v2035_v35 = vld [vmem:[#allocation19 + $0x110] sm:$0xff] }
 0xcdb   :  { %v1961_v37 = vadd.f32 1e-05, %v1959_v36  ;;  %v2039_v36 = vld [vmem:[#allocation19 + $0x130] sm:$0xff] }
 0xcdc   :  { %2875 = vmatpush1.bf16.msra.mxu1 %v8611_v26  ;;  %2834 = vmatpush1.bf16.msra.mxu0 %v8617_v38  ;;  %v2003_v26 = vld [vmem:[#allocation19 + $0x10] sm:$0xff] }
 0xcdd   :  { %2876 = vmatprep.subr.bf16.mxu1 %v8620_v39  ;;  %2835 = vmatprep.subr.bf16.mxu0 %v8626_v44  ;;  %10293 = vrsqrt.f32 %v1961_v37  ;;  %v2036_v37 = vld [vmem:[#allocation19 + $0x118] sm:$0xff] }
 0xce0   :  { %2877 = vmatpush1.bf16.msra.mxu1 %v8619_v40  ;;  %2836 = vmatpush1.bf16.msra.mxu0 %v8625_v48  ;;  %v1977_v48 = vrot.slane %v1935_v43, %v11329_v29 }
 0xce1   :  { %2878 = vmatprep.subr.bf16.mxu1 %v8628_v60  ;;  %2837 = vmatprep.subr.bf16.mxu0 %v8634_v0 }
 0xce4   :  { %2879 = vmatpush1.bf16.msra.mxu1 %v8627_v46  ;;  %2838 = vmatpush1.bf16.msra.mxu0 %v8633_v2  ;;  %v1973_v46 = vrot.slane %v1935_v43, %v11332_v30 }
 0xce5   :  { %2880 = vmatprep.subr.bf16.mxu1 %v8636_v62  ;;  %2839 = vmatprep.subr.bf16.mxu0 %v8642_v53  ;;  %v2015_v53 = vld [vmem:[#allocation19 + $0x70] sm:$0xff] }
 0xce6   :  { %v8541_v16 = vcombine.low %v2011_v49, %v2015_v53 }
 0xce7   :  { %v10294_v42 = vpop.eup %10293 }
 0xce8   :  { %2881 = vmatpush1.bf16.msra.mxu1 %v8635_v17  ;;  %2840 = vmatpush1.bf16.msra.mxu0 %v8641_v10  ;;  %v1965_v41 = vmul.f32 %v10294_v42, %v11599_v50  ;;  %v1966_v44 = vmul.f32 %v10294_v42, %v11602_v45  ;;  %v2016_v10 = vld [vmem:[#allocation19 + $0x78] sm:$0xff]  ;;  %v8566_v42 = vcombine.high %v2035_v35, %v2039_v36 }
 0xce9   :  { %2882 = vmatprep.subr.bf16.mxu1 %v8644_v12  ;;  %2841 = vmatprep.subr.bf16.mxu0 %v8650_v25  ;;  %v2024_v25 = vld [vmem:[#allocation19 + $0xb8] sm:$0xff] }
 0xcea   :  { %v1981_v5 = vmul.f32 %v1977_v48, %v1966_v44  ;;  %v1980_v2 = vmul.f32 %v1973_v46, %v1965_v41  ;;  %v2043_v41 = vld [vmem:[#allocation19 + $0x150] sm:$0xff] }
 0xceb   :  { %v2047_v44 = vld [vmem:[#allocation19 + $0x170] sm:$0xff] }
 0xcec   :  { %2883 = vmatpush1.bf16.msra.mxu1 %v8643_v11  ;;  %2842 = vmatpush1.bf16.msra.mxu0 %v8649_v18  ;;  %v1996_v62 = vadd.f32 %v1992_v61, %v1981_v5  ;;  %v1995_v3 = vadd.f32 %v1988_v4, %v1980_v2  ;;  %v8543_v18 = vcombine.low %v2012_v9, %v2016_v10  ;;  %v2052_v5 = vld [vmem:[#allocation19 + $0x198] sm:$0xff] }
 0xced   :  { %2884 = vmatprep.subr.bf16.mxu1 %v8652_v19  ;;  %v8550_v19 = vcombine.high %v2019_v13, %v2023_v14  ;;  %v2056_v2 = vld [vmem:[#allocation19 + $0x1b8] sm:$0xff] }
 0xcf0   :  { %2885 = vmatpush1.bf16.msra.mxu1 %v8651_v22  ;;  %v8552_v22 = vcombine.high %v2020_v15, %v2024_v25 }
 0xd44   :  { %v1942_v27 = vpop.xlane.xlu1 %1941 }
 0xd45   :  { %v1944_v31 = vmul.f32 0.00390625, %v1942_v27  ;;  %v2007_v27 = vld [vmem:[#allocation19 + $0x30] sm:$0xff] }
 0xd47   :  { %v11617_v33 = vsub.f32 %v11610_v57, %v1944_v31  ;;  %v11620_v51 = vsub.f32 %v11612_v59, %v1944_v31  ;;  %v2004_v31 = vld [vmem:[#allocation19 + $0x18] sm:$0xff] }
 0xd49   :  { %v1951_v52 = vmul.f32 %v11617_v33, %v11617_v33  ;;  %v1952_v24 = vmul.f32 %v11620_v51, %v11620_v51 }
 0xd4b   :  { %v1956_v58 = vadd.f32 %v1952_v24, %v1951_v52  ;;  %v8534_v52 = vcombine.high %v2003_v26, %v2007_v27  ;;  %v2008_v24 = vld [vmem:[#allocation19 + $0x38] sm:$0xff] }
 0xd4c   :  { %v8535_v32 = vcombine.low %v2004_v31, %v2008_v24  ;;  %v8536_v34 = vcombine.high %v2004_v31, %v2008_v24  ;;  %v2028_v31 = vld [vmem:[#allocation19 + $0xd8] sm:$0xff]  ;;  %v8549_v24 = vcombine.low %v2019_v13, %v2023_v14 }
 0xd4d   :  { %1957 = vadd.xlane.f32.xlu1 %v1956_v58  ;;  %v8533_v58 = vcombine.low %v2003_v26, %v2007_v27  ;;  %2897 = vmatprep.subr.bf16.mxu0 %v8534_v52  ;;  %v2027_v26 = vld [vmem:[#allocation19 + $0xd0] sm:$0xff]  ;;  %v2032_v52 = vld [vmem:[#allocation19 + $0xf8] sm:$0xff] }
 0xd4e   :  { %2940 = vmatprep.subr.bf16.mxu1 %v8536_v34  ;;  %v2031_v27 = vld [vmem:[#allocation19 + $0xf0] sm:$0xff]  ;;  %v8551_v34 = vcombine.low %v2020_v15, %v2024_v25  ;;  %v2068_v14 = vld [vmem:[#allocation19 + $0x218] sm:$0xff] }
 0xd4f   :  { %v2072_v15 = vld [vmem:[#allocation19 + $0x238] sm:$0xff] }
 0xdda   :  { %v1958_v38 = vpop.xlane.xlu1 %1957 }
 0xddb   :  { %v1960_v40 = vmul.f32 0.00390625, %v1958_v38  ;;  %v2040_v38 = vld [vmem:[#allocation19 + $0x138] sm:$0xff] }
 0xddc   :  { %v8568_v43 = vcombine.high %v2036_v37, %v2040_v38 }
 0xddd   :  { %v1962_v39 = vadd.f32 1e-05, %v1960_v40  ;;  %v8557_v40 = vcombine.low %v2027_v26, %v2031_v27 }
 0xddf   :  { %10295 = vrsqrt.f32 %v1962_v39  ;;  %v8559_v39 = vcombine.low %v2028_v31, %v2032_v52 }
 0xde9   :  { %v10296_v60 = vpop.eup %10295 }
 0xdea   :  { %v1967_v7 = vmul.f32 %v10296_v60, %v11617_v33  ;;  %v1968_v0 = vmul.f32 %v10296_v60, %v11620_v51  ;;  %v8542_v33 = vcombine.high %v2011_v49, %v2015_v53  ;;  %v8544_v51 = vcombine.high %v2012_v9, %v2016_v10  ;;  %v2060_v49 = vld [vmem:[#allocation19 + $0x1d8] sm:$0xff] }
 0xdeb   :  { %v8567_v60 = vcombine.low %v2036_v37, %v2040_v38  ;;  %v2064_v53 = vld [vmem:[#allocation19 + $0x1f8] sm:$0xff]  ;;  %v8583_v10 = vcombine.low %v2052_v5, %v2056_v2 }
 0xdec   :  { %v1983_v17 = vmul.f32 %v1977_v48, %v1968_v0  ;;  %v1982_v50 = vmul.f32 %v1973_v46, %v1967_v7  ;;  %v2048_v48 = vld [vmem:[#allocation19 + $0x178] sm:$0xff]  ;;  %v8565_v46 = vcombine.low %v2035_v35, %v2039_v36  ;;  %v2051_v7 = vld [vmem:[#allocation19 + $0x190] sm:$0xff]  ;;  %v8592_v13 = vcombine.high %v2060_v49, %v2064_v53 }
 0xded   :  { %v2055_v0 = vld [vmem:[#allocation19 + $0x1b0] sm:$0xff]  ;;  %v2084_v36 = vld [vmem:[#allocation19 + $0x298] sm:$0xff] }
 0xdee   :  { %v1998_v45 = vadd.f32 %v1992_v61, %v1983_v17  ;;  %v1997_v1 = vadd.f32 %v1988_v4, %v1982_v50  ;;  %v8574_v61 = vcombine.high %v2043_v41, %v2047_v44  ;;  %v8576_v4 = vcombine.high %v2044_v47, %v2048_v48  ;;  %v2087_v35 = vld [vmem:[#allocation19 + $0x2b0] sm:$0xff]  ;;  %v2088_v37 = vld [vmem:[#allocation19 + $0x2b8] sm:$0xff] }
 0xdef   :  { %v8573_v17 = vcombine.low %v2043_v41, %v2047_v44  ;;  %v8575_v50 = vcombine.low %v2044_v47, %v2048_v48  ;;  %v8581_v9 = vcombine.low %v2051_v7, %v2055_v0  ;;  %v2095_v41 = vld [vmem:[#allocation19 + $0x2f0] sm:$0xff]  ;;  %v2092_v44 = vld [vmem:[#allocation19 + $0x2d8] sm:$0xff] }
 0xdf0   :  { %v2000_v11 = vpack.c.bf16 %v1998_v45, %v1996_v62  ;;  %v11634_v12 = vpack.c.bf16 %v1997_v1, %v1995_v3  ;;  %v8582_v62 = vcombine.high %v2051_v7, %v2055_v0  ;;  %v8584_v45 = vcombine.high %v2052_v5, %v2056_v2  ;;  %v2059_v3 = vld [vmem:[#allocation19 + $0x1d0] sm:$0xff]  ;;  %v2096_v47 = vld [vmem:[#allocation19 + $0x2f8] sm:$0xff] }
 0xdf1   :  { %v2063_v1 = vld [vmem:[#allocation19 + $0x1f0] sm:$0xff]  ;;  %v2100_v0 = vld [vmem:[#allocation19 + $0x318] sm:$0xff] }
 0xdf2   :  { %2843 = vmatprep.mubr.bf16.mxu0 %v2000_v11  ;;  %2886 = vmatprep.mubr.bf16.mxu1 %v2000_v11  ;;  %v8589_v25 = vcombine.low %v2059_v3, %v2063_v1  ;;  %v2103_v7 = vld [vmem:[#allocation19 + $0x330] sm:$0xff]  ;;  %v2104_v5 = vld [vmem:[#allocation19 + $0x338] sm:$0xff] }
 0xdf3   :  { %2844 = vmatmul.mubr.bf16.vlgmr.msra.gmra.mrb[20].mxu0 %v11634_v12  ;;  %2887 = vmatmul.mubr.bf16.vlgmr.msra.gmra.mrb[40].mxu1 %v11634_v12 }
 0xdf4   :  { %2898 = vmatpush1.bf16.msra.mxu0 %v8533_v58  ;;  %2941 = vmatpush1.bf16.msra.mxu1 %v8535_v32  ;;  %v8558_v58 = vcombine.high %v2027_v26, %v2031_v27  ;;  %v8560_v32 = vcombine.high %v2028_v31, %v2032_v52  ;;  %v2079_v26 = vld [vmem:[#allocation19 + $0x270] sm:$0xff]  ;;  %v2076_v27 = vld [vmem:[#allocation19 + $0x258] sm:$0xff] }
 0xdf5   :  { %2929 = vmatprep.mubr.bf16.mxu0 %v2000_v11  ;;  %2972 = vmatprep.mubr.bf16.mxu1 %v2000_v11  ;;  %v8590_v11 = vcombine.high %v2059_v3, %v2063_v1  ;;  %v2080_v31 = vld [vmem:[#allocation19 + $0x278] sm:$0xff]  ;;  %v2111_v3 = vld [vmem:[#allocation19 + $0x370] sm:$0xff] }
 0xdf6   :  { %2899 = vmatprep.subr.bf16.mxu0 %v8542_v33  ;;  %2942 = vmatprep.subr.bf16.mxu1 %v8544_v51  ;;  %v2067_v33 = vld [vmem:[#allocation19 + $0x210] sm:$0xff]  ;;  %v2108_v1 = vld [vmem:[#allocation19 + $0x358] sm:$0xff] }
 0xdf7   :  { %v2071_v51 = vld [vmem:[#allocation19 + $0x230] sm:$0xff] }
 0xdf8   :  { %2900 = vmatpush1.bf16.msra.mxu0 %v8541_v16  ;;  %2943 = vmatpush1.bf16.msra.mxu1 %v8543_v18  ;;  %v8591_v16 = vcombine.low %v2060_v49, %v2064_v53  ;;  %v8598_v18 = vcombine.high %v2067_v33, %v2071_v51  ;;  %v8597_v52 = vcombine.low %v2067_v33, %v2071_v51  ;;  %v2112_v49 = vld [vmem:[#allocation19 + $0x378] sm:$0xff]  ;;  %v2119_v33 = vld [vmem:[#allocation19 + $0x3b0] sm:$0xff] }
 0xdf9   :  { %2901 = vmatprep.subr.bf16.mxu0 %v8550_v19  ;;  %2944 = vmatprep.subr.bf16.mxu1 %v8552_v22  ;;  %v8600_v19 = vcombine.high %v2068_v14, %v2072_v15  ;;  %v2075_v22 = vld [vmem:[#allocation19 + $0x250] sm:$0xff]  ;;  %v2116_v51 = vld [vmem:[#allocation19 + $0x398] sm:$0xff] }
 0xdfa   :  { %v8605_v38 = vcombine.low %v2075_v22, %v2079_v26 }
 0xdfc   :  { %2902 = vmatpush1.bf16.msra.mxu0 %v8549_v24  ;;  %2945 = vmatpush1.bf16.msra.mxu1 %v8551_v34  ;;  %v8599_v24 = vcombine.low %v2068_v14, %v2072_v15  ;;  %v8606_v34 = vcombine.high %v2075_v22, %v2079_v26  ;;  %v2120_v14 = vld [vmem:[#allocation19 + $0x3b8] sm:$0xff]  ;;  %v2127_v22 = vld [vmem:[#allocation19 + $0x3f0] sm:$0xff] }
 0xdfd   :  { %2903 = vmatprep.subr.bf16.mxu0 %v8558_v58  ;;  %2946 = vmatprep.subr.bf16.mxu1 %v8560_v32  ;;  %v8608_v58 = vcombine.high %v2076_v27, %v2080_v31  ;;  %v2083_v32 = vld [vmem:[#allocation19 + $0x290] sm:$0xff]  ;;  %v2124_v26 = vld [vmem:[#allocation19 + $0x3d8] sm:$0xff] }
 0xdfe   :  { %v8613_v48 = vcombine.low %v2083_v32, %v2087_v35 }
 0xe00   :  { %2904 = vmatpush1.bf16.msra.mxu0 %v8557_v40  ;;  %2947 = vmatpush1.bf16.msra.mxu1 %v8559_v39  ;;  %v8607_v40 = vcombine.low %v2076_v27, %v2080_v31  ;;  %v8614_v39 = vcombine.high %v2083_v32, %v2087_v35  ;;  %v2128_v27 = vld [vmem:[#allocation19 + $0x3f8] sm:$0xff] }
 0xe01   :  { %2905 = vmatprep.subr.bf16.mxu0 %v8566_v42  ;;  %2948 = vmatprep.subr.bf16.mxu1 %v8568_v43  ;;  %v8616_v42 = vcombine.high %v2084_v36, %v2088_v37  ;;  %v2091_v43 = vld [vmem:[#allocation19 + $0x2d0] sm:$0xff]  ;;  %v8655_v32 = vcombine.low %v2124_v26, %v2128_v27 }
 0xe02   :  { %v8621_v2 = vcombine.low %v2091_v43, %v2095_v41  ;;  %v9635_v35 = vld [vmem:[#allocation22 + $0x4] ss:$8 sps:$4 sm:$0xff]  }
 0xe04   :  { %2906 = vmatpush1.bf16.msra.mxu0 %v8565_v46  ;;  %2949 = vmatpush1.bf16.msra.mxu1 %v8567_v60  ;;  %v8615_v46 = vcombine.low %v2084_v36, %v2088_v37  ;;  %v8622_v60 = vcombine.high %v2091_v43, %v2095_v41  ;;  %v9633_v36 = vld [vmem:[#allocation22] ss:$8 sps:$4 sm:$0xff]   ;;  %v9638_v37 = vld [vmem:[#allocation22 + $0x14] ss:$8 sps:$4 sm:$0xff]   ;;  %v9642_v43 = vld [vmem:[#allocation22 + $0x30] ss:$8 sps:$4 sm:$0xff]  }
 0xe05   :  { %2907 = vmatprep.subr.bf16.mxu0 %v8574_v61  ;;  %2950 = vmatprep.subr.bf16.mxu1 %v8576_v4  ;;  %v8624_v61 = vcombine.high %v2092_v44, %v2096_v47  ;;  %v2099_v4 = vld [vmem:[#allocation19 + $0x310] sm:$0xff] }
 0xe06   :  { %v8629_v53 = vcombine.low %v2099_v4, %v2103_v7  ;;  %v9647_v41 = vld [vmem:[#allocation22 + $0x44] ss:$8 sps:$4 sm:$0xff]  }
 0xe08   :  { %2908 = vmatpush1.bf16.msra.mxu0 %v8573_v17  ;;  %2951 = vmatpush1.bf16.msra.mxu1 %v8575_v50  ;;  %v8623_v17 = vcombine.low %v2092_v44, %v2096_v47  ;;  %v8630_v50 = vcombine.high %v2099_v4, %v2103_v7  ;;  %v9645_v44 = vld [vmem:[#allocation22 + $0x40] ss:$8 sps:$4 sm:$0xff]   ;;  %v9650_v47 = vld [vmem:[#allocation22 + $0x54] ss:$8 sps:$4 sm:$0xff]   ;;  %v9659_v4 = vld [vmem:[#allocation22 + $0x84] ss:$8 sps:$4 sm:$0xff]  }
 0xe09   :  { %2909 = vmatprep.subr.bf16.mxu0 %v8582_v62  ;;  %2952 = vmatprep.subr.bf16.mxu1 %v8584_v45  ;;  %v8632_v62 = vcombine.high %v2100_v0, %v2104_v5  ;;  %v2107_v45 = vld [vmem:[#allocation19 + $0x350] sm:$0xff] }
 0xe0a   :  { %v8637_v15 = vcombine.low %v2107_v45, %v2111_v3  ;;  %v9657_v7 = vld [vmem:[#allocation22 + $0x80] ss:$8 sps:$4 sm:$0xff]  }
 0xe0c   :  { %2910 = vmatpush1.bf16.msra.mxu0 %v8581_v9  ;;  %2953 = vmatpush1.bf16.msra.mxu1 %v8583_v10  ;;  %v8631_v9 = vcombine.low %v2100_v0, %v2104_v5  ;;  %v8638_v10 = vcombine.high %v2107_v45, %v2111_v3  ;;  %v9662_v0 = vld [vmem:[#allocation22 + $0x94] ss:$8 sps:$4 sm:$0xff]   ;;  %v9660_v5 = vld [vmem:[#allocation22 + $0x90] ss:$8 sps:$4 sm:$0xff]   ;;  %v9671_v45 = vld [vmem:[#allocation22 + $0xc4] ss:$8 sps:$4 sm:$0xff]  }
 0xe0d   :  { %2911 = vmatprep.subr.bf16.mxu0 %v8590_v11  ;;  %2954 = vmatprep.subr.bf16.mxu1 %v8592_v13  ;;  %v8640_v11 = vcombine.high %v2108_v1, %v2112_v49  ;;  %v2115_v13 = vld [vmem:[#allocation19 + $0x390] sm:$0xff] }
 0xe0e   :  { %v8645_v31 = vcombine.low %v2115_v13, %v2119_v33  ;;  %v9669_v3 = vld [vmem:[#allocation22 + $0xc0] ss:$8 sps:$4 sm:$0xff]  }
 0xe10   :  { %2912 = vmatpush1.bf16.msra.mxu0 %v8589_v25  ;;  %2955 = vmatpush1.bf16.msra.mxu1 %v8591_v16  ;;  %v8639_v25 = vcombine.low %v2108_v1, %v2112_v49  ;;  %v8646_v16 = vcombine.high %v2115_v13, %v2119_v33  ;;  %v9674_v1 = vld [vmem:[#allocation22 + $0xd4] ss:$8 sps:$4 sm:$0xff]   ;;  %v9672_v49 = vld [vmem:[#allocation22 + $0xd0] ss:$8 sps:$4 sm:$0xff]   ;;  %v9683_v13 = vld [vmem:[#allocation22 + $0x104] ss:$8 sps:$4 sm:$0xff]  }
 0xe11   :  { %2913 = vmatprep.subr.bf16.mxu0 %v8598_v18  ;;  %2956 = vmatprep.subr.bf16.mxu1 %v8600_v19  ;;  %v8648_v18 = vcombine.high %v2116_v51, %v2120_v14  ;;  %v2123_v19 = vld [vmem:[#allocation19 + $0x3d0] sm:$0xff]  ;;  %v11640_v33 = vld [vmem:[#allocation20] sm:$0xff] }
 0xe14   :  { %2914 = vmatpush1.bf16.msra.mxu0 %v8597_v52  ;;  %2957 = vmatpush1.bf16.msra.mxu1 %v8599_v24  ;;  %v8647_v52 = vcombine.low %v2116_v51, %v2120_v14  ;;  %v8654_v24 = vcombine.high %v2123_v19, %v2127_v22  ;;  %v2134_v51 = vrot.slane %v11640_v33, %v11332_v30 }
 0xe15   :  { %2915 = vmatprep.subr.bf16.mxu0 %v8606_v34  ;;  %2958 = vmatprep.subr.bf16.mxu1 %v8608_v58  ;;  %v8656_v34 = vcombine.high %v2124_v26, %v2128_v27  ;;  %v8653_v58 = vcombine.low %v2123_v19, %v2127_v22  ;;  %v2142_v14 = vrot.slane %v11640_v33, %v11372_v54 }
 0xe18   :  { %2916 = vmatpush1.bf16.msra.mxu0 %v8605_v38  ;;  %2959 = vmatpush1.bf16.msra.mxu1 %v8607_v40  ;;  %v9636_v38 = vld [vmem:[#allocation22 + $0x10] ss:$8 sps:$4 sm:$0xff]   ;;  %v9641_v40 = vld [vmem:[#allocation22 + $0x24] ss:$8 sps:$4 sm:$0xff]  }
 0xe19   :  { %2917 = vmatprep.subr.bf16.mxu0 %v8614_v39  ;;  %2960 = vmatprep.subr.bf16.mxu1 %v8616_v42  ;;  %v9639_v39 = vld [vmem:[#allocation22 + $0x20] ss:$8 sps:$4 sm:$0xff]   ;;  %v9644_v42 = vld [vmem:[#allocation22 + $0x34] ss:$8 sps:$4 sm:$0xff]  }
 0xe1c   :  { %2918 = vmatpush1.bf16.msra.mxu0 %v8613_v48  ;;  %2961 = vmatpush1.bf16.msra.mxu1 %v8615_v46  ;;  %v9648_v48 = vld [vmem:[#allocation22 + $0x50] ss:$8 sps:$4 sm:$0xff]   ;;  %v9651_v46 = vld [vmem:[#allocation22 + $0x60] ss:$8 sps:$4 sm:$0xff]  }
 0xe1d   :  { %2919 = vmatprep.subr.bf16.mxu0 %v8622_v60  ;;  %2962 = vmatprep.subr.bf16.mxu1 %v8624_v61  ;;  %v9656_v60 = vld [vmem:[#allocation22 + $0x74] ss:$8 sps:$4 sm:$0xff]   ;;  %v9654_v61 = vld [vmem:[#allocation22 + $0x70] ss:$8 sps:$4 sm:$0xff]  }
 0xe20   :  { %2920 = vmatpush1.bf16.msra.mxu0 %v8621_v2  ;;  %2963 = vmatpush1.bf16.msra.mxu1 %v8623_v17  ;;  %v9665_v2 = vld [vmem:[#allocation22 + $0xa4] ss:$8 sps:$4 sm:$0xff]   ;;  %v9663_v17 = vld [vmem:[#allocation22 + $0xa0] ss:$8 sps:$4 sm:$0xff]  }
 0xe21   :  { %2921 = vmatprep.subr.bf16.mxu0 %v8630_v50  ;;  %2964 = vmatprep.subr.bf16.mxu1 %v8632_v62  ;;  %v9668_v50 = vld [vmem:[#allocation22 + $0xb4] ss:$8 sps:$4 sm:$0xff]   ;;  %v9666_v62 = vld [vmem:[#allocation22 + $0xb0] ss:$8 sps:$4 sm:$0xff]  }
 0xe24   :  { %2922 = vmatpush1.bf16.msra.mxu0 %v8629_v53  ;;  %2965 = vmatpush1.bf16.msra.mxu1 %v8631_v9  ;;  %v9677_v53 = vld [vmem:[#allocation22 + $0xe4] ss:$8 sps:$4 sm:$0xff]   ;;  %v9675_v9 = vld [vmem:[#allocation22 + $0xe0] ss:$8 sps:$4 sm:$0xff]  }
 0xe25   :  { %2923 = vmatprep.subr.bf16.mxu0 %v8638_v10  ;;  %2966 = vmatprep.subr.bf16.mxu1 %v8640_v11  ;;  %v9680_v10 = vld [vmem:[#allocation22 + $0xf4] ss:$8 sps:$4 sm:$0xff]   ;;  %v9678_v11 = vld [vmem:[#allocation22 + $0xf0] ss:$8 sps:$4 sm:$0xff]  }
 0xe28   :  { %2924 = vmatpush1.bf16.msra.mxu0 %v8637_v15  ;;  %2967 = vmatpush1.bf16.msra.mxu1 %v8639_v25  ;;  %v2138_v15 = vrot.slane %v11640_v33, %v11329_v29  ;;  %v2146_v25 = vrot.slane %v11640_v33, %v11375_v55 }
 0xe29   :  { %2925 = vmatprep.subr.bf16.mxu0 %v8646_v16  ;;  %2968 = vmatprep.subr.bf16.mxu1 %v8648_v18 }
 0xe2c   :  { %2926 = vmatpush1.bf16.msra.mxu0 %v8645_v31  ;;  %2969 = vmatpush1.bf16.msra.mxu1 %v8647_v52 }
 0xe2d   :  { %2927 = vmatprep.subr.bf16.mxu0 %v8654_v24  ;;  %2970 = vmatprep.subr.bf16.mxu1 %v8656_v34 }
 0xe30   :  { %2928 = vmatpush1.bf16.msra.mxu0 %v8653_v58  ;;  %2971 = vmatpush1.bf16.msra.mxu1 %v8655_v32 }
 0xe31   :  { %3915 = vmatprep.subr.bf16.mxu0 %v9635_v35 }
 0xe33   :  { %2930 = vmatmul.mubr.bf16.vlgmr.msra.gmra.mrb[24].mxu0 %v11634_v12  ;;  %2973 = vmatmul.mubr.bf16.vlgmr.msra.gmra.mrb[44].mxu1 %v11634_v12  ;;  %v9653_v12 = vld [vmem:[#allocation22 + $0x64] ss:$8 sps:$4 sm:$0xff]  }
 0xe34   :  { %3916 = vmatpush1.bf16.msra.mxu0 %v9633_v36 }
 0xe35   :  { %3917 = vmatprep.subr.bf16.mxu0 %v9638_v37 }
 0xe38   :  { %3918 = vmatpush1.bf16.msra.mxu0 %v9636_v38 }
 0xe39   :  { %3919 = vmatprep.subr.bf16.mxu0 %v9641_v40 }
 0xe3c   :  { %3920 = vmatpush1.bf16.msra.mxu0 %v9639_v39 }
 0xe3d   :  { %3921 = vmatprep.subr.bf16.mxu0 %v9644_v42 }
 0xe40   :  { %3922 = vmatpush1.bf16.msra.mxu0 %v9642_v43 }
 0xe41   :  { %3923 = vmatprep.subr.bf16.mxu0 %v9647_v41 }
 0xe44   :  { %3924 = vmatpush1.bf16.msra.mxu0 %v9645_v44 }
 0xe45   :  { %3925 = vmatprep.subr.bf16.mxu0 %v9650_v47 }
 0xe48   :  { %3926 = vmatpush1.bf16.msra.mxu0 %v9648_v48 }
 0xe49   :  { %3927 = vmatprep.subr.bf16.mxu0 %v9653_v12 }
 0xe4c   :  { %3928 = vmatpush1.bf16.msra.mxu0 %v9651_v46 }
 0xe4d   :  { %3929 = vmatprep.subr.bf16.mxu0 %v9656_v60 }
 0xe50   :  { %3930 = vmatpush1.bf16.msra.mxu0 %v9654_v61 }
 0xe51   :  { %3931 = vmatprep.subr.bf16.mxu0 %v9659_v4 }
 0xe54   :  { %3932 = vmatpush1.bf16.msra.mxu0 %v9657_v7 }
 0xe55   :  { %3933 = vmatprep.subr.bf16.mxu0 %v9662_v0 }
 0xe58   :  { %3934 = vmatpush1.bf16.msra.mxu0 %v9660_v5 }
 0xe59   :  { %3935 = vmatprep.subr.bf16.mxu0 %v9665_v2 }
 0xe5c   :  { %3936 = vmatpush1.bf16.msra.mxu0 %v9663_v17 }
 0xe5d   :  { %3937 = vmatprep.subr.bf16.mxu0 %v9668_v50 }
 0xe60   :  { %3938 = vmatpush1.bf16.msra.mxu0 %v9666_v62 }
 0xe61   :  { %3939 = vmatprep.subr.bf16.mxu0 %v9671_v45 }
 0xe64   :  { %3940 = vmatpush1.bf16.msra.mxu0 %v9669_v3 }
 0xe65   :  { %3941 = vmatprep.subr.bf16.mxu0 %v9674_v1 }
 0xe68   :  { %3942 = vmatpush1.bf16.msra.mxu0 %v9672_v49 }
 0xe69   :  { %3943 = vmatprep.subr.bf16.mxu0 %v9677_v53 }
 0xe6c   :  { %3944 = vmatpush1.bf16.msra.mxu0 %v9675_v9 }
 0xe6d   :  { %3945 = vmatprep.subr.bf16.mxu0 %v9680_v10 }
 0xe70   :  { %3946 = vmatpush1.bf16.msra.mxu0 %v9678_v11 }
 0xe71   :  { %3958 = vmatprep.subr.bf16.mxu0 %v9683_v13 }
 0xec6   :  { %v2845_v16 = vpop.f32.mrb[20].mxu0  ;;  %v2888_v18 = vpop.f32.mrb[40].mxu1 }
 0xec7   :  { %v11650_v19 = vadd.f32 %v2845_v16, %v2134_v51  ;;  %v11652_v22 = vadd.f32 %v2888_v18, %v2142_v14  ;;  %v2847_v26 = vpop.f32.mrb[21].mxu0  ;;  %v2890_v27 = vpop.f32.mrb[41].mxu1 }
 0xec8   :  { %v11654_v31 = vadd.f32 %v2847_v26, %v2138_v15  ;;  %v11656_v52 = vadd.f32 %v2890_v27, %v2146_v25  ;;  %v2849_v24 = vpop.f32.mrb[22].mxu0  ;;  %v2892_v34 = vpop.f32.mrb[42].mxu1 }
 0xec9   :  { %v2999_v58 = vmul.f32 0.044715, %v11650_v19  ;;  %v3001_v32 = vmul.f32 0.044715, %v11652_v22  ;;  %v2850_v35 = vadd.f32 %v2849_v24, %v2134_v51  ;;  %v2893_v36 = vadd.f32 %v2892_v34, %v2142_v14  ;;  %v2851_v37 = vpop.f32.mrb[23].mxu0  ;;  %v2894_v38 = vpop.f32.mrb[43].mxu1 }
 0xeca   :  { %v3000_v40 = vmul.f32 0.044715, %v11654_v31  ;;  %v3002_v39 = vmul.f32 0.044715, %v11656_v52  ;;  %v11662_v42 = vadd.f32 %v2851_v37, %v2138_v15  ;;  %v11664_v43 = vadd.f32 %v2894_v38, %v2146_v25 }
 0xecb   :  { %v3015_v41 = vmul.f32 %v2999_v58, %v11650_v19  ;;  %v3017_v44 = vmul.f32 %v3001_v32, %v11652_v22  ;;  %v3007_v47 = vmul.f32 0.044715, %v2850_v35  ;;  %v3009_v48 = vmul.f32 0.044715, %v2893_v36 }
 0xecc   :  { %v3016_v12 = vmul.f32 %v3000_v40, %v11654_v31  ;;  %v3018_v46 = vmul.f32 %v3002_v39, %v11656_v52  ;;  %v3008_v60 = vmul.f32 0.044715, %v11662_v42  ;;  %v3010_v61 = vmul.f32 0.044715, %v11664_v43 }
 0xecd   :  { %v3031_v4 = vmul.f32 %v3015_v41, %v11650_v19  ;;  %v3033_v7 = vmul.f32 %v3017_v44, %v11652_v22  ;;  %v3023_v0 = vmul.f32 %v3007_v47, %v2850_v35  ;;  %v3025_v5 = vmul.f32 %v3009_v48, %v2893_v36 }
 0xece   :  { %v3032_v2 = vmul.f32 %v3016_v12, %v11654_v31  ;;  %v3024_v17 = vmul.f32 %v3008_v60, %v11662_v42  ;;  %v3026_v50 = vmul.f32 %v3010_v61, %v11664_v43  ;;  %v3034_v49 = vmul.f32 %v3018_v46, %v11656_v52 }
 0xecf   :  { %v3047_v62 = vadd.f32 %v3031_v4, %v11650_v19  ;;  %v3049_v45 = vadd.f32 %v3033_v7, %v11652_v22  ;;  %v3039_v3 = vmul.f32 %v3023_v0, %v2850_v35  ;;  %v3041_v1 = vmul.f32 %v3025_v5, %v2893_v36 }
 0xed0   :  { %v3040_v53 = vmul.f32 %v3024_v17, %v11662_v42  ;;  %v3042_v9 = vmul.f32 %v3026_v50, %v11664_v43  ;;  %v3048_v14 = vadd.f32 %v3032_v2, %v11654_v31  ;;  %v3050_v27 = vadd.f32 %v3034_v49, %v11656_v52 }
 0xed1   :  { %v3063_v10 = vmul.f32 0.7978846, %v3047_v62  ;;  %v3065_v11 = vmul.f32 0.7978846, %v3049_v45  ;;  %v3055_v13 = vadd.f32 %v3039_v3, %v2850_v35  ;;  %v3057_v51 = vadd.f32 %v3041_v1, %v2893_v36 }
 0xed2   :  { %v3056_v15 = vadd.f32 %v3040_v53, %v11662_v42  ;;  %v3064_v18 = vmul.f32 0.7978846, %v3048_v14  ;;  %v3058_v24 = vadd.f32 %v3042_v9, %v11664_v43  ;;  %v3066_v34 = vmul.f32 0.7978846, %v3050_v27  ;;  %v9698_v27 = vld [vmem:[#allocation22 + $0x154] ss:$8 sps:$4 sm:$0xff]  }
 0xed3   :  { %10297 = vtanh.f32 %v3063_v10  ;;  %v3071_v25 = vmul.f32 0.7978846, %v3055_v13  ;;  %v3073_v16 = vmul.f32 0.7978846, %v3057_v51  ;;  %v2983_v44 = vmul.f32 0.5, %v11650_v19 }
 0xed4   :  { %10299 = vtanh.f32 %v3065_v11  ;;  %v3072_v26 = vmul.f32 0.7978846, %v3056_v15  ;;  %v3074_v58 = vmul.f32 0.7978846, %v3058_v24  ;;  %v2991_v47 = vmul.f32 0.5, %v2850_v35 }
 0xed5   :  { %10301 = vtanh.f32 %v3071_v25  ;;  %v2985_v46 = vmul.f32 0.5, %v11652_v22  ;;  %v2993_v60 = vmul.f32 0.5, %v2893_v36  ;;  %v2984_v7 = vmul.f32 0.5, %v11654_v31  ;;  %v9686_v51 = vld [vmem:[#allocation22 + $0x114] ss:$8 sps:$4 sm:$0xff]  }
 0xed6   :  { %10303 = vtanh.f32 %v3073_v16  ;;  %v2992_v50 = vmul.f32 0.5, %v11662_v42  ;;  %v2986_v22 = vmul.f32 0.5, %v11656_v52  ;;  %v2994_v36 = vmul.f32 0.5, %v11664_v43  ;;  %v9681_v42 = vld [vmem:[#allocation22 + $0x100] ss:$8 sps:$4 sm:$0xff]  }
 0xed7   :  { %10305 = vtanh.f32 %v3064_v18  ;;  %v9684_v52 = vld [vmem:[#allocation22 + $0x110] ss:$8 sps:$4 sm:$0xff]   ;;  %v9689_v43 = vld [vmem:[#allocation22 + $0x124] ss:$8 sps:$4 sm:$0xff]   ;;  %v9687_v15 = vld [vmem:[#allocation22 + $0x120] ss:$8 sps:$4 sm:$0xff]  }
 0xed8   :  { %10307 = vtanh.f32 %v3072_v26  ;;  %v9692_v25 = vld [vmem:[#allocation22 + $0x134] ss:$8 sps:$4 sm:$0xff]   ;;  %v9690_v16 = vld [vmem:[#allocation22 + $0x130] ss:$8 sps:$4 sm:$0xff]   ;;  %v9695_v18 = vld [vmem:[#allocation22 + $0x144] ss:$8 sps:$4 sm:$0xff]  }
 0xed9   :  { %10309 = vtanh.f32 %v3066_v34  ;;  %v9693_v26 = vld [vmem:[#allocation22 + $0x140] ss:$8 sps:$4 sm:$0xff]   ;;  %v9696_v24 = vld [vmem:[#allocation22 + $0x150] ss:$8 sps:$4 sm:$0xff]   ;;  %v9701_v34 = vld [vmem:[#allocation22 + $0x164] ss:$8 sps:$4 sm:$0xff]  }
 0xeda   :  { %10311 = vtanh.f32 %v3074_v58  ;;  %v9699_v58 = vld [vmem:[#allocation22 + $0x160] ss:$8 sps:$4 sm:$0xff]  }
 0xedd   :  { %v10298_v32 = vpop.eup %10297 }
 0xede   :  { %v10300_v37 = vpop.eup %10299  ;;  %v3095_v38 = vadd.f32 1.0, %v10298_v32  ;;  %v2157_v32 = vsub.s32 6, %v11326_v28 }
 0xedf   :  { %v10302_v40 = vpop.eup %10301  ;;  %v3097_v39 = vadd.f32 1.0, %v10300_v37  ;;  %v9704_v37 = vld [vmem:[#allocation22 + $0x174] ss:$8 sps:$4 sm:$0xff]  }
 0xee0   :  { %v10304_v41 = vpop.eup %10303  ;;  %v3103_v48 = vadd.f32 1.0, %v10302_v40  ;;  %v3111_v5 = vmul.f32 %v3095_v38, %v2983_v44  ;;  %v2161_v38 = vsub.s32 7, %v11326_v28  ;;  %v9702_v40 = vld [vmem:[#allocation22 + $0x170] ss:$8 sps:$4 sm:$0xff]   ;;  %v2154_v44 = vrot.slane %v11640_v33, %v11357_v23  ;;  %v10094_v28 = vld [vmem:[#allocation22 + $0x594] ss:$8 sps:$4 sm:$0xff]  }
 0xee1   :  { %v10306_v12 = vpop.eup %10305  ;;  %v3105_v61 = vadd.f32 1.0, %v10304_v41  ;;  %v11690_v45 = vmul.f32 %v3097_v39, %v2985_v46  ;;  %v2150_v39 = vrot.slane %v11640_v33, %v11354_v21  ;;  %v2158_v41 = vrot.slane %v11640_v33, %v2157_v32 }
 0xee2   :  { %v10308_v4 = vpop.eup %10307  ;;  %v3096_v0 = vadd.f32 1.0, %v10306_v12  ;;  %v3119_v2 = vmul.f32 %v3103_v48, %v2991_v47  ;;  %v2162_v47 = vrot.slane %v11640_v33, %v2161_v38  ;;  %v9707_v48 = vld [vmem:[#allocation22 + $0x184] ss:$8 sps:$4 sm:$0xff]  }
 0xee3   :  { %v10310_v17 = vpop.eup %10309  ;;  %v3104_v62 = vadd.f32 1.0, %v10308_v4  ;;  %v11692_v19 = vmul.f32 %v3105_v61, %v2993_v60 }
 0xee4   :  { %v10312_v35 = vpop.eup %10311  ;;  %v3127_v3 = vpack.c.bf16 %v3119_v2, %v3111_v5  ;;  %v3098_v1 = vadd.f32 1.0, %v10310_v17  ;;  %v3112_v49 = vmul.f32 %v3096_v0, %v2984_v7  ;;  %v9705_v0 = vld [vmem:[#allocation22 + $0x180] ss:$8 sps:$4 sm:$0xff]  }
 0xee5   :  { %v3120_v31 = vmul.f32 %v3104_v62, %v2992_v50  ;;  %v3106_v53 = vadd.f32 1.0, %v10312_v35  ;;  %v3129_v9 = vpack.c.bf16 %v11692_v19, %v11690_v45  ;;  %v9710_v62 = vld [vmem:[#allocation22 + $0x194] ss:$8 sps:$4 sm:$0xff]   ;;  %v9744_v45 = vld [vmem:[#allocation22 + $0x250] ss:$8 sps:$4 sm:$0xff]  }
 0xee6   :  { %v3114_v11 = vmul.f32 %v3098_v1, %v2986_v22  ;;  %v9749_v19 = vld [vmem:[#allocation22 + $0x264] ss:$8 sps:$4 sm:$0xff]  }
 0xee7   :  { %v3128_v10 = vpack.c.bf16 %v3120_v31, %v3112_v49  ;;  %v3122_v13 = vmul.f32 %v3106_v53, %v2994_v36 }
 0xee9   :  { %3947 = vmatprep.mubr.bf16.mxu0 %v3128_v10  ;;  %v3130_v14 = vpack.c.bf16 %v3122_v13, %v3114_v11 }
 0xeea   :  { %3948 = vmatmul.mubr.bf16.vlgmr.msra.gmra.mrb[28].mxu0 %v3127_v3 }
 0xeeb   :  { %3959 = vmatpush1.bf16.msra.mxu0 %v9681_v42  ;;  %3990 = vmatprep.mubr.bf16.mxu0 %v3130_v14  ;;  %v9708_v14 = vld [vmem:[#allocation22 + $0x190] ss:$8 sps:$4 sm:$0xff]  }
 0xeec   :  { %3960 = vmatprep.subr.bf16.mxu0 %v9686_v51 }
 0xeef   :  { %3961 = vmatpush1.bf16.msra.mxu0 %v9684_v52 }
 0xef0   :  { %3962 = vmatprep.subr.bf16.mxu0 %v9689_v43 }
 0xef3   :  { %3963 = vmatpush1.bf16.msra.mxu0 %v9687_v15 }
 0xef4   :  { %3964 = vmatprep.subr.bf16.mxu0 %v9692_v25 }
 0xef7   :  { %3965 = vmatpush1.bf16.msra.mxu0 %v9690_v16  ;;  %v9713_v16 = vld [vmem:[#allocation22 + $0x1a4] ss:$8 sps:$4 sm:$0xff]  }
 0xef8   :  { %3966 = vmatprep.subr.bf16.mxu0 %v9695_v18 }
 0xefb   :  { %3967 = vmatpush1.bf16.msra.mxu0 %v9693_v26 }
 0xefc   :  { %3968 = vmatprep.subr.bf16.mxu0 %v9698_v27 }
 0xeff   :  { %3969 = vmatpush1.bf16.msra.mxu0 %v9696_v24 }
 0xf00   :  { %3970 = vmatprep.subr.bf16.mxu0 %v9701_v34 }
 0xf03   :  { %3971 = vmatpush1.bf16.msra.mxu0 %v9699_v58 }
 0xf04   :  { %3972 = vmatprep.subr.bf16.mxu0 %v9704_v37 }
 0xf06   :  { %v2931_v12 = vpop.f32.mrb[24].mxu0  ;;  %v2974_v46 = vpop.f32.mrb[44].mxu1 }
 0xf07   :  { %3973 = vmatpush1.bf16.msra.mxu0 %v9702_v40  ;;  %v11710_v60 = vadd.f32 %v2931_v12, %v2150_v39  ;;  %v11712_v61 = vadd.f32 %v2974_v46, %v2158_v41  ;;  %v2933_v4 = vpop.f32.mrb[25].mxu0  ;;  %v2976_v7 = vpop.f32.mrb[45].mxu1 }
 0xf08   :  { %v11714_v5 = vadd.f32 %v2933_v4, %v2154_v44  ;;  %v11716_v2 = vadd.f32 %v2976_v7, %v2162_v47  ;;  %v2935_v17 = vpop.f32.mrb[26].mxu0  ;;  %v2978_v50 = vpop.f32.mrb[46].mxu1  ;;  %3974 = vmatprep.subr.bf16.mxu0 %v9707_v48  ;;  %v9716_v4 = vld [vmem:[#allocation22 + $0x1b4] ss:$8 sps:$4 sm:$0xff]  }
 0xf09   :  { %v3003_v33 = vmul.f32 0.044715, %v11710_v60  ;;  %v3005_v35 = vmul.f32 0.044715, %v11712_v61  ;;  %v11720_v3 = vadd.f32 %v2935_v17, %v2150_v39  ;;  %v11722_v22 = vadd.f32 %v2978_v50, %v2158_v41  ;;  %v2937_v36 = vpop.f32.mrb[27].mxu0  ;;  %v2980_v1 = vpop.f32.mrb[47].mxu1 }
 0xf0a   :  { %v3004_v49 = vmul.f32 0.044715, %v11714_v5  ;;  %v3006_v31 = vmul.f32 0.044715, %v11716_v2  ;;  %v11726_v53 = vadd.f32 %v2937_v36, %v2154_v44  ;;  %v11728_v10 = vadd.f32 %v2980_v1, %v2162_v47  ;;  %v9711_v47 = vld [vmem:[#allocation22 + $0x1a0] ss:$8 sps:$4 sm:$0xff]  }
 0xf0b   :  { %v3019_v42 = vmul.f32 %v3003_v33, %v11710_v60  ;;  %v3021_v11 = vmul.f32 %v3005_v35, %v11712_v61  ;;  %v3011_v13 = vmul.f32 0.044715, %v11720_v3  ;;  %v3013_v51 = vmul.f32 0.044715, %v11722_v22  ;;  %3975 = vmatpush1.bf16.msra.mxu0 %v9705_v0  ;;  %v9714_v1 = vld [vmem:[#allocation22 + $0x1b0] ss:$8 sps:$4 sm:$0xff]  }
 0xf0c   :  { %v3020_v52 = vmul.f32 %v3004_v49, %v11714_v5  ;;  %v3022_v43 = vmul.f32 %v3006_v31, %v11716_v2  ;;  %v3012_v15 = vmul.f32 0.044715, %v11726_v53  ;;  %v3014_v25 = vmul.f32 0.044715, %v11728_v10  ;;  %3976 = vmatprep.subr.bf16.mxu0 %v9710_v62  ;;  %v9719_v49 = vld [vmem:[#allocation22 + $0x1c4] ss:$8 sps:$4 sm:$0xff]  }
 0xf0d   :  { %v3035_v18 = vmul.f32 %v3019_v42, %v11710_v60  ;;  %v3037_v26 = vmul.f32 %v3021_v11, %v11712_v61  ;;  %v3027_v27 = vmul.f32 %v3011_v13, %v11720_v3  ;;  %v3029_v24 = vmul.f32 %v3013_v51, %v11722_v22  ;;  %v9717_v51 = vld [vmem:[#allocation22 + $0x1c0] ss:$8 sps:$4 sm:$0xff]  }
 0xf0e   :  { %v3036_v34 = vmul.f32 %v3020_v52, %v11714_v5  ;;  %v3028_v58 = vmul.f32 %v3012_v15, %v11726_v53  ;;  %v3030_v37 = vmul.f32 %v3014_v25, %v11728_v10  ;;  %v3038_v48 = vmul.f32 %v3022_v43, %v11716_v2  ;;  %v9722_v43 = vld [vmem:[#allocation22 + $0x1d4] ss:$8 sps:$4 sm:$0xff]   ;;  %v9720_v15 = vld [vmem:[#allocation22 + $0x1d0] ss:$8 sps:$4 sm:$0xff]   ;;  %v9725_v25 = vld [vmem:[#allocation22 + $0x1e4] ss:$8 sps:$4 sm:$0xff]  }
 0xf0f   :  { %v3051_v40 = vadd.f32 %v3035_v18, %v11710_v60  ;;  %v3053_v39 = vadd.f32 %v3037_v26, %v11712_v61  ;;  %v3043_v41 = vmul.f32 %v3027_v27, %v11720_v3  ;;  %v3045_v44 = vmul.f32 %v3029_v24, %v11722_v22  ;;  %3977 = vmatpush1.bf16.msra.mxu0 %v9708_v14  ;;  %v9723_v24 = vld [vmem:[#allocation22 + $0x1e0] ss:$8 sps:$4 sm:$0xff]  }
 0xf10   :  { %v3044_v12 = vmul.f32 %v3028_v58, %v11726_v53  ;;  %v3046_v46 = vmul.f32 %v3030_v37, %v11728_v10  ;;  %3978 = vmatprep.subr.bf16.mxu0 %v9713_v16  ;;  %v3052_v62 = vadd.f32 %v3036_v34, %v11714_v5  ;;  %v3054_v11 = vadd.f32 %v3038_v48, %v11716_v2  ;;  %v9728_v37 = vld [vmem:[#allocation22 + $0x1f4] ss:$8 sps:$4 sm:$0xff]  }
 0xf11   :  { %v3067_v7 = vmul.f32 0.7978846, %v3051_v40  ;;  %v3069_v0 = vmul.f32 0.7978846, %v3053_v39  ;;  %v3059_v17 = vadd.f32 %v3043_v41, %v11720_v3  ;;  %v3061_v50 = vadd.f32 %v3045_v44, %v11722_v22 }
 0xf12   :  { %v3060_v33 = vadd.f32 %v3044_v12, %v11726_v53  ;;  %v3068_v31 = vmul.f32 0.7978846, %v3052_v62  ;;  %v3062_v13 = vadd.f32 %v3046_v46, %v11728_v10  ;;  %v3070_v14 = vmul.f32 0.7978846, %v3054_v11 }
 0xf13   :  { %10313 = vtanh.f32 %v3067_v7  ;;  %v3075_v35 = vmul.f32 0.7978846, %v3059_v17  ;;  %v3077_v36 = vmul.f32 0.7978846, %v3061_v50  ;;  %3979 = vmatpush1.bf16.msra.mxu0 %v9711_v47  ;;  %v2987_v40 = vmul.f32 0.5, %v11710_v60 }
 0xf14   :  { %10315 = vtanh.f32 %v3069_v0  ;;  %3980 = vmatprep.subr.bf16.mxu0 %v9716_v4  ;;  %v3076_v42 = vmul.f32 0.7978846, %v3060_v33  ;;  %v3078_v52 = vmul.f32 0.7978846, %v3062_v13  ;;  %v2995_v39 = vmul.f32 0.5, %v11720_v3 }
 0xf15   :  { %10317 = vtanh.f32 %v3075_v35  ;;  %v2989_v47 = vmul.f32 0.5, %v11712_v61  ;;  %v2997_v48 = vmul.f32 0.5, %v11722_v22  ;;  %v2988_v4 = vmul.f32 0.5, %v11714_v5  ;;  %v9726_v60 = vld [vmem:[#allocation22 + $0x1f0] ss:$8 sps:$4 sm:$0xff]  }
 0xf16   :  { %10319 = vtanh.f32 %v3077_v36  ;;  %v2996_v3 = vmul.f32 0.5, %v11726_v53  ;;  %v9731_v35 = vld [vmem:[#allocation22 + $0x204] ss:$8 sps:$4 sm:$0xff]   ;;  %v2990_v36 = vmul.f32 0.5, %v11716_v2  ;;  %v9729_v13 = vld [vmem:[#allocation22 + $0x200] ss:$8 sps:$4 sm:$0xff]  }
 0xf17   :  { %3981 = vmatpush1.bf16.msra.mxu0 %v9714_v1  ;;  %10321 = vtanh.f32 %v3068_v31  ;;  %v2998_v1 = vmul.f32 0.5, %v11728_v10  ;;  %v9732_v10 = vld [vmem:[#allocation22 + $0x210] ss:$8 sps:$4 sm:$0xff]  }
 0xf18   :  { %3982 = vmatprep.subr.bf16.mxu0 %v9719_v49  ;;  %10323 = vtanh.f32 %v3076_v42 }
 0xf19   :  { %10325 = vtanh.f32 %v3070_v14 }
 0xf1a   :  { %10327 = vtanh.f32 %v3078_v52 }
 0xf1b   :  { %3983 = vmatpush1.bf16.msra.mxu0 %v9717_v51 }
 0xf1c   :  { %3984 = vmatprep.subr.bf16.mxu0 %v9722_v43  ;;  %v9734_v43 = vld [vmem:[#allocation22 + $0x214] ss:$8 sps:$4 sm:$0xff]  }
 0xf1d   :  { %v10314_v16 = vpop.eup %10313 }
 0xf1e   :  { %v10316_v18 = vpop.eup %10315  ;;  %v3099_v26 = vadd.f32 1.0, %v10314_v16  ;;  %v9740_v16 = vld [vmem:[#allocation22 + $0x234] ss:$8 sps:$4 sm:$0xff]  }
 0xf1f   :  { %v10318_v27 = vpop.eup %10317  ;;  %3985 = vmatpush1.bf16.msra.mxu0 %v9720_v15  ;;  %v3101_v34 = vadd.f32 1.0, %v10316_v18  ;;  %v9737_v15 = vld [vmem:[#allocation22 + $0x224] ss:$8 sps:$4 sm:$0xff]   ;;  %v9738_v18 = vld [vmem:[#allocation22 + $0x230] ss:$8 sps:$4 sm:$0xff]  }
 0xf20   :  { %v10320_v58 = vpop.eup %10319  ;;  %3986 = vmatprep.subr.bf16.mxu0 %v9725_v25  ;;  %v3107_v41 = vadd.f32 1.0, %v10318_v27  ;;  %v11763_v0 = vmul.f32 %v3099_v26, %v2987_v40  ;;  %v9735_v25 = vld [vmem:[#allocation22 + $0x220] ss:$8 sps:$4 sm:$0xff]   ;;  %v9743_v26 = vld [vmem:[#allocation22 + $0x244] ss:$8 sps:$4 sm:$0xff]  }
 0xf21   :  { %v10322_v44 = vpop.eup %10321  ;;  %v3109_v12 = vadd.f32 1.0, %v10320_v58  ;;  %v11768_v33 = vmul.f32 %v3101_v34, %v2989_v47  ;;  %v9741_v27 = vld [vmem:[#allocation22 + $0x240] ss:$8 sps:$4 sm:$0xff]   ;;  %v9752_v34 = vld [vmem:[#allocation22 + $0x274] ss:$8 sps:$4 sm:$0xff]  }
 0xf22   :  { %v10324_v46 = vpop.eup %10323  ;;  %v3100_v7 = vadd.f32 1.0, %v10322_v44  ;;  %v11765_v17 = vmul.f32 %v3107_v41, %v2995_v39  ;;  %v9750_v58 = vld [vmem:[#allocation22 + $0x270] ss:$8 sps:$4 sm:$0xff]   ;;  %v9753_v40 = vld [vmem:[#allocation22 + $0x280] ss:$8 sps:$4 sm:$0xff]  }
 0xf23   :  { %v10326_v50 = vpop.eup %10325  ;;  %3987 = vmatpush1.bf16.msra.mxu0 %v9723_v24  ;;  %v3108_v62 = vadd.f32 1.0, %v10324_v46  ;;  %v11770_v61 = vmul.f32 %v3109_v12, %v2997_v48  ;;  %v9746_v24 = vld [vmem:[#allocation22 + $0x254] ss:$8 sps:$4 sm:$0xff]   ;;  %v9756_v41 = vld [vmem:[#allocation22 + $0x290] ss:$8 sps:$4 sm:$0xff]  }
 0xf24   :  { %v10328_v22 = vpop.eup %10327  ;;  %3988 = vmatprep.subr.bf16.mxu0 %v9728_v37  ;;  %v3131_v5 = vpack.c.bf16 %v11765_v17, %v11763_v0  ;;  %v3102_v49 = vadd.f32 1.0, %v10326_v50  ;;  %v3116_v31 = vmul.f32 %v3100_v7, %v2988_v4  ;;  %v9755_v37 = vld [vmem:[#allocation22 + $0x284] ss:$8 sps:$4 sm:$0xff]   ;;  %v9758_v39 = vld [vmem:[#allocation22 + $0x294] ss:$8 sps:$4 sm:$0xff]  }
 0xf25   :  { %v3124_v42 = vmul.f32 %v3108_v62, %v2996_v3  ;;  %v3110_v11 = vadd.f32 1.0, %v10328_v22  ;;  %v3133_v53 = vpack.c.bf16 %v11770_v61, %v11768_v33  ;;  %v9761_v44 = vld [vmem:[#allocation22 + $0x2a4] ss:$8 sps:$4 sm:$0xff]   ;;  %v9759_v47 = vld [vmem:[#allocation22 + $0x2a0] ss:$8 sps:$4 sm:$0xff]  }
 0xf26   :  { %v11778_v14 = vmul.f32 %v3102_v49, %v2990_v36  ;;  %v9764_v48 = vld [vmem:[#allocation22 + $0x2b4] ss:$8 sps:$4 sm:$0xff]   ;;  %v9762_v12 = vld [vmem:[#allocation22 + $0x2b0] ss:$8 sps:$4 sm:$0xff]   ;;  %v9767_v46 = vld [vmem:[#allocation22 + $0x2c4] ss:$8 sps:$4 sm:$0xff]  }
 0xf27   :  { %3989 = vmatpush1.bf16.msra.mxu0 %v9726_v60  ;;  %v3132_v51 = vpack.c.bf16 %v3124_v42, %v3116_v31  ;;  %v11780_v52 = vmul.f32 %v3110_v11, %v2998_v1  ;;  %v9765_v4 = vld [vmem:[#allocation22 + $0x2c0] ss:$8 sps:$4 sm:$0xff]   ;;  %v9770_v7 = vld [vmem:[#allocation22 + $0x2d4] ss:$8 sps:$4 sm:$0xff]   ;;  %v9768_v50 = vld [vmem:[#allocation22 + $0x2d0] ss:$8 sps:$4 sm:$0xff]  }
 0xf28   :  { %4001 = vmatprep.subr.bf16.mxu0 %v9731_v35  ;;  %v9773_v60 = vld [vmem:[#allocation22 + $0x2e4] ss:$8 sps:$4 sm:$0xff]   ;;  %v9771_v3 = vld [vmem:[#allocation22 + $0x2e0] ss:$8 sps:$4 sm:$0xff]   ;;  %v9776_v62 = vld [vmem:[#allocation22 + $0x2f4] ss:$8 sps:$4 sm:$0xff]  }
 0xf29   :  { %v3134_v2 = vpack.c.bf16 %v11780_v52, %v11778_v14  ;;  %v9774_v22 = vld [vmem:[#allocation22 + $0x2f0] ss:$8 sps:$4 sm:$0xff]   ;;  %v9779_v35 = vld [vmem:[#allocation22 + $0x304] ss:$8 sps:$4 sm:$0xff]   ;;  %v9777_v36 = vld [vmem:[#allocation22 + $0x300] ss:$8 sps:$4 sm:$0xff]  }
 0xf2a   :  { %3991 = vmatmul.mubr.bf16.vlgmr.msra.gmra.mrb[28].mxu0 %v3129_v9  ;;  %v9747_v9 = vld [vmem:[#allocation22 + $0x260] ss:$8 sps:$4 sm:$0xff]   ;;  %v9782_v1 = vld [vmem:[#allocation22 + $0x314] ss:$8 sps:$4 sm:$0xff]   ;;  %v9780_v49 = vld [vmem:[#allocation22 + $0x310] ss:$8 sps:$4 sm:$0xff]  }
 0xf2b   :  { %4002 = vmatpush1.bf16.msra.mxu0 %v9729_v13  ;;  %4033 = vmatprep.mubr.bf16.mxu0 %v3132_v51  ;;  %v9785_v31 = vld [vmem:[#allocation22 + $0x324] ss:$8 sps:$4 sm:$0xff]   ;;  %v9783_v42 = vld [vmem:[#allocation22 + $0x320] ss:$8 sps:$4 sm:$0xff]   ;;  %v9788_v11 = vld [vmem:[#allocation22 + $0x334] ss:$8 sps:$4 sm:$0xff]  }
 0xf2c   :  { %4003 = vmatprep.subr.bf16.mxu0 %v9734_v43  ;;  %v9786_v13 = vld [vmem:[#allocation22 + $0x330] ss:$8 sps:$4 sm:$0xff]   ;;  %v9791_v51 = vld [vmem:[#allocation22 + $0x344] ss:$8 sps:$4 sm:$0xff]   ;;  %v9789_v43 = vld [vmem:[#allocation22 + $0x340] ss:$8 sps:$4 sm:$0xff]  }
 0xf2d   :  { %v9794_v0 = vld [vmem:[#allocation22 + $0x354] ss:$8 sps:$4 sm:$0xff]   ;;  %v9792_v17 = vld [vmem:[#allocation22 + $0x350] ss:$8 sps:$4 sm:$0xff]   ;;  %v9795_v14 = vld [vmem:[#allocation22 + $0x360] ss:$8 sps:$4 sm:$0xff]  }
 0xf2e   :  { %v9800_v52 = vld [vmem:[#allocation22 + $0x374] ss:$8 sps:$4 sm:$0xff]  }
 0xf2f   :  { %4004 = vmatpush1.bf16.msra.mxu0 %v9732_v10  ;;  %v9803_v10 = vld [vmem:[#allocation22 + $0x384] ss:$8 sps:$4 sm:$0xff]  }
 0xf30   :  { %4005 = vmatprep.subr.bf16.mxu0 %v9737_v15  ;;  %v9801_v15 = vld [vmem:[#allocation22 + $0x380] ss:$8 sps:$4 sm:$0xff]  }
 0xf33   :  { %4006 = vmatpush1.bf16.msra.mxu0 %v9735_v25  ;;  %v9806_v25 = vld [vmem:[#allocation22 + $0x394] ss:$8 sps:$4 sm:$0xff]  }
 0xf34   :  { %4007 = vmatprep.subr.bf16.mxu0 %v9740_v16  ;;  %v9804_v16 = vld [vmem:[#allocation22 + $0x390] ss:$8 sps:$4 sm:$0xff]  }
 0xf37   :  { %4008 = vmatpush1.bf16.msra.mxu0 %v9738_v18  ;;  %v9809_v18 = vld [vmem:[#allocation22 + $0x3a4] ss:$8 sps:$4 sm:$0xff]  }
 0xf38   :  { %4009 = vmatprep.subr.bf16.mxu0 %v9743_v26  ;;  %v9807_v26 = vld [vmem:[#allocation22 + $0x3a0] ss:$8 sps:$4 sm:$0xff]  }
 0xf3b   :  { %4010 = vmatpush1.bf16.msra.mxu0 %v9741_v27  ;;  %v9812_v27 = vld [vmem:[#allocation22 + $0x3b4] ss:$8 sps:$4 sm:$0xff]  }
 0xf3c   :  { %4011 = vmatprep.subr.bf16.mxu0 %v9746_v24  ;;  %v9810_v24 = vld [vmem:[#allocation22 + $0x3b0] ss:$8 sps:$4 sm:$0xff]  }
 0xf3f   :  { %4012 = vmatpush1.bf16.msra.mxu0 %v9744_v45  ;;  %v9815_v45 = vld [vmem:[#allocation22 + $0x3c4] ss:$8 sps:$4 sm:$0xff]  }
 0xf40   :  { %4013 = vmatprep.subr.bf16.mxu0 %v9749_v19  ;;  %v9813_v19 = vld [vmem:[#allocation22 + $0x3c0] ss:$8 sps:$4 sm:$0xff]  }
 0xf43   :  { %4014 = vmatpush1.bf16.msra.mxu0 %v9747_v9  ;;  %v9818_v9 = vld [vmem:[#allocation22 + $0x3d4] ss:$8 sps:$4 sm:$0xff]  }
 0xf44   :  { %4015 = vmatprep.subr.bf16.mxu0 %v9752_v34  ;;  %v9816_v34 = vld [vmem:[#allocation22 + $0x3d0] ss:$8 sps:$4 sm:$0xff]  }
 0xf47   :  { %4016 = vmatpush1.bf16.msra.mxu0 %v9750_v58  ;;  %v9821_v58 = vld [vmem:[#allocation22 + $0x3e4] ss:$8 sps:$4 sm:$0xff]  }
 0xf48   :  { %4017 = vmatprep.subr.bf16.mxu0 %v9755_v37  ;;  %v9819_v37 = vld [vmem:[#allocation22 + $0x3e0] ss:$8 sps:$4 sm:$0xff]  }
 0xf4b   :  { %4018 = vmatpush1.bf16.msra.mxu0 %v9753_v40  ;;  %v9824_v40 = vld [vmem:[#allocation22 + $0x3f4] ss:$8 sps:$4 sm:$0xff]  }
 0xf4c   :  { %4019 = vmatprep.subr.bf16.mxu0 %v9758_v39  ;;  %v9822_v39 = vld [vmem:[#allocation22 + $0x3f0] ss:$8 sps:$4 sm:$0xff]  }
 0xf4f   :  { %4020 = vmatpush1.bf16.msra.mxu0 %v9756_v41  ;;  %v3263_v41 = vld [vmem:[#allocation23] sm:$0x3] }
 0xf50   :  { %4021 = vmatprep.subr.bf16.mxu0 %v9761_v44  ;;  %v3268_v44 = vrot.slane %v3263_v41, %v11332_v30 }
 0xf53   :  { %4022 = vmatpush1.bf16.msra.mxu0 %v9759_v47  ;;  %v3272_v47 = vrot.slane %v3263_v41, %v11329_v29  ;;  %v9855_v41 = vld [vmem:[#allocation10 + $0x4e0] ss:$24 sps:$4 sm:$0xff]  }
 0xf54   :  { %4023 = vmatprep.subr.bf16.mxu0 %v9764_v48 }
 0xf57   :  { %4024 = vmatpush1.bf16.msra.mxu0 %v9762_v12 }
 0xf58   :  { %4025 = vmatprep.subr.bf16.mxu0 %v9767_v46 }
 0xf5b   :  { %4026 = vmatpush1.bf16.msra.mxu0 %v9765_v4 }
 0xf5c   :  { %4027 = vmatprep.subr.bf16.mxu0 %v9770_v7 }
 0xf5f   :  { %4028 = vmatpush1.bf16.msra.mxu0 %v9768_v50 }
 0xf60   :  { %4029 = vmatprep.subr.bf16.mxu0 %v9773_v60 }
 0xf63   :  { %4030 = vmatpush1.bf16.msra.mxu0 %v9771_v3 }
 0xf64   :  { %4031 = vmatprep.subr.bf16.mxu0 %v9776_v62 }
 0xf67   :  { %4032 = vmatpush1.bf16.msra.mxu0 %v9774_v22 }
 0xf68   :  { %4044 = vmatprep.subr.bf16.mxu0 %v9779_v35  ;;  %v9825_v35 = vld [vmem:[#allocation10 + $0x300] ss:$24 sps:$4 sm:$0xff]  }
 0xf6a   :  { %4034 = vmatmul.mubr.bf16.vlgmr.msra.gmra.mrb[28].mxu0 %v3131_v5  ;;  %v9797_v5 = vld [vmem:[#allocation22 + $0x364] ss:$8 sps:$4 sm:$0xff]  }
 0xf6b   :  { %4045 = vmatpush1.bf16.msra.mxu0 %v9777_v36  ;;  %4076 = vmatprep.mubr.bf16.mxu0 %v3134_v2  ;;  %v9798_v2 = vld [vmem:[#allocation22 + $0x370] ss:$8 sps:$4 sm:$0xff]   ;;  %v9827_v36 = vld [vmem:[#allocation10 + $0x304] ss:$24 sps:$4 sm:$0xff]  }
 0xf6c   :  { %4046 = vmatprep.subr.bf16.mxu0 %v9782_v1  ;;  %v9830_v1 = vld [vmem:[#allocation10 + $0x334] ss:$24 sps:$4 sm:$0xff]   ;;  %4769 = vmatprep.subr.bf16.mxu1 %v9827_v36 }
 0xf6d   :  { %4770 = vmatpush1.bf16.msra.mxu1 %v9825_v35 }
 0xf6e   :  { %4771 = vmatprep.subr.bf16.mxu1 %v9830_v1 }
 0xf6f   :  { %4047 = vmatpush1.bf16.msra.mxu0 %v9780_v49  ;;  %v9831_v49 = vld [vmem:[#allocation10 + $0x360] ss:$24 sps:$4 sm:$0xff]  }
 0xf70   :  { %4048 = vmatprep.subr.bf16.mxu0 %v9785_v31  ;;  %v9834_v31 = vld [vmem:[#allocation10 + $0x390] ss:$24 sps:$4 sm:$0xff]  }
 0xf73   :  { %4049 = vmatpush1.bf16.msra.mxu0 %v9783_v42  ;;  %v9839_v42 = vld [vmem:[#allocation10 + $0x3c4] ss:$24 sps:$4 sm:$0xff]  }
 0xf74   :  { %4050 = vmatprep.subr.bf16.mxu0 %v9788_v11  ;;  %v9837_v11 = vld [vmem:[#allocation10 + $0x3c0] ss:$24 sps:$4 sm:$0xff]  }
 0xf77   :  { %4051 = vmatpush1.bf16.msra.mxu0 %v9786_v13  ;;  %v9842_v13 = vld [vmem:[#allocation10 + $0x3f4] ss:$24 sps:$4 sm:$0xff]  }
 0xf78   :  { %4052 = vmatprep.subr.bf16.mxu0 %v9791_v51  ;;  %v9840_v51 = vld [vmem:[#allocation10 + $0x3f0] ss:$24 sps:$4 sm:$0xff]  }
 0xf7b   :  { %4053 = vmatpush1.bf16.msra.mxu0 %v9789_v43  ;;  %v9845_v43 = vld [vmem:[#allocation10 + $0x424] ss:$24 sps:$4 sm:$0xff]  }
 0xf7c   :  { %4054 = vmatprep.subr.bf16.mxu0 %v9794_v0  ;;  %v9843_v0 = vld [vmem:[#allocation10 + $0x420] ss:$24 sps:$4 sm:$0xff]  }
 0xf7f   :  { %4055 = vmatpush1.bf16.msra.mxu0 %v9792_v17  ;;  %v9848_v17 = vld [vmem:[#allocation10 + $0x454] ss:$24 sps:$4 sm:$0xff]  }
 0xf80   :  { %4056 = vmatprep.subr.bf16.mxu0 %v9797_v5  ;;  %v9846_v5 = vld [vmem:[#allocation10 + $0x450] ss:$24 sps:$4 sm:$0xff]  }
 0xf83   :  { %4057 = vmatpush1.bf16.msra.mxu0 %v9795_v14  ;;  %v9851_v14 = vld [vmem:[#allocation10 + $0x484] ss:$24 sps:$4 sm:$0xff]  }
 0xf84   :  { %4058 = vmatprep.subr.bf16.mxu0 %v9800_v52  ;;  %v9849_v52 = vld [vmem:[#allocation10 + $0x480] ss:$24 sps:$4 sm:$0xff]  }
 0xf87   :  { %4059 = vmatpush1.bf16.msra.mxu0 %v9798_v2  ;;  %v9854_v2 = vld [vmem:[#allocation10 + $0x4b4] ss:$24 sps:$4 sm:$0xff]  }
 0xf88   :  { %4060 = vmatprep.subr.bf16.mxu0 %v9803_v10  ;;  %v9852_v10 = vld [vmem:[#allocation10 + $0x4b0] ss:$24 sps:$4 sm:$0xff]  }
 0xf8b   :  { %4061 = vmatpush1.bf16.msra.mxu0 %v9801_v15 }
 0xf8c   :  { %4062 = vmatprep.subr.bf16.mxu0 %v9806_v25 }
 0xf8f   :  { %4063 = vmatpush1.bf16.msra.mxu0 %v9804_v16 }
 0xf90   :  { %4064 = vmatprep.subr.bf16.mxu0 %v9809_v18 }
 0xf93   :  { %4065 = vmatpush1.bf16.msra.mxu0 %v9807_v26 }
 0xf94   :  { %4066 = vmatprep.subr.bf16.mxu0 %v9812_v27 }
 0xf97   :  { %4067 = vmatpush1.bf16.msra.mxu0 %v9810_v24 }
 0xf98   :  { %4068 = vmatprep.subr.bf16.mxu0 %v9815_v45 }
 0xf9b   :  { %4069 = vmatpush1.bf16.msra.mxu0 %v9813_v19 }
 0xf9c   :  { %4070 = vmatprep.subr.bf16.mxu0 %v9818_v9 }
 0xf9f   :  { %4071 = vmatpush1.bf16.msra.mxu0 %v9816_v34 }
 0xfa0   :  { %4072 = vmatprep.subr.bf16.mxu0 %v9821_v58 }
 0xfa3   :  { %4073 = vmatpush1.bf16.msra.mxu0 %v9819_v37 }
 0xfa4   :  { %4074 = vmatprep.subr.bf16.mxu0 %v9824_v40 }
 0xfa7   :  { %4075 = vmatpush1.bf16.msra.mxu0 %v9822_v39  ;;  %v9857_v39 = vld [vmem:[#allocation10 + $0x4e4] ss:$24 sps:$4 sm:$0xff]  }
 0xfaa   :  { %4077 = vmatmul.mubr.bf16.vlgmr.msra.gmra.mrb[28].mxu0 %v3133_v53 }
 0xfab   :  { %5372 = vmatprep.mubr.bf16.mxu0 %v10913_v56 }
0x107d   :  { %v4078_v48 = vpop.f32.mrb[28].mxu0 }
0x107e   :  { %v9372_v12 = vadd.f32 %v4078_v48, %v3268_v44  ;;  %v4080_v46 = vpop.f32.mrb[29].mxu0  ;;  %v9861_v48 = vld [vmem:[#allocation10 + $0x540] ss:$24 sps:$4 sm:$0xff]  }
0x107f   :  { %v9373_v4 = vadd.f32 %v4080_v46, %v3272_v47  ;;  %v4082_v7 = vpop.f32.mrb[30].mxu0  ;;  %v9866_v46 = vld [vmem:[#allocation10 + $0x574] ss:$24 sps:$4 sm:$0xff]  }
0x1080   :  { %v11800_v50 = vadd.f32 %v9372_v12, %v11573_v63  ;;  %v9374_v60 = vadd.f32 %v4082_v7, %v3268_v44  ;;  %v4084_v3 = vpop.f32.mrb[31].mxu0  ;;  %v9860_v44 = vld [vmem:[#allocation10 + $0x514] ss:$24 sps:$4 sm:$0xff]   ;;  %v9863_v12 = vld [vmem:[#allocation10 + $0x544] ss:$24 sps:$4 sm:$0xff]  }
0x1081   :  { %v11803_v33 = vadd.f32 %v9373_v4, %v11575_v6  ;;  %v9375_v61 = vadd.f32 %v4084_v3, %v3272_v47  ;;  %v9828_v6 = vld [vmem:[#allocation10 + $0x330] ss:$24 sps:$4 sm:$0xff]   ;;  %v9869_v7 = vld [vmem:[#allocation10 + $0x5a4] ss:$24 sps:$4 sm:$0xff]   ;;  %v9872_v3 = vld [vmem:[#allocation10 + $0x5d4] ss:$24 sps:$4 sm:$0xff]  }
0x1082   :  { %v11806_v53 = vadd.f32 %v9374_v60, %v11610_v57  ;;  %v9833_v57 = vld [vmem:[#allocation10 + $0x364] ss:$24 sps:$4 sm:$0xff]   ;;  %4772 = vmatpush1.bf16.msra.mxu1 %v9828_v6  ;;  %v9858_v47 = vld [vmem:[#allocation10 + $0x510] ss:$24 sps:$4 sm:$0xff]   ;;  %v9867_v60 = vld [vmem:[#allocation10 + $0x5a0] ss:$24 sps:$4 sm:$0xff]  }
0x1083   :  { %v11809_v62 = vadd.f32 %v9375_v61, %v11612_v59  ;;  %v4095_v22 = vadd.f32 %v11803_v33, %v11800_v50  ;;  %4773 = vmatprep.subr.bf16.mxu1 %v9833_v57  ;;  %v9836_v59 = vld [vmem:[#allocation10 + $0x394] ss:$24 sps:$4 sm:$0xff]   ;;  %v9864_v4 = vld [vmem:[#allocation10 + $0x570] ss:$24 sps:$4 sm:$0xff]  }
0x1084   :  { %v9870_v61 = vld [vmem:[#allocation10 + $0x5d0] ss:$24 sps:$4 sm:$0xff]  }
0x1085   :  { %4096 = vadd.xlane.f32.xlu0 %v4095_v22  ;;  %v4098_v63 = vadd.f32 %v11809_v62, %v11806_v53  ;;  %v9875_v22 = vld [vmem:[#allocation10 + $0x30c] ss:$24 sps:$4 sm:$0xff]  }
0x1086   :  { %4774 = vmatpush1.bf16.msra.mxu1 %v9831_v49  ;;  %v4092_v49 = vld [vmem:[#allocation7 + $0x2] sm:$0x3] }
0x1087   :  { %4099 = vadd.xlane.f32.xlu1 %v4098_v63  ;;  %4775 = vmatprep.subr.bf16.mxu1 %v9836_v59  ;;  %v4094_v59 = vld [vmem:[#allocation8 + $0x2] sm:$0x3] }
0x108a   :  { %4776 = vmatpush1.bf16.msra.mxu1 %v9834_v31  ;;  %v4131_v31 = vrot.slane %v4092_v49, %v11332_v30 }
0x108b   :  { %4777 = vmatprep.subr.bf16.mxu1 %v9839_v42  ;;  %v4135_v42 = vrot.slane %v4092_v49, %v11329_v29  ;;  %v9912_v49 = vld [vmem:[#allocation10 + $0x578] ss:$24 sps:$4 sm:$0xff]  }
0x108e   :  { %4778 = vmatpush1.bf16.msra.mxu1 %v9837_v11 }
0x108f   :  { %4779 = vmatprep.subr.bf16.mxu1 %v9842_v13 }
0x1092   :  { %4780 = vmatpush1.bf16.msra.mxu1 %v9840_v51 }
0x1093   :  { %4781 = vmatprep.subr.bf16.mxu1 %v9845_v43 }
0x1096   :  { %4782 = vmatpush1.bf16.msra.mxu1 %v9843_v0  ;;  %v4146_v0 = vrot.slane %v4094_v59, %v11332_v30 }
0x1097   :  { %4783 = vmatprep.subr.bf16.mxu1 %v9848_v17  ;;  %v4150_v17 = vrot.slane %v4094_v59, %v11329_v29  ;;  %v9917_v59 = vld [vmem:[#allocation10 + $0x5ac] ss:$24 sps:$4 sm:$0xff]  }
0x109a   :  { %4784 = vmatpush1.bf16.msra.mxu1 %v9846_v5 }
0x109b   :  { %4785 = vmatprep.subr.bf16.mxu1 %v9851_v14 }
0x109e   :  { %4786 = vmatpush1.bf16.msra.mxu1 %v9849_v52 }
0x109f   :  { %4787 = vmatprep.subr.bf16.mxu1 %v9854_v2 }
0x10a2   :  { %4788 = vmatpush1.bf16.msra.mxu1 %v9852_v10 }
0x10a3   :  { %4789 = vmatprep.subr.bf16.mxu1 %v9857_v39  ;;  %v9887_v39 = vld [vmem:[#allocation10 + $0x3cc] ss:$24 sps:$4 sm:$0xff]  }
0x10a6   :  { %4790 = vmatpush1.bf16.msra.mxu1 %v9855_v41  ;;  %v9885_v41 = vld [vmem:[#allocation10 + $0x3c8] ss:$24 sps:$4 sm:$0xff]  }
0x10a7   :  { %4791 = vmatprep.subr.bf16.mxu1 %v9860_v44  ;;  %v9890_v44 = vld [vmem:[#allocation10 + $0x3fc] ss:$24 sps:$4 sm:$0xff]  }
0x10aa   :  { %4792 = vmatpush1.bf16.msra.mxu1 %v9858_v47  ;;  %v9888_v47 = vld [vmem:[#allocation10 + $0x3f8] ss:$24 sps:$4 sm:$0xff]  }
0x10ab   :  { %4793 = vmatprep.subr.bf16.mxu1 %v9863_v12  ;;  %v9891_v12 = vld [vmem:[#allocation10 + $0x428] ss:$24 sps:$4 sm:$0xff]  }
0x10ae   :  { %4794 = vmatpush1.bf16.msra.mxu1 %v9861_v48  ;;  %v9893_v48 = vld [vmem:[#allocation10 + $0x42c] ss:$24 sps:$4 sm:$0xff]  }
0x10af   :  { %4795 = vmatprep.subr.bf16.mxu1 %v9866_v46  ;;  %v9896_v46 = vld [vmem:[#allocation10 + $0x45c] ss:$24 sps:$4 sm:$0xff]  }
0x10b2   :  { %4796 = vmatpush1.bf16.msra.mxu1 %v9864_v4  ;;  %v9894_v4 = vld [vmem:[#allocation10 + $0x458] ss:$24 sps:$4 sm:$0xff]  }
0x10b3   :  { %4797 = vmatprep.subr.bf16.mxu1 %v9869_v7  ;;  %v9899_v7 = vld [vmem:[#allocation10 + $0x48c] ss:$24 sps:$4 sm:$0xff]  }
0x10b6   :  { %4798 = vmatpush1.bf16.msra.mxu1 %v9867_v60  ;;  %v9897_v60 = vld [vmem:[#allocation10 + $0x488] ss:$24 sps:$4 sm:$0xff]  }
0x10b7   :  { %4799 = vmatprep.subr.bf16.mxu1 %v9872_v3  ;;  %v9902_v3 = vld [vmem:[#allocation10 + $0x4bc] ss:$24 sps:$4 sm:$0xff]  }
0x10ba   :  { %4800 = vmatpush1.bf16.msra.mxu1 %v9870_v61  ;;  %v9900_v61 = vld [vmem:[#allocation10 + $0x4b8] ss:$24 sps:$4 sm:$0xff]  }
0x10bb   :  { %4812 = vmatprep.subr.bf16.mxu1 %v9875_v22  ;;  %v9905_v22 = vld [vmem:[#allocation10 + $0x4ec] ss:$24 sps:$4 sm:$0xff]  }
0x1112   :  { %v4097_v15 = vpop.xlane.xlu0 %4096 }
0x1113   :  { %v4101_v25 = vmul.f32 0.00390625, %v4097_v15 }
0x1114   :  { %v4100_v16 = vpop.xlane.xlu1 %4099 }
0x1115   :  { %v4103_v18 = vsub.f32 %v11800_v50, %v4101_v25  ;;  %v4104_v26 = vsub.f32 %v11803_v33, %v4101_v25  ;;  %v4102_v27 = vmul.f32 0.00390625, %v4100_v16 }
0x1117   :  { %v4105_v24 = vsub.f32 %v11806_v53, %v4102_v27  ;;  %v4106_v45 = vsub.f32 %v11809_v62, %v4102_v27  ;;  %v4107_v19 = vmul.f32 %v4103_v18, %v4103_v18  ;;  %v4108_v9 = vmul.f32 %v4104_v26, %v4104_v26 }
0x1119   :  { %v4111_v34 = vadd.f32 %v4108_v9, %v4107_v19  ;;  %v4109_v58 = vmul.f32 %v4105_v24, %v4105_v24  ;;  %v4110_v37 = vmul.f32 %v4106_v45, %v4106_v45 }
0x111b   :  { %4112 = vadd.xlane.f32.xlu0 %v4111_v34  ;;  %v4114_v40 = vadd.f32 %v4110_v37, %v4109_v58  ;;  %v9873_v34 = vld [vmem:[#allocation10 + $0x308] ss:$24 sps:$4 sm:$0xff]   ;;  %v9884_v37 = vld [vmem:[#allocation10 + $0x39c] ss:$24 sps:$4 sm:$0xff]  }
0x111c   :  { %v9879_v58 = vld [vmem:[#allocation10 + $0x368] ss:$24 sps:$4 sm:$0xff]  }
0x111d   :  { %4115 = vadd.xlane.f32.xlu1 %v4114_v40  ;;  %v9882_v40 = vld [vmem:[#allocation10 + $0x398] ss:$24 sps:$4 sm:$0xff]  }
0x11a8   :  { %v4113_v63 = vpop.xlane.xlu0 %4112 }
0x11a9   :  { %v4117_v35 = vmul.f32 0.00390625, %v4113_v63  ;;  %v9903_v63 = vld [vmem:[#allocation10 + $0x4e8] ss:$24 sps:$4 sm:$0xff]  }
0x11aa   :  { %v4116_v36 = vpop.xlane.xlu1 %4115 }
0x11ab   :  { %v4119_v1 = vadd.f32 1e-05, %v4117_v35  ;;  %v4118_v6 = vmul.f32 0.00390625, %v4116_v36  ;;  %v9908_v35 = vld [vmem:[#allocation10 + $0x51c] ss:$24 sps:$4 sm:$0xff]  }
0x11ac   :  { %v9906_v36 = vld [vmem:[#allocation10 + $0x518] ss:$24 sps:$4 sm:$0xff]  }
0x11ad   :  { %10329 = vrsqrt.f32 %v4119_v1  ;;  %v4120_v57 = vadd.f32 1e-05, %v4118_v6  ;;  %v9911_v1 = vld [vmem:[#allocation10 + $0x54c] ss:$24 sps:$4 sm:$0xff]   ;;  %v9909_v6 = vld [vmem:[#allocation10 + $0x548] ss:$24 sps:$4 sm:$0xff]  }
0x11af   :  { %10331 = vrsqrt.f32 %v4120_v57  ;;  %v9914_v57 = vld [vmem:[#allocation10 + $0x57c] ss:$24 sps:$4 sm:$0xff]  }
0x11b7   :  { %v10330_v11 = vpop.eup %10329 }
0x11b8   :  { %v4123_v13 = vmul.f32 %v10330_v11, %v4103_v18  ;;  %v4124_v51 = vmul.f32 %v10330_v11, %v4104_v26  ;;  %v9878_v26 = vld [vmem:[#allocation10 + $0x33c] ss:$24 sps:$4 sm:$0xff]   ;;  %v9918_v11 = vld [vmem:[#allocation10 + $0x5d8] ss:$24 sps:$4 sm:$0xff]  }
0x11b9   :  { %v10332_v43 = vpop.eup %10331 }
0x11ba   :  { %v4125_v5 = vmul.f32 %v10332_v43, %v4105_v24  ;;  %v4126_v14 = vmul.f32 %v10332_v43, %v4106_v45  ;;  %v4139_v52 = vmul.f32 %v4135_v42, %v4124_v51  ;;  %v4138_v2 = vmul.f32 %v4131_v31, %v4123_v13  ;;  %v9876_v24 = vld [vmem:[#allocation10 + $0x338] ss:$24 sps:$4 sm:$0xff]   ;;  %v9881_v45 = vld [vmem:[#allocation10 + $0x36c] ss:$24 sps:$4 sm:$0xff]  }
0x11bb   :  { %v9923_v13 = vld [vmem:[#allocation10 + $0x314] ss:$24 sps:$4 sm:$0xff]   ;;  %v9921_v51 = vld [vmem:[#allocation10 + $0x310] ss:$24 sps:$4 sm:$0xff]   ;;  %v9926_v43 = vld [vmem:[#allocation10 + $0x344] ss:$24 sps:$4 sm:$0xff]  }
0x11bc   :  { %v4141_v10 = vmul.f32 %v4135_v42, %v4126_v14  ;;  %v4140_v15 = vmul.f32 %v4131_v31, %v4125_v5  ;;  %v4154_v25 = vadd.f32 %v4150_v17, %v4139_v52  ;;  %v4153_v27 = vadd.f32 %v4146_v0, %v4138_v2  ;;  %v9915_v31 = vld [vmem:[#allocation10 + $0x5a8] ss:$24 sps:$4 sm:$0xff]   ;;  %v9920_v42 = vld [vmem:[#allocation10 + $0x5dc] ss:$24 sps:$4 sm:$0xff]  }
0x11bd   :  { %v9927_v5 = vld [vmem:[#allocation10 + $0x370] ss:$24 sps:$4 sm:$0xff]   ;;  %v9932_v14 = vld [vmem:[#allocation10 + $0x3a4] ss:$24 sps:$4 sm:$0xff]   ;;  %v9930_v52 = vld [vmem:[#allocation10 + $0x3a0] ss:$24 sps:$4 sm:$0xff]  }
0x11be   :  { %v4156_v16 = vadd.f32 %v4150_v17, %v4141_v10  ;;  %v4155_v19 = vadd.f32 %v4146_v0, %v4140_v15  ;;  %v9924_v0 = vld [vmem:[#allocation10 + $0x340] ss:$24 sps:$4 sm:$0xff]   ;;  %v9929_v17 = vld [vmem:[#allocation10 + $0x374] ss:$24 sps:$4 sm:$0xff]   ;;  %v9933_v10 = vld [vmem:[#allocation10 + $0x3d0] ss:$24 sps:$4 sm:$0xff]  }
0x11bf   :  { %v9935_v2 = vld [vmem:[#allocation10 + $0x3d4] ss:$24 sps:$4 sm:$0xff]   ;;  %v9938_v15 = vld [vmem:[#allocation10 + $0x404] ss:$24 sps:$4 sm:$0xff]  }
0x11c0   :  { %v11823_v9 = vpack.c.bf16 %v4156_v16, %v4154_v25  ;;  %v11825_v18 = vpack.c.bf16 %v4155_v19, %v4153_v27  ;;  %v9936_v25 = vld [vmem:[#allocation10 + $0x400] ss:$24 sps:$4 sm:$0xff]   ;;  %v9941_v16 = vld [vmem:[#allocation10 + $0x434] ss:$24 sps:$4 sm:$0xff]   ;;  %v9939_v27 = vld [vmem:[#allocation10 + $0x430] ss:$24 sps:$4 sm:$0xff]  }
0x11c1   :  { %v9944_v19 = vld [vmem:[#allocation10 + $0x464] ss:$24 sps:$4 sm:$0xff]  }
0x11c2   :  { %4801 = vmatprep.mubr.bf16.mxu1 %v11823_v9 }
0x11c3   :  { %4802 = vmatmul.mubr.bf16.vlgmr.msra.gmra.mrb[48].mxu1 %v11825_v18 }
0x11c4   :  { %4813 = vmatpush1.bf16.msra.mxu1 %v9873_v34  ;;  %4844 = vmatprep.mubr.bf16.mxu1 %v11823_v9  ;;  %v9947_v34 = vld [vmem:[#allocation10 + $0x494] ss:$24 sps:$4 sm:$0xff]  }
0x11c5   :  { %4814 = vmatprep.subr.bf16.mxu1 %v9878_v26  ;;  %v9945_v26 = vld [vmem:[#allocation10 + $0x490] ss:$24 sps:$4 sm:$0xff]  }
0x11c8   :  { %4815 = vmatpush1.bf16.msra.mxu1 %v9876_v24  ;;  %v9950_v24 = vld [vmem:[#allocation10 + $0x4c4] ss:$24 sps:$4 sm:$0xff]  }
0x11c9   :  { %4816 = vmatprep.subr.bf16.mxu1 %v9881_v45  ;;  %v9948_v45 = vld [vmem:[#allocation10 + $0x4c0] ss:$24 sps:$4 sm:$0xff]  }
0x11cc   :  { %4817 = vmatpush1.bf16.msra.mxu1 %v9879_v58  ;;  %v9953_v58 = vld [vmem:[#allocation10 + $0x4f4] ss:$24 sps:$4 sm:$0xff]  }
0x11cd   :  { %4818 = vmatprep.subr.bf16.mxu1 %v9884_v37  ;;  %v9951_v37 = vld [vmem:[#allocation10 + $0x4f0] ss:$24 sps:$4 sm:$0xff]  }
0x11d0   :  { %4819 = vmatpush1.bf16.msra.mxu1 %v9882_v40  ;;  %v9956_v40 = vld [vmem:[#allocation10 + $0x524] ss:$24 sps:$4 sm:$0xff]  }
0x11d1   :  { %4820 = vmatprep.subr.bf16.mxu1 %v9887_v39  ;;  %v9954_v39 = vld [vmem:[#allocation10 + $0x520] ss:$24 sps:$4 sm:$0xff]  }
0x11d4   :  { %4821 = vmatpush1.bf16.msra.mxu1 %v9885_v41  ;;  %v9959_v41 = vld [vmem:[#allocation10 + $0x554] ss:$24 sps:$4 sm:$0xff]  }
0x11d5   :  { %4822 = vmatprep.subr.bf16.mxu1 %v9890_v44  ;;  %v9957_v44 = vld [vmem:[#allocation10 + $0x550] ss:$24 sps:$4 sm:$0xff]  }
0x11d8   :  { %4823 = vmatpush1.bf16.msra.mxu1 %v9888_v47  ;;  %v9962_v47 = vld [vmem:[#allocation10 + $0x584] ss:$24 sps:$4 sm:$0xff]  }
0x11d9   :  { %4824 = vmatprep.subr.bf16.mxu1 %v9893_v48  ;;  %v9960_v48 = vld [vmem:[#allocation10 + $0x580] ss:$24 sps:$4 sm:$0xff]  }
0x11dc   :  { %4825 = vmatpush1.bf16.msra.mxu1 %v9891_v12  ;;  %v9965_v12 = vld [vmem:[#allocation10 + $0x5b4] ss:$24 sps:$4 sm:$0xff]  }
0x11dd   :  { %4826 = vmatprep.subr.bf16.mxu1 %v9896_v46  ;;  %v9963_v46 = vld [vmem:[#allocation10 + $0x5b0] ss:$24 sps:$4 sm:$0xff]  }
0x11e0   :  { %4827 = vmatpush1.bf16.msra.mxu1 %v9894_v4  ;;  %v9968_v4 = vld [vmem:[#allocation10 + $0x5e4] ss:$24 sps:$4 sm:$0xff]  }
0x11e1   :  { %4828 = vmatprep.subr.bf16.mxu1 %v9899_v7  ;;  %v9966_v7 = vld [vmem:[#allocation10 + $0x5e0] ss:$24 sps:$4 sm:$0xff]  }
0x11e4   :  { %4829 = vmatpush1.bf16.msra.mxu1 %v9897_v60  ;;  %v4257_v60 = vld [vmem:[#allocation11 + $0x6] sm:$0x3f] }
0x11e5   :  { %4830 = vmatprep.subr.bf16.mxu1 %v9902_v3  ;;  %v4262_v3 = vrot.slane %v4257_v60, %v11332_v30 }
0x11e8   :  { %4831 = vmatpush1.bf16.msra.mxu1 %v9900_v61 }
0x11e9   :  { %4832 = vmatprep.subr.bf16.mxu1 %v9905_v22  ;;  %v4266_v22 = vrot.slane %v4257_v60, %v11329_v29 }
0x11ec   :  { %4833 = vmatpush1.bf16.msra.mxu1 %v9903_v63 }
0x11ed   :  { %4834 = vmatprep.subr.bf16.mxu1 %v9908_v35 }
0x11f0   :  { %4835 = vmatpush1.bf16.msra.mxu1 %v9906_v36 }
0x11f1   :  { %4836 = vmatprep.subr.bf16.mxu1 %v9911_v1 }
0x11f4   :  { %4837 = vmatpush1.bf16.msra.mxu1 %v9909_v6 }
0x11f5   :  { %4838 = vmatprep.subr.bf16.mxu1 %v9914_v57 }
0x11f8   :  { %4839 = vmatpush1.bf16.msra.mxu1 %v9912_v49 }
0x11f9   :  { %4840 = vmatprep.subr.bf16.mxu1 %v9917_v59 }
0x11fc   :  { %4841 = vmatpush1.bf16.msra.mxu1 %v9915_v31 }
0x11fd   :  { %4842 = vmatprep.subr.bf16.mxu1 %v9920_v42 }
0x1200   :  { %4843 = vmatpush1.bf16.msra.mxu1 %v9918_v11  ;;  %v4274_v11 = vrot.slane %v4257_v60, %v11375_v55 }
0x1201   :  { %4855 = vmatprep.subr.bf16.mxu1 %v9923_v13 }
0x1203   :  { %4845 = vmatmul.mubr.bf16.vlgmr.msra.gmra.mrb[52].mxu1 %v11825_v18 }
0x1204   :  { %4856 = vmatpush1.bf16.msra.mxu1 %v9921_v51  ;;  %4887 = vmatprep.mubr.bf16.mxu1 %v11823_v9  ;;  %v9942_v9 = vld [vmem:[#allocation10 + $0x460] ss:$24 sps:$4 sm:$0xff]  }
0x1205   :  { %4857 = vmatprep.subr.bf16.mxu1 %v9926_v43 }
0x1208   :  { %4858 = vmatpush1.bf16.msra.mxu1 %v9924_v0 }
0x1209   :  { %4859 = vmatprep.subr.bf16.mxu1 %v9929_v17 }
0x120c   :  { %4860 = vmatpush1.bf16.msra.mxu1 %v9927_v5 }
0x120d   :  { %4861 = vmatprep.subr.bf16.mxu1 %v9932_v14 }
0x1210   :  { %4862 = vmatpush1.bf16.msra.mxu1 %v9930_v52 }
0x1211   :  { %4863 = vmatprep.subr.bf16.mxu1 %v9935_v2 }
0x1214   :  { %4864 = vmatpush1.bf16.msra.mxu1 %v9933_v10  ;;  %v4278_v10 = vrot.slane %v4257_v60, %v11354_v21 }
0x1215   :  { %4865 = vmatprep.subr.bf16.mxu1 %v9938_v15 }
0x1218   :  { %4866 = vmatpush1.bf16.msra.mxu1 %v9936_v25  ;;  %v4282_v25 = vrot.slane %v4257_v60, %v11357_v23 }
0x1219   :  { %4867 = vmatprep.subr.bf16.mxu1 %v9941_v16 }
0x121c   :  { %4868 = vmatpush1.bf16.msra.mxu1 %v9939_v27 }
0x121d   :  { %4869 = vmatprep.subr.bf16.mxu1 %v9944_v19 }
0x1220   :  { %4870 = vmatpush1.bf16.msra.mxu1 %v9942_v9 }
0x1221   :  { %4871 = vmatprep.subr.bf16.mxu1 %v9947_v34 }
0x1224   :  { %4872 = vmatpush1.bf16.msra.mxu1 %v9945_v26 }
0x1225   :  { %4873 = vmatprep.subr.bf16.mxu1 %v9950_v24 }
0x1228   :  { %4874 = vmatpush1.bf16.msra.mxu1 %v9948_v45 }
0x1229   :  { %4875 = vmatprep.subr.bf16.mxu1 %v9953_v58 }
0x122c   :  { %4876 = vmatpush1.bf16.msra.mxu1 %v9951_v37 }
0x122d   :  { %4877 = vmatprep.subr.bf16.mxu1 %v9956_v40 }
0x1230   :  { %4878 = vmatpush1.bf16.msra.mxu1 %v9954_v39 }
0x1231   :  { %4879 = vmatprep.subr.bf16.mxu1 %v9959_v41 }
0x1234   :  { %4880 = vmatpush1.bf16.msra.mxu1 %v9957_v44 }
0x1235   :  { %4881 = vmatprep.subr.bf16.mxu1 %v9962_v47 }
0x1238   :  { %4882 = vmatpush1.bf16.msra.mxu1 %v9960_v48 }
0x1239   :  { %4883 = vmatprep.subr.bf16.mxu1 %v9965_v12 }
0x123c   :  { %4884 = vmatpush1.bf16.msra.mxu1 %v9963_v46 }
0x123d   :  { %4885 = vmatprep.subr.bf16.mxu1 %v9968_v4 }
0x1240   :  { %4886 = vmatpush1.bf16.msra.mxu1 %v9966_v7 }
0x1241   :  { %9324 = vmatprep.subr.bf16.mxu1 %v10911_v20 }
0x1243   :  { %4888 = vmatmul.mubr.bf16.vlgmr.msra.gmra.mrb[56].mxu1 %v11825_v18  ;;  %v4270_v18 = vrot.slane %v4257_v60, %v11372_v54 }
0x1244   :  { %9326 = vmatprep.mubr.msk.bf16.mxu1 %vm10912_vm0, %v10911_v20 }
0x1296   :  { %v4803_v61 = vpop.f32.mrb[48].mxu1 }
0x1297   :  { %v4805_v63 = vpop.f32.mrb[49].mxu1  ;;  %v4804_v36 = vadd.f32 %v4803_v61, %v4262_v3  ;;  %v11866_v61 = vld [vmem:[#allocation13 + $0x100] ss:$8 sps:$4 sm:$0xff]  }
0x1298   :  { %v4807_v35 = vpop.f32.mrb[50].mxu1  ;;  %v4806_v57 = vadd.f32 %v4805_v63, %v4266_v22  ;;  %v11870_v63 = vld [vmem:[#allocation13 + $0x114] ss:$8 sps:$4 sm:$0xff]  }
0x1299   :  { %v4808_v1 = vadd.f32 %v4807_v35, %v4262_v3  ;;  %v4809_v6 = vpop.f32.mrb[51].mxu1  ;;  %v11874_v35 = vld [vmem:[#allocation13 + $0x110] ss:$8 sps:$4 sm:$0xff]  }
0x129a   :  { %v4810_v49 = vadd.f32 %v4809_v6, %v4266_v22  ;;  %v11868_v22 = vld [vmem:[#allocation13 + $0x104] ss:$8 sps:$4 sm:$0xff]   ;;  %v11883_v6 = vld [vmem:[#allocation13 + $0x134] ss:$8 sps:$4 sm:$0xff]  }
0x129b   :  { %v11838_v59 = vpack.c.bf16 %v4808_v1, %v4804_v36  ;;  %5340 = vmatprep.subr.bf16.mxu0 %v11868_v22  ;;  %v11877_v36 = vld [vmem:[#allocation13 + $0x124] ss:$8 sps:$4 sm:$0xff]   ;;  %v11880_v1 = vld [vmem:[#allocation13 + $0x120] ss:$8 sps:$4 sm:$0xff]  }
0x129c   :  { %v11840_v31 = vpack.c.bf16 %v4810_v49, %v4806_v57  ;;  %5341 = vmatpush1.bf16.msra.mxu0 %v11866_v61  ;;  %v11886_v57 = vld [vmem:[#allocation13 + $0x130] ss:$8 sps:$4 sm:$0xff]   ;;  %v11889_v49 = vld [vmem:[#allocation13 + $0x144] ss:$8 sps:$4 sm:$0xff]  }
0x129d   :  { %5342 = vmatprep.subr.bf16.mxu0 %v11870_v63 }
0x12a0   :  { %5343 = vmatpush1.bf16.msra.mxu0 %v11874_v35 }
0x12a1   :  { %5344 = vmatprep.subr.bf16.mxu0 %v11877_v36 }
0x12a4   :  { %5345 = vmatpush1.bf16.msra.mxu0 %v11880_v1 }
0x12a5   :  { %5346 = vmatprep.subr.bf16.mxu0 %v11883_v6 }
0x12a8   :  { %5347 = vmatpush1.bf16.msra.mxu0 %v11886_v57 }
0x12a9   :  { %5348 = vmatprep.subr.bf16.mxu0 %v11889_v49 }
0x12d6   :  { %v4846_v42 = vpop.f32.mrb[52].mxu1 }
0x12d7   :  { %v4848_v13 = vpop.f32.mrb[53].mxu1  ;;  %v4847_v43 = vadd.f32 %v4846_v42, %v4270_v18  ;;  %v11895_v42 = vld [vmem:[#allocation13 + $0x154] ss:$8 sps:$4 sm:$0xff]  }
0x12d8   :  { %v4850_v51 = vpop.f32.mrb[54].mxu1  ;;  %v4849_v5 = vadd.f32 %v4848_v13, %v4274_v11  ;;  %v11901_v13 = vld [vmem:[#allocation13 + $0x164] ss:$8 sps:$4 sm:$0xff]  }
0x12d9   :  { %v4851_v0 = vadd.f32 %v4850_v51, %v4270_v18  ;;  %v4852_v17 = vpop.f32.mrb[55].mxu1  ;;  %v11892_v18 = vld [vmem:[#allocation13 + $0x140] ss:$8 sps:$4 sm:$0xff]  }
0x12da   :  { %v4853_v14 = vadd.f32 %v4852_v17, %v4274_v11  ;;  %5349 = vmatpush1.bf16.msra.mxu0 %v11892_v18  ;;  %v11898_v11 = vld [vmem:[#allocation13 + $0x150] ss:$8 sps:$4 sm:$0xff]   ;;  %v11904_v51 = vld [vmem:[#allocation13 + $0x160] ss:$8 sps:$4 sm:$0xff]  }
0x12db   :  { %v11844_v52 = vpack.c.bf16 %v4851_v0, %v4847_v43  ;;  %5350 = vmatprep.subr.bf16.mxu0 %v11895_v42  ;;  %v11907_v43 = vld [vmem:[#allocation13 + $0x174] ss:$8 sps:$4 sm:$0xff]   ;;  %v11910_v0 = vld [vmem:[#allocation13 + $0x170] ss:$8 sps:$4 sm:$0xff]  }
0x12dc   :  { %v11846_v2 = vpack.c.bf16 %v4853_v14, %v4849_v5 }
0x12dd   :  { %9325 = vmatpush3.bf16.xpose.msra.mxu1 %v11844_v52 }
0x12de   :  { %9330 = vmatprep.subr.bf16.mxu1 %v10911_v20  ;;  %5351 = vmatpush1.bf16.msra.mxu0 %v11898_v11 }
0x12df   :  { %5352 = vmatprep.subr.bf16.mxu0 %v11901_v13 }
0x12e2   :  { %5353 = vmatpush1.bf16.msra.mxu0 %v11904_v51 }
0x12e3   :  { %5354 = vmatprep.subr.bf16.mxu0 %v11907_v43 }
0x12e4   :  { %9327 = vmatmul.mubr.bf16.vlgmr.msra.gmra.mrb[60].mxu1 %v11838_v59 }
0x12e5   :  { %9332 = vmatprep.mubr.msk.bf16.mxu1 %vm10912_vm0, %v10911_v20 }
0x12e6   :  { %5355 = vmatpush1.bf16.msra.mxu0 %v11910_v0 }
0x1316   :  { %v4889_v15 = vpop.f32.mrb[56].mxu1 }
0x1317   :  { %v4891_v16 = vpop.f32.mrb[57].mxu1  ;;  %v4890_v19 = vadd.f32 %v4889_v15, %v4278_v10 }
0x1318   :  { %v4893_v27 = vpop.f32.mrb[58].mxu1  ;;  %v4892_v26 = vadd.f32 %v4891_v16, %v4282_v25 }
0x1319   :  { %v4894_v9 = vadd.f32 %v4893_v27, %v4278_v10  ;;  %v4895_v34 = vpop.f32.mrb[59].mxu1 }
0x131a   :  { %v4896_v24 = vadd.f32 %v4895_v34, %v4282_v25 }
0x131b   :  { %v11855_v45 = vpack.c.bf16 %v4894_v9, %v4890_v19 }
0x131c   :  { %v11857_v58 = vpack.c.bf16 %v4896_v24, %v4892_v26 }
0x131d   :  { %v4995_v37 = vsel %vm1227_vm1, %v11855_v45, 0 }
0x131e   :  { %9331 = vmatpush3.bf16.msra.mxu1 %v4995_v37  ;;  %v5096_v15 = vsel %vm1227_vm1, %v11857_v58, 0 }
0x131f   :  { %9336 = vmatprep.subr.bf16.mxu1 %v10911_v20 }
0x13b7   :  { %v4971_v40 = vpop.f32.mrb[60].mxu1 }
0x13b8   :  { %v4977_v39 = vmul.f32 0.088388346, %v4971_v40  ;;  %v9328_v41 = vpop.f32.mrb[61].mxu1 }
0x13b9   :  { %v4974_v44 = vpop.f32.mrb[62].mxu1 }
0x13ba   :  { %v9329_v47 = vpop.f32.mrb[63].mxu1  ;;  %v4978_v48 = vsel %vm11401_vm2, %v4977_v39, -1e+30 }
0x13bb   :  { %v4979_v12 = vsel %vm1211_vm3, %v4978_v48, -inf }
0x13bc   :  { %4980 = vmax.xlane.f32.xlu0 %v4979_v12 }
0x1449   :  { %v4981_v46 = vpop.xlane.xlu0 %4980 }
0x144a   :  { %v4982_v4 = vsub.f32 %v4978_v48, %v4981_v46 }
0x144c   :  { %v4983_v7 = vmul.f32 1.442695, %v4982_v4  ;;  %v9995_v4 = vld [vmem:[#allocation13 + $0x184] ss:$8 sps:$4 sm:$0xff]  }
0x144d   :  { %5599 = vmatprep.subr.bf16.mxu0 %v9995_v4 }
0x144e   :  { %10333 = vpow2.f32 %v4983_v7  ;;  %v9993_v7 = vld [vmem:[#allocation13 + $0x180] ss:$8 sps:$4 sm:$0xff]  }
0x1458   :  { %v10334_v60 = vpop.eup %10333 }
0x1459   :  { %v4985_v3 = vsel %vm1211_vm3, %v10334_v60, 0.0 }
0x145a   :  { %4986 = vadd.xlane.f32.xlu1 %v4985_v3  ;;  %v9996_v3 = vld [vmem:[#allocation13 + $0x190] ss:$8 sps:$4 sm:$0xff]  }
0x14e7   :  { %v4987_v17 = vpop.xlane.xlu1 %4986 }
0x14e8   :  { %10335 = vrcp.f32 %v4987_v17  ;;  %v10001_v17 = vld [vmem:[#allocation13 + $0x1a4] ss:$8 sps:$4 sm:$0xff]  }
0x14f2   :  { %v10336_v5 = vpop.eup %10335 }
0x14f3   :  { %v4989_v14 = vmul.f32 %v10336_v5, %v10334_v60  ;;  %v9998_v60 = vld [vmem:[#allocation13 + $0x194] ss:$8 sps:$4 sm:$0xff]   ;;  %v9999_v5 = vld [vmem:[#allocation13 + $0x1a0] ss:$8 sps:$4 sm:$0xff]  }
0x14f5   :  { %v4990_v10 = vpack.c.bf16 %v4989_v14, %v4989_v14  ;;  %v10004_v14 = vld [vmem:[#allocation13 + $0x1b4] ss:$8 sps:$4 sm:$0xff]  }
0x14f7   :  { %9333 = vmatmul.mubr.msk.bf16.vlgmr.msra.gmra.mrb[64].mxu1 %vm1211_vm3, %v4990_v10  ;;  %v10002_v10 = vld [vmem:[#allocation13 + $0x1b0] ss:$8 sps:$4 sm:$0xff]  }
0x14f8   :  { %9337 = vmatpush3.bf16.xpose.msra.mxu1 %v11846_v2  ;;  %9338 = vmatprep.mubr.msk.bf16.mxu1 %vm10912_vm0, %v10911_v20 }
0x14f9   :  { %9342 = vmatprep.subr.bf16.mxu1 %v10911_v20 }
0x14ff   :  { %9339 = vmatmul.mubr.bf16.vlgmr.msra.gmra.mrb[68].mxu1 %v11840_v31 }
0x1500   :  { %9343 = vmatpush3.bf16.msra.mxu1 %v5096_v15  ;;  %9344 = vmatprep.mubr.msk.bf16.mxu1 %vm10912_vm0, %v10911_v20 }
0x1501   :  { %5219 = vmatprep.subr.bf16.mxu1 %v9995_v4 }
0x15ca   :  { %v5031_v25 = vpop.f32.mrb[64].mxu1 }
0x15cb   :  { %v5037_v16 = vpack.c.bf16 %v5031_v25, %v5031_v25  ;;  %v9334_v27 = vpop.f32.mrb[65].mxu1  ;;  %v10007_v25 = vld [vmem:[#allocation13 + $0x1c4] ss:$8 sps:$4 sm:$0xff]  }
0x15cc   :  { %v5034_v19 = vpop.f32.mrb[66].mxu1 }
0x15cd   :  { %v9335_v9 = vpop.f32.mrb[67].mxu1  ;;  %5373 = vmatmul.mubr.bf16.vlgmr.msra.gmra.mrb[32].mxu0 %v5037_v16 }
0x15ce   :  { %5631 = vmatprep.mubr.bf16.mxu0 %v10913_v56  ;;  %5600 = vmatpush1.bf16.msra.mxu0 %v9993_v7  ;;  %v10005_v9 = vld [vmem:[#allocation13 + $0x1c0] ss:$8 sps:$4 sm:$0xff]  }
0x15cf   :  { %5601 = vmatprep.subr.bf16.mxu0 %v9998_v60 }
0x15d2   :  { %v5072_v34 = vpop.f32.mrb[68].mxu1  ;;  %5602 = vmatpush1.bf16.msra.mxu0 %v9996_v3 }
0x15d3   :  { %v5078_v26 = vmul.f32 0.088388346, %v5072_v34  ;;  %v9340_v24 = vpop.f32.mrb[69].mxu1  ;;  %5603 = vmatprep.subr.bf16.mxu0 %v10001_v17  ;;  %v10010_v34 = vld [vmem:[#allocation13 + $0x1d4] ss:$8 sps:$4 sm:$0xff]  }
0x15d4   :  { %v5075_v37 = vpop.f32.mrb[70].mxu1  ;;  %v10013_v24 = vld [vmem:[#allocation13 + $0x1e4] ss:$8 sps:$4 sm:$0xff]  }
0x15d5   :  { %v9341_v40 = vpop.f32.mrb[71].mxu1  ;;  %v5079_v39 = vsel %vm11401_vm2, %v5078_v26, -1e+30  ;;  %v10008_v26 = vld [vmem:[#allocation13 + $0x1d0] ss:$8 sps:$4 sm:$0xff]  }
0x15d6   :  { %v5080_v41 = vsel %vm1211_vm3, %v5079_v39, -inf  ;;  %5604 = vmatpush1.bf16.msra.mxu0 %v9999_v5  ;;  %v10011_v37 = vld [vmem:[#allocation13 + $0x1e0] ss:$8 sps:$4 sm:$0xff]   ;;  %v10016_v40 = vld [vmem:[#allocation13 + $0x1f4] ss:$8 sps:$4 sm:$0xff]  }
0x15d7   :  { %5081 = vmax.xlane.f32.xlu0 %v5080_v41  ;;  %5605 = vmatprep.subr.bf16.mxu0 %v10004_v14 }
0x15da   :  { %5606 = vmatpush1.bf16.msra.mxu0 %v10002_v10 }
0x15db   :  { %5607 = vmatprep.subr.bf16.mxu0 %v10007_v25 }
0x15de   :  { %5608 = vmatpush1.bf16.msra.mxu0 %v10005_v9 }
0x15df   :  { %5609 = vmatprep.subr.bf16.mxu0 %v10010_v34 }
0x15e2   :  { %5610 = vmatpush1.bf16.msra.mxu0 %v10008_v26 }
0x15e3   :  { %5611 = vmatprep.subr.bf16.mxu0 %v10013_v24 }
0x15e6   :  { %5612 = vmatpush1.bf16.msra.mxu0 %v10011_v37 }
0x15e7   :  { %5613 = vmatprep.subr.bf16.mxu0 %v10016_v40 }
0x1664   :  { %v5082_v44 = vpop.xlane.xlu0 %5081 }
0x1665   :  { %v5083_v47 = vsub.f32 %v5079_v39, %v5082_v44  ;;  %v10014_v39 = vld [vmem:[#allocation13 + $0x1f0] ss:$8 sps:$4 sm:$0xff]  }
0x1666   :  { %5614 = vmatpush1.bf16.msra.mxu0 %v10014_v39 }
0x1667   :  { %v5084_v48 = vmul.f32 1.442695, %v5083_v47 }
0x1669   :  { %10337 = vpow2.f32 %v5084_v48 }
0x1673   :  { %v10338_v12 = vpop.eup %10337 }
0x1674   :  { %v5086_v46 = vsel %vm1211_vm3, %v10338_v12, 0.0 }
0x1675   :  { %5087 = vadd.xlane.f32.xlu1 %v5086_v46 }
0x16a0   :  { %v5374_v15 = vpop.f32.mrb[32].mxu0 }
0x16a1   :  { %v5376_v16 = vpop.f32.mrb[33].mxu0 }
0x16a2   :  { %v5378_v27 = vpop.f32.mrb[34].mxu0 }
0x16a3   :  { %v5379_v19 = vpop.f32.mrb[35].mxu0 }
0x1702   :  { %v5088_v41 = vpop.xlane.xlu1 %5087 }
0x1703   :  { %10339 = vrcp.f32 %v5088_v41 }
0x170d   :  { %v10340_v44 = vpop.eup %10339 }
0x170e   :  { %v5090_v47 = vmul.f32 %v10340_v44, %v10338_v12 }
0x1710   :  { %v5091_v48 = vpack.c.bf16 %v5090_v47, %v5090_v47 }
0x1712   :  { %9345 = vmatmul.mubr.msk.bf16.vlgmr.msra.gmra.mrb[72].mxu1 %vm1211_vm3, %v5091_v48 }
0x1713   :  { %5220 = vmatpush1.bf16.msra.mxu1 %v9993_v7  ;;  %5251 = vmatprep.mubr.bf16.mxu1 %v10913_v56  ;;  %v5385_v7 = vrot.slane %v11844_v52, 4 }
0x1714   :  { %5221 = vmatprep.subr.bf16.mxu1 %v9998_v60 }
0x1717   :  { %5222 = vmatpush1.bf16.msra.mxu1 %v9996_v3 }
0x1718   :  { %5223 = vmatprep.subr.bf16.mxu1 %v10001_v17  ;;  %v5442_v17 = vrot.slane %v11855_v45, 4 }
0x171b   :  { %5224 = vmatpush1.bf16.msra.mxu1 %v9999_v5  ;;  %v5382_v5 = vrot.slane %v11838_v59, 4 }
0x171c   :  { %5225 = vmatprep.subr.bf16.mxu1 %v10004_v14  ;;  %v5447_v14 = vsel %vm1227_vm1, %v5442_v17, 0 }
0x171f   :  { %5226 = vmatpush1.bf16.msra.mxu1 %v10002_v10 }
0x1720   :  { %5227 = vmatprep.subr.bf16.mxu1 %v10007_v25 }
0x1723   :  { %5228 = vmatpush1.bf16.msra.mxu1 %v10005_v9 }
0x1724   :  { %5229 = vmatprep.subr.bf16.mxu1 %v10010_v34 }
0x1727   :  { %5230 = vmatpush1.bf16.msra.mxu1 %v10008_v26 }
0x1728   :  { %5231 = vmatprep.subr.bf16.mxu1 %v10013_v24 }
0x172b   :  { %5232 = vmatpush1.bf16.msra.mxu1 %v10011_v37 }
0x172c   :  { %5233 = vmatprep.subr.bf16.mxu1 %v10016_v40 }
0x172f   :  { %5234 = vmatpush1.bf16.msra.mxu1 %v10014_v39 }
0x1730   :  { %9348 = vmatprep.subr.bf16.mxu1 %v10911_v20 }
0x17e5   :  { %v5132_v12 = vpop.f32.mrb[72].mxu1 }
0x17e6   :  { %v5138_v46 = vpack.c.bf16 %v5132_v12, %v5132_v12  ;;  %v9346_v4 = vpop.f32.mrb[73].mxu1 }
0x17e7   :  { %v5135_v60 = vpop.f32.mrb[74].mxu1  ;;  %v5494_v4 = vrot.slane %v11846_v2, 4  ;;  %v5682_v2 = vld [vmem:[#allocation14 + $0x2] sm:$0x3] }
0x17e8   :  { %v9347_v3 = vpop.f32.mrb[75].mxu1  ;;  %5252 = vmatmul.mubr.bf16.vlgmr.msra.gmra.mrb[76].mxu1 %v5138_v46  ;;  %v5491_v60 = vrot.slane %v11840_v31, 4 }
0x17e9   :  { %9349 = vmatpush3.bf16.xpose.msra.mxu1 %v5385_v7  ;;  %9350 = vmatprep.mubr.msk.bf16.mxu1 %vm10912_vm0, %v10911_v20  ;;  %v5551_v7 = vrot.slane %v11857_v58, 4  ;;  %v11961_v58 = vrot.slane %v5682_v2, %v11329_v29 }
0x17ea   :  { %9354 = vmatprep.subr.bf16.mxu1 %v10911_v20 }
0x17eb   :  { %v5556_v3 = vsel %vm1227_vm1, %v5551_v7, 0 }
0x17f0   :  { %9351 = vmatmul.mubr.bf16.vlgmr.msra.gmra.mrb[80].mxu1 %v5382_v5 }
0x17f1   :  { %9355 = vmatpush3.bf16.msra.mxu1 %v5447_v14  ;;  %9356 = vmatprep.mubr.msk.bf16.mxu1 %vm10912_vm0, %v10911_v20 }
0x17f2   :  { %9360 = vmatprep.subr.bf16.mxu1 %v10911_v20 }
0x18bb   :  { %v5253_v52 = vpop.f32.mrb[76].mxu1 }
0x18bc   :  { %v5375_v10 = vadd.f32 %v5374_v15, %v5253_v52  ;;  %v5255_v25 = vpop.f32.mrb[77].mxu1  ;;  %v11958_v52 = vrot.slane %v5682_v2, %v11332_v30 }
0x18bd   :  { %v5377_v27 = vadd.f32 %v5376_v16, %v5255_v25  ;;  %v5257_v19 = vpop.f32.mrb[78].mxu1 }
0x18be   :  { %v5258_v9 = vpop.f32.mrb[79].mxu1  ;;  %v5694_v25 = vadd.f32 %v11958_v52, %v5375_v10 }
0x18bf   :  { %v5695_v19 = vadd.f32 %v11961_v58, %v5377_v27 }
0x18c3   :  { %v5421_v34 = vpop.f32.mrb[80].mxu1 }
0x18c4   :  { %v5427_v26 = vmul.f32 0.088388346, %v5421_v34  ;;  %v9352_v45 = vpop.f32.mrb[81].mxu1 }
0x18c5   :  { %v5424_v24 = vpop.f32.mrb[82].mxu1  ;;  %v11969_v45 = vadd.f32 %v5695_v19, %v11803_v33 }
0x18c6   :  { %v9353_v59 = vpop.f32.mrb[83].mxu1  ;;  %v5428_v37 = vsel %vm11401_vm2, %v5427_v26, -1e+30 }
0x18c7   :  { %v5429_v40 = vsel %vm1211_vm3, %v5428_v37, -inf }
0x18c8   :  { %5430 = vmax.xlane.f32.xlu0 %v5429_v40 }
0x1955   :  { %v5431_v39 = vpop.xlane.xlu0 %5430 }
0x1956   :  { %v5432_v41 = vsub.f32 %v5428_v37, %v5431_v39 }
0x1958   :  { %v5433_v44 = vmul.f32 1.442695, %v5432_v41 }
0x195a   :  { %10341 = vpow2.f32 %v5433_v44 }
0x1964   :  { %v10342_v15 = vpop.eup %10341 }
0x1965   :  { %v5435_v16 = vsel %vm1211_vm3, %v10342_v15, 0.0 }
0x1966   :  { %5436 = vadd.xlane.f32.xlu1 %v5435_v16 }
0x19f3   :  { %v5437_v47 = vpop.xlane.xlu1 %5436 }
0x19f4   :  { %10343 = vrcp.f32 %v5437_v47 }
0x19fe   :  { %v10344_v48 = vpop.eup %10343 }
0x19ff   :  { %v5439_v12 = vmul.f32 %v10344_v48, %v10342_v15 }
0x1a01   :  { %v5440_v46 = vpack.c.bf16 %v5439_v12, %v5439_v12 }
0x1a03   :  { %9357 = vmatmul.mubr.msk.bf16.vlgmr.msra.gmra.mrb[84].mxu1 %vm1211_vm3, %v5440_v46 }
0x1a04   :  { %9361 = vmatpush3.bf16.xpose.msra.mxu1 %v5494_v4  ;;  %9362 = vmatprep.mubr.msk.bf16.mxu1 %vm10912_vm0, %v10911_v20 }
0x1a05   :  { %9366 = vmatprep.subr.bf16.mxu1 %v10911_v20 }
0x1a0b   :  { %9363 = vmatmul.mubr.bf16.vlgmr.msra.gmra.mrb[88].mxu1 %v5491_v60 }
0x1a0c   :  { %9367 = vmatpush3.bf16.msra.mxu1 %v5556_v3  ;;  %9368 = vmatprep.mubr.msk.bf16.mxu1 %vm10912_vm0, %v10911_v20 }
0x1a0d   :  { %5640 = vmatprep.subr.bf16.mxu1 %v11868_v22  ;;  %v11966_v22 = vadd.f32 %v5694_v25, %v11800_v50  ;;  %v5772_v25 = vld [vmem:[#allocation19 + $0x408] sm:$0xff] }
0x1a0f   :  { %v5706_v10 = vadd.f32 %v11969_v45, %v11966_v22 }
0x1ad6   :  { %v5483_v17 = vpop.f32.mrb[84].mxu1 }
0x1ad7   :  { %v9358_v5 = vpop.f32.mrb[85].mxu1 }
0x1ad8   :  { %v5486_v14 = vpop.f32.mrb[86].mxu1 }
0x1ad9   :  { %v9359_v31 = vpop.f32.mrb[87].mxu1  ;;  %v5771_v14 = vld [vmem:[#allocation19 + $0x400] sm:$0xff] }
0x1ada   :  { %v5775_v31 = vld [vmem:[#allocation19 + $0x420] sm:$0xff] }
0x1adb   :  { %v8917_v19 = vcombine.low %v5771_v14, %v5775_v31 }
0x1ade   :  { %v5530_v9 = vpop.f32.mrb[88].mxu1 }
0x1adf   :  { %v5536_v34 = vmul.f32 0.088388346, %v5530_v9  ;;  %v9364_v20 = vpop.f32.mrb[89].mxu1  ;;  %v8918_v9 = vcombine.high %v5771_v14, %v5775_v31  ;;  %v5824_v14 = vld [vmem:[#allocation19 + $0x5a8] sm:$0xff] }
0x1ae0   :  { %v5533_v26 = vpop.f32.mrb[90].mxu1  ;;  %v5783_v20 = vld [vmem:[#allocation19 + $0x460] sm:$0xff] }
0x1ae1   :  { %v9365_v24 = vpop.f32.mrb[91].mxu1  ;;  %v5537_v59 = vsel %vm11401_vm2, %v5536_v34, -1e+30  ;;  %v5776_v34 = vld [vmem:[#allocation19 + $0x428] sm:$0xff]  ;;  %6582 = vmatprep.subr.bf16.mxu0 %v8918_v9 }
0x1ae2   :  { %v5538_v37 = vsel %vm1211_vm3, %v5537_v59, -inf  ;;  %v8919_v26 = vcombine.low %v5772_v25, %v5776_v34 }
0x1ae3   :  { %5539 = vmax.xlane.f32.xlu0 %v5538_v37  ;;  %v5787_v37 = vld [vmem:[#allocation19 + $0x480] sm:$0xff] }
0x1ae7   :  { %5707 = vadd.xlane.f32.xlu0 %v5706_v10  ;;  %v5791_v10 = vld [vmem:[#allocation19 + $0x4a0] sm:$0xff] }
0x1b70   :  { %v5540_v27 = vpop.xlane.xlu0 %5539 }
0x1b71   :  { %v5541_v40 = vsub.f32 %v5537_v59, %v5540_v27  ;;  %v5784_v59 = vld [vmem:[#allocation19 + $0x468] sm:$0xff] }
0x1b72   :  { %v5788_v27 = vld [vmem:[#allocation19 + $0x488] sm:$0xff] }
0x1b73   :  { %v5542_v39 = vmul.f32 1.442695, %v5541_v40  ;;  %v5792_v40 = vld [vmem:[#allocation19 + $0x4a8] sm:$0xff] }
0x1b74   :  { %v5708_v41 = vpop.xlane.xlu0 %5707 }
0x1b75   :  { %10345 = vpow2.f32 %v5542_v39  ;;  %v5712_v50 = vmul.f32 0.00390625, %v5708_v41 }
0x1b77   :  { %v11977_v33 = vsub.f32 %v11966_v22, %v5712_v50  ;;  %v11980_v44 = vsub.f32 %v11969_v45, %v5712_v50  ;;  %v8934_v50 = vcombine.high %v5787_v37, %v5791_v10 }
0x1b79   :  { %v5718_v8 = vmul.f32 %v11977_v33, %v11977_v33  ;;  %v5719_v15 = vmul.f32 %v11980_v44, %v11980_v44 }
0x1b7b   :  { %v5722_v16 = vadd.f32 %v5719_v15, %v5718_v8  ;;  %v8936_v8 = vcombine.high %v5788_v27, %v5792_v40  ;;  %v5795_v15 = vld [vmem:[#allocation19 + $0x4c0] sm:$0xff] }
0x1b7d   :  { %5723 = vadd.xlane.f32.xlu0 %v5722_v16  ;;  %v5799_v16 = vld [vmem:[#allocation19 + $0x4e0] sm:$0xff] }
0x1b7f   :  { %v10346_v47 = vpop.eup %10345 }
0x1b80   :  { %v5544_v48 = vsel %vm1211_vm3, %v10346_v47, 0.0 }
0x1b81   :  { %5545 = vadd.xlane.f32.xlu1 %v5544_v48  ;;  %v5800_v48 = vld [vmem:[#allocation19 + $0x4e8] sm:$0xff] }
0x1c0e   :  { %v5546_v12 = vpop.xlane.xlu1 %5545 }
0x1c0f   :  { %10347 = vrcp.f32 %v5546_v12  ;;  %v8933_v12 = vcombine.low %v5787_v37, %v5791_v10  ;;  %v5835_v37 = vld [vmem:[#allocation19 + $0x600] sm:$0xff]  ;;  %v5836_v10 = vld [vmem:[#allocation19 + $0x608] sm:$0xff] }
0x1c19   :  { %v10348_v46 = vpop.eup %10347 }
0x1c1a   :  { %v5548_v4 = vmul.f32 %v10348_v46, %v10346_v47  ;;  %v5796_v47 = vld [vmem:[#allocation19 + $0x4c8] sm:$0xff]  ;;  %v8935_v46 = vcombine.low %v5788_v27, %v5792_v40 }
0x1c1b   :  { %v5840_v27 = vld [vmem:[#allocation19 + $0x628] sm:$0xff] }
0x1c1c   :  { %v5549_v7 = vpack.c.bf16 %v5548_v4, %v5548_v4  ;;  %v8942_v4 = vcombine.high %v5795_v15, %v5799_v16 }
0x1c1e   :  { %9369 = vmatmul.mubr.msk.bf16.vlgmr.msra.gmra.mrb[92].mxu1 %vm1211_vm3, %v5549_v7  ;;  %v8944_v7 = vcombine.high %v5796_v47, %v5800_v48 }
0x1c1f   :  { %5641 = vmatpush1.bf16.msra.mxu1 %v11866_v61  ;;  %5672 = vmatprep.mubr.bf16.mxu1 %v10913_v56  ;;  %v5489_v56 = vpack.c.bf16 %v5483_v17, %v5483_v17 }
0x1c20   :  { %5642 = vmatprep.subr.bf16.mxu1 %v11870_v63 }
0x1c23   :  { %5643 = vmatpush1.bf16.msra.mxu1 %v11874_v35 }
0x1c24   :  { %5644 = vmatprep.subr.bf16.mxu1 %v11877_v36 }
0x1c27   :  { %5645 = vmatpush1.bf16.msra.mxu1 %v11880_v1 }
0x1c28   :  { %5646 = vmatprep.subr.bf16.mxu1 %v11883_v6 }
0x1c2b   :  { %5647 = vmatpush1.bf16.msra.mxu1 %v11886_v57 }
0x1c2c   :  { %5648 = vmatprep.subr.bf16.mxu1 %v11889_v49 }
0x1c2f   :  { %5649 = vmatpush1.bf16.msra.mxu1 %v11892_v18 }
0x1c30   :  { %5650 = vmatprep.subr.bf16.mxu1 %v11895_v42 }
0x1c33   :  { %5651 = vmatpush1.bf16.msra.mxu1 %v11898_v11 }
0x1c34   :  { %5652 = vmatprep.subr.bf16.mxu1 %v11901_v13 }
0x1c37   :  { %5653 = vmatpush1.bf16.msra.mxu1 %v11904_v51 }
0x1c38   :  { %5654 = vmatprep.subr.bf16.mxu1 %v11907_v43 }
0x1c3b   :  { %5655 = vmatpush1.bf16.msra.mxu1 %v11910_v0 }
0x1c3e   :  { %5673 = vmatmul.mubr.bf16.vlgmr.msra.gmra.mrb[96].mxu1 %v5489_v56  ;;  %v5803_v56 = vld [vmem:[#allocation19 + $0x500] sm:$0xff] }
0x1cf1   :  { %v5592_v61 = vpop.f32.mrb[92].mxu1 }
0x1cf2   :  { %v5598_v63 = vpack.c.bf16 %v5592_v61, %v5592_v61  ;;  %v9370_v35 = vpop.f32.mrb[93].mxu1  ;;  %v5807_v61 = vld [vmem:[#allocation19 + $0x520] sm:$0xff] }
0x1cf3   :  { %v5595_v36 = vpop.f32.mrb[94].mxu1  ;;  %v5808_v35 = vld [vmem:[#allocation19 + $0x528] sm:$0xff] }
0x1cf4   :  { %v9371_v1 = vpop.f32.mrb[95].mxu1  ;;  %5632 = vmatmul.mubr.bf16.vlgmr.msra.gmra.mrb[36].mxu0 %v5598_v63  ;;  %v5804_v63 = vld [vmem:[#allocation19 + $0x508] sm:$0xff]  ;;  %v8941_v36 = vcombine.low %v5795_v15, %v5799_v16  ;;  %v5847_v15 = vld [vmem:[#allocation19 + $0x660] sm:$0xff] }
0x1cf5   :  { %6583 = vmatpush1.bf16.msra.mxu0 %v8917_v19  ;;  %v8943_v1 = vcombine.low %v5796_v47, %v5800_v48  ;;  %v5844_v16 = vld [vmem:[#allocation19 + $0x648] sm:$0xff] }
0x1cf6   :  { %v5848_v47 = vld [vmem:[#allocation19 + $0x668] sm:$0xff] }
0x1d11   :  { %v5674_v6 = vpop.f32.mrb[96].mxu1 }
0x1d12   :  { %v5676_v57 = vpop.f32.mrb[97].mxu1 }
0x1d13   :  { %v5678_v49 = vpop.f32.mrb[98].mxu1 }
0x1d14   :  { %v5679_v18 = vpop.f32.mrb[99].mxu1  ;;  %v5811_v49 = vld [vmem:[#allocation19 + $0x540] sm:$0xff] }
0x1d15   :  { %v5815_v18 = vld [vmem:[#allocation19 + $0x560] sm:$0xff] }
0x1d16   :  { %v8957_v31 = vcombine.low %v5811_v49, %v5815_v18 }
0x1dc7   :  { %v5633_v42 = vpop.f32.mrb[36].mxu0 }
0x1dc8   :  { %v5675_v11 = vadd.f32 %v5674_v6, %v5633_v42  ;;  %v5635_v13 = vpop.f32.mrb[37].mxu0  ;;  %v8950_v6 = vcombine.high %v5803_v56, %v5807_v61  ;;  %v5812_v42 = vld [vmem:[#allocation19 + $0x548] sm:$0xff] }
0x1dc9   :  { %v5677_v51 = vadd.f32 %v5676_v57, %v5635_v13  ;;  %v5637_v60 = vpop.f32.mrb[38].mxu0  ;;  %v8952_v57 = vcombine.high %v5804_v63, %v5808_v35  ;;  %v8949_v13 = vcombine.low %v5803_v56, %v5807_v61  ;;  %v5855_v56 = vld [vmem:[#allocation19 + $0x6a0] sm:$0xff]  ;;  %v5852_v61 = vld [vmem:[#allocation19 + $0x688] sm:$0xff] }
0x1dca   :  { %v5696_v43 = vadd.f32 %v11958_v52, %v5675_v11  ;;  %v5638_v0 = vpop.f32.mrb[39].mxu0  ;;  %v5779_v52 = vld [vmem:[#allocation19 + $0x440] sm:$0xff]  ;;  %v5816_v11 = vld [vmem:[#allocation19 + $0x568] sm:$0xff]  ;;  %v8958_v60 = vcombine.high %v5811_v49, %v5815_v18 }
0x1dcb   :  { %v5697_v3 = vadd.f32 %v11961_v58, %v5677_v51  ;;  %v8920_v58 = vcombine.high %v5772_v25, %v5776_v34  ;;  %v8926_v24 = vcombine.high %v5779_v52, %v5783_v20  ;;  %v8925_v39 = vcombine.low %v5779_v52, %v5783_v20  ;;  %v5819_v0 = vld [vmem:[#allocation19 + $0x580] sm:$0xff]  ;;  %v5828_v20 = vld [vmem:[#allocation19 + $0x5c8] sm:$0xff] }
0x1dcc   :  { %v12007_v2 = vadd.f32 %v5696_v43, %v11806_v53  ;;  %v5780_v53 = vld [vmem:[#allocation19 + $0x448] sm:$0xff]  ;;  %v8951_v51 = vcombine.low %v5804_v63, %v5808_v35  ;;  %v8960_v43 = vcombine.high %v5812_v42, %v5816_v11  ;;  %v8959_v25 = vcombine.low %v5812_v42, %v5816_v11  ;;  %v5827_v34 = vld [vmem:[#allocation19 + $0x5c0] sm:$0xff] }
0x1dcd   :  { %v12010_v17 = vadd.f32 %v5697_v3, %v11809_v62  ;;  %v8928_v62 = vcombine.high %v5780_v53, %v5784_v59  ;;  %6625 = vmatprep.subr.bf16.mxu1 %v8920_v58  ;;  %6584 = vmatprep.subr.bf16.mxu0 %v8926_v24  ;;  %v8927_v41 = vcombine.low %v5780_v53, %v5784_v59  ;;  %v5823_v3 = vld [vmem:[#allocation19 + $0x5a0] sm:$0xff]  ;;  %v5856_v63 = vld [vmem:[#allocation19 + $0x6a8] sm:$0xff] }
0x1dce   :  { %6626 = vmatpush1.bf16.msra.mxu1 %v8919_v26  ;;  %6585 = vmatpush1.bf16.msra.mxu0 %v8925_v39  ;;  %v8966_v19 = vcombine.high %v5819_v0, %v5823_v3  ;;  %v5831_v52 = vld [vmem:[#allocation19 + $0x5e0] sm:$0xff]  ;;  %v5832_v26 = vld [vmem:[#allocation19 + $0x5e8] sm:$0xff]  ;;  %v8965_v58 = vcombine.low %v5819_v0, %v5823_v3  ;;  %v8999_v49 = vcombine.low %v5852_v61, %v5856_v63 }
0x1dcf   :  { %v5709_v5 = vadd.f32 %v12010_v17, %v12007_v2  ;;  %6627 = vmatprep.subr.bf16.mxu1 %v8928_v62  ;;  %6586 = vmatprep.subr.bf16.mxu0 %v8934_v50  ;;  %v8974_v53 = vcombine.high %v5827_v34, %v5831_v52  ;;  %v8976_v59 = vcombine.high %v5828_v20, %v5832_v26  ;;  %v5839_v62 = vld [vmem:[#allocation19 + $0x620] sm:$0xff] }
0x1dd0   :  { %v8973_v40 = vcombine.low %v5827_v34, %v5831_v52  ;;  %v8975_v39 = vcombine.low %v5828_v20, %v5832_v26  ;;  %v8984_v50 = vcombine.high %v5836_v10, %v5840_v27  ;;  %v8981_v48 = vcombine.low %v5835_v37, %v5839_v62  ;;  %v5859_v0 = vld [vmem:[#allocation19 + $0x6c0] sm:$0xff]  ;;  %v5868_v20 = vld [vmem:[#allocation19 + $0x708] sm:$0xff] }
0x1dd1   :  { %5710 = vadd.xlane.f32.xlu1 %v5709_v5  ;;  %v5820_v5 = vld [vmem:[#allocation19 + $0x588] sm:$0xff]  ;;  %v5863_v3 = vld [vmem:[#allocation19 + $0x6e0] sm:$0xff] }
0x1dd2   :  { %6628 = vmatpush1.bf16.msra.mxu1 %v8927_v41  ;;  %6587 = vmatpush1.bf16.msra.mxu0 %v8933_v12  ;;  %v8968_v9 = vcombine.high %v5820_v5, %v5824_v14  ;;  %v8967_v24 = vcombine.low %v5820_v5, %v5824_v14  ;;  %v8982_v41 = vcombine.high %v5835_v37, %v5839_v62  ;;  %v5860_v5 = vld [vmem:[#allocation19 + $0x6c8] sm:$0xff]  ;;  %v5867_v34 = vld [vmem:[#allocation19 + $0x700] sm:$0xff] }
0x1dd3   :  { %6629 = vmatprep.subr.bf16.mxu1 %v8936_v8  ;;  %6588 = vmatprep.subr.bf16.mxu0 %v8942_v4  ;;  %v5843_v8 = vld [vmem:[#allocation19 + $0x640] sm:$0xff]  ;;  %v8983_v12 = vcombine.low %v5836_v10, %v5840_v27  ;;  %v8992_v4 = vcombine.high %v5844_v16, %v5848_v47  ;;  %v9006_v14 = vcombine.high %v5859_v0, %v5863_v3  ;;  %v5876_v10 = vld [vmem:[#allocation19 + $0x748] sm:$0xff] }
0x1dd4   :  { %v8989_v35 = vcombine.low %v5843_v8, %v5847_v15  ;;  %v5871_v52 = vld [vmem:[#allocation19 + $0x720] sm:$0xff] }
0x1dd5   :  { %v9014_v26 = vcombine.high %v5867_v34, %v5871_v52  ;;  %v5875_v37 = vld [vmem:[#allocation19 + $0x740] sm:$0xff] }
0x1dd6   :  { %6630 = vmatpush1.bf16.msra.mxu1 %v8935_v46  ;;  %6589 = vmatpush1.bf16.msra.mxu0 %v8941_v36  ;;  %v8990_v46 = vcombine.high %v5843_v8, %v5847_v15  ;;  %v8991_v36 = vcombine.low %v5844_v16, %v5848_v47  ;;  %v5879_v62 = vld [vmem:[#allocation19 + $0x760] sm:$0xff]  ;;  %v5884_v47 = vld [vmem:[#allocation19 + $0x788] sm:$0xff] }
0x1dd7   :  { %6631 = vmatprep.subr.bf16.mxu1 %v8944_v7  ;;  %6590 = vmatprep.subr.bf16.mxu0 %v8950_v6  ;;  %v5851_v7 = vld [vmem:[#allocation19 + $0x680] sm:$0xff]  ;;  %v9000_v6 = vcombine.high %v5852_v61, %v5856_v63  ;;  %v9021_v27 = vcombine.low %v5875_v37, %v5879_v62 }
0x1dda   :  { %6632 = vmatpush1.bf16.msra.mxu1 %v8943_v1  ;;  %6591 = vmatpush1.bf16.msra.mxu0 %v8949_v13  ;;  %v8998_v1 = vcombine.high %v5851_v7, %v5855_v56 }
0x1ddb   :  { %6633 = vmatprep.subr.bf16.mxu1 %v8952_v57  ;;  %6592 = vmatprep.subr.bf16.mxu0 %v8958_v60  ;;  %v8997_v57 = vcombine.low %v5851_v7, %v5855_v56  ;;  %v5892_v7 = vld [vmem:[#allocation19 + $0x7c8] sm:$0xff] }
0x1ddc   :  { %v5896_v56 = vld [vmem:[#allocation19 + $0x7e8] sm:$0xff] }
0x1dde   :  { %6634 = vmatpush1.bf16.msra.mxu1 %v8951_v51  ;;  %6593 = vmatpush1.bf16.msra.mxu0 %v8957_v31  ;;  %v5864_v31 = vld [vmem:[#allocation19 + $0x6e8] sm:$0xff] }
0x1ddf   :  { %6635 = vmatprep.subr.bf16.mxu1 %v8960_v43  ;;  %6594 = vmatprep.subr.bf16.mxu0 %v8966_v19  ;;  %v9007_v19 = vcombine.low %v5860_v5, %v5864_v31 }
0x1de2   :  { %6636 = vmatpush1.bf16.msra.mxu1 %v8959_v25  ;;  %6595 = vmatpush1.bf16.msra.mxu0 %v8965_v58  ;;  %v9005_v25 = vcombine.low %v5859_v0, %v5863_v3  ;;  %v5872_v58 = vld [vmem:[#allocation19 + $0x728] sm:$0xff]  ;;  %v5724_v3 = vpop.xlane.xlu0 %5723 }
0x1de3   :  { %6637 = vmatprep.subr.bf16.mxu1 %v8968_v9  ;;  %6596 = vmatprep.subr.bf16.mxu0 %v8974_v53  ;;  %v9008_v9 = vcombine.high %v5860_v5, %v5864_v31  ;;  %v9015_v53 = vcombine.low %v5868_v20, %v5872_v58  ;;  %v5728_v5 = vmul.f32 0.00390625, %v5724_v3  ;;  %v5809_v3 = vld [vmem:[#allocation19 + $0x530] sm:$0xff] }
0x1de6   :  { %6638 = vmatpush1.bf16.msra.mxu1 %v8967_v24  ;;  %6597 = vmatpush1.bf16.msra.mxu0 %v8973_v40  ;;  %v9013_v24 = vcombine.low %v5867_v34, %v5871_v52  ;;  %v9022_v40 = vcombine.high %v5875_v37, %v5879_v62  ;;  %v5703_v34 = vld [vmem:[#allocation16 + $0x2] sm:$0x3] }
0x1de7   :  { %6639 = vmatprep.subr.bf16.mxu1 %v8976_v59  ;;  %6598 = vmatprep.subr.bf16.mxu0 %v8982_v41  ;;  %v9016_v59 = vcombine.high %v5868_v20, %v5872_v58  ;;  %v5883_v41 = vld [vmem:[#allocation19 + $0x780] sm:$0xff]  ;;  %v5746_v58 = vrot.slane %v5703_v34, %v11329_v29 }
0x1dea   :  { %6640 = vmatpush1.bf16.msra.mxu1 %v8975_v39  ;;  %6599 = vmatpush1.bf16.msra.mxu0 %v8981_v48  ;;  %v5880_v39 = vld [vmem:[#allocation19 + $0x768] sm:$0xff] }
0x1deb   :  { %6641 = vmatprep.subr.bf16.mxu1 %v8984_v50  ;;  %6600 = vmatprep.subr.bf16.mxu0 %v8990_v46  ;;  %v5887_v50 = vld [vmem:[#allocation19 + $0x7a0] sm:$0xff]  ;;  %v9023_v8 = vcombine.low %v5876_v10, %v5880_v39  ;;  %v9024_v15 = vcombine.high %v5876_v10, %v5880_v39  ;;  %v5888_v48 = vld [vmem:[#allocation19 + $0x7a8] sm:$0xff] }
0x1dec   :  { %v9030_v16 = vcombine.high %v5883_v41, %v5887_v50  ;;  %v5891_v46 = vld [vmem:[#allocation19 + $0x7c0] sm:$0xff]  ;;  %v9029_v61 = vcombine.low %v5883_v41, %v5887_v50  ;;  %v9031_v63 = vcombine.low %v5884_v47, %v5888_v48 }
0x1dee   :  { %6642 = vmatpush1.bf16.msra.mxu1 %v8983_v12  ;;  %6601 = vmatpush1.bf16.msra.mxu0 %v8989_v35  ;;  %v9032_v12 = vcombine.high %v5884_v47, %v5888_v48  ;;  %v5782_v47 = vld [vmem:[#allocation19 + $0x458] sm:$0xff] }
0x1def   :  { %6643 = vmatprep.subr.bf16.mxu1 %v8992_v4  ;;  %6602 = vmatprep.subr.bf16.mxu0 %v8998_v1  ;;  %v5895_v4 = vld [vmem:[#allocation19 + $0x7e0] sm:$0xff]  ;;  %v5773_v1 = vld [vmem:[#allocation19 + $0x410] sm:$0xff]  ;;  %v5786_v48 = vld [vmem:[#allocation19 + $0x478] sm:$0xff] }
0x1df0   :  { %v9038_v35 = vcombine.high %v5891_v46, %v5895_v4 }
0x1df2   :  { %6644 = vmatpush1.bf16.msra.mxu1 %v8991_v36  ;;  %6603 = vmatpush1.bf16.msra.mxu0 %v8997_v57  ;;  %v9040_v36 = vcombine.high %v5892_v7, %v5896_v56  ;;  %v5774_v57 = vld [vmem:[#allocation19 + $0x418] sm:$0xff] }
0x1df3   :  { %6645 = vmatprep.subr.bf16.mxu1 %v9000_v6  ;;  %6604 = vmatprep.subr.bf16.mxu0 %v9006_v14  ;;  %v5777_v6 = vld [vmem:[#allocation19 + $0x430] sm:$0xff]  ;;  %v5730_v14 = vadd.f32 1e-05, %v5728_v5  ;;  %v5806_v5 = vld [vmem:[#allocation19 + $0x518] sm:$0xff] }
0x1df5   :  { %10349 = vrsqrt.f32 %v5730_v14  ;;  %v5810_v14 = vld [vmem:[#allocation19 + $0x538] sm:$0xff] }
0x1df6   :  { %6646 = vmatpush1.bf16.msra.mxu1 %v8999_v49  ;;  %6605 = vmatpush1.bf16.msra.mxu0 %v9005_v25  ;;  %v9037_v49 = vcombine.low %v5891_v46, %v5895_v4  ;;  %v5789_v4 = vld [vmem:[#allocation19 + $0x490] sm:$0xff] }
0x1df7   :  { %6647 = vmatprep.subr.bf16.mxu1 %v9008_v9  ;;  %6606 = vmatprep.subr.bf16.mxu0 %v9014_v26  ;;  %v5705_v26 = vld [vmem:[#allocation17 + $0x2] sm:$0x3] }
0x1df8   :  { %v5757_v37 = vrot.slane %v5705_v26, %v11332_v30 }
0x1dfa   :  { %6648 = vmatpush1.bf16.msra.mxu1 %v9007_v19  ;;  %6607 = vmatpush1.bf16.msra.mxu0 %v9013_v24  ;;  %v5742_v24 = vrot.slane %v5703_v34, %v11332_v30  ;;  %v5813_v34 = vld [vmem:[#allocation19 + $0x550] sm:$0xff] }
0x1dfb   :  { %6649 = vmatprep.subr.bf16.mxu1 %v9016_v59  ;;  %6608 = vmatprep.subr.bf16.mxu0 %v9022_v40  ;;  %v5761_v59 = vrot.slane %v5705_v26, %v11329_v29  ;;  %v5818_v26 = vld [vmem:[#allocation19 + $0x578] sm:$0xff] }
0x1dfe   :  { %6650 = vmatpush1.bf16.msra.mxu1 %v9015_v53  ;;  %6609 = vmatpush1.bf16.msra.mxu0 %v9021_v27 }
0x1dff   :  { %6651 = vmatprep.subr.bf16.mxu1 %v9024_v15  ;;  %6610 = vmatprep.subr.bf16.mxu0 %v9030_v16  ;;  %v10350_v9 = vpop.eup %10349  ;;  %v5781_v15 = vld [vmem:[#allocation19 + $0x450] sm:$0xff] }
0x1e00   :  { %v5734_v52 = vmul.f32 %v10350_v9, %v11977_v33  ;;  %v5735_v20 = vmul.f32 %v10350_v9, %v11980_v44  ;;  %v5785_v16 = vld [vmem:[#allocation19 + $0x470] sm:$0xff]  ;;  %v8956_v9 = vcombine.high %v5806_v5, %v5810_v14 }
0x1e02   :  { %6652 = vmatpush1.bf16.msra.mxu1 %v9023_v8  ;;  %6611 = vmatpush1.bf16.msra.mxu0 %v9029_v61  ;;  %v5750_v27 = vmul.f32 %v5746_v58, %v5735_v20  ;;  %v5749_v40 = vmul.f32 %v5742_v24, %v5734_v52  ;;  %v5794_v61 = vld [vmem:[#allocation19 + $0x4b8] sm:$0xff]  ;;  %v5817_v52 = vld [vmem:[#allocation19 + $0x570] sm:$0xff] }
0x1e03   :  { %6653 = vmatprep.subr.bf16.mxu1 %v9032_v12  ;;  %6612 = vmatprep.subr.bf16.mxu0 %v9038_v35  ;;  %v8931_v35 = vcombine.low %v5782_v47, %v5786_v48  ;;  %v5814_v20 = vld [vmem:[#allocation19 + $0x558] sm:$0xff] }
0x1e04   :  { %v5765_v41 = vadd.f32 %v5761_v59, %v5750_v27  ;;  %v5764_v50 = vadd.f32 %v5757_v37, %v5749_v40  ;;  %v5826_v27 = vld [vmem:[#allocation19 + $0x5b8] sm:$0xff]  ;;  %v8961_v40 = vcombine.low %v5813_v34, %v5817_v52 }
0x1e06   :  { %6654 = vmatpush1.bf16.msra.mxu1 %v9031_v63  ;;  %6613 = vmatpush1.bf16.msra.mxu0 %v9037_v49  ;;  %v8929_v63 = vcombine.low %v5781_v15, %v5785_v16  ;;  %v5798_v49 = vld [vmem:[#allocation19 + $0x4d8] sm:$0xff] }
0x1e07   :  { %6655 = vmatprep.subr.bf16.mxu1 %v9040_v36 }
0x1e5e   :  { %v5711_v18 = vpop.xlane.xlu1 %5710 }
0x1e5f   :  { %v5713_v42 = vmul.f32 0.00390625, %v5711_v18  ;;  %v8921_v18 = vcombine.low %v5773_v1, %v5777_v6 }
0x1e61   :  { %v12015_v11 = vsub.f32 %v12007_v2, %v5713_v42  ;;  %v12018_v13 = vsub.f32 %v12010_v17, %v5713_v42  ;;  %v5778_v42 = vld [vmem:[#allocation19 + $0x438] sm:$0xff] }
0x1e62   :  { %v8924_v0 = vcombine.high %v5774_v57, %v5778_v42 }
0x1e63   :  { %v5720_v51 = vmul.f32 %v12015_v11, %v12015_v11  ;;  %v5721_v60 = vmul.f32 %v12018_v13, %v12018_v13 }
0x1e65   :  { %v5725_v43 = vadd.f32 %v5721_v60, %v5720_v51  ;;  %v9039_v51 = vcombine.low %v5892_v7, %v5896_v56  ;;  %v8922_v60 = vcombine.high %v5773_v1, %v5777_v6  ;;  %v5793_v7 = vld [vmem:[#allocation19 + $0x4b0] sm:$0xff]  ;;  %v5790_v56 = vld [vmem:[#allocation19 + $0x498] sm:$0xff] }
0x1e66   :  { %v8938_v36 = vcombine.high %v5789_v4, %v5793_v7  ;;  %v8940_v1 = vcombine.high %v5790_v56, %v5794_v61  ;;  %v5797_v6 = vld [vmem:[#allocation19 + $0x4d0] sm:$0xff] }
0x1e67   :  { %5726 = vadd.xlane.f32.xlu1 %v5725_v43  ;;  %v8923_v43 = vcombine.low %v5774_v57, %v5778_v42  ;;  %6656 = vmatpush1.bf16.msra.mxu1 %v9039_v51  ;;  %v5801_v57 = vld [vmem:[#allocation19 + $0x4f0] sm:$0xff]  ;;  %v5802_v42 = vld [vmem:[#allocation19 + $0x4f8] sm:$0xff]  ;;  %v8937_v51 = vcombine.low %v5789_v4, %v5793_v7 }
0x1e68   :  { %6668 = vmatprep.subr.bf16.mxu0 %v8922_v60  ;;  %6711 = vmatprep.subr.bf16.mxu1 %v8924_v0  ;;  %v8939_v60 = vcombine.low %v5790_v56, %v5794_v61  ;;  %v5805_v0 = vld [vmem:[#allocation19 + $0x510] sm:$0xff]  ;;  %v5842_v7 = vld [vmem:[#allocation19 + $0x638] sm:$0xff] }
0x1e69   :  { %v5837_v4 = vld [vmem:[#allocation19 + $0x610] sm:$0xff] }
0x1ef4   :  { %v5727_v31 = vpop.xlane.xlu1 %5726 }
0x1ef5   :  { %v5729_v25 = vmul.f32 0.00390625, %v5727_v31  ;;  %v8945_v31 = vcombine.low %v5797_v6, %v5801_v57 }
0x1ef7   :  { %v5731_v19 = vadd.f32 1e-05, %v5729_v25  ;;  %v8947_v25 = vcombine.low %v5798_v49, %v5802_v42 }
0x1ef9   :  { %10351 = vrsqrt.f32 %v5731_v19  ;;  %v8954_v19 = vcombine.high %v5805_v0, %v5809_v3 }
0x1f03   :  { %v10352_v53 = vpop.eup %10351 }
0x1f04   :  { %v5736_v62 = vmul.f32 %v10352_v53, %v12015_v11  ;;  %v5737_v10 = vmul.f32 %v10352_v53, %v12018_v13  ;;  %v8930_v11 = vcombine.high %v5781_v15, %v5785_v16  ;;  %v8932_v13 = vcombine.high %v5782_v47, %v5786_v48  ;;  %v5834_v15 = vld [vmem:[#allocation19 + $0x5f8] sm:$0xff] }
0x1f05   :  { %v8962_v53 = vcombine.high %v5813_v34, %v5817_v52  ;;  %v5862_v34 = vld [vmem:[#allocation19 + $0x6d8] sm:$0xff] }
0x1f06   :  { %v5752_v39 = vmul.f32 %v5746_v58, %v5737_v10  ;;  %v5751_v33 = vmul.f32 %v5742_v24, %v5736_v62  ;;  %v8953_v58 = vcombine.low %v5805_v0, %v5809_v3  ;;  %v8955_v24 = vcombine.low %v5806_v5, %v5810_v14  ;;  %v5825_v62 = vld [vmem:[#allocation19 + $0x5b0] sm:$0xff]  ;;  %v5822_v10 = vld [vmem:[#allocation19 + $0x598] sm:$0xff] }
0x1f07   :  { %v8971_v47 = vcombine.low %v5822_v10, %v5826_v27  ;;  %v5854_v0 = vld [vmem:[#allocation19 + $0x698] sm:$0xff] }
0x1f08   :  { %v5767_v44 = vadd.f32 %v5761_v59, %v5752_v39  ;;  %v5766_v8 = vadd.f32 %v5757_v37, %v5751_v33  ;;  %v8964_v59 = vcombine.high %v5814_v20, %v5818_v26  ;;  %v5821_v37 = vld [vmem:[#allocation19 + $0x590] sm:$0xff]  ;;  %v8963_v39 = vcombine.low %v5814_v20, %v5818_v26  ;;  %v5858_v3 = vld [vmem:[#allocation19 + $0x6b8] sm:$0xff] }
0x1f09   :  { %v8970_v33 = vcombine.high %v5821_v37, %v5825_v62  ;;  %v8969_v16 = vcombine.low %v5821_v37, %v5825_v62  ;;  %v5866_v52 = vld [vmem:[#allocation19 + $0x6f8] sm:$0xff]  ;;  %v9003_v26 = vcombine.low %v5854_v0, %v5858_v3 }
0x1f0a   :  { %v5769_v12 = vpack.c.bf16 %v5767_v44, %v5765_v41  ;;  %v12032_v46 = vpack.c.bf16 %v5766_v8, %v5764_v50  ;;  %v8972_v41 = vcombine.high %v5822_v10, %v5826_v27  ;;  %v5829_v44 = vld [vmem:[#allocation19 + $0x5d0] sm:$0xff]  ;;  %v5830_v8 = vld [vmem:[#allocation19 + $0x5d8] sm:$0xff]  ;;  %v9011_v27 = vcombine.low %v5862_v34, %v5866_v52 }
0x1f0b   :  { %v5833_v50 = vld [vmem:[#allocation19 + $0x5f0] sm:$0xff]  ;;  %v8979_v61 = vcombine.low %v5830_v8, %v5834_v15  ;;  %v5870_v37 = vld [vmem:[#allocation19 + $0x718] sm:$0xff] }
0x1f0c   :  { %6614 = vmatprep.mubr.bf16.mxu0 %v5769_v12  ;;  %6657 = vmatprep.mubr.bf16.mxu1 %v5769_v12  ;;  %v8978_v48 = vcombine.high %v5829_v44, %v5833_v50  ;;  %v8977_v56 = vcombine.low %v5829_v44, %v5833_v50  ;;  %v5874_v62 = vld [vmem:[#allocation19 + $0x738] sm:$0xff] }
0x1f0d   :  { %6615 = vmatmul.mubr.bf16.vlgmr.msra.gmra.mrb[40].mxu0 %v12032_v46  ;;  %6658 = vmatmul.mubr.bf16.vlgmr.msra.gmra.mrb[100].mxu1 %v12032_v46  ;;  %v5878_v44 = vld [vmem:[#allocation19 + $0x758] sm:$0xff] }
0x1f0e   :  { %6669 = vmatpush1.bf16.msra.mxu0 %v8921_v18  ;;  %6712 = vmatpush1.bf16.msra.mxu1 %v8923_v43  ;;  %v8946_v18 = vcombine.high %v5797_v6, %v5801_v57  ;;  %v8948_v43 = vcombine.high %v5798_v49, %v5802_v42  ;;  %v5846_v6 = vld [vmem:[#allocation19 + $0x658] sm:$0xff] }
0x1f0f   :  { %6700 = vmatprep.mubr.bf16.mxu0 %v5769_v12  ;;  %6743 = vmatprep.mubr.bf16.mxu1 %v5769_v12  ;;  %v8980_v12 = vcombine.high %v5830_v8, %v5834_v15  ;;  %v5850_v57 = vld [vmem:[#allocation19 + $0x678] sm:$0xff]  ;;  %v9019_v15 = vcombine.low %v5870_v37, %v5874_v62 }
0x1f10   :  { %6670 = vmatprep.subr.bf16.mxu0 %v8930_v11  ;;  %6713 = vmatprep.subr.bf16.mxu1 %v8932_v13  ;;  %v5841_v11 = vld [vmem:[#allocation19 + $0x630] sm:$0xff]  ;;  %v5838_v13 = vld [vmem:[#allocation19 + $0x618] sm:$0xff]  ;;  %v8995_v14 = vcombine.low %v5846_v6, %v5850_v57 }
0x1f11   :  { %v8985_v49 = vcombine.low %v5837_v4, %v5841_v11  ;;  %v8987_v42 = vcombine.low %v5838_v13, %v5842_v7  ;;  %v5882_v50 = vld [vmem:[#allocation19 + $0x778] sm:$0xff] }
0x1f12   :  { %6671 = vmatpush1.bf16.msra.mxu0 %v8929_v63  ;;  %6714 = vmatpush1.bf16.msra.mxu1 %v8931_v35  ;;  %v8986_v63 = vcombine.high %v5837_v4, %v5841_v11  ;;  %v8988_v35 = vcombine.high %v5838_v13, %v5842_v7  ;;  %v5886_v4 = vld [vmem:[#allocation19 + $0x798] sm:$0xff]  ;;  %v9027_v7 = vcombine.low %v5878_v44, %v5882_v50 }
0x1f13   :  { %6672 = vmatprep.subr.bf16.mxu0 %v8938_v36  ;;  %6715 = vmatprep.subr.bf16.mxu1 %v8940_v1  ;;  %v5845_v36 = vld [vmem:[#allocation19 + $0x650] sm:$0xff]  ;;  %v5890_v11 = vld [vmem:[#allocation19 + $0x7b8] sm:$0xff] }
0x1f14   :  { %v5849_v1 = vld [vmem:[#allocation19 + $0x670] sm:$0xff] }
0x1f15   :  { %v8993_v5 = vcombine.low %v5845_v36, %v5849_v1 }
0x1f16   :  { %6673 = vmatpush1.bf16.msra.mxu0 %v8937_v51  ;;  %6716 = vmatpush1.bf16.msra.mxu1 %v8939_v60  ;;  %v8994_v51 = vcombine.high %v5845_v36, %v5849_v1  ;;  %v8996_v60 = vcombine.high %v5846_v6, %v5850_v57  ;;  %v5894_v36 = vld [vmem:[#allocation19 + $0x7d8] sm:$0xff]  ;;  %v9035_v57 = vcombine.low %v5886_v4, %v5890_v11 }
0x1f17   :  { %6674 = vmatprep.subr.bf16.mxu0 %v8946_v18  ;;  %6717 = vmatprep.subr.bf16.mxu1 %v8948_v43  ;;  %v5853_v18 = vld [vmem:[#allocation19 + $0x690] sm:$0xff]  ;;  %v5898_v1 = vld [vmem:[#allocation19 + $0x7f8] sm:$0xff] }
0x1f18   :  { %v5857_v43 = vld [vmem:[#allocation19 + $0x6b0] sm:$0xff] }
0x1f19   :  { %v9001_v20 = vcombine.low %v5853_v18, %v5857_v43 }
0x1f1a   :  { %6675 = vmatpush1.bf16.msra.mxu0 %v8945_v31  ;;  %6718 = vmatpush1.bf16.msra.mxu1 %v8947_v25  ;;  %v9002_v31 = vcombine.high %v5853_v18, %v5857_v43  ;;  %v9004_v25 = vcombine.high %v5854_v0, %v5858_v3  ;;  %v10019_v18 = vld [vmem:[#allocation22 + $0x404] ss:$8 sps:$4 sm:$0xff]   ;;  %v10017_v43 = vld [vmem:[#allocation22 + $0x400] ss:$8 sps:$4 sm:$0xff]   ;;  %v10022_v0 = vld [vmem:[#allocation22 + $0x414] ss:$8 sps:$4 sm:$0xff]  }
0x1f1b   :  { %6676 = vmatprep.subr.bf16.mxu0 %v8954_v19  ;;  %6719 = vmatprep.subr.bf16.mxu1 %v8956_v9  ;;  %v5861_v19 = vld [vmem:[#allocation19 + $0x6d0] sm:$0xff]  ;;  %v10020_v3 = vld [vmem:[#allocation22 + $0x410] ss:$8 sps:$4 sm:$0xff]  }
0x1f1c   :  { %v5865_v9 = vld [vmem:[#allocation19 + $0x6f0] sm:$0xff] }
0x1f1d   :  { %v9009_v10 = vcombine.low %v5861_v19, %v5865_v9 }
0x1f1e   :  { %6677 = vmatpush1.bf16.msra.mxu0 %v8953_v58  ;;  %6720 = vmatpush1.bf16.msra.mxu1 %v8955_v24  ;;  %v9010_v58 = vcombine.high %v5861_v19, %v5865_v9  ;;  %v9012_v24 = vcombine.high %v5862_v34, %v5866_v52  ;;  %v10031_v19 = vld [vmem:[#allocation22 + $0x444] ss:$8 sps:$4 sm:$0xff]   ;;  %v10029_v9 = vld [vmem:[#allocation22 + $0x440] ss:$8 sps:$4 sm:$0xff]   ;;  %v10034_v34 = vld [vmem:[#allocation22 + $0x454] ss:$8 sps:$4 sm:$0xff]  }
0x1f1f   :  { %6678 = vmatprep.subr.bf16.mxu0 %v8962_v53  ;;  %6721 = vmatprep.subr.bf16.mxu1 %v8964_v59  ;;  %v5869_v53 = vld [vmem:[#allocation19 + $0x710] sm:$0xff]  ;;  %v10032_v52 = vld [vmem:[#allocation22 + $0x450] ss:$8 sps:$4 sm:$0xff]  }
0x1f20   :  { %v5873_v59 = vld [vmem:[#allocation19 + $0x730] sm:$0xff] }
0x1f21   :  { %v9017_v8 = vcombine.low %v5869_v53, %v5873_v59 }
0x1f22   :  { %6679 = vmatpush1.bf16.msra.mxu0 %v8961_v40  ;;  %6722 = vmatpush1.bf16.msra.mxu1 %v8963_v39  ;;  %v9018_v40 = vcombine.high %v5869_v53, %v5873_v59  ;;  %v9020_v39 = vcombine.high %v5870_v37, %v5874_v62  ;;  %v10041_v53 = vld [vmem:[#allocation22 + $0x480] ss:$8 sps:$4 sm:$0xff]   ;;  %v10046_v59 = vld [vmem:[#allocation22 + $0x494] ss:$8 sps:$4 sm:$0xff]   ;;  %v10044_v37 = vld [vmem:[#allocation22 + $0x490] ss:$8 sps:$4 sm:$0xff]  }
0x1f23   :  { %6680 = vmatprep.subr.bf16.mxu0 %v8970_v33  ;;  %6723 = vmatprep.subr.bf16.mxu1 %v8972_v41  ;;  %v5877_v33 = vld [vmem:[#allocation19 + $0x750] sm:$0xff] }
0x1f24   :  { %v5881_v41 = vld [vmem:[#allocation19 + $0x770] sm:$0xff] }
0x1f25   :  { %v9025_v13 = vcombine.low %v5877_v33, %v5881_v41  ;;  %v10049_v62 = vld [vmem:[#allocation22 + $0x4a4] ss:$8 sps:$4 sm:$0xff]  }
0x1f26   :  { %6681 = vmatpush1.bf16.msra.mxu0 %v8969_v16  ;;  %6724 = vmatpush1.bf16.msra.mxu1 %v8971_v47  ;;  %v9026_v16 = vcombine.high %v5877_v33, %v5881_v41  ;;  %v9028_v47 = vcombine.high %v5878_v44, %v5882_v50  ;;  %v10053_v33 = vld [vmem:[#allocation22 + $0x4c0] ss:$8 sps:$4 sm:$0xff]   ;;  %v10058_v41 = vld [vmem:[#allocation22 + $0x4d4] ss:$8 sps:$4 sm:$0xff]   ;;  %v10056_v44 = vld [vmem:[#allocation22 + $0x4d0] ss:$8 sps:$4 sm:$0xff]  }
0x1f27   :  { %6682 = vmatprep.subr.bf16.mxu0 %v8978_v48  ;;  %6725 = vmatprep.subr.bf16.mxu1 %v8980_v12  ;;  %v5885_v48 = vld [vmem:[#allocation19 + $0x790] sm:$0xff] }
0x1f28   :  { %v5889_v12 = vld [vmem:[#allocation19 + $0x7b0] sm:$0xff] }
0x1f29   :  { %v9033_v6 = vcombine.low %v5885_v48, %v5889_v12  ;;  %v10061_v50 = vld [vmem:[#allocation22 + $0x4e4] ss:$8 sps:$4 sm:$0xff]  }
0x1f2a   :  { %6683 = vmatpush1.bf16.msra.mxu0 %v8977_v56  ;;  %6726 = vmatpush1.bf16.msra.mxu1 %v8979_v61  ;;  %v9034_v56 = vcombine.high %v5885_v48, %v5889_v12  ;;  %v9036_v61 = vcombine.high %v5886_v4, %v5890_v11  ;;  %v12038_v48 = vld [vmem:[#allocation20 + $0x8] sm:$0xff] }
0x1f2b   :  { %6684 = vmatprep.subr.bf16.mxu0 %v8986_v63  ;;  %6727 = vmatprep.subr.bf16.mxu1 %v8988_v35  ;;  %v5893_v63 = vld [vmem:[#allocation19 + $0x7d0] sm:$0xff]  ;;  %v5905_v12 = vrot.slane %v12038_v48, %v11332_v30  ;;  %v5913_v4 = vrot.slane %v12038_v48, %v11372_v54  ;;  %v5909_v11 = vrot.slane %v12038_v48, %v11329_v29 }
0x1f2c   :  { %v5897_v35 = vld [vmem:[#allocation19 + $0x7f0] sm:$0xff] }
0x1f2e   :  { %6685 = vmatpush1.bf16.msra.mxu0 %v8985_v49  ;;  %6728 = vmatpush1.bf16.msra.mxu1 %v8987_v42  ;;  %v9042_v49 = vcombine.high %v5893_v63, %v5897_v35  ;;  %v9044_v42 = vcombine.high %v5894_v36, %v5898_v1 }
0x1f2f   :  { %6686 = vmatprep.subr.bf16.mxu0 %v8994_v51  ;;  %6729 = vmatprep.subr.bf16.mxu1 %v8996_v60  ;;  %v9041_v51 = vcombine.low %v5893_v63, %v5897_v35  ;;  %v9043_v60 = vcombine.low %v5894_v36, %v5898_v1 }
0x1f32   :  { %6687 = vmatpush1.bf16.msra.mxu0 %v8993_v5  ;;  %6730 = vmatpush1.bf16.msra.mxu1 %v8995_v14  ;;  %v10025_v5 = vld [vmem:[#allocation22 + $0x424] ss:$8 sps:$4 sm:$0xff]   ;;  %v10023_v14 = vld [vmem:[#allocation22 + $0x420] ss:$8 sps:$4 sm:$0xff]  }
0x1f33   :  { %6688 = vmatprep.subr.bf16.mxu0 %v9002_v31  ;;  %6731 = vmatprep.subr.bf16.mxu1 %v9004_v25  ;;  %v10028_v31 = vld [vmem:[#allocation22 + $0x434] ss:$8 sps:$4 sm:$0xff]   ;;  %v10026_v25 = vld [vmem:[#allocation22 + $0x430] ss:$8 sps:$4 sm:$0xff]  }
0x1f36   :  { %6689 = vmatpush1.bf16.msra.mxu0 %v9001_v20  ;;  %6732 = vmatpush1.bf16.msra.mxu1 %v9003_v26  ;;  %v10035_v20 = vld [vmem:[#allocation22 + $0x460] ss:$8 sps:$4 sm:$0xff]   ;;  %v10040_v26 = vld [vmem:[#allocation22 + $0x474] ss:$8 sps:$4 sm:$0xff]  }
0x1f37   :  { %6690 = vmatprep.subr.bf16.mxu0 %v9010_v58  ;;  %6733 = vmatprep.subr.bf16.mxu1 %v9012_v24  ;;  %v10038_v58 = vld [vmem:[#allocation22 + $0x470] ss:$8 sps:$4 sm:$0xff]   ;;  %v10043_v24 = vld [vmem:[#allocation22 + $0x484] ss:$8 sps:$4 sm:$0xff]  }
0x1f3a   :  { %6691 = vmatpush1.bf16.msra.mxu0 %v9009_v10  ;;  %6734 = vmatpush1.bf16.msra.mxu1 %v9011_v27  ;;  %v10047_v10 = vld [vmem:[#allocation22 + $0x4a0] ss:$8 sps:$4 sm:$0xff]   ;;  %v10052_v27 = vld [vmem:[#allocation22 + $0x4b4] ss:$8 sps:$4 sm:$0xff]  }
0x1f3b   :  { %6692 = vmatprep.subr.bf16.mxu0 %v9018_v40  ;;  %6735 = vmatprep.subr.bf16.mxu1 %v9020_v39  ;;  %v10050_v40 = vld [vmem:[#allocation22 + $0x4b0] ss:$8 sps:$4 sm:$0xff]   ;;  %v10055_v39 = vld [vmem:[#allocation22 + $0x4c4] ss:$8 sps:$4 sm:$0xff]  }
0x1f3e   :  { %6693 = vmatpush1.bf16.msra.mxu0 %v9017_v8  ;;  %6736 = vmatpush1.bf16.msra.mxu1 %v9019_v15  ;;  %v10059_v8 = vld [vmem:[#allocation22 + $0x4e0] ss:$8 sps:$4 sm:$0xff]   ;;  %v10064_v15 = vld [vmem:[#allocation22 + $0x4f4] ss:$8 sps:$4 sm:$0xff]  }
0x1f3f   :  { %6694 = vmatprep.subr.bf16.mxu0 %v9026_v16  ;;  %6737 = vmatprep.subr.bf16.mxu1 %v9028_v47  ;;  %v10062_v16 = vld [vmem:[#allocation22 + $0x4f0] ss:$8 sps:$4 sm:$0xff]   ;;  %v10067_v47 = vld [vmem:[#allocation22 + $0x504] ss:$8 sps:$4 sm:$0xff]  }
0x1f42   :  { %6695 = vmatpush1.bf16.msra.mxu0 %v9025_v13  ;;  %6738 = vmatpush1.bf16.msra.mxu1 %v9027_v7  ;;  %v5917_v13 = vrot.slane %v12038_v48, %v11375_v55 }
0x1f43   :  { %6696 = vmatprep.subr.bf16.mxu0 %v9034_v56  ;;  %6739 = vmatprep.subr.bf16.mxu1 %v9036_v61 }
0x1f46   :  { %6697 = vmatpush1.bf16.msra.mxu0 %v9033_v6  ;;  %6740 = vmatpush1.bf16.msra.mxu1 %v9035_v57 }
0x1f47   :  { %6698 = vmatprep.subr.bf16.mxu0 %v9042_v49  ;;  %6741 = vmatprep.subr.bf16.mxu1 %v9044_v42 }
0x1f4a   :  { %6699 = vmatpush1.bf16.msra.mxu0 %v9041_v51  ;;  %6742 = vmatpush1.bf16.msra.mxu1 %v9043_v60 }
0x1f4b   :  { %7688 = vmatprep.subr.bf16.mxu0 %v10019_v18 }
0x1f4d   :  { %6701 = vmatmul.mubr.bf16.vlgmr.msra.gmra.mrb[44].mxu0 %v12032_v46  ;;  %6744 = vmatmul.mubr.bf16.vlgmr.msra.gmra.mrb[104].mxu1 %v12032_v46  ;;  %v10037_v46 = vld [vmem:[#allocation22 + $0x464] ss:$8 sps:$4 sm:$0xff]  }
0x1f4e   :  { %7689 = vmatpush1.bf16.msra.mxu0 %v10017_v43 }
0x1f4f   :  { %7690 = vmatprep.subr.bf16.mxu0 %v10022_v0 }
0x1f52   :  { %7691 = vmatpush1.bf16.msra.mxu0 %v10020_v3 }
0x1f53   :  { %7692 = vmatprep.subr.bf16.mxu0 %v10025_v5 }
0x1f56   :  { %7693 = vmatpush1.bf16.msra.mxu0 %v10023_v14 }
0x1f57   :  { %7694 = vmatprep.subr.bf16.mxu0 %v10028_v31 }
0x1f5a   :  { %7695 = vmatpush1.bf16.msra.mxu0 %v10026_v25 }
0x1f5b   :  { %7696 = vmatprep.subr.bf16.mxu0 %v10031_v19 }
0x1f5e   :  { %7697 = vmatpush1.bf16.msra.mxu0 %v10029_v9 }
0x1f5f   :  { %7698 = vmatprep.subr.bf16.mxu0 %v10034_v34 }
0x1f62   :  { %7699 = vmatpush1.bf16.msra.mxu0 %v10032_v52 }
0x1f63   :  { %7700 = vmatprep.subr.bf16.mxu0 %v10037_v46 }
0x1f66   :  { %7701 = vmatpush1.bf16.msra.mxu0 %v10035_v20 }
0x1f67   :  { %7702 = vmatprep.subr.bf16.mxu0 %v10040_v26 }
0x1f6a   :  { %7703 = vmatpush1.bf16.msra.mxu0 %v10038_v58 }
0x1f6b   :  { %7704 = vmatprep.subr.bf16.mxu0 %v10043_v24 }
0x1f6e   :  { %7705 = vmatpush1.bf16.msra.mxu0 %v10041_v53 }
0x1f6f   :  { %7706 = vmatprep.subr.bf16.mxu0 %v10046_v59 }
0x1f72   :  { %7707 = vmatpush1.bf16.msra.mxu0 %v10044_v37 }
0x1f73   :  { %7708 = vmatprep.subr.bf16.mxu0 %v10049_v62 }
0x1f76   :  { %7709 = vmatpush1.bf16.msra.mxu0 %v10047_v10 }
0x1f77   :  { %7710 = vmatprep.subr.bf16.mxu0 %v10052_v27 }
0x1f7a   :  { %7711 = vmatpush1.bf16.msra.mxu0 %v10050_v40 }
0x1f7b   :  { %7712 = vmatprep.subr.bf16.mxu0 %v10055_v39 }
0x1f7e   :  { %7713 = vmatpush1.bf16.msra.mxu0 %v10053_v33 }
0x1f7f   :  { %7714 = vmatprep.subr.bf16.mxu0 %v10058_v41 }
0x1f82   :  { %7715 = vmatpush1.bf16.msra.mxu0 %v10056_v44 }
0x1f83   :  { %7716 = vmatprep.subr.bf16.mxu0 %v10061_v50 }
0x1f86   :  { %7717 = vmatpush1.bf16.msra.mxu0 %v10059_v8 }
0x1f87   :  { %7718 = vmatprep.subr.bf16.mxu0 %v10064_v15 }
0x1f8a   :  { %7719 = vmatpush1.bf16.msra.mxu0 %v10062_v16 }
0x1f8b   :  { %7731 = vmatprep.subr.bf16.mxu0 %v10067_v47 }
0x1fe0   :  { %v6616_v7 = vpop.f32.mrb[40].mxu0  ;;  %v6659_v56 = vpop.f32.mrb[100].mxu1 }
0x1fe1   :  { %v12048_v61 = vadd.f32 %v6616_v7, %v5905_v12  ;;  %v12050_v63 = vadd.f32 %v6659_v56, %v5913_v4  ;;  %v6618_v35 = vpop.f32.mrb[41].mxu0  ;;  %v6661_v36 = vpop.f32.mrb[101].mxu1 }
0x1fe2   :  { %v12052_v1 = vadd.f32 %v6618_v35, %v5909_v11  ;;  %v12054_v6 = vadd.f32 %v6661_v36, %v5917_v13  ;;  %v6620_v57 = vpop.f32.mrb[42].mxu0  ;;  %v6663_v54 = vpop.f32.mrb[102].mxu1 }
0x1fe3   :  { %v6770_v49 = vmul.f32 0.044715, %v12048_v61  ;;  %v6772_v42 = vmul.f32 0.044715, %v12050_v63  ;;  %v6621_v51 = vadd.f32 %v6620_v57, %v5905_v12  ;;  %v6664_v55 = vadd.f32 %v6663_v54, %v5913_v4  ;;  %v6622_v60 = vpop.f32.mrb[43].mxu0  ;;  %v6665_v18 = vpop.f32.mrb[103].mxu1 }
0x1fe4   :  { %v6771_v43 = vmul.f32 0.044715, %v12052_v1  ;;  %v6773_v0 = vmul.f32 0.044715, %v12054_v6  ;;  %v12060_v3 = vadd.f32 %v6622_v60, %v5909_v11  ;;  %v12062_v5 = vadd.f32 %v6665_v18, %v5917_v13 }
0x1fe5   :  { %v6786_v14 = vmul.f32 %v6770_v49, %v12048_v61  ;;  %v6788_v31 = vmul.f32 %v6772_v42, %v12050_v63  ;;  %v6778_v25 = vmul.f32 0.044715, %v6621_v51  ;;  %v6780_v19 = vmul.f32 0.044715, %v6664_v55 }
0x1fe6   :  { %v6787_v9 = vmul.f32 %v6771_v43, %v12052_v1  ;;  %v6789_v34 = vmul.f32 %v6773_v0, %v12054_v6  ;;  %v6779_v52 = vmul.f32 0.044715, %v12060_v3  ;;  %v6781_v46 = vmul.f32 0.044715, %v12062_v5 }
0x1fe7   :  { %v6802_v20 = vmul.f32 %v6786_v14, %v12048_v61  ;;  %v6804_v26 = vmul.f32 %v6788_v31, %v12050_v63  ;;  %v6794_v58 = vmul.f32 %v6778_v25, %v6621_v51  ;;  %v6796_v24 = vmul.f32 %v6780_v19, %v6664_v55 }
0x1fe8   :  { %v6803_v53 = vmul.f32 %v6787_v9, %v12052_v1  ;;  %v6795_v59 = vmul.f32 %v6779_v52, %v12060_v3  ;;  %v6797_v37 = vmul.f32 %v6781_v46, %v12062_v5  ;;  %v6805_v39 = vmul.f32 %v6789_v34, %v12054_v6 }
0x1fe9   :  { %v6818_v62 = vadd.f32 %v6802_v20, %v12048_v61  ;;  %v6820_v10 = vadd.f32 %v6804_v26, %v12050_v63  ;;  %v6810_v27 = vmul.f32 %v6794_v58, %v6621_v51  ;;  %v6812_v40 = vmul.f32 %v6796_v24, %v6664_v55 }
0x1fea   :  { %v6811_v33 = vmul.f32 %v6795_v59, %v12060_v3  ;;  %v6813_v41 = vmul.f32 %v6797_v37, %v12062_v5  ;;  %v6819_v16 = vadd.f32 %v6803_v53, %v12052_v1  ;;  %v6821_v7 = vadd.f32 %v6805_v39, %v12054_v6 }
0x1feb   :  { %v6834_v44 = vmul.f32 0.7978846, %v6818_v62  ;;  %v6836_v50 = vmul.f32 0.7978846, %v6820_v10  ;;  %v6826_v8 = vadd.f32 %v6810_v27, %v6621_v51  ;;  %v6828_v15 = vadd.f32 %v6812_v40, %v6664_v55 }
0x1fec   :  { %v6827_v47 = vadd.f32 %v6811_v33, %v12060_v3  ;;  %v6835_v11 = vmul.f32 0.7978846, %v6819_v16  ;;  %v6829_v56 = vadd.f32 %v6813_v41, %v12062_v5  ;;  %v6837_v35 = vmul.f32 0.7978846, %v6821_v7  ;;  %v10074_v16 = vld [vmem:[#allocation22 + $0x530] ss:$8 sps:$4 sm:$0xff]  }
0x1fed   :  { %10353 = vtanh.f32 %v6834_v44  ;;  %v6842_v12 = vmul.f32 0.7978846, %v6826_v8  ;;  %v6844_v4 = vmul.f32 0.7978846, %v6828_v15  ;;  %v6754_v43 = vmul.f32 0.5, %v12048_v61 }
0x1fee   :  { %10355 = vtanh.f32 %v6836_v50  ;;  %v6843_v13 = vmul.f32 0.7978846, %v6827_v47  ;;  %v6845_v36 = vmul.f32 0.7978846, %v6829_v56  ;;  %v6762_v0 = vmul.f32 0.5, %v6621_v51 }
0x1fef   :  { %10357 = vtanh.f32 %v6842_v12  ;;  %v6756_v25 = vmul.f32 0.5, %v12050_v63  ;;  %v6764_v19 = vmul.f32 0.5, %v6664_v55  ;;  %v6755_v52 = vmul.f32 0.5, %v12052_v1  ;;  %v10070_v44 = vld [vmem:[#allocation22 + $0x514] ss:$8 sps:$4 sm:$0xff]  }
0x1ff0   :  { %10359 = vtanh.f32 %v6844_v4  ;;  %v6763_v24 = vmul.f32 0.5, %v12060_v3  ;;  %v6757_v63 = vmul.f32 0.5, %v12054_v6  ;;  %v6765_v55 = vmul.f32 0.5, %v12062_v5  ;;  %v10065_v3 = vld [vmem:[#allocation22 + $0x500] ss:$8 sps:$4 sm:$0xff]  }
0x1ff1   :  { %10361 = vtanh.f32 %v6835_v11  ;;  %v10068_v6 = vld [vmem:[#allocation22 + $0x510] ss:$8 sps:$4 sm:$0xff]   ;;  %v10073_v5 = vld [vmem:[#allocation22 + $0x524] ss:$8 sps:$4 sm:$0xff]   ;;  %v10071_v8 = vld [vmem:[#allocation22 + $0x520] ss:$8 sps:$4 sm:$0xff]  }
0x1ff2   :  { %10363 = vtanh.f32 %v6843_v13  ;;  %v10076_v15 = vld [vmem:[#allocation22 + $0x534] ss:$8 sps:$4 sm:$0xff]   ;;  %v10079_v47 = vld [vmem:[#allocation22 + $0x544] ss:$8 sps:$4 sm:$0xff]   ;;  %v10077_v12 = vld [vmem:[#allocation22 + $0x540] ss:$8 sps:$4 sm:$0xff]  }
0x1ff3   :  { %10365 = vtanh.f32 %v6837_v35  ;;  %v10082_v4 = vld [vmem:[#allocation22 + $0x554] ss:$8 sps:$4 sm:$0xff]   ;;  %v10080_v11 = vld [vmem:[#allocation22 + $0x550] ss:$8 sps:$4 sm:$0xff]   ;;  %v10085_v13 = vld [vmem:[#allocation22 + $0x564] ss:$8 sps:$4 sm:$0xff]  }
0x1ff4   :  { %10367 = vtanh.f32 %v6845_v36  ;;  %v10083_v7 = vld [vmem:[#allocation22 + $0x560] ss:$8 sps:$4 sm:$0xff]   ;;  %v10088_v56 = vld [vmem:[#allocation22 + $0x574] ss:$8 sps:$4 sm:$0xff]   ;;  %v10086_v35 = vld [vmem:[#allocation22 + $0x570] ss:$8 sps:$4 sm:$0xff]   ;;  %v5921_v36 = vrot.slane %v12038_v48, %v11354_v21 }
0x1ff7   :  { %v10354_v57 = vpop.eup %10353 }
0x1ff8   :  { %v10356_v54 = vpop.eup %10355  ;;  %v6866_v49 = vadd.f32 1.0, %v10354_v57  ;;  %v5929_v57 = vrot.slane %v12038_v48, %v2157_v32 }
0x1ff9   :  { %v10358_v42 = vpop.eup %10357  ;;  %v6868_v60 = vadd.f32 1.0, %v10356_v54  ;;  %v5925_v54 = vrot.slane %v12038_v48, %v11357_v23 }
0x1ffa   :  { %v10360_v18 = vpop.eup %10359  ;;  %v6874_v14 = vadd.f32 1.0, %v10358_v42  ;;  %v6882_v20 = vmul.f32 %v6866_v49, %v6754_v43  ;;  %v5933_v49 = vrot.slane %v12038_v48, %v2161_v38  ;;  %v10091_v42 = vld [vmem:[#allocation22 + $0x584] ss:$8 sps:$4 sm:$0xff]  }
0x1ffb   :  { %v10362_v31 = vpop.eup %10361  ;;  %v6876_v9 = vadd.f32 1.0, %v10360_v18  ;;  %v12088_v59 = vmul.f32 %v6868_v60, %v6756_v25 }
0x1ffc   :  { %v10364_v34 = vpop.eup %10363  ;;  %v6867_v46 = vadd.f32 1.0, %v10362_v31  ;;  %v6890_v26 = vmul.f32 %v6874_v14, %v6762_v0  ;;  %v10089_v31 = vld [vmem:[#allocation22 + $0x580] ss:$8 sps:$4 sm:$0xff]  }
0x1ffd   :  { %v10366_v58 = vpop.eup %10365  ;;  %v6875_v53 = vadd.f32 1.0, %v10364_v34  ;;  %v12090_v61 = vmul.f32 %v6876_v9, %v6764_v19 }
0x1ffe   :  { %v10368_v51 = vpop.eup %10367  ;;  %v6898_v37 = vpack.c.bf16 %v6890_v26, %v6882_v20  ;;  %v6869_v62 = vadd.f32 1.0, %v10366_v58  ;;  %v6883_v10 = vmul.f32 %v6867_v46, %v6755_v52 }
0x1fff   :  { %v6891_v1 = vmul.f32 %v6875_v53, %v6763_v24  ;;  %v6877_v27 = vadd.f32 1.0, %v10368_v51  ;;  %v6900_v40 = vpack.c.bf16 %v12090_v61, %v12088_v59  ;;  %v10128_v59 = vld [vmem:[#allocation22 + $0x650] ss:$8 sps:$4 sm:$0xff]   ;;  %v10133_v61 = vld [vmem:[#allocation22 + $0x664] ss:$8 sps:$4 sm:$0xff]  }
0x2000   :  { %v6885_v33 = vmul.f32 %v6869_v62, %v6757_v63 }
0x2001   :  { %v6899_v39 = vpack.c.bf16 %v6891_v1, %v6883_v10  ;;  %v6893_v41 = vmul.f32 %v6877_v27, %v6765_v55  ;;  %v10092_v55 = vld [vmem:[#allocation22 + $0x590] ss:$8 sps:$4 sm:$0xff]  }
0x2003   :  { %7720 = vmatprep.mubr.bf16.mxu0 %v6899_v39  ;;  %v6901_v50 = vpack.c.bf16 %v6893_v41, %v6885_v33  ;;  %v10097_v39 = vld [vmem:[#allocation22 + $0x5a4] ss:$8 sps:$4 sm:$0xff]  }
0x2004   :  { %7721 = vmatmul.mubr.bf16.vlgmr.msra.gmra.mrb[48].mxu0 %v6898_v37 }
0x2005   :  { %7732 = vmatpush1.bf16.msra.mxu0 %v10065_v3  ;;  %7763 = vmatprep.mubr.bf16.mxu0 %v6901_v50 }
0x2006   :  { %7733 = vmatprep.subr.bf16.mxu0 %v10070_v44 }
0x2009   :  { %7734 = vmatpush1.bf16.msra.mxu0 %v10068_v6 }
0x200a   :  { %7735 = vmatprep.subr.bf16.mxu0 %v10073_v5 }
0x200d   :  { %7736 = vmatpush1.bf16.msra.mxu0 %v10071_v8 }
0x200e   :  { %7737 = vmatprep.subr.bf16.mxu0 %v10076_v15 }
0x2011   :  { %7738 = vmatpush1.bf16.msra.mxu0 %v10074_v16 }
0x2012   :  { %7739 = vmatprep.subr.bf16.mxu0 %v10079_v47 }
0x2015   :  { %7740 = vmatpush1.bf16.msra.mxu0 %v10077_v12  ;;  %v10095_v12 = vld [vmem:[#allocation22 + $0x5a0] ss:$8 sps:$4 sm:$0xff]  }
0x2016   :  { %7741 = vmatprep.subr.bf16.mxu0 %v10082_v4 }
0x2019   :  { %7742 = vmatpush1.bf16.msra.mxu0 %v10080_v11 }
0x201a   :  { %7743 = vmatprep.subr.bf16.mxu0 %v10085_v13 }
0x201d   :  { %7744 = vmatpush1.bf16.msra.mxu0 %v10083_v7  ;;  %v10100_v7 = vld [vmem:[#allocation22 + $0x5b4] ss:$8 sps:$4 sm:$0xff]  }
0x201e   :  { %7745 = vmatprep.subr.bf16.mxu0 %v10088_v56 }
0x2020   :  { %v6702_v60 = vpop.f32.mrb[44].mxu0  ;;  %v6745_v18 = vpop.f32.mrb[104].mxu1 }
0x2021   :  { %7746 = vmatpush1.bf16.msra.mxu0 %v10086_v35  ;;  %v12106_v43 = vadd.f32 %v6702_v60, %v5921_v36  ;;  %v12108_v0 = vadd.f32 %v6745_v18, %v5929_v57  ;;  %v6704_v21 = vpop.f32.mrb[45].mxu0  ;;  %v6747_v14 = vpop.f32.mrb[105].mxu1  ;;  %v10098_v18 = vld [vmem:[#allocation22 + $0x5b0] ss:$8 sps:$4 sm:$0xff]  }
0x2022   :  { %v12110_v32 = vadd.f32 %v6704_v21, %v5925_v54  ;;  %v12112_v25 = vadd.f32 %v6747_v14, %v5933_v49  ;;  %v6706_v23 = vpop.f32.mrb[46].mxu0  ;;  %v6749_v19 = vpop.f32.mrb[106].mxu1  ;;  %7747 = vmatprep.subr.bf16.mxu0 %v10091_v42  ;;  %v10103_v21 = vld [vmem:[#allocation22 + $0x5c4] ss:$8 sps:$4 sm:$0xff]  }
0x2023   :  { %v6774_v38 = vmul.f32 0.044715, %v12106_v43  ;;  %v6776_v48 = vmul.f32 0.044715, %v12108_v0  ;;  %v12116_v9 = vadd.f32 %v6706_v23, %v5921_v36  ;;  %v12118_v34 = vadd.f32 %v6749_v19, %v5929_v57  ;;  %v6708_v52 = vpop.f32.mrb[47].mxu0  ;;  %v6751_v46 = vpop.f32.mrb[107].mxu1 }
0x2024   :  { %v6775_v20 = vmul.f32 0.044715, %v12110_v32  ;;  %v6777_v26 = vmul.f32 0.044715, %v12112_v25  ;;  %v12122_v58 = vadd.f32 %v6708_v52, %v5925_v54  ;;  %v12124_v24 = vadd.f32 %v6751_v46, %v5933_v49  ;;  %v10106_v52 = vld [vmem:[#allocation22 + $0x5d4] ss:$8 sps:$4 sm:$0xff]  }
0x2025   :  { %v6790_v53 = vmul.f32 %v6774_v38, %v12106_v43  ;;  %v6792_v51 = vmul.f32 %v6776_v48, %v12108_v0  ;;  %v6782_v37 = vmul.f32 0.044715, %v12116_v9  ;;  %v6784_v63 = vmul.f32 0.044715, %v12118_v34  ;;  %7748 = vmatpush1.bf16.msra.mxu0 %v10089_v31  ;;  %v10104_v46 = vld [vmem:[#allocation22 + $0x5d0] ss:$8 sps:$4 sm:$0xff]  }
0x2026   :  { %v6791_v62 = vmul.f32 %v6775_v20, %v12110_v32  ;;  %v6793_v10 = vmul.f32 %v6777_v26, %v12112_v25  ;;  %v6783_v1 = vmul.f32 0.044715, %v12122_v58  ;;  %v6785_v27 = vmul.f32 0.044715, %v12124_v24  ;;  %7749 = vmatprep.subr.bf16.mxu0 %v10094_v28  ;;  %v10101_v28 = vld [vmem:[#allocation22 + $0x5c0] ss:$8 sps:$4 sm:$0xff]  }
0x2027   :  { %v6806_v3 = vmul.f32 %v6790_v53, %v12106_v43  ;;  %v6808_v33 = vmul.f32 %v6792_v51, %v12108_v0  ;;  %v6798_v41 = vmul.f32 %v6782_v37, %v12116_v9  ;;  %v6800_v44 = vmul.f32 %v6784_v63, %v12118_v34  ;;  %v10109_v20 = vld [vmem:[#allocation22 + $0x5e4] ss:$8 sps:$4 sm:$0xff]   ;;  %v10107_v63 = vld [vmem:[#allocation22 + $0x5e0] ss:$8 sps:$4 sm:$0xff]  }
0x2028   :  { %v6807_v50 = vmul.f32 %v6791_v62, %v12110_v32  ;;  %v6799_v6 = vmul.f32 %v6783_v1, %v12122_v58  ;;  %v6801_v5 = vmul.f32 %v6785_v27, %v12124_v24  ;;  %v6809_v4 = vmul.f32 %v6793_v10, %v12112_v25  ;;  %v10112_v10 = vld [vmem:[#allocation22 + $0x5f4] ss:$8 sps:$4 sm:$0xff]  }
0x2029   :  { %v6822_v8 = vadd.f32 %v6806_v3, %v12106_v43  ;;  %v6824_v15 = vadd.f32 %v6808_v33, %v12108_v0  ;;  %v6814_v16 = vmul.f32 %v6798_v41, %v12116_v9  ;;  %v6816_v47 = vmul.f32 %v6800_v44, %v12118_v34  ;;  %7750 = vmatpush1.bf16.msra.mxu0 %v10092_v55 }
0x202a   :  { %v6815_v11 = vmul.f32 %v6799_v6, %v12122_v58  ;;  %v6817_v13 = vmul.f32 %v6801_v5, %v12124_v24  ;;  %7751 = vmatprep.subr.bf16.mxu0 %v10097_v39  ;;  %v6823_v54 = vadd.f32 %v6807_v50, %v12110_v32  ;;  %v6825_v23 = vadd.f32 %v6809_v4, %v12112_v25  ;;  %v10115_v4 = vld [vmem:[#allocation22 + $0x604] ss:$8 sps:$4 sm:$0xff]  }
0x202b   :  { %v6838_v56 = vmul.f32 0.7978846, %v6822_v8  ;;  %v6840_v35 = vmul.f32 0.7978846, %v6824_v15  ;;  %v6830_v36 = vadd.f32 %v6814_v16, %v12116_v9  ;;  %v6832_v57 = vadd.f32 %v6816_v47, %v12118_v34 }
0x202c   :  { %v6831_v49 = vadd.f32 %v6815_v11, %v12122_v58  ;;  %v6839_v14 = vmul.f32 0.7978846, %v6823_v54  ;;  %v6833_v19 = vadd.f32 %v6817_v13, %v12124_v24  ;;  %v6841_v38 = vmul.f32 0.7978846, %v6825_v23  ;;  %v10127_v23 = vld [vmem:[#allocation22 + $0x644] ss:$8 sps:$4 sm:$0xff]  }
0x202d   :  { %10369 = vtanh.f32 %v6838_v56  ;;  %v6846_v42 = vmul.f32 0.7978846, %v6830_v36  ;;  %v6848_v60 = vmul.f32 0.7978846, %v6832_v57  ;;  %7752 = vmatpush1.bf16.msra.mxu0 %v10095_v12  ;;  %v6758_v1 = vmul.f32 0.5, %v12106_v43 }
0x202e   :  { %10371 = vtanh.f32 %v6840_v35  ;;  %7753 = vmatprep.subr.bf16.mxu0 %v10100_v7  ;;  %v6847_v31 = vmul.f32 0.7978846, %v6831_v49  ;;  %v6849_v48 = vmul.f32 0.7978846, %v6833_v19  ;;  %v6766_v27 = vmul.f32 0.5, %v12116_v9 }
0x202f   :  { %10373 = vtanh.f32 %v6846_v42  ;;  %v6760_v33 = vmul.f32 0.5, %v12108_v0  ;;  %v6768_v41 = vmul.f32 0.5, %v12118_v34  ;;  %v6759_v6 = vmul.f32 0.5, %v12110_v32  ;;  %v10110_v43 = vld [vmem:[#allocation22 + $0x5f0] ss:$8 sps:$4 sm:$0xff]  }
0x2030   :  { %10375 = vtanh.f32 %v6848_v60  ;;  %v6767_v9 = vmul.f32 0.5, %v12122_v58  ;;  %v6761_v11 = vmul.f32 0.5, %v12112_v25  ;;  %v6769_v13 = vmul.f32 0.5, %v12124_v24  ;;  %v10113_v57 = vld [vmem:[#allocation22 + $0x600] ss:$8 sps:$4 sm:$0xff]  }
0x2031   :  { %7754 = vmatpush1.bf16.msra.mxu0 %v10098_v18  ;;  %10377 = vtanh.f32 %v6839_v14  ;;  %v10118_v60 = vld [vmem:[#allocation22 + $0x614] ss:$8 sps:$4 sm:$0xff]   ;;  %v10116_v24 = vld [vmem:[#allocation22 + $0x610] ss:$8 sps:$4 sm:$0xff]   ;;  %v10121_v18 = vld [vmem:[#allocation22 + $0x624] ss:$8 sps:$4 sm:$0xff]  }
0x2032   :  { %7755 = vmatprep.subr.bf16.mxu0 %v10103_v21  ;;  %10379 = vtanh.f32 %v6847_v31  ;;  %v10119_v21 = vld [vmem:[#allocation22 + $0x620] ss:$8 sps:$4 sm:$0xff]   ;;  %v10124_v14 = vld [vmem:[#allocation22 + $0x634] ss:$8 sps:$4 sm:$0xff]   ;;  %v10122_v31 = vld [vmem:[#allocation22 + $0x630] ss:$8 sps:$4 sm:$0xff]  }
0x2033   :  { %10381 = vtanh.f32 %v6841_v38  ;;  %v10125_v19 = vld [vmem:[#allocation22 + $0x640] ss:$8 sps:$4 sm:$0xff]   ;;  %v10136_v38 = vld [vmem:[#allocation22 + $0x674] ss:$8 sps:$4 sm:$0xff]  }
0x2034   :  { %10383 = vtanh.f32 %v6849_v48  ;;  %v10134_v48 = vld [vmem:[#allocation22 + $0x670] ss:$8 sps:$4 sm:$0xff]  }
0x2035   :  { %7756 = vmatpush1.bf16.msra.mxu0 %v10101_v28  ;;  %v10130_v28 = vld [vmem:[#allocation22 + $0x654] ss:$8 sps:$4 sm:$0xff]  }
0x2036   :  { %7757 = vmatprep.subr.bf16.mxu0 %v10106_v52  ;;  %v10139_v52 = vld [vmem:[#allocation22 + $0x684] ss:$8 sps:$4 sm:$0xff]  }
0x2037   :  { %v10370_v26 = vpop.eup %10369 }
0x2038   :  { %v10372_v53 = vpop.eup %10371  ;;  %v6870_v51 = vadd.f32 1.0, %v10370_v26  ;;  %v10140_v26 = vld [vmem:[#allocation22 + $0x690] ss:$8 sps:$4 sm:$0xff]  }
0x2039   :  { %v10374_v37 = vpop.eup %10373  ;;  %7758 = vmatpush1.bf16.msra.mxu0 %v10104_v46  ;;  %v6872_v55 = vadd.f32 1.0, %v10372_v53  ;;  %v10137_v46 = vld [vmem:[#allocation22 + $0x680] ss:$8 sps:$4 sm:$0xff]   ;;  %v10145_v53 = vld [vmem:[#allocation22 + $0x6a4] ss:$8 sps:$4 sm:$0xff]  }
0x203a   :  { %v10376_v62 = vpop.eup %10375  ;;  %7759 = vmatprep.subr.bf16.mxu0 %v10109_v20  ;;  %v6878_v39 = vadd.f32 1.0, %v10374_v37  ;;  %v12159_v8 = vmul.f32 %v6870_v51, %v6758_v1  ;;  %v10142_v20 = vld [vmem:[#allocation22 + $0x694] ss:$8 sps:$4 sm:$0xff]   ;;  %v10143_v51 = vld [vmem:[#allocation22 + $0x6a0] ss:$8 sps:$4 sm:$0xff]  }
0x203b   :  { %v10378_v3 = vpop.eup %10377  ;;  %v6880_v44 = vadd.f32 1.0, %v10376_v62  ;;  %v12164_v12 = vmul.f32 %v6872_v55, %v6760_v33  ;;  %v10148_v37 = vld [vmem:[#allocation22 + $0x6b4] ss:$8 sps:$4 sm:$0xff]   ;;  %v10151_v55 = vld [vmem:[#allocation22 + $0x6c4] ss:$8 sps:$4 sm:$0xff]  }
0x203c   :  { %v10380_v50 = vpop.eup %10379  ;;  %v6871_v5 = vadd.f32 1.0, %v10378_v3  ;;  %v12161_v15 = vmul.f32 %v6878_v39, %v6766_v27  ;;  %v10149_v62 = vld [vmem:[#allocation22 + $0x6c0] ss:$8 sps:$4 sm:$0xff]   ;;  %v10152_v1 = vld [vmem:[#allocation22 + $0x6d0] ss:$8 sps:$4 sm:$0xff]  }
0x203d   :  { %v10382_v16 = vpop.eup %10381  ;;  %7760 = vmatpush1.bf16.msra.mxu0 %v10107_v63  ;;  %v6879_v47 = vadd.f32 1.0, %v10380_v50  ;;  %v12166_v0 = vmul.f32 %v6880_v44, %v6768_v41  ;;  %v10146_v63 = vld [vmem:[#allocation22 + $0x6b0] ss:$8 sps:$4 sm:$0xff]   ;;  %v10157_v27 = vld [vmem:[#allocation22 + $0x6e4] ss:$8 sps:$4 sm:$0xff]  }
0x203e   :  { %v10384_v34 = vpop.eup %10383  ;;  %7761 = vmatprep.subr.bf16.mxu0 %v10112_v10  ;;  %v6902_v32 = vpack.c.bf16 %v12161_v15, %v12159_v8  ;;  %v6873_v7 = vadd.f32 1.0, %v10382_v16  ;;  %v6887_v56 = vmul.f32 %v6871_v5, %v6759_v6  ;;  %v10154_v10 = vld [vmem:[#allocation22 + $0x6d4] ss:$8 sps:$4 sm:$0xff]   ;;  %v10155_v39 = vld [vmem:[#allocation22 + $0x6e0] ss:$8 sps:$4 sm:$0xff]  }
0x203f   :  { %v6895_v35 = vmul.f32 %v6879_v47, %v6767_v9  ;;  %v6881_v36 = vadd.f32 1.0, %v10384_v34  ;;  %v6904_v58 = vpack.c.bf16 %v12166_v0, %v12164_v12  ;;  %v10160_v3 = vld [vmem:[#allocation22 + $0x6f4] ss:$8 sps:$4 sm:$0xff]   ;;  %v10158_v33 = vld [vmem:[#allocation22 + $0x6f0] ss:$8 sps:$4 sm:$0xff]  }
0x2040   :  { %v12174_v49 = vmul.f32 %v6873_v7, %v6761_v11  ;;  %v10163_v41 = vld [vmem:[#allocation22 + $0x704] ss:$8 sps:$4 sm:$0xff]   ;;  %v10161_v44 = vld [vmem:[#allocation22 + $0x700] ss:$8 sps:$4 sm:$0xff]   ;;  %v10166_v50 = vld [vmem:[#allocation22 + $0x714] ss:$8 sps:$4 sm:$0xff]  }
0x2041   :  { %7762 = vmatpush1.bf16.msra.mxu0 %v10110_v43  ;;  %v6903_v54 = vpack.c.bf16 %v6895_v35, %v6887_v56  ;;  %v12176_v42 = vmul.f32 %v6881_v36, %v6769_v13  ;;  %v10164_v6 = vld [vmem:[#allocation22 + $0x710] ss:$8 sps:$4 sm:$0xff]   ;;  %v10169_v5 = vld [vmem:[#allocation22 + $0x724] ss:$8 sps:$4 sm:$0xff]   ;;  %v10167_v16 = vld [vmem:[#allocation22 + $0x720] ss:$8 sps:$4 sm:$0xff]  }
0x2042   :  { %7774 = vmatprep.subr.bf16.mxu0 %v10115_v4  ;;  %v10172_v43 = vld [vmem:[#allocation22 + $0x734] ss:$8 sps:$4 sm:$0xff]   ;;  %v10170_v9 = vld [vmem:[#allocation22 + $0x730] ss:$8 sps:$4 sm:$0xff]   ;;  %v10175_v47 = vld [vmem:[#allocation22 + $0x744] ss:$8 sps:$4 sm:$0xff]  }
0x2043   :  { %v6905_v25 = vpack.c.bf16 %v12176_v42, %v12174_v49  ;;  %v10173_v34 = vld [vmem:[#allocation22 + $0x740] ss:$8 sps:$4 sm:$0xff]   ;;  %v10178_v8 = vld [vmem:[#allocation22 + $0x754] ss:$8 sps:$4 sm:$0xff]   ;;  %v10176_v15 = vld [vmem:[#allocation22 + $0x750] ss:$8 sps:$4 sm:$0xff]  }
0x2044   :  { %7764 = vmatmul.mubr.bf16.vlgmr.msra.gmra.mrb[48].mxu0 %v6900_v40  ;;  %v10131_v40 = vld [vmem:[#allocation22 + $0x660] ss:$8 sps:$4 sm:$0xff]   ;;  %v10181_v4 = vld [vmem:[#allocation22 + $0x764] ss:$8 sps:$4 sm:$0xff]   ;;  %v10184_v11 = vld [vmem:[#allocation22 + $0x774] ss:$8 sps:$4 sm:$0xff]  }
0x2045   :  { %7775 = vmatpush1.bf16.msra.mxu0 %v10113_v57  ;;  %7806 = vmatprep.mubr.bf16.mxu0 %v6903_v54  ;;  %v10182_v13 = vld [vmem:[#allocation22 + $0x770] ss:$8 sps:$4 sm:$0xff]   ;;  %v10187_v7 = vld [vmem:[#allocation22 + $0x784] ss:$8 sps:$4 sm:$0xff]   ;;  %v10185_v56 = vld [vmem:[#allocation22 + $0x780] ss:$8 sps:$4 sm:$0xff]  }
0x2046   :  { %7776 = vmatprep.subr.bf16.mxu0 %v10118_v60  ;;  %v10190_v35 = vld [vmem:[#allocation22 + $0x794] ss:$8 sps:$4 sm:$0xff]   ;;  %v10188_v36 = vld [vmem:[#allocation22 + $0x790] ss:$8 sps:$4 sm:$0xff]   ;;  %v10193_v57 = vld [vmem:[#allocation22 + $0x7a4] ss:$8 sps:$4 sm:$0xff]  }
0x2047   :  { %v10191_v54 = vld [vmem:[#allocation22 + $0x7a0] ss:$8 sps:$4 sm:$0xff]   ;;  %v10196_v49 = vld [vmem:[#allocation22 + $0x7b4] ss:$8 sps:$4 sm:$0xff]   ;;  %v10194_v42 = vld [vmem:[#allocation22 + $0x7b0] ss:$8 sps:$4 sm:$0xff]  }
0x2048   :  { %v10199_v60 = vld [vmem:[#allocation22 + $0x7c4] ss:$8 sps:$4 sm:$0xff]  }
0x2049   :  { %7777 = vmatpush1.bf16.msra.mxu0 %v10116_v24  ;;  %v10202_v24 = vld [vmem:[#allocation22 + $0x7d4] ss:$8 sps:$4 sm:$0xff]  }
0x204a   :  { %7778 = vmatprep.subr.bf16.mxu0 %v10121_v18  ;;  %v10200_v18 = vld [vmem:[#allocation22 + $0x7d0] ss:$8 sps:$4 sm:$0xff]  }
0x204d   :  { %7779 = vmatpush1.bf16.msra.mxu0 %v10119_v21  ;;  %v10205_v21 = vld [vmem:[#allocation22 + $0x7e4] ss:$8 sps:$4 sm:$0xff]  }
0x204e   :  { %7780 = vmatprep.subr.bf16.mxu0 %v10124_v14  ;;  %v10203_v14 = vld [vmem:[#allocation22 + $0x7e0] ss:$8 sps:$4 sm:$0xff]  }
0x2051   :  { %7781 = vmatpush1.bf16.msra.mxu0 %v10122_v31  ;;  %v10208_v31 = vld [vmem:[#allocation22 + $0x7f4] ss:$8 sps:$4 sm:$0xff]  }
0x2052   :  { %7782 = vmatprep.subr.bf16.mxu0 %v10127_v23  ;;  %v10206_v23 = vld [vmem:[#allocation22 + $0x7f0] ss:$8 sps:$4 sm:$0xff]  }
0x2055   :  { %7783 = vmatpush1.bf16.msra.mxu0 %v10125_v19  ;;  %v7036_v19 = vld [vmem:[#allocation23 + $0x2] sm:$0x3] }
0x2056   :  { %7784 = vmatprep.subr.bf16.mxu0 %v10130_v28  ;;  %v7041_v28 = vrot.slane %v7036_v19, %v11332_v30 }
0x2059   :  { %7785 = vmatpush1.bf16.msra.mxu0 %v10128_v59  ;;  %v7045_v59 = vrot.slane %v7036_v19, %v11329_v29 }
0x205a   :  { %7786 = vmatprep.subr.bf16.mxu0 %v10133_v61 }
0x205d   :  { %7787 = vmatpush1.bf16.msra.mxu0 %v10131_v40 }
0x205e   :  { %7788 = vmatprep.subr.bf16.mxu0 %v10136_v38 }
0x2061   :  { %7789 = vmatpush1.bf16.msra.mxu0 %v10134_v48 }
0x2062   :  { %7790 = vmatprep.subr.bf16.mxu0 %v10139_v52 }
0x2065   :  { %7791 = vmatpush1.bf16.msra.mxu0 %v10137_v46 }
0x2066   :  { %7792 = vmatprep.subr.bf16.mxu0 %v10142_v20 }
0x2069   :  { %7793 = vmatpush1.bf16.msra.mxu0 %v10140_v26 }
0x206a   :  { %7794 = vmatprep.subr.bf16.mxu0 %v10145_v53 }
0x206d   :  { %7795 = vmatpush1.bf16.msra.mxu0 %v10143_v51 }
0x206e   :  { %7796 = vmatprep.subr.bf16.mxu0 %v10148_v37 }
0x2071   :  { %7797 = vmatpush1.bf16.msra.mxu0 %v10146_v63  ;;  %v10209_v63 = vld [vmem:[#allocation29 + $0x40] sm:$0xff]  }
0x2072   :  { %7798 = vmatprep.subr.bf16.mxu0 %v10151_v55  ;;  %v10210_v55 = vld [vmem:[#allocation29] sm:$0xff]   ;;  %9254 = vmatprep.subr.bf16.mxu1 %v10209_v63 }
0x2073   :  { %9255 = vmatpush3.bf16.msra.mxu1 %v10210_v55 }
0x2075   :  { %7799 = vmatpush1.bf16.msra.mxu0 %v10149_v62  ;;  %v10211_v62 = vld [vmem:[#allocation29 + $0x48] sm:$0xff]  }
0x2076   :  { %7800 = vmatprep.subr.bf16.mxu0 %v10154_v10  ;;  %v10212_v10 = vld [vmem:[#allocation29 + $0x8] sm:$0xff]   ;;  %9256 = vmatprep.subr.bf16.mxu1 %v10211_v62 }
0x2077   :  { %9257 = vmatpush3.bf16.msra.mxu1 %v10212_v10  ;;  %v10225_v62 = vld [vmem:[#allocation28] ss:$8 sps:$4 sm:$0xff]  }
0x2079   :  { %7801 = vmatpush1.bf16.msra.mxu0 %v10152_v1  ;;  %v10214_v1 = vld [vmem:[#allocation29 + $0x10] sm:$0xff]  }
0x207a   :  { %7802 = vmatprep.subr.bf16.mxu0 %v10157_v27 }
0x207d   :  { %7803 = vmatpush1.bf16.msra.mxu0 %v10155_v39 }
0x207e   :  { %7804 = vmatprep.subr.bf16.mxu0 %v10160_v3 }
0x2081   :  { %7805 = vmatpush1.bf16.msra.mxu0 %v10158_v33 }
0x2082   :  { %7817 = vmatprep.subr.bf16.mxu0 %v10163_v41 }
0x2084   :  { %7807 = vmatmul.mubr.bf16.vlgmr.msra.gmra.mrb[48].mxu0 %v6902_v32  ;;  %v10179_v32 = vld [vmem:[#allocation22 + $0x760] ss:$8 sps:$4 sm:$0xff]  }
0x2085   :  { %7818 = vmatpush1.bf16.msra.mxu0 %v10161_v44  ;;  %7849 = vmatprep.mubr.bf16.mxu0 %v6905_v25  ;;  %v10197_v25 = vld [vmem:[#allocation22 + $0x7c0] ss:$8 sps:$4 sm:$0xff]  }
0x2086   :  { %7819 = vmatprep.subr.bf16.mxu0 %v10166_v50 }
0x2089   :  { %7820 = vmatpush1.bf16.msra.mxu0 %v10164_v6 }
0x208a   :  { %7821 = vmatprep.subr.bf16.mxu0 %v10169_v5 }
0x208d   :  { %7822 = vmatpush1.bf16.msra.mxu0 %v10167_v16 }
0x208e   :  { %7823 = vmatprep.subr.bf16.mxu0 %v10172_v43 }
0x2091   :  { %7824 = vmatpush1.bf16.msra.mxu0 %v10170_v9  ;;  %v10215_v9 = vld [vmem:[#allocation29 + $0x58] sm:$0xff]  }
0x2092   :  { %7825 = vmatprep.subr.bf16.mxu0 %v10175_v47  ;;  %v10216_v47 = vld [vmem:[#allocation29 + $0x18] sm:$0xff]  }
0x2095   :  { %7826 = vmatpush1.bf16.msra.mxu0 %v10173_v34  ;;  %v10217_v34 = vld [vmem:[#allocation29 + $0x60] sm:$0xff]  }
0x2096   :  { %7827 = vmatprep.subr.bf16.mxu0 %v10178_v8  ;;  %v10218_v8 = vld [vmem:[#allocation29 + $0x20] sm:$0xff]  }
0x2099   :  { %7828 = vmatpush1.bf16.msra.mxu0 %v10176_v15  ;;  %v10219_v15 = vld [vmem:[#allocation29 + $0x68] sm:$0xff]  }
0x209a   :  { %7829 = vmatprep.subr.bf16.mxu0 %v10181_v4  ;;  %v10220_v4 = vld [vmem:[#allocation29 + $0x28] sm:$0xff]  }
0x209d   :  { %7830 = vmatpush1.bf16.msra.mxu0 %v10179_v32  ;;  %v10221_v32 = vld [vmem:[#allocation29 + $0x70] sm:$0xff]  }
0x209e   :  { %7831 = vmatprep.subr.bf16.mxu0 %v10184_v11  ;;  %v10222_v11 = vld [vmem:[#allocation29 + $0x30] sm:$0xff]  }
0x20a1   :  { %7832 = vmatpush1.bf16.msra.mxu0 %v10182_v13  ;;  %v10223_v13 = vld [vmem:[#allocation29 + $0x78] sm:$0xff]  }
0x20a2   :  { %7833 = vmatprep.subr.bf16.mxu0 %v10187_v7  ;;  %v10224_v7 = vld [vmem:[#allocation29 + $0x38] sm:$0xff]  }
0x20a5   :  { %7834 = vmatpush1.bf16.msra.mxu0 %v10185_v56  ;;  %v10227_v56 = vld [vmem:[#allocation28 + $0x4] ss:$8 sps:$4 sm:$0xff]  }
0x20a6   :  { %7835 = vmatprep.subr.bf16.mxu0 %v10190_v35 }
0x20a9   :  { %7836 = vmatpush1.bf16.msra.mxu0 %v10188_v36 }
0x20aa   :  { %7837 = vmatprep.subr.bf16.mxu0 %v10193_v57 }
0x20ad   :  { %7838 = vmatpush1.bf16.msra.mxu0 %v10191_v54 }
0x20ae   :  { %7839 = vmatprep.subr.bf16.mxu0 %v10196_v49 }
0x20b1   :  { %7840 = vmatpush1.bf16.msra.mxu0 %v10194_v42 }
0x20b2   :  { %7841 = vmatprep.subr.bf16.mxu0 %v10199_v60  ;;  %v7864_v60 = vld [vmem:[#allocation25] sm:$0x3] }
0x20b5   :  { %7842 = vmatpush1.bf16.msra.mxu0 %v10197_v25  ;;  %v7865_v25 = vld [vmem:[#allocation26] sm:$0x3] }
0x20b6   :  { %7843 = vmatprep.subr.bf16.mxu0 %v10202_v24  ;;  %v7902_v24 = vrot.slane %v7864_v60, %v11332_v30  ;;  %v7921_v19 = vrot.slane %v7865_v25, %v11329_v29 }
0x20b9   :  { %7844 = vmatpush1.bf16.msra.mxu0 %v10200_v18  ;;  %v7906_v18 = vrot.slane %v7864_v60, %v11329_v29 }
0x20ba   :  { %7845 = vmatprep.subr.bf16.mxu0 %v10205_v21 }
0x20bd   :  { %7846 = vmatpush1.bf16.msra.mxu0 %v10203_v14 }
0x20be   :  { %7847 = vmatprep.subr.bf16.mxu0 %v10208_v31 }
0x20c1   :  { %7848 = vmatpush1.bf16.msra.mxu0 %v10206_v23  ;;  %v7917_v23 = vrot.slane %v7865_v25, %v11332_v30 }
0x20c4   :  { %7850 = vmatmul.mubr.bf16.vlgmr.msra.gmra.mrb[48].mxu0 %v6904_v58 }
0x2197   :  { %v7851_v61 = vpop.f32.mrb[48].mxu0 }
0x2198   :  { %v9376_v40 = vadd.f32 %v7851_v61, %v7041_v28  ;;  %v7853_v38 = vpop.f32.mrb[49].mxu0 }
0x2199   :  { %v9377_v48 = vadd.f32 %v7853_v38, %v7045_v59  ;;  %v7855_v52 = vpop.f32.mrb[50].mxu0 }
0x219a   :  { %v7860_v46 = vadd.f32 %v9376_v40, %v11966_v22  ;;  %v9378_v20 = vadd.f32 %v7855_v52, %v7041_v28  ;;  %v7857_v26 = vpop.f32.mrb[51].mxu0  ;;  %v10213_v22 = vld [vmem:[#allocation29 + $0x50] sm:$0xff]  }
0x219b   :  { %v7861_v53 = vadd.f32 %v9377_v48, %v11969_v45  ;;  %v9379_v51 = vadd.f32 %v7857_v26, %v7045_v59  ;;  %9258 = vmatprep.subr.bf16.mxu1 %v10213_v22  ;;  %v10230_v22 = vld [vmem:[#allocation28 + $0x14] ss:$8 sps:$4 sm:$0xff]  }
0x219c   :  { %v7862_v12 = vadd.f32 %v9378_v20, %v12007_v2  ;;  %9259 = vmatpush3.bf16.msra.mxu1 %v10214_v1  ;;  %v10228_v1 = vld [vmem:[#allocation28 + $0x10] ss:$8 sps:$4 sm:$0xff]  }
0x219d   :  { %v7863_v0 = vadd.f32 %v9379_v51, %v12010_v17  ;;  %v7866_v58 = vadd.f32 %v7861_v53, %v7860_v46  ;;  %9260 = vmatprep.subr.bf16.mxu1 %v10215_v9  ;;  %v7928_v51 = vld [vmem:[#allocation5] sm:$0xff]  ;;  %v10254_v9 = vld [vmem:[#allocation28 + $0x94] ss:$8 sps:$4 sm:$0xff]  }
0x219f   :  { %7867 = vadd.xlane.f32.xlu0 %v7866_v58  ;;  %v7869_v37 = vadd.f32 %v7863_v0, %v7862_v12 }
0x21a0   :  { %9261 = vmatpush3.bf16.msra.mxu1 %v10216_v47  ;;  %v10252_v47 = vld [vmem:[#allocation28 + $0x90] ss:$8 sps:$4 sm:$0xff]  }
0x21a1   :  { %7870 = vadd.xlane.f32.xlu1 %v7869_v37  ;;  %9262 = vmatprep.subr.bf16.mxu1 %v10217_v34  ;;  %v10257_v34 = vld [vmem:[#allocation28 + $0xa4] ss:$8 sps:$4 sm:$0xff]  }
0x21a4   :  { %9263 = vmatpush3.bf16.msra.mxu1 %v10218_v8  ;;  %v10255_v8 = vld [vmem:[#allocation28 + $0xa0] ss:$8 sps:$4 sm:$0xff]  }
0x21a5   :  { %9264 = vmatprep.subr.bf16.mxu1 %v10219_v15  ;;  %v10260_v15 = vld [vmem:[#allocation28 + $0xb4] ss:$8 sps:$4 sm:$0xff]  }
0x21a8   :  { %9265 = vmatpush3.bf16.msra.mxu1 %v10220_v4  ;;  %v10258_v4 = vld [vmem:[#allocation28 + $0xb0] ss:$8 sps:$4 sm:$0xff]  }
0x21a9   :  { %9266 = vmatprep.subr.bf16.mxu1 %v10221_v32  ;;  %v10263_v32 = vld [vmem:[#allocation28 + $0xc4] ss:$8 sps:$4 sm:$0xff]  }
0x21ac   :  { %9267 = vmatpush3.bf16.msra.mxu1 %v10222_v11  ;;  %v10261_v11 = vld [vmem:[#allocation28 + $0xc0] ss:$8 sps:$4 sm:$0xff]  }
0x21ad   :  { %9268 = vmatprep.subr.bf16.mxu1 %v10223_v13  ;;  %v10266_v13 = vld [vmem:[#allocation28 + $0xd4] ss:$8 sps:$4 sm:$0xff]  }
0x21b0   :  { %9269 = vmatpush3.bf16.msra.mxu1 %v10224_v7  ;;  %v10264_v7 = vld [vmem:[#allocation28 + $0xd0] ss:$8 sps:$4 sm:$0xff]  }
0x21b1   :  { %8308 = vmatprep.subr.bf16.mxu1 %v10227_v56  ;;  %v10269_v56 = vld [vmem:[#allocation28 + $0xe4] ss:$8 sps:$4 sm:$0xff]  }
0x222c   :  { %v7868_v45 = vpop.xlane.xlu0 %7867 }
0x222d   :  { %v7872_v2 = vmul.f32 0.00390625, %v7868_v45  ;;  %v10233_v45 = vld [vmem:[#allocation28 + $0x24] ss:$8 sps:$4 sm:$0xff]  }
0x222e   :  { %v7871_v27 = vpop.xlane.xlu1 %7870 }
0x222f   :  { %v7874_v17 = vsub.f32 %v7860_v46, %v7872_v2  ;;  %v7875_v39 = vsub.f32 %v7861_v53, %v7872_v2  ;;  %v7873_v3 = vmul.f32 0.00390625, %v7871_v27  ;;  %v7929_v46 = vld [vmem:[#allocation5 + $0x8] sm:$0xff]  ;;  %v7931_v53 = vld [vmem:[#allocation5 + $0x18] sm:$0xff] }
0x2230   :  { %v10231_v2 = vld [vmem:[#allocation28 + $0x20] ss:$8 sps:$4 sm:$0xff]   ;;  %v10236_v27 = vld [vmem:[#allocation28 + $0x34] ss:$8 sps:$4 sm:$0xff]  }
0x2231   :  { %v7876_v33 = vsub.f32 %v7862_v12, %v7873_v3  ;;  %v7877_v41 = vsub.f32 %v7863_v0, %v7873_v3  ;;  %v7878_v44 = vmul.f32 %v7874_v17, %v7874_v17  ;;  %v7879_v50 = vmul.f32 %v7875_v39, %v7875_v39  ;;  %v7930_v12 = vld [vmem:[#allocation5 + $0x10] sm:$0xff]  ;;  %v10237_v3 = vld [vmem:[#allocation28 + $0x40] ss:$8 sps:$4 sm:$0xff]  }
0x2233   :  { %v7882_v6 = vadd.f32 %v7879_v50, %v7878_v44  ;;  %v7880_v5 = vmul.f32 %v7876_v33, %v7876_v33  ;;  %v7881_v16 = vmul.f32 %v7877_v41, %v7877_v41  ;;  %v10245_v44 = vld [vmem:[#allocation28 + $0x64] ss:$8 sps:$4 sm:$0xff]   ;;  %v10243_v50 = vld [vmem:[#allocation28 + $0x60] ss:$8 sps:$4 sm:$0xff]  }
0x2235   :  { %7883 = vadd.xlane.f32.xlu0 %v7882_v6  ;;  %v7885_v43 = vadd.f32 %v7881_v16, %v7880_v5  ;;  %v10248_v6 = vld [vmem:[#allocation28 + $0x74] ss:$8 sps:$4 sm:$0xff]   ;;  %v10246_v5 = vld [vmem:[#allocation28 + $0x70] ss:$8 sps:$4 sm:$0xff]   ;;  %v10251_v16 = vld [vmem:[#allocation28 + $0x84] ss:$8 sps:$4 sm:$0xff]  }
0x2237   :  { %7886 = vadd.xlane.f32.xlu1 %v7885_v43  ;;  %v10249_v43 = vld [vmem:[#allocation28 + $0x80] ss:$8 sps:$4 sm:$0xff]  }
0x22c2   :  { %v7884_v35 = vpop.xlane.xlu0 %7883 }
0x22c3   :  { %v7888_v36 = vmul.f32 0.00390625, %v7884_v35  ;;  %v10267_v35 = vld [vmem:[#allocation28 + $0xe0] ss:$8 sps:$4 sm:$0xff]  }
0x22c4   :  { %v7887_v57 = vpop.xlane.xlu1 %7886 }
0x22c5   :  { %v7890_v54 = vadd.f32 1e-05, %v7888_v36  ;;  %v7889_v49 = vmul.f32 0.00390625, %v7887_v57  ;;  %v10272_v36 = vld [vmem:[#allocation28 + $0xf4] ss:$8 sps:$4 sm:$0xff]  }
0x22c6   :  { %v10270_v57 = vld [vmem:[#allocation28 + $0xf0] ss:$8 sps:$4 sm:$0xff]  }
0x22c7   :  { %10385 = vrsqrt.f32 %v7890_v54  ;;  %v7891_v42 = vadd.f32 1e-05, %v7889_v49  ;;  %v9173_v49 = vld [vmem:[#allocation31] ss:$0 sm:$0xff] }
0x22c9   :  { %10387 = vrsqrt.f32 %v7891_v42 }
0x22d1   :  { %v10386_v21 = vpop.eup %10385 }
0x22d2   :  { %v7894_v14 = vmul.f32 %v10386_v21, %v7874_v17  ;;  %v7895_v31 = vmul.f32 %v10386_v21, %v7875_v39  ;;  %v10234_v17 = vld [vmem:[#allocation28 + $0x30] ss:$8 sps:$4 sm:$0xff]   ;;  %v10239_v39 = vld [vmem:[#allocation28 + $0x44] ss:$8 sps:$4 sm:$0xff]  }
0x22d3   :  { %v10388_v28 = vpop.eup %10387 }
0x22d4   :  { %v7896_v59 = vmul.f32 %v10388_v28, %v7876_v33  ;;  %v7897_v61 = vmul.f32 %v10388_v28, %v7877_v41  ;;  %v7910_v40 = vmul.f32 %v7906_v18, %v7895_v31  ;;  %v7909_v38 = vmul.f32 %v7902_v24, %v7894_v14  ;;  %v10242_v33 = vld [vmem:[#allocation28 + $0x54] ss:$8 sps:$4 sm:$0xff]   ;;  %v10240_v41 = vld [vmem:[#allocation28 + $0x50] ss:$8 sps:$4 sm:$0xff]  }
0x22d6   :  { %v7912_v48 = vmul.f32 %v7906_v18, %v7897_v61  ;;  %v7925_v52 = vadd.f32 %v7921_v19, %v7910_v40  ;;  %v7911_v20 = vmul.f32 %v7902_v24, %v7896_v59  ;;  %v7924_v26 = vadd.f32 %v7917_v23, %v7909_v38 }
0x22d8   :  { %v7927_v0 = vadd.f32 %v7921_v19, %v7912_v48  ;;  %v7926_v58 = vadd.f32 %v7917_v23, %v7911_v20  ;;  %v7933_v37 = vadd.f32 %v7929_v46, %v7925_v52  ;;  %v7932_v30 = vadd.f32 %v7928_v51, %v7924_v26 }
0x22da   :  { %v7935_v63 = vadd.f32 %v7931_v53, %v7927_v0  ;;  %v7934_v55 = vadd.f32 %v7930_v12, %v7926_v58 }
0x22dc   :  { %v7937_v29 = vpack.c.bf16 %v7935_v63, %v7933_v37  ;;  %v12202_v10 = vpack.c.bf16 %v7934_v55, %v7932_v30 }
0x22de   :  { %8105 = vmatprep.mubr.bf16.mxu1 %v7937_v29 }
0x22df   :  { %8106 = vmatmul.mubr.bf16.vlgmr.msra.gmra.mrb[108].mxu1 %v12202_v10 }
0x22e0   :  { %8309 = vmatpush1.bf16.xpose.msra.mxu1 %v10225_v62  ;;  %8340 = vmatprep.mubr.bf16.mxu1 %v7937_v29 }
0x22e1   :  { %8310 = vmatprep.subr.bf16.mxu1 %v10230_v22 }
0x22e8   :  { %8311 = vmatpush1.bf16.xpose.msra.mxu1 %v10228_v1 }
0x22e9   :  { %8312 = vmatprep.subr.bf16.mxu1 %v10233_v45 }
0x22f0   :  { %8313 = vmatpush1.bf16.xpose.msra.mxu1 %v10231_v2 }
0x22f1   :  { %8314 = vmatprep.subr.bf16.mxu1 %v10236_v27 }
0x22f8   :  { %8315 = vmatpush1.bf16.xpose.msra.mxu1 %v10234_v17 }
0x22f9   :  { %8316 = vmatprep.subr.bf16.mxu1 %v10239_v39 }
0x2300   :  { %8317 = vmatpush1.bf16.xpose.msra.mxu1 %v10237_v3 }
0x2301   :  { %8318 = vmatprep.subr.bf16.mxu1 %v10242_v33 }
0x2308   :  { %8319 = vmatpush1.bf16.xpose.msra.mxu1 %v10240_v41 }
0x2309   :  { %8320 = vmatprep.subr.bf16.mxu1 %v10245_v44 }
0x2310   :  { %8321 = vmatpush1.bf16.xpose.msra.mxu1 %v10243_v50 }
0x2311   :  { %8322 = vmatprep.subr.bf16.mxu1 %v10248_v6 }
0x2318   :  { %8323 = vmatpush1.bf16.xpose.msra.mxu1 %v10246_v5 }
0x2319   :  { %8324 = vmatprep.subr.bf16.mxu1 %v10251_v16 }
0x2320   :  { %8325 = vmatpush1.bf16.xpose.msra.mxu1 %v10249_v43 }
0x2321   :  { %8326 = vmatprep.subr.bf16.mxu1 %v10254_v9 }
0x2328   :  { %8327 = vmatpush1.bf16.xpose.msra.mxu1 %v10252_v47 }
0x2329   :  { %8328 = vmatprep.subr.bf16.mxu1 %v10257_v34 }
0x2330   :  { %8329 = vmatpush1.bf16.xpose.msra.mxu1 %v10255_v8 }
0x2331   :  { %8330 = vmatprep.subr.bf16.mxu1 %v10260_v15 }
0x2338   :  { %8331 = vmatpush1.bf16.xpose.msra.mxu1 %v10258_v4 }
0x2339   :  { %8332 = vmatprep.subr.bf16.mxu1 %v10263_v32 }
0x2340   :  { %8333 = vmatpush1.bf16.xpose.msra.mxu1 %v10261_v11 }
0x2341   :  { %8334 = vmatprep.subr.bf16.mxu1 %v10266_v13 }
0x2348   :  { %8335 = vmatpush1.bf16.xpose.msra.mxu1 %v10264_v7 }
0x2349   :  { %8336 = vmatprep.subr.bf16.mxu1 %v10269_v56 }
0x2350   :  { %8337 = vmatpush1.bf16.xpose.msra.mxu1 %v10267_v35 }
0x2351   :  { %8338 = vmatprep.subr.bf16.mxu1 %v10272_v36 }
0x2358   :  { %8339 = vmatpush1.bf16.xpose.msra.mxu1 %v10270_v57 }
0x235f   :  { %8341 = vmatmul.mubr.bf16.vlgmr.msra.gmra.mrb[112].mxu1 %v12202_v10 }
0x23b2   :  { %v9270_v54 = vpop.f32.mrb[108].mxu1 }
0x23b3   :  { %v9271_v42 = vpop.f32.mrb[109].mxu1 }
0x23b4   :  { %v9272_v60 = vadd.f32 %v9271_v42, %v9270_v54  ;;  %v9273_v25 = vpop.f32.mrb[110].mxu1 }
0x23b5   :  { %v9274_v24 = vpop.f32.mrb[111].mxu1 }
0x23b6   :  { %v8108_v18 = vadd.f32 %v9272_v60, %v9173_v49  ;;  %v9275_v21 = vadd.f32 %v9274_v24, %v9273_v25 }
0x23b8   :  { %8114 = vst [vmem:[#allocation32] sm:$0xff] %v8108_v18  ;;  %v8111_v14 = vadd.f32 %v9275_v21, %v9173_v49 }
0x23ba   :  { %8115 = vst [vmem:[#allocation32 + $0x8] sm:$0xff] %v8111_v14 }
0x23bb   :  { %10822 = shalt.err (!%p10819_p2)
}
0x23bc   :  { %s12287_s13 = sld [smem:[#allocation53_spill]] }
0x23c2   :  { %s10823_s4 = scalar_lea.hbm %s12287_s13, 256 }
0x23c3   :  { %p10824_p3 = scmp.ne.s32.totalorder %s12287_s13, %s10823_s4  ;;  %p10827_p4 = scmp.lt.u32.totalorder %s10823_s4, %s12287_s13 }
0x23c5   :  { %p10829_p5 = pnand %p10827_p4, %p10824_p3 }
0x23c7   :  { %10832 = shalt.err (!%p10829_p5)
}
0x23c8   :  { %8366 = dma.vmem_to_hbm [thread:$0]  %s8361_s9, 256, %s12287_s13, [#allocation4], %s10892_s1, %s10892_s1, %s10893_s20  }
0x23c9   :  { %s10915_s10 = smov [#allocation33]  }
0x23ca   :  { %s8372_s2 = sshll.u32 %s10915_s10, 4  ;;  %s8373_s2 = int_to_ptr.vmem [resolvable:$true] %s8372_s2 }
0x23cb   :  { %s10833_s26 = scalar_lea.vmem %s8373_s2, 512  ;;  %p10838_p7 = scmp.lt.s32.totalorder %s8373_s2, %s8373_s2 }
0x23cc   :  { %p10834_p6 = scmp.ne.s32.totalorder %s8373_s2, %s10833_s26  ;;  %p10839_p8 = scmp.lt.s32.totalorder %s10833_s26, %s10833_s26 }
0x23ce   :  { %p10840_p9 = por %p10839_p8, %p10838_p7 }
0x23d0   :  { %p10841_p10 = pnand %p10840_p9, %p10834_p6 }
0x2432   :  { %v8342_v31 = vpop.f32.mrb[112].mxu1 }
0x2433   :  { %8351 = vst [vmem:[#allocation33] sm:$0xff] %v8342_v31  ;;  %v8344_v23 = vpop.f32.mrb[113].mxu1 }
0x2434   :  { %8352 = vst [vmem:[#allocation33 + $0x8] sm:$0xff] %v8344_v23  ;;  %v8346_v19 = vpop.f32.mrb[114].mxu1 }
0x2435   :  { %8353 = vst [vmem:[#allocation33 + $0x10] sm:$0xff] %v8346_v19  ;;  %v8348_v28 = vpop.f32.mrb[115].mxu1 }
0x2436   :  { %8354 = vst [vmem:[#allocation33 + $0x18] sm:$0xff] %v8348_v28 }
0x2437   :  { %10844 = shalt.err (!%p10841_p10)
}
0x2438   :  { %s12288_s20 = sld [smem:[#allocation54_spill]] }
0x243e   :  { %s10845_s15 = scalar_lea.hbm %s12288_s20, 512 }
0x243f   :  { %p10846_p11 = scmp.ne.s32.totalorder %s12288_s20, %s10845_s15  ;;  %p10849_p12 = scmp.lt.u32.totalorder %s10845_s15, %s12288_s20 }
0x2441   :  { %p10851_p13 = pnand %p10849_p12, %p10846_p11 }
0x2443   :  { %10854 = shalt.err (!%p10851_p13)
}
0x2444   :  { %8378 = dma.vmem_to_hbm [thread:$0]  %s8373_s2, 512, %s12288_s20, [#allocation34], %s12281_s27, %s12281_s27, %s12280_s22  }
0x2445   :  { %10875 = dma.done.wait [#allocation4], 256  }
0x2446   :  { %10876 = vsyncadd [#allocation4], 4294967040 }
0x2447   :  { %10877 = dma.done.wait [#allocation34], 512  }
0x2448   :  { %10878 = vsyncadd [#allocation34], 4294966784 }
0x2449   :  { %8385 = vsyncpa [#allocation3], 1 }
0x244a   :  { %8386 = vsyncpa [#allocation6], 1 }
0x244b   :  { %8387 = vsyncpa [#allocation9], 1 }
0x244c   :  { %8388 = vsyncpa [#allocation12], 1 }
0x244d   :  { %8389 = vsyncpa [#allocation15], 1 }
0x244e   :  { %8390 = vsyncpa [#allocation18], 1 }
0x244f   :  { %8391 = vsyncpa [#allocation21], 1 }
0x2450   :  { %8392 = vsyncpa [#allocation24], 1 }
0x2451   :  { %8393 = vsyncpa [#allocation27], 1 }
0x2452   :  { %8394 = vsyncpa [#allocation30], 1 }
0x2453   :  { %8395 = vsyncpa [#allocation4], 1 }
0x2454   :  { %8396 = vsyncpa [#allocation34], 1 }

</bundles_post_ra>
